<compile_context>
chip_gen: v7x
topology: tpu7x:2x2x1
jax: 0.10.0
libtpu: 0.0.40
codegen_flags: <defaults>
</compile_context>

<pallas_src>
import functools

import jax
import jax.numpy as jnp
import numpy as np
from jax import lax
from jax.experimental import pallas as pl
from jax.experimental.pallas import tpu as pltpu


def _round_up(x, m):
    return (x + m - 1) // m * m


# ---------------------------------------------------------------------------
# Conv2d(k=3, pad=1) with fused bias + (InstanceNorm) + LeakyReLU epilogue
# ---------------------------------------------------------------------------
def _conv_fused_kernel(x_ref, w_ref, b_ref, m_ref, o_ref, *scratch,
                       taps, ho, wop, row_chunk, leaky, norm, inv_n):
    # x_ref: (1, P, Hx, Wx, Ck) bf16  prepared input (halo-padded / col-im2col'd / im2col'd)
    # w_ref: (T, Ck, Cp)        bf16  per-tap weights
    # b_ref: (1, Cp)            f32   bias (padded channels are zero)
    # m_ref: (Ho*Wop, 1)        f32   column-validity mask (1 on cols < Wo, else 0)
    # o_ref: (1, Ho, Wop, Cp)   bf16/f32 output; padded cols/channels are written as zero
    cp = o_ref.shape[-1]
    bias = b_ref[...]
    acc_ref = scratch[0] if norm else None

    for h0 in range(0, ho, row_chunk):                     # static loop, M ~ 512 per chunk
        th = min(row_chunk, ho - h0)
        acc = jnp.zeros((th * wop, cp), jnp.float32)
        for t, (p, ro, co) in enumerate(taps):
            a = x_ref[0, p, h0 + ro:h0 + ro + th, co:co + wop, :]
            a = a.reshape(th * wop, a.shape[-1])           # layout no-op (wop % 16 == 0)
            acc = acc + jnp.dot(a, w_ref[t], preferred_element_type=jnp.float32)
        y = acc + bias
        if norm:
            # Keep the exact f32 pre-norm result resident in VMEM for the stats epilogue.
            acc_ref[h0 * wop:(h0 + th) * wop, :] = y
        else:
            if leaky:
                y = jnp.where(y > 0.0, y, 0.2 * y)
            y = y * m_ref[h0 * wop:(h0 + th) * wop, :]     # zero the padded output columns
            o_ref[0, h0:h0 + th, :, :] = y.reshape(th, wop, cp).astype(o_ref.dtype)

    if norm:
        # Fused InstanceNorm (biased var, eps=1e-5) + LeakyReLU(0.2) over the valid Ho x Wo
        # region only; padded columns are excluded from the stats and forced to zero.
        mask = m_ref[...]                                  # (Ho*Wop, 1)
        accv = acc_ref[...]                                # (Ho*Wop, Cp) f32
        mean = jnp.sum(accv * mask, axis=0, keepdims=True) * inv_n
        c = (accv - mean) * mask
        var = jnp.sum(c * c, axis=0, keepdims=True) * inv_n
        y = c * lax.rsqrt(var + 1e-5)
        y = jnp.where(y > 0.0, y, 0.2 * y)
        o_ref[0] = y.reshape(ho, wop, cp).astype(o_ref.dtype)


def conv_block_pallas(x, w, b, stride, *, w_logical, norm, act, out_dtype=jnp.bfloat16):
    """One discriminator block: Conv2d(k=3, s=stride, p=1) [+ InstanceNorm] [+ LeakyReLU].

    x: (N, H, Wc, Cc) carried activation (bf16 or f32); columns >= w_logical and channels
       >= w.shape[1] are exactly zero.  Returns (y, Wo) with y: (N, Ho, Wop, Cp) out_dtype,
       where Wop = round_up(Wo, 16), Cp = round_up(Cout, 128) and the padding is zero.
    """
    assert act or not norm                                  # model: norm is always + LeakyReLU
    N, H, Wc, Cc = x.shape
    Cout, Cin = w.shape[0], w.shape[1]
    W = w_logical
    Ho = (H - 1) // stride + 1
    Wo = (W - 1) // stride + 1
    Cp = _round_up(Cout, 128)                               # lane-dense output stores
    Wop = _round_up(Wo, 16)                                 # in-kernel reshapes stay no-ops

    wt = jnp.transpose(w, (2, 3, 1, 0)).reshape(9, Cin, Cout).astype(jnp.bfloat16)
    xb = x[..., :Cin].astype(jnp.bfloat16)                  # drop carried channel padding

    if 9 * Cin <= 128:
        # Tiny-Cin first layer: full im2col, one matmul with K = 9*Cin (padded to 32).
        K = 9 * Cin
        Kp = _round_up(K, 32)
        pad_r = max(0, (Wop - 1) * stride + 2 - Wc)
        xp = jnp.pad(xb, ((0, 0), (1, 1), (1, pad_r), (0, 0)))
        cols = [xp[:, di:di + (Ho - 1) * stride + 1:stride,
                   dj:dj + (Wop - 1) * stride + 1:stride, :]
                for di in range(3) for dj in range(3)]
        a = jnp.concatenate(cols, axis=-1)                                  # (N,Ho,Wop,K)
        xprep = jnp.pad(a, ((0, 0), (0, 0), (0, 0), (0, Kp - K)))[:, None]  # (N,1,Ho,Wop,Kp)
        wk = jnp.pad(wt.reshape(K, Cout), ((0, Kp - K), (0, Cp - Cout)))[None]
        taps = ((0, 0, 0),)
    elif stride == 1:
        # Halo pad only; 9 taps, K = Cin (Cin is 128/256/512 here: MXU already well fed).
        pad_r = max(0, Wop + 1 - Wc)
        xprep = jnp.pad(xb, ((0, 0), (1, 1), (1, pad_r), (0, 0)))[:, None]  # (N,1,H+2,Wop+2,Cin)
        wk = jnp.pad(wt, ((0, 0), (0, 0), (0, Cp - Cout)))
        taps = tuple((0, di, dj) for di in range(3) for dj in range(3))
    else:
        # stride == 2: column-im2col (K = 3*Cin) + row-phase split -> only 3 taps.
        Hq = Ho + 1
        xp = jnp.pad(xb, ((0, 0), (1, 2 * Hq - H - 1),
                          (1, max(0, 2 * Wop - Wc)), (0, 0)))
        a = jnp.concatenate([xp[:, :, dj:dj + 2 * Wop:2, :] for dj in range(3)],
                            axis=-1)                                        # (N,2Hq,Wop,3Cin)
        xprep = a.reshape(N, Hq, 2, Wop, 3 * Cin).transpose(0, 2, 1, 3, 4)  # (N,2,Hq,Wop,3Cin)
        wk = jnp.stack([jnp.concatenate([wt[3 * di + dj] for dj in range(3)], axis=0)
                        for di in range(3)])                                # (3,3Cin,Cout)
        wk = jnp.pad(wk, ((0, 0), (0, 0), (0, Cp - Cout)))
        taps = ((0, 0, 0), (1, 0, 0), (0, 1, 0))                            # (phase, drow, dcol)

    Pn, Hx, Wx, Ck = xprep.shape[1:]
    T = wk.shape[0]
    bias2d = jnp.pad(b.astype(jnp.float32), (0, Cp - Cout)).reshape(1, Cp)
    colmask = jnp.tile((jnp.arange(Wop) < Wo).astype(jnp.float32), Ho).reshape(Ho * Wop, 1)

    # M ~ 512 per chunk amortizes MXU weight pushes (v6e/v7x); v5e may prefer ~256.
    row_chunk = max(1, min(Ho, 512 // Wop))

    # Per-layer VMEM budget instead of a hard-coded limit.
    out_bytes = Ho * Wop * Cp * jnp.dtype(out_dtype).itemsize
    x_bytes = Pn * Hx * Wx * Ck * 2
    w_bytes = T * Ck * Cp * 2 + Cp * 4
    scr_bytes = Ho * Wop * Cp * 4 if norm else 0
    est = (2 * (x_bytes + out_bytes) + 2 * w_bytes + scr_bytes
           + 3 * row_chunk * Wop * Cp * 4 + (2 << 20))
    vmem_limit = int(min(max(est, 32 << 20), 100 << 20))

    scratch = [pltpu.VMEM((Ho * Wop, Cp), jnp.float32)] if norm else []

    out = pl.pallas_call(
        functools.partial(_conv_fused_kernel, taps=taps, ho=Ho, wop=Wop,
                          row_chunk=row_chunk, leaky=(act and not norm), norm=norm,
                          inv_n=1.0 / float(Ho * Wo)),
        out_shape=jax.ShapeDtypeStruct((N, Ho, Wop, Cp), out_dtype),
        grid_spec=pltpu.PrefetchScalarGridSpec(
            num_scalar_prefetch=0,
            grid=(N,),
            in_specs=[
                pl.BlockSpec((1, Pn, Hx, Wx, Ck), lambda n: (n, 0, 0, 0, 0)),
                pl.BlockSpec((T, Ck, Cp), lambda n: (0, 0, 0)),   # whole weight, grid-invariant
                pl.BlockSpec((1, Cp), lambda n: (0, 0)),
                pl.BlockSpec((Ho * Wop, 1), lambda n: (0, 0)),
            ],
            out_specs=pl.BlockSpec((1, Ho, Wop, Cp), lambda n: (n, 0, 0, 0)),
            scratch_shapes=scratch,
        ),
        compiler_params=pltpu.CompilerParams(
            dimension_semantics=("parallel",),
            vmem_limit_bytes=vmem_limit,
        ),
    )(xprep, wk, bias2d, colmask)
    return out, Wo


# ---------------------------------------------------------------------------
# Discriminator: params + forward
# ---------------------------------------------------------------------------
_BLOCKS = ((64, 2, False), (128, 2, True), (256, 1, True), (512, 1, True))


def _layer_specs(channels):
    specs = []
    cin = channels
    for (cout, stride, norm) in _BLOCKS:
        specs.append((cin, cout, stride, norm, True))
        cin = cout
    specs.append((cin, 1, 1, False, False))                 # final conv: no norm, no activation
    return tuple(specs)


def init_params(key, channels=3):
    params = []
    for (cin, cout, stride, norm, act) in _layer_specs(channels):
        key, kw, kb = jax.random.split(key, 3)
        bound = 1.0 / np.sqrt(cin * 9)                      # kaiming-uniform-like bounds
        w = jax.random.uniform(kw, (cout, cin, 3, 3), jnp.float32, -bound, bound)
        b = jax.random.uniform(kb, (cout,), jnp.float32, -bound, bound)
        params.append((w, b))
    return params


def discriminator_forward(img_nchw, params, channels=3):
    # img: (N, C, H, W) like PyTorch; kernels run in NHWC with bf16 carried activations.
    x = jnp.transpose(img_nchw, (0, 2, 3, 1)).astype(jnp.float32)
    w_log = x.shape[2]
    specs = _layer_specs(channels)
    for i, ((w, b), (cin, cout, stride, norm, act)) in enumerate(zip(params, specs)):
        last = (i == len(specs) - 1)
        x, w_log = conv_block_pallas(
            x, w, b, stride, w_logical=w_log, norm=norm, act=act,
            out_dtype=(jnp.float32 if last else jnp.bfloat16))
    y = x[:, :, :w_log, :1]                                 # crop padding of the tiny final map
    return jnp.transpose(y, (0, 3, 1, 2))                   # back to NCHW


# ---------------------------------------------------------------------------
# Pure-JAX reference (for correctness)
# ---------------------------------------------------------------------------
def ref_forward(img_nchw, params, channels=3):
    x = jnp.transpose(img_nchw, (0, 2, 3, 1)).astype(jnp.float32)
    for (w, b), (cin, cout, stride, norm, act) in zip(params, _layer_specs(channels)):
        y = lax.conv_general_dilated(
            x, jnp.transpose(w, (2, 3, 1, 0)),
            window_strides=(stride, stride), padding=((1, 1), (1, 1)),
            dimension_numbers=("NHWC", "HWIO", "NHWC"))
        y = y + b
        if norm:
            m = jnp.mean(y, axis=(1, 2), keepdims=True)
            v = jnp.mean((y - m) ** 2, axis=(1, 2), keepdims=True)
            y = (y - m) * lax.rsqrt(v + 1e-5)
        if act:
            y = jnp.where(y > 0.0, y, 0.2 * y)
        x = y
    return jnp.transpose(x, (0, 3, 1, 2))


if __name__ == "__main__":
    key = jax.random.PRNGKey(0)
    kp, kx = jax.random.split(key)
    params = init_params(kp, channels=3)
    img = jax.random.normal(kx, (2, 3, 16, 16), jnp.float32)   # NCHW, like PyTorch

    fwd = jax.jit(discriminator_forward)
    out = jax.block_until_ready(fwd(img, params))
    assert out.shape == (2, 1, 4, 4), out.shape

    ref = jax.block_until_ready(ref_forward(img, params))
    np.testing.assert_allclose(np.asarray(out), np.asarray(ref), atol=5e-2, rtol=5e-2)

    print("KERNEL_OK")
</pallas_src>

<mosaic_0001>
module attributes {stable_mosaic.version = 11 : i64} {
  func.func @_conv_fused_kernel(%arg0: i32, %arg1: memref<1x1x8x16x32xbf16, #tpu.memory_space<vmem>>, %arg2: memref<1x32x128xbf16, #tpu.memory_space<vmem>>, %arg3: memref<1x128xf32, #tpu.memory_space<vmem>>, %arg4: memref<128x1xf32, #tpu.memory_space<vmem>>, %arg5: memref<1x8x16x128xbf16, #tpu.memory_space<vmem>>) attributes {dimension_semantics = [#tpu.dimension_semantics<parallel>], iteration_bounds = array<i64: 2>, scalar_prefetch = 0 : i64, scratch_operands = 0 : i64, tpu.core_type = #tpu.core_type<tc>, window_params = [{transform_indices = @transform_0, window_bounds = array<i64: 1, 1, 8, 16, 32>}, {pipeline_mode = #tpu.pipeline_mode<synchronous>, transform_indices = @transform_1, window_bounds = array<i64: 1, 32, 128>}, {pipeline_mode = #tpu.pipeline_mode<synchronous>, transform_indices = @transform_2, window_bounds = array<i64: 1, 128>}, {pipeline_mode = #tpu.pipeline_mode<synchronous>, transform_indices = @transform_3, window_bounds = array<i64: 128, 1>}, {transform_indices = @transform_4, window_bounds = array<i64: 1, 8, 16, 128>}]} {
    %c0 = arith.constant 0 : index
    %c0_0 = arith.constant 0 : index
    %0 = vector.load %arg3[%c0, %c0_0] : memref<1x128xf32, #tpu.memory_space<vmem>>, vector<1x128xf32>
    %cst = arith.constant 0.000000e+00 : f32
    %1 = vector.broadcast %cst : f32 to vector<128x128xf32>
    %c0_1 = arith.constant 0 : index
    %c0_2 = arith.constant 0 : index
    %c0_3 = arith.constant 0 : index
    %c0_4 = arith.constant 0 : index
    %c0_5 = arith.constant 0 : index
    %2 = vector.load %arg1[%c0_1, %c0_2, %c0_3, %c0_4, %c0_5] : memref<1x1x8x16x32xbf16, #tpu.memory_space<vmem>>, vector<1x1x8x16x32xbf16>
    %3 = vector.shape_cast %2 : vector<1x1x8x16x32xbf16> to vector<8x16x32xbf16>
    %4 = vector.shape_cast %3 : vector<8x16x32xbf16> to vector<128x32xbf16>
    %c0_6 = arith.constant 0 : index
    %c0_7 = arith.constant 0 : index
    %c0_8 = arith.constant 0 : index
    %5 = vector.load %arg2[%c0_6, %c0_7, %c0_8] : memref<1x32x128xbf16, #tpu.memory_space<vmem>>, vector<1x32x128xbf16>
    %6 = vector.shape_cast %5 : vector<1x32x128xbf16> to vector<32x128xbf16>
    %cst_9 = arith.constant dense<0.000000e+00> : vector<128x128xf32>
    %7 = tpu.matmul %4, %6, %cst_9 {dimension_numbers = #tpu.dot_dimension_numbers<[1], [0], [0], [1], [0, 0, 1, 1], [], []>} : vector<128x32xbf16>, vector<32x128xbf16>, vector<128x128xf32> -> vector<128x128xf32>
    %8 = arith.addf %1, %7 : vector<128x128xf32>
    %9 = vector.broadcast %0 : vector<1x128xf32> to vector<128x128xf32>
    %10 = arith.addf %8, %9 : vector<128x128xf32>
    %cst_10 = arith.constant 0.000000e+00 : f32
    %11 = vector.broadcast %cst_10 : f32 to vector<128x128xf32>
    %12 = arith.cmpf ogt, %10, %11 : vector<128x128xf32>
    %cst_11 = arith.constant 2.000000e-01 : f32
    %13 = vector.broadcast %cst_11 : f32 to vector<128x128xf32>
    %14 = arith.mulf %13, %10 : vector<128x128xf32>
    %15 = arith.select %12, %10, %14 : vector<128x128xi1>, vector<128x128xf32>
    %c0_12 = arith.constant 0 : index
    %c0_13 = arith.constant 0 : index
    %16 = vector.load %arg4[%c0_12, %c0_13] : memref<128x1xf32, #tpu.memory_space<vmem>>, vector<128x1xf32>
    %17 = vector.broadcast %16 : vector<128x1xf32> to vector<128x128xf32>
    %18 = arith.mulf %15, %17 : vector<128x128xf32>
    %19 = vector.shape_cast %18 : vector<128x128xf32> to vector<8x16x128xf32>
    %20 = arith.truncf %19 : vector<8x16x128xf32> to vector<8x16x128xbf16>
    %c0_14 = arith.constant 0 : index
    %c0_15 = arith.constant 0 : index
    %c0_16 = arith.constant 0 : index
    %c0_17 = arith.constant 0 : index
    %21 = vector.load %arg5[%c0_14, %c0_15, %c0_16, %c0_17] : memref<1x8x16x128xbf16, #tpu.memory_space<vmem>>, vector<1x8x16x128xbf16>
    %22 = vector.shape_cast %21 : vector<1x8x16x128xbf16> to vector<8x16x128xbf16>
    %23 = vector.shape_cast %20 : vector<8x16x128xbf16> to vector<1x8x16x128xbf16>
    tpu.vector_store %arg5[%c0_14, %c0_15, %c0_16, %c0_17], %23 {strides = array<i32>} : memref<1x8x16x128xbf16, #tpu.memory_space<vmem>>, vector<1x8x16x128xbf16>,
    return
  }
  func.func @transform_0(%arg0: i32) -> (i32, i32, i32, i32, i32) {
    %c0_i32 = arith.constant 0 : i32
    %c0_i32_0 = arith.constant 0 : i32
    %c0_i32_1 = arith.constant 0 : i32
    %c0_i32_2 = arith.constant 0 : i32
    %c0_i32_3 = arith.constant 0 : i32
    return %arg0, %c0_i32, %c0_i32_0, %c0_i32_1, %c0_i32_2 : i32, i32, i32, i32, i32
  }
  func.func @transform_1(%arg0: i32) -> (i32, i32, i32) {
    %c0_i32 = arith.constant 0 : i32
    %c0_i32_0 = arith.constant 0 : i32
    %c0_i32_1 = arith.constant 0 : i32
    %c0_i32_2 = arith.constant 0 : i32
    return %c0_i32, %c0_i32_0, %c0_i32_1 : i32, i32, i32
  }
  func.func @transform_2(%arg0: i32) -> (i32, i32) {
    %c0_i32 = arith.constant 0 : i32
    %c0_i32_0 = arith.constant 0 : i32
    %c0_i32_1 = arith.constant 0 : i32
    return %c0_i32, %c0_i32_0 : i32, i32
  }
  func.func @transform_3(%arg0: i32) -> (i32, i32) {
    %c0_i32 = arith.constant 0 : i32
    %c0_i32_0 = arith.constant 0 : i32
    %c0_i32_1 = arith.constant 0 : i32
    return %c0_i32, %c0_i32_0 : i32, i32
  }
  func.func @transform_4(%arg0: i32) -> (i32, i32, i32, i32) {
    %c0_i32 = arith.constant 0 : i32
    %c0_i32_0 = arith.constant 0 : i32
    %c0_i32_1 = arith.constant 0 : i32
    %c0_i32_2 = arith.constant 0 : i32
    return %arg0, %c0_i32, %c0_i32_0, %c0_i32_1 : i32, i32, i32, i32
  }
}

module attributes {stable_mosaic.version = 11 : i64} {
  func.func @_conv_fused_kernel(%arg0: i32, %arg1: memref<1x2x5x16x192xbf16, #tpu.memory_space<vmem>>, %arg2: memref<3x192x128xbf16, #tpu.memory_space<vmem>>, %arg3: memref<1x128xf32, #tpu.memory_space<vmem>>, %arg4: memref<64x1xf32, #tpu.memory_space<vmem>>, %arg5: memref<1x4x16x128xbf16, #tpu.memory_space<vmem>>, %arg6: memref<64x128xf32, #tpu.memory_space<vmem>>) attributes {dimension_semantics = [#tpu.dimension_semantics<parallel>], iteration_bounds = array<i64: 2>, scalar_prefetch = 0 : i64, scratch_operands = 1 : i64, tpu.core_type = #tpu.core_type<tc>, window_params = [{transform_indices = @transform_0, window_bounds = array<i64: 1, 2, 5, 16, 192>}, {pipeline_mode = #tpu.pipeline_mode<synchronous>, transform_indices = @transform_1, window_bounds = array<i64: 3, 192, 128>}, {pipeline_mode = #tpu.pipeline_mode<synchronous>, transform_indices = @transform_2, window_bounds = array<i64: 1, 128>}, {pipeline_mode = #tpu.pipeline_mode<synchronous>, transform_indices = @transform_3, window_bounds = array<i64: 64, 1>}, {transform_indices = @transform_4, window_bounds = array<i64: 1, 4, 16, 128>}]} {
    %c0 = arith.constant 0 : index
    %c0_0 = arith.constant 0 : index
    %0 = vector.load %arg3[%c0, %c0_0] : memref<1x128xf32, #tpu.memory_space<vmem>>, vector<1x128xf32>
    %cst = arith.constant 0.000000e+00 : f32
    %1 = vector.broadcast %cst : f32 to vector<64x128xf32>
    %c0_1 = arith.constant 0 : index
    %c0_2 = arith.constant 0 : index
    %c0_3 = arith.constant 0 : index
    %c0_4 = arith.constant 0 : index
    %c0_5 = arith.constant 0 : index
    %2 = vector.load %arg1[%c0_1, %c0_2, %c0_3, %c0_4, %c0_5] : memref<1x2x5x16x192xbf16, #tpu.memory_space<vmem>>, vector<1x1x4x16x192xbf16>
    %3 = vector.shape_cast %2 : vector<1x1x4x16x192xbf16> to vector<4x16x192xbf16>
    %4 = vector.shape_cast %3 : vector<4x16x192xbf16> to vector<64x192xbf16>
    %c0_6 = arith.constant 0 : index
    %c0_7 = arith.constant 0 : index
    %c0_8 = arith.constant 0 : index
    %5 = vector.load %arg2[%c0_6, %c0_7, %c0_8] : memref<3x192x128xbf16, #tpu.memory_space<vmem>>, vector<1x192x128xbf16>
    %6 = vector.shape_cast %5 : vector<1x192x128xbf16> to vector<192x128xbf16>
    %cst_9 = arith.constant dense<0.000000e+00> : vector<64x128xf32>
    %7 = tpu.matmul %4, %6, %cst_9 {dimension_numbers = #tpu.dot_dimension_numbers<[1], [0], [0], [1], [0, 0, 1, 1], [], []>} : vector<64x192xbf16>, vector<192x128xbf16>, vector<64x128xf32> -> vector<64x128xf32>
    %8 = arith.addf %1, %7 : vector<64x128xf32>
    %c0_10 = arith.constant 0 : index
    %c1 = arith.constant 1 : index
    %c0_11 = arith.constant 0 : index
    %c0_12 = arith.constant 0 : index
    %c0_13 = arith.constant 0 : index
    %9 = vector.load %arg1[%c0_10, %c1, %c0_11, %c0_12, %c0_13] : memref<1x2x5x16x192xbf16, #tpu.memory_space<vmem>>, vector<1x1x4x16x192xbf16>
    %10 = vector.shape_cast %9 : vector<1x1x4x16x192xbf16> to vector<4x16x192xbf16>
    %11 = vector.shape_cast %10 : vector<4x16x192xbf16> to vector<64x192xbf16>
    %c1_14 = arith.constant 1 : index
    %c0_15 = arith.constant 0 : index
    %c0_16 = arith.constant 0 : index
    %12 = vector.load %arg2[%c1_14, %c0_15, %c0_16] : memref<3x192x128xbf16, #tpu.memory_space<vmem>>, vector<1x192x128xbf16>
    %13 = vector.shape_cast %12 : vector<1x192x128xbf16> to vector<192x128xbf16>
    %cst_17 = arith.constant dense<0.000000e+00> : vector<64x128xf32>
    %14 = tpu.matmul %11, %13, %cst_17 {dimension_numbers = #tpu.dot_dimension_numbers<[1], [0], [0], [1], [0, 0, 1, 1], [], []>} : vector<64x192xbf16>, vector<192x128xbf16>, vector<64x128xf32> -> vector<64x128xf32>
    %15 = arith.addf %8, %14 : vector<64x128xf32>
    %c0_18 = arith.constant 0 : index
    %c0_19 = arith.constant 0 : index
    %c1_20 = arith.constant 1 : index
    %c0_21 = arith.constant 0 : index
    %c0_22 = arith.constant 0 : index
    %16 = vector.load %arg1[%c0_18, %c0_19, %c1_20, %c0_21, %c0_22] : memref<1x2x5x16x192xbf16, #tpu.memory_space<vmem>>, vector<1x1x4x16x192xbf16>
    %17 = vector.shape_cast %16 : vector<1x1x4x16x192xbf16> to vector<4x16x192xbf16>
    %18 = vector.shape_cast %17 : vector<4x16x192xbf16> to vector<64x192xbf16>
    %c2 = arith.constant 2 : index
    %c0_23 = arith.constant 0 : index
    %c0_24 = arith.constant 0 : index
    %19 = vector.load %arg2[%c2, %c0_23, %c0_24] : memref<3x192x128xbf16, #tpu.memory_space<vmem>>, vector<1x192x128xbf16>
    %20 = vector.shape_cast %19 : vector<1x192x128xbf16> to vector<192x128xbf16>
    %cst_25 = arith.constant dense<0.000000e+00> : vector<64x128xf32>
    %21 = tpu.matmul %18, %20, %cst_25 {dimension_numbers = #tpu.dot_dimension_numbers<[1], [0], [0], [1], [0, 0, 1, 1], [], []>} : vector<64x192xbf16>, vector<192x128xbf16>, vector<64x128xf32> -> vector<64x128xf32>
    %22 = arith.addf %15, %21 : vector<64x128xf32>
    %23 = vector.broadcast %0 : vector<1x128xf32> to vector<64x128xf32>
    %24 = arith.addf %22, %23 : vector<64x128xf32>
    %c0_26 = arith.constant 0 : index
    %c0_27 = arith.constant 0 : index
    %25 = vector.load %arg6[%c0_26, %c0_27] : memref<64x128xf32, #tpu.memory_space<vmem>>, vector<64x128xf32>
    tpu.vector_store %arg6[%c0_26, %c0_27], %24 {strides = array<i32>} : memref<64x128xf32, #tpu.memory_space<vmem>>, vector<64x128xf32>,
    %c0_28 = arith.constant 0 : index
    %c0_29 = arith.constant 0 : index
    %26 = vector.load %arg4[%c0_28, %c0_29] : memref<64x1xf32, #tpu.memory_space<vmem>>, vector<64x1xf32>
    %c0_30 = arith.constant 0 : index
    %c0_31 = arith.constant 0 : index
    %27 = vector.load %arg6[%c0_30, %c0_31] : memref<64x128xf32, #tpu.memory_space<vmem>>, vector<64x128xf32>
    %28 = vector.broadcast %26 : vector<64x1xf32> to vector<64x128xf32>
    %29 = arith.mulf %27, %28 : vector<64x128xf32>
    %cst_32 = arith.constant dense<0.000000e+00> : vector<128xf32>
    %30 = vector.multi_reduction <add>, %29, %cst_32 [0] : vector<64x128xf32> to vector<128xf32>
    %31 = vector.shape_cast %30 : vector<128xf32> to vector<1x128xf32>
    %cst_33 = arith.constant 6.250000e-02 : f32
    %32 = vector.broadcast %cst_33 : f32 to vector<1x128xf32>
    %33 = arith.mulf %31, %32 : vector<1x128xf32>
    %34 = vector.broadcast %33 : vector<1x128xf32> to vector<64x128xf32>
    %35 = arith.subf %27, %34 : vector<64x128xf32>
    %36 = vector.broadcast %26 : vector<64x1xf32> to vector<64x128xf32>
    %37 = arith.mulf %35, %36 : vector<64x128xf32>
    %38 = arith.mulf %37, %37 : vector<64x128xf32>
    %cst_34 = arith.constant dense<0.000000e+00> : vector<128xf32>
    %39 = vector.multi_reduction <add>, %38, %cst_34 [0] : vector<64x128xf32> to vector<128xf32>
    %40 = vector.shape_cast %39 : vector<128xf32> to vector<1x128xf32>
    %cst_35 = arith.constant 6.250000e-02 : f32
    %41 = vector.broadcast %cst_35 : f32 to vector<1x128xf32>
    %42 = arith.mulf %40, %41 : vector<1x128xf32>
    %cst_36 = arith.constant 9.99999974E-6 : f32
    %43 = vector.broadcast %cst_36 : f32 to vector<1x128xf32>
    %44 = arith.addf %42, %43 : vector<1x128xf32>
    %45 = math.rsqrt %44 : vector<1x128xf32>
    %46 = vector.broadcast %45 : vector<1x128xf32> to vector<64x128xf32>
    %47 = arith.mulf %37, %46 : vector<64x128xf32>
    %cst_37 = arith.constant 0.000000e+00 : f32
    %48 = vector.broadcast %cst_37 : f32 to vector<64x128xf32>
    %49 = arith.cmpf ogt, %47, %48 : vector<64x128xf32>
    %cst_38 = arith.constant 2.000000e-01 : f32
    %50 = vector.broadcast %cst_38 : f32 to vector<64x128xf32>
    %51 = arith.mulf %50, %47 : vector<64x128xf32>
    %52 = arith.select %49, %47, %51 : vector<64x128xi1>, vector<64x128xf32>
    %53 = vector.shape_cast %52 : vector<64x128xf32> to vector<4x16x128xf32>
    %54 = arith.truncf %53 : vector<4x16x128xf32> to vector<4x16x128xbf16>
    %c0_39 = arith.constant 0 : index
    %c0_40 = arith.constant 0 : index
    %c0_41 = arith.constant 0 : index
    %c0_42 = arith.constant 0 : index
    %55 = vector.load %arg5[%c0_39, %c0_40, %c0_41, %c0_42] : memref<1x4x16x128xbf16, #tpu.memory_space<vmem>>, vector<1x4x16x128xbf16>
    %56 = vector.shape_cast %55 : vector<1x4x16x128xbf16> to vector<4x16x128xbf16>
    %57 = vector.shape_cast %54 : vector<4x16x128xbf16> to vector<1x4x16x128xbf16>
    tpu.vector_store %arg5[%c0_39, %c0_40, %c0_41, %c0_42], %57 {strides = array<i32>} : memref<1x4x16x128xbf16, #tpu.memory_space<vmem>>, vector<1x4x16x128xbf16>,
    return
  }
  func.func @transform_0(%arg0: i32) -> (i32, i32, i32, i32, i32) {
    %c0_i32 = arith.constant 0 : i32
    %c0_i32_0 = arith.constant 0 : i32
    %c0_i32_1 = arith.constant 0 : i32
    %c0_i32_2 = arith.constant 0 : i32
    %c0_i32_3 = arith.constant 0 : i32
    return %arg0, %c0_i32, %c0_i32_0, %c0_i32_1, %c0_i32_2 : i32, i32, i32, i32, i32
  }
  func.func @transform_1(%arg0: i32) -> (i32, i32, i32) {
    %c0_i32 = arith.constant 0 : i32
    %c0_i32_0 = arith.constant 0 : i32
    %c0_i32_1 = arith.constant 0 : i32
    %c0_i32_2 = arith.constant 0 : i32
    return %c0_i32, %c0_i32_0, %c0_i32_1 : i32, i32, i32
  }
  func.func @transform_2(%arg0: i32) -> (i32, i32) {
    %c0_i32 = arith.constant 0 : i32
    %c0_i32_0 = arith.constant 0 : i32
    %c0_i32_1 = arith.constant 0 : i32
    return %c0_i32, %c0_i32_0 : i32, i32
  }
  func.func @transform_3(%arg0: i32) -> (i32, i32) {
    %c0_i32 = arith.constant 0 : i32
    %c0_i32_0 = arith.constant 0 : i32
    %c0_i32_1 = arith.constant 0 : i32
    return %c0_i32, %c0_i32_0 : i32, i32
  }
  func.func @transform_4(%arg0: i32) -> (i32, i32, i32, i32) {
    %c0_i32 = arith.constant 0 : i32
    %c0_i32_0 = arith.constant 0 : i32
    %c0_i32_1 = arith.constant 0 : i32
    %c0_i32_2 = arith.constant 0 : i32
    return %arg0, %c0_i32, %c0_i32_0, %c0_i32_1 : i32, i32, i32, i32
  }
}

module attributes {stable_mosaic.version = 11 : i64} {
  func.func @_conv_fused_kernel(%arg0: i32, %arg1: memref<1x1x6x18x128xbf16, #tpu.memory_space<vmem>>, %arg2: memref<9x128x256xbf16, #tpu.memory_space<vmem>>, %arg3: memref<1x256xf32, #tpu.memory_space<vmem>>, %arg4: memref<64x1xf32, #tpu.memory_space<vmem>>, %arg5: memref<1x4x16x256xbf16, #tpu.memory_space<vmem>>, %arg6: memref<64x256xf32, #tpu.memory_space<vmem>>) attributes {dimension_semantics = [#tpu.dimension_semantics<parallel>], iteration_bounds = array<i64: 2>, scalar_prefetch = 0 : i64, scratch_operands = 1 : i64, tpu.core_type = #tpu.core_type<tc>, window_params = [{transform_indices = @transform_0, window_bounds = array<i64: 1, 1, 6, 18, 128>}, {pipeline_mode = #tpu.pipeline_mode<synchronous>, transform_indices = @transform_1, window_bounds = array<i64: 9, 128, 256>}, {pipeline_mode = #tpu.pipeline_mode<synchronous>, transform_indices = @transform_2, window_bounds = array<i64: 1, 256>}, {pipeline_mode = #tpu.pipeline_mode<synchronous>, transform_indices = @transform_3, window_bounds = array<i64: 64, 1>}, {transform_indices = @transform_4, window_bounds = array<i64: 1, 4, 16, 256>}]} {
    %c0 = arith.constant 0 : index
    %c0_0 = arith.constant 0 : index
    %0 = vector.load %arg3[%c0, %c0_0] : memref<1x256xf32, #tpu.memory_space<vmem>>, vector<1x256xf32>
    %cst = arith.constant 0.000000e+00 : f32
    %1 = vector.broadcast %cst : f32 to vector<64x256xf32>
    %c0_1 = arith.constant 0 : index
    %c0_2 = arith.constant 0 : index
    %c0_3 = arith.constant 0 : index
    %c0_4 = arith.constant 0 : index
    %c0_5 = arith.constant 0 : index
    %2 = vector.load %arg1[%c0_1, %c0_2, %c0_3, %c0_4, %c0_5] : memref<1x1x6x18x128xbf16, #tpu.memory_space<vmem>>, vector<1x1x4x16x128xbf16>
    %3 = vector.shape_cast %2 : vector<1x1x4x16x128xbf16> to vector<4x16x128xbf16>
    %4 = vector.shape_cast %3 : vector<4x16x128xbf16> to vector<64x128xbf16>
    %c0_6 = arith.constant 0 : index
    %c0_7 = arith.constant 0 : index
    %c0_8 = arith.constant 0 : index
    %5 = vector.load %arg2[%c0_6, %c0_7, %c0_8] : memref<9x128x256xbf16, #tpu.memory_space<vmem>>, vector<1x128x256xbf16>
    %6 = vector.shape_cast %5 : vector<1x128x256xbf16> to vector<128x256xbf16>
    %cst_9 = arith.constant dense<0.000000e+00> : vector<64x256xf32>
    %7 = tpu.matmul %4, %6, %cst_9 {dimension_numbers = #tpu.dot_dimension_numbers<[1], [0], [0], [1], [0, 0, 1, 1], [], []>} : vector<64x128xbf16>, vector<128x256xbf16>, vector<64x256xf32> -> vector<64x256xf32>
    %8 = arith.addf %1, %7 : vector<64x256xf32>
    %c0_10 = arith.constant 0 : index
    %c0_11 = arith.constant 0 : index
    %c0_12 = arith.constant 0 : index
    %c1 = arith.constant 1 : index
    %c0_13 = arith.constant 0 : index
    %9 = vector.load %arg1[%c0_10, %c0_11, %c0_12, %c1, %c0_13] : memref<1x1x6x18x128xbf16, #tpu.memory_space<vmem>>, vector<1x1x4x16x128xbf16>
    %10 = vector.shape_cast %9 : vector<1x1x4x16x128xbf16> to vector<4x16x128xbf16>
    %11 = vector.shape_cast %10 : vector<4x16x128xbf16> to vector<64x128xbf16>
    %c1_14 = arith.constant 1 : index
    %c0_15 = arith.constant 0 : index
    %c0_16 = arith.constant 0 : index
    %12 = vector.load %arg2[%c1_14, %c0_15, %c0_16] : memref<9x128x256xbf16, #tpu.memory_space<vmem>>, vector<1x128x256xbf16>
    %13 = vector.shape_cast %12 : vector<1x128x256xbf16> to vector<128x256xbf16>
    %cst_17 = arith.constant dense<0.000000e+00> : vector<64x256xf32>
    %14 = tpu.matmul %11, %13, %cst_17 {dimension_numbers = #tpu.dot_dimension_numbers<[1], [0], [0], [1], [0, 0, 1, 1], [], []>} : vector<64x128xbf16>, vector<128x256xbf16>, vector<64x256xf32> -> vector<64x256xf32>
    %15 = arith.addf %8, %14 : vector<64x256xf32>
    %c0_18 = arith.constant 0 : index
    %c0_19 = arith.constant 0 : index
    %c0_20 = arith.constant 0 : index
    %c2 = arith.constant 2 : index
    %c0_21 = arith.constant 0 : index
    %16 = vector.load %arg1[%c0_18, %c0_19, %c0_20, %c2, %c0_21] : memref<1x1x6x18x128xbf16, #tpu.memory_space<vmem>>, vector<1x1x4x16x128xbf16>
    %17 = vector.shape_cast %16 : vector<1x1x4x16x128xbf16> to vector<4x16x128xbf16>
    %18 = vector.shape_cast %17 : vector<4x16x128xbf16> to vector<64x128xbf16>
    %c2_22 = arith.constant 2 : index
    %c0_23 = arith.constant 0 : index
    %c0_24 = arith.constant 0 : index
    %19 = vector.load %arg2[%c2_22, %c0_23, %c0_24] : memref<9x128x256xbf16, #tpu.memory_space<vmem>>, vector<1x128x256xbf16>
    %20 = vector.shape_cast %19 : vector<1x128x256xbf16> to vector<128x256xbf16>
    %cst_25 = arith.constant dense<0.000000e+00> : vector<64x256xf32>
    %21 = tpu.matmul %18, %20, %cst_25 {dimension_numbers = #tpu.dot_dimension_numbers<[1], [0], [0], [1], [0, 0, 1, 1], [], []>} : vector<64x128xbf16>, vector<128x256xbf16>, vector<64x256xf32> -> vector<64x256xf32>
    %22 = arith.addf %15, %21 : vector<64x256xf32>
    %c0_26 = arith.constant 0 : index
    %c0_27 = arith.constant 0 : index
    %c1_28 = arith.constant 1 : index
    %c0_29 = arith.constant 0 : index
    %c0_30 = arith.constant 0 : index
    %23 = vector.load %arg1[%c0_26, %c0_27, %c1_28, %c0_29, %c0_30] : memref<1x1x6x18x128xbf16, #tpu.memory_space<vmem>>, vector<1x1x4x16x128xbf16>
    %24 = vector.shape_cast %23 : vector<1x1x4x16x128xbf16> to vector<4x16x128xbf16>
    %25 = vector.shape_cast %24 : vector<4x16x128xbf16> to vector<64x128xbf16>
    %c3 = arith.constant 3 : index
    %c0_31 = arith.constant 0 : index
    %c0_32 = arith.constant 0 : index
    %26 = vector.load %arg2[%c3, %c0_31, %c0_32] : memref<9x128x256xbf16, #tpu.memory_space<vmem>>, vector<1x128x256xbf16>
    %27 = vector.shape_cast %26 : vector<1x128x256xbf16> to vector<128x256xbf16>
    %cst_33 = arith.constant dense<0.000000e+00> : vector<64x256xf32>
    %28 = tpu.matmul %25, %27, %cst_33 {dimension_numbers = #tpu.dot_dimension_numbers<[1], [0], [0], [1], [0, 0, 1, 1], [], []>} : vector<64x128xbf16>, vector<128x256xbf16>, vector<64x256xf32> -> vector<64x256xf32>
    %29 = arith.addf %22, %28 : vector<64x256xf32>
    %c0_34 = arith.constant 0 : index
    %c0_35 = arith.constant 0 : index
    %c1_36 = arith.constant 1 : index
    %c1_37 = arith.constant 1 : index
    %c0_38 = arith.constant 0 : index
    %30 = vector.load %arg1[%c0_34, %c0_35, %c1_36, %c1_37, %c0_38] : memref<1x1x6x18x128xbf16, #tpu.memory_space<vmem>>, vector<1x1x4x16x128xbf16>
    %31 = vector.shape_cast %30 : vector<1x1x4x16x128xbf16> to vector<4x16x128xbf16>
    %32 = vector.shape_cast %31 : vector<4x16x128xbf16> to vector<64x128xbf16>
    %c4 = arith.constant 4 : index
    %c0_39 = arith.constant 0 : index
    %c0_40 = arith.constant 0 : index
    %33 = vector.load %arg2[%c4, %c0_39, %c0_40] : memref<9x128x256xbf16, #tpu.memory_space<vmem>>, vector<1x128x256xbf16>
    %34 = vector.shape_cast %33 : vector<1x128x256xbf16> to vector<128x256xbf16>
    %cst_41 = arith.constant dense<0.000000e+00> : vector<64x256xf32>
    %35 = tpu.matmul %32, %34, %cst_41 {dimension_numbers = #tpu.dot_dimension_numbers<[1], [0], [0], [1], [0, 0, 1, 1], [], []>} : vector<64x128xbf16>, vector<128x256xbf16>, vector<64x256xf32> -> vector<64x256xf32>
    %36 = arith.addf %29, %35 : vector<64x256xf32>
    %c0_42 = arith.constant 0 : index
    %c0_43 = arith.constant 0 : index
    %c1_44 = arith.constant 1 : index
    %c2_45 = arith.constant 2 : index
    %c0_46 = arith.constant 0 : index
    %37 = vector.load %arg1[%c0_42, %c0_43, %c1_44, %c2_45, %c0_46] : memref<1x1x6x18x128xbf16, #tpu.memory_space<vmem>>, vector<1x1x4x16x128xbf16>
    %38 = vector.shape_cast %37 : vector<1x1x4x16x128xbf16> to vector<4x16x128xbf16>
    %39 = vector.shape_cast %38 : vector<4x16x128xbf16> to vector<64x128xbf16>
    %c5 = arith.constant 5 : index
    %c0_47 = arith.constant 0 : index
    %c0_48 = arith.constant 0 : index
    %40 = vector.load %arg2[%c5, %c0_47, %c0_48] : memref<9x128x256xbf16, #tpu.memory_space<vmem>>, vector<1x128x256xbf16>
    %41 = vector.shape_cast %40 : vector<1x128x256xbf16> to vector<128x256xbf16>
    %cst_49 = arith.constant dense<0.000000e+00> : vector<64x256xf32>
    %42 = tpu.matmul %39, %41, %cst_49 {dimension_numbers = #tpu.dot_dimension_numbers<[1], [0], [0], [1], [0, 0, 1, 1], [], []>} : vector<64x128xbf16>, vector<128x256xbf16>, vector<64x256xf32> -> vector<64x256xf32>
    %43 = arith.addf %36, %42 : vector<64x256xf32>
    %c0_50 = arith.constant 0 : index
    %c0_51 = arith.constant 0 : index
    %c2_52 = arith.constant 2 : index
    %c0_53 = arith.constant 0 : index
    %c0_54 = arith.constant 0 : index
    %44 = vector.load %arg1[%c0_50, %c0_51, %c2_52, %c0_53, %c0_54] : memref<1x1x6x18x128xbf16, #tpu.memory_space<vmem>>, vector<1x1x4x16x128xbf16>
    %45 = vector.shape_cast %44 : vector<1x1x4x16x128xbf16> to vector<4x16x128xbf16>
    %46 = vector.shape_cast %45 : vector<4x16x128xbf16> to vector<64x128xbf16>
    %c6 = arith.constant 6 : index
    %c0_55 = arith.constant 0 : index
    %c0_56 = arith.constant 0 : index
    %47 = vector.load %arg2[%c6, %c0_55, %c0_56] : memref<9x128x256xbf16, #tpu.memory_space<vmem>>, vector<1x128x256xbf16>
    %48 = vector.shape_cast %47 : vector<1x128x256xbf16> to vector<128x256xbf16>
    %cst_57 = arith.constant dense<0.000000e+00> : vector<64x256xf32>
    %49 = tpu.matmul %46, %48, %cst_57 {dimension_numbers = #tpu.dot_dimension_numbers<[1], [0], [0], [1], [0, 0, 1, 1], [], []>} : vector<64x128xbf16>, vector<128x256xbf16>, vector<64x256xf32> -> vector<64x256xf32>
    %50 = arith.addf %43, %49 : vector<64x256xf32>
    %c0_58 = arith.constant 0 : index
    %c0_59 = arith.constant 0 : index
    %c2_60 = arith.constant 2 : index
    %c1_61 = arith.constant 1 : index
    %c0_62 = arith.constant 0 : index
    %51 = vector.load %arg1[%c0_58, %c0_59, %c2_60, %c1_61, %c0_62] : memref<1x1x6x18x128xbf16, #tpu.memory_space<vmem>>, vector<1x1x4x16x128xbf16>
    %52 = vector.shape_cast %51 : vector<1x1x4x16x128xbf16> to vector<4x16x128xbf16>
    %53 = vector.shape_cast %52 : vector<4x16x128xbf16> to vector<64x128xbf16>
    %c7 = arith.constant 7 : index
    %c0_63 = arith.constant 0 : index
    %c0_64 = arith.constant 0 : index
    %54 = vector.load %arg2[%c7, %c0_63, %c0_64] : memref<9x128x256xbf16, #tpu.memory_space<vmem>>, vector<1x128x256xbf16>
    %55 = vector.shape_cast %54 : vector<1x128x256xbf16> to vector<128x256xbf16>
    %cst_65 = arith.constant dense<0.000000e+00> : vector<64x256xf32>
    %56 = tpu.matmul %53, %55, %cst_65 {dimension_numbers = #tpu.dot_dimension_numbers<[1], [0], [0], [1], [0, 0, 1, 1], [], []>} : vector<64x128xbf16>, vector<128x256xbf16>, vector<64x256xf32> -> vector<64x256xf32>
    %57 = arith.addf %50, %56 : vector<64x256xf32>
    %c0_66 = arith.constant 0 : index
    %c0_67 = arith.constant 0 : index
    %c2_68 = arith.constant 2 : index
    %c2_69 = arith.constant 2 : index
    %c0_70 = arith.constant 0 : index
    %58 = vector.load %arg1[%c0_66, %c0_67, %c2_68, %c2_69, %c0_70] : memref<1x1x6x18x128xbf16, #tpu.memory_space<vmem>>, vector<1x1x4x16x128xbf16>
    %59 = vector.shape_cast %58 : vector<1x1x4x16x128xbf16> to vector<4x16x128xbf16>
    %60 = vector.shape_cast %59 : vector<4x16x128xbf16> to vector<64x128xbf16>
    %c8 = arith.constant 8 : index
    %c0_71 = arith.constant 0 : index
    %c0_72 = arith.constant 0 : index
    %61 = vector.load %arg2[%c8, %c0_71, %c0_72] : memref<9x128x256xbf16, #tpu.memory_space<vmem>>, vector<1x128x256xbf16>
    %62 = vector.shape_cast %61 : vector<1x128x256xbf16> to vector<128x256xbf16>
    %cst_73 = arith.constant dense<0.000000e+00> : vector<64x256xf32>
    %63 = tpu.matmul %60, %62, %cst_73 {dimension_numbers = #tpu.dot_dimension_numbers<[1], [0], [0], [1], [0, 0, 1, 1], [], []>} : vector<64x128xbf16>, vector<128x256xbf16>, vector<64x256xf32> -> vector<64x256xf32>
    %64 = arith.addf %57, %63 : vector<64x256xf32>
    %65 = vector.broadcast %0 : vector<1x256xf32> to vector<64x256xf32>
    %66 = arith.addf %64, %65 : vector<64x256xf32>
    %c0_74 = arith.constant 0 : index
    %c0_75 = arith.constant 0 : index
    %67 = vector.load %arg6[%c0_74, %c0_75] : memref<64x256xf32, #tpu.memory_space<vmem>>, vector<64x256xf32>
    tpu.vector_store %arg6[%c0_74, %c0_75], %66 {strides = array<i32>} : memref<64x256xf32, #tpu.memory_space<vmem>>, vector<64x256xf32>,
    %c0_76 = arith.constant 0 : index
    %c0_77 = arith.constant 0 : index
    %68 = vector.load %arg4[%c0_76, %c0_77] : memref<64x1xf32, #tpu.memory_space<vmem>>, vector<64x1xf32>
    %c0_78 = arith.constant 0 : index
    %c0_79 = arith.constant 0 : index
    %69 = vector.load %arg6[%c0_78, %c0_79] : memref<64x256xf32, #tpu.memory_space<vmem>>, vector<64x256xf32>
    %70 = vector.broadcast %68 : vector<64x1xf32> to vector<64x256xf32>
    %71 = arith.mulf %69, %70 : vector<64x256xf32>
    %cst_80 = arith.constant dense<0.000000e+00> : vector<256xf32>
    %72 = vector.multi_reduction <add>, %71, %cst_80 [0] : vector<64x256xf32> to vector<256xf32>
    %73 = vector.shape_cast %72 : vector<256xf32> to vector<1x256xf32>
    %cst_81 = arith.constant 6.250000e-02 : f32
    %74 = vector.broadcast %cst_81 : f32 to vector<1x256xf32>
    %75 = arith.mulf %73, %74 : vector<1x256xf32>
    %76 = vector.broadcast %75 : vector<1x256xf32> to vector<64x256xf32>
    %77 = arith.subf %69, %76 : vector<64x256xf32>
    %78 = vector.broadcast %68 : vector<64x1xf32> to vector<64x256xf32>
    %79 = arith.mulf %77, %78 : vector<64x256xf32>
    %80 = arith.mulf %79, %79 : vector<64x256xf32>
    %cst_82 = arith.constant dense<0.000000e+00> : vector<256xf32>
    %81 = vector.multi_reduction <add>, %80, %cst_82 [0] : vector<64x256xf32> to vector<256xf32>
    %82 = vector.shape_cast %81 : vector<256xf32> to vector<1x256xf32>
    %cst_83 = arith.constant 6.250000e-02 : f32
    %83 = vector.broadcast %cst_83 : f32 to vector<1x256xf32>
    %84 = arith.mulf %82, %83 : vector<1x256xf32>
    %cst_84 = arith.constant 9.99999974E-6 : f32
    %85 = vector.broadcast %cst_84 : f32 to vector<1x256xf32>
    %86 = arith.addf %84, %85 : vector<1x256xf32>
    %87 = math.rsqrt %86 : vector<1x256xf32>
    %88 = vector.broadcast %87 : vector<1x256xf32> to vector<64x256xf32>
    %89 = arith.mulf %79, %88 : vector<64x256xf32>
    %cst_85 = arith.constant 0.000000e+00 : f32
    %90 = vector.broadcast %cst_85 : f32 to vector<64x256xf32>
    %91 = arith.cmpf ogt, %89, %90 : vector<64x256xf32>
    %cst_86 = arith.constant 2.000000e-01 : f32
    %92 = vector.broadcast %cst_86 : f32 to vector<64x256xf32>
    %93 = arith.mulf %92, %89 : vector<64x256xf32>
    %94 = arith.select %91, %89, %93 : vector<64x256xi1>, vector<64x256xf32>
    %95 = vector.shape_cast %94 : vector<64x256xf32> to vector<4x16x256xf32>
    %96 = arith.truncf %95 : vector<4x16x256xf32> to vector<4x16x256xbf16>
    %c0_87 = arith.constant 0 : index
    %c0_88 = arith.constant 0 : index
    %c0_89 = arith.constant 0 : index
    %c0_90 = arith.constant 0 : index
    %97 = vector.load %arg5[%c0_87, %c0_88, %c0_89, %c0_90] : memref<1x4x16x256xbf16, #tpu.memory_space<vmem>>, vector<1x4x16x256xbf16>
    %98 = vector.shape_cast %97 : vector<1x4x16x256xbf16> to vector<4x16x256xbf16>
    %99 = vector.shape_cast %96 : vector<4x16x256xbf16> to vector<1x4x16x256xbf16>
    tpu.vector_store %arg5[%c0_87, %c0_88, %c0_89, %c0_90], %99 {strides = array<i32>} : memref<1x4x16x256xbf16, #tpu.memory_space<vmem>>, vector<1x4x16x256xbf16>,
    return
  }
  func.func @transform_0(%arg0: i32) -> (i32, i32, i32, i32, i32) {
    %c0_i32 = arith.constant 0 : i32
    %c0_i32_0 = arith.constant 0 : i32
    %c0_i32_1 = arith.constant 0 : i32
    %c0_i32_2 = arith.constant 0 : i32
    %c0_i32_3 = arith.constant 0 : i32
    return %arg0, %c0_i32, %c0_i32_0, %c0_i32_1, %c0_i32_2 : i32, i32, i32, i32, i32
  }
  func.func @transform_1(%arg0: i32) -> (i32, i32, i32) {
    %c0_i32 = arith.constant 0 : i32
    %c0_i32_0 = arith.constant 0 : i32
    %c0_i32_1 = arith.constant 0 : i32
    %c0_i32_2 = arith.constant 0 : i32
    return %c0_i32, %c0_i32_0, %c0_i32_1 : i32, i32, i32
  }
  func.func @transform_2(%arg0: i32) -> (i32, i32) {
    %c0_i32 = arith.constant 0 : i32
    %c0_i32_0 = arith.constant 0 : i32
    %c0_i32_1 = arith.constant 0 : i32
    return %c0_i32, %c0_i32_0 : i32, i32
  }
  func.func @transform_3(%arg0: i32) -> (i32, i32) {
    %c0_i32 = arith.constant 0 : i32
    %c0_i32_0 = arith.constant 0 : i32
    %c0_i32_1 = arith.constant 0 : i32
    return %c0_i32, %c0_i32_0 : i32, i32
  }
  func.func @transform_4(%arg0: i32) -> (i32, i32, i32, i32) {
    %c0_i32 = arith.constant 0 : i32
    %c0_i32_0 = arith.constant 0 : i32
    %c0_i32_1 = arith.constant 0 : i32
    %c0_i32_2 = arith.constant 0 : i32
    return %arg0, %c0_i32, %c0_i32_0, %c0_i32_1 : i32, i32, i32, i32
  }
}

module attributes {stable_mosaic.version = 11 : i64} {
  func.func @_conv_fused_kernel(%arg0: i32, %arg1: memref<1x1x6x18x256xbf16, #tpu.memory_space<vmem>>, %arg2: memref<9x256x512xbf16, #tpu.memory_space<vmem>>, %arg3: memref<1x512xf32, #tpu.memory_space<vmem>>, %arg4: memref<64x1xf32, #tpu.memory_space<vmem>>, %arg5: memref<1x4x16x512xbf16, #tpu.memory_space<vmem>>, %arg6: memref<64x512xf32, #tpu.memory_space<vmem>>) attributes {dimension_semantics = [#tpu.dimension_semantics<parallel>], iteration_bounds = array<i64: 2>, scalar_prefetch = 0 : i64, scratch_operands = 1 : i64, tpu.core_type = #tpu.core_type<tc>, window_params = [{transform_indices = @transform_0, window_bounds = array<i64: 1, 1, 6, 18, 256>}, {pipeline_mode = #tpu.pipeline_mode<synchronous>, transform_indices = @transform_1, window_bounds = array<i64: 9, 256, 512>}, {pipeline_mode = #tpu.pipeline_mode<synchronous>, transform_indices = @transform_2, window_bounds = array<i64: 1, 512>}, {pipeline_mode = #tpu.pipeline_mode<synchronous>, transform_indices = @transform_3, window_bounds = array<i64: 64, 1>}, {transform_indices = @transform_4, window_bounds = array<i64: 1, 4, 16, 512>}]} {
    %c0 = arith.constant 0 : index
    %c0_0 = arith.constant 0 : index
    %0 = vector.load %arg3[%c0, %c0_0] : memref<1x512xf32, #tpu.memory_space<vmem>>, vector<1x512xf32>
    %cst = arith.constant 0.000000e+00 : f32
    %1 = vector.broadcast %cst : f32 to vector<64x512xf32>
    %c0_1 = arith.constant 0 : index
    %c0_2 = arith.constant 0 : index
    %c0_3 = arith.constant 0 : index
    %c0_4 = arith.constant 0 : index
    %c0_5 = arith.constant 0 : index
    %2 = vector.load %arg1[%c0_1, %c0_2, %c0_3, %c0_4, %c0_5] : memref<1x1x6x18x256xbf16, #tpu.memory_space<vmem>>, vector<1x1x4x16x256xbf16>
    %3 = vector.shape_cast %2 : vector<1x1x4x16x256xbf16> to vector<4x16x256xbf16>
    %4 = vector.shape_cast %3 : vector<4x16x256xbf16> to vector<64x256xbf16>
    %c0_6 = arith.constant 0 : index
    %c0_7 = arith.constant 0 : index
    %c0_8 = arith.constant 0 : index
    %5 = vector.load %arg2[%c0_6, %c0_7, %c0_8] : memref<9x256x512xbf16, #tpu.memory_space<vmem>>, vector<1x256x512xbf16>
    %6 = vector.shape_cast %5 : vector<1x256x512xbf16> to vector<256x512xbf16>
    %cst_9 = arith.constant dense<0.000000e+00> : vector<64x512xf32>
    %7 = tpu.matmul %4, %6, %cst_9 {dimension_numbers = #tpu.dot_dimension_numbers<[1], [0], [0], [1], [0, 0, 1, 1], [], []>} : vector<64x256xbf16>, vector<256x512xbf16>, vector<64x512xf32> -> vector<64x512xf32>
    %8 = arith.addf %1, %7 : vector<64x512xf32>
    %c0_10 = arith.constant 0 : index
    %c0_11 = arith.constant 0 : index
    %c0_12 = arith.constant 0 : index
    %c1 = arith.constant 1 : index
    %c0_13 = arith.constant 0 : index
    %9 = vector.load %arg1[%c0_10, %c0_11, %c0_12, %c1, %c0_13] : memref<1x1x6x18x256xbf16, #tpu.memory_space<vmem>>, vector<1x1x4x16x256xbf16>
    %10 = vector.shape_cast %9 : vector<1x1x4x16x256xbf16> to vector<4x16x256xbf16>
    %11 = vector.shape_cast %10 : vector<4x16x256xbf16> to vector<64x256xbf16>
    %c1_14 = arith.constant 1 : index
    %c0_15 = arith.constant 0 : index
    %c0_16 = arith.constant 0 : index
    %12 = vector.load %arg2[%c1_14, %c0_15, %c0_16] : memref<9x256x512xbf16, #tpu.memory_space<vmem>>, vector<1x256x512xbf16>
    %13 = vector.shape_cast %12 : vector<1x256x512xbf16> to vector<256x512xbf16>
    %cst_17 = arith.constant dense<0.000000e+00> : vector<64x512xf32>
    %14 = tpu.matmul %11, %13, %cst_17 {dimension_numbers = #tpu.dot_dimension_numbers<[1], [0], [0], [1], [0, 0, 1, 1], [], []>} : vector<64x256xbf16>, vector<256x512xbf16>, vector<64x512xf32> -> vector<64x512xf32>
    %15 = arith.addf %8, %14 : vector<64x512xf32>
    %c0_18 = arith.constant 0 : index
    %c0_19 = arith.constant 0 : index
    %c0_20 = arith.constant 0 : index
    %c2 = arith.constant 2 : index
    %c0_21 = arith.constant 0 : index
    %16 = vector.load %arg1[%c0_18, %c0_19, %c0_20, %c2, %c0_21] : memref<1x1x6x18x256xbf16, #tpu.memory_space<vmem>>, vector<1x1x4x16x256xbf16>
    %17 = vector.shape_cast %16 : vector<1x1x4x16x256xbf16> to vector<4x16x256xbf16>
    %18 = vector.shape_cast %17 : vector<4x16x256xbf16> to vector<64x256xbf16>
    %c2_22 = arith.constant 2 : index
    %c0_23 = arith.constant 0 : index
    %c0_24 = arith.constant 0 : index
    %19 = vector.load %arg2[%c2_22, %c0_23, %c0_24] : memref<9x256x512xbf16, #tpu.memory_space<vmem>>, vector<1x256x512xbf16>
    %20 = vector.shape_cast %19 : vector<1x256x512xbf16> to vector<256x512xbf16>
    %cst_25 = arith.constant dense<0.000000e+00> : vector<64x512xf32>
    %21 = tpu.matmul %18, %20, %cst_25 {dimension_numbers = #tpu.dot_dimension_numbers<[1], [0], [0], [1], [0, 0, 1, 1], [], []>} : vector<64x256xbf16>, vector<256x512xbf16>, vector<64x512xf32> -> vector<64x512xf32>
    %22 = arith.addf %15, %21 : vector<64x512xf32>
    %c0_26 = arith.constant 0 : index
    %c0_27 = arith.constant 0 : index
    %c1_28 = arith.constant 1 : index
    %c0_29 = arith.constant 0 : index
    %c0_30 = arith.constant 0 : index
    %23 = vector.load %arg1[%c0_26, %c0_27, %c1_28, %c0_29, %c0_30] : memref<1x1x6x18x256xbf16, #tpu.memory_space<vmem>>, vector<1x1x4x16x256xbf16>
    %24 = vector.shape_cast %23 : vector<1x1x4x16x256xbf16> to vector<4x16x256xbf16>
    %25 = vector.shape_cast %24 : vector<4x16x256xbf16> to vector<64x256xbf16>
    %c3 = arith.constant 3 : index
    %c0_31 = arith.constant 0 : index
    %c0_32 = arith.constant 0 : index
    %26 = vector.load %arg2[%c3, %c0_31, %c0_32] : memref<9x256x512xbf16, #tpu.memory_space<vmem>>, vector<1x256x512xbf16>
    %27 = vector.shape_cast %26 : vector<1x256x512xbf16> to vector<256x512xbf16>
    %cst_33 = arith.constant dense<0.000000e+00> : vector<64x512xf32>
    %28 = tpu.matmul %25, %27, %cst_33 {dimension_numbers = #tpu.dot_dimension_numbers<[1], [0], [0], [1], [0, 0, 1, 1], [], []>} : vector<64x256xbf16>, vector<256x512xbf16>, vector<64x512xf32> -> vector<64x512xf32>
    %29 = arith.addf %22, %28 : vector<64x512xf32>
    %c0_34 = arith.constant 0 : index
    %c0_35 = arith.constant 0 : index
    %c1_36 = arith.constant 1 : index
    %c1_37 = arith.constant 1 : index
    %c0_38 = arith.constant 0 : index
    %30 = vector.load %arg1[%c0_34, %c0_35, %c1_36, %c1_37, %c0_38] : memref<1x1x6x18x256xbf16, #tpu.memory_space<vmem>>, vector<1x1x4x16x256xbf16>
    %31 = vector.shape_cast %30 : vector<1x1x4x16x256xbf16> to vector<4x16x256xbf16>
    %32 = vector.shape_cast %31 : vector<4x16x256xbf16> to vector<64x256xbf16>
    %c4 = arith.constant 4 : index
    %c0_39 = arith.constant 0 : index
    %c0_40 = arith.constant 0 : index
    %33 = vector.load %arg2[%c4, %c0_39, %c0_40] : memref<9x256x512xbf16, #tpu.memory_space<vmem>>, vector<1x256x512xbf16>
    %34 = vector.shape_cast %33 : vector<1x256x512xbf16> to vector<256x512xbf16>
    %cst_41 = arith.constant dense<0.000000e+00> : vector<64x512xf32>
    %35 = tpu.matmul %32, %34, %cst_41 {dimension_numbers = #tpu.dot_dimension_numbers<[1], [0], [0], [1], [0, 0, 1, 1], [], []>} : vector<64x256xbf16>, vector<256x512xbf16>, vector<64x512xf32> -> vector<64x512xf32>
    %36 = arith.addf %29, %35 : vector<64x512xf32>
    %c0_42 = arith.constant 0 : index
    %c0_43 = arith.constant 0 : index
    %c1_44 = arith.constant 1 : index
    %c2_45 = arith.constant 2 : index
    %c0_46 = arith.constant 0 : index
    %37 = vector.load %arg1[%c0_42, %c0_43, %c1_44, %c2_45, %c0_46] : memref<1x1x6x18x256xbf16, #tpu.memory_space<vmem>>, vector<1x1x4x16x256xbf16>
    %38 = vector.shape_cast %37 : vector<1x1x4x16x256xbf16> to vector<4x16x256xbf16>
    %39 = vector.shape_cast %38 : vector<4x16x256xbf16> to vector<64x256xbf16>
    %c5 = arith.constant 5 : index
    %c0_47 = arith.constant 0 : index
    %c0_48 = arith.constant 0 : index
    %40 = vector.load %arg2[%c5, %c0_47, %c0_48] : memref<9x256x512xbf16, #tpu.memory_space<vmem>>, vector<1x256x512xbf16>
    %41 = vector.shape_cast %40 : vector<1x256x512xbf16> to vector<256x512xbf16>
    %cst_49 = arith.constant dense<0.000000e+00> : vector<64x512xf32>
    %42 = tpu.matmul %39, %41, %cst_49 {dimension_numbers = #tpu.dot_dimension_numbers<[1], [0], [0], [1], [0, 0, 1, 1], [], []>} : vector<64x256xbf16>, vector<256x512xbf16>, vector<64x512xf32> -> vector<64x512xf32>
    %43 = arith.addf %36, %42 : vector<64x512xf32>
    %c0_50 = arith.constant 0 : index
    %c0_51 = arith.constant 0 : index
    %c2_52 = arith.constant 2 : index
    %c0_53 = arith.constant 0 : index
    %c0_54 = arith.constant 0 : index
    %44 = vector.load %arg1[%c0_50, %c0_51, %c2_52, %c0_53, %c0_54] : memref<1x1x6x18x256xbf16, #tpu.memory_space<vmem>>, vector<1x1x4x16x256xbf16>
    %45 = vector.shape_cast %44 : vector<1x1x4x16x256xbf16> to vector<4x16x256xbf16>
    %46 = vector.shape_cast %45 : vector<4x16x256xbf16> to vector<64x256xbf16>
    %c6 = arith.constant 6 : index
    %c0_55 = arith.constant 0 : index
    %c0_56 = arith.constant 0 : index
    %47 = vector.load %arg2[%c6, %c0_55, %c0_56] : memref<9x256x512xbf16, #tpu.memory_space<vmem>>, vector<1x256x512xbf16>
    %48 = vector.shape_cast %47 : vector<1x256x512xbf16> to vector<256x512xbf16>
    %cst_57 = arith.constant dense<0.000000e+00> : vector<64x512xf32>
    %49 = tpu.matmul %46, %48, %cst_57 {dimension_numbers = #tpu.dot_dimension_numbers<[1], [0], [0], [1], [0, 0, 1, 1], [], []>} : vector<64x256xbf16>, vector<256x512xbf16>, vector<64x512xf32> -> vector<64x512xf32>
    %50 = arith.addf %43, %49 : vector<64x512xf32>
    %c0_58 = arith.constant 0 : index
    %c0_59 = arith.constant 0 : index
    %c2_60 = arith.constant 2 : index
    %c1_61 = arith.constant 1 : index
    %c0_62 = arith.constant 0 : index
    %51 = vector.load %arg1[%c0_58, %c0_59, %c2_60, %c1_61, %c0_62] : memref<1x1x6x18x256xbf16, #tpu.memory_space<vmem>>, vector<1x1x4x16x256xbf16>
    %52 = vector.shape_cast %51 : vector<1x1x4x16x256xbf16> to vector<4x16x256xbf16>
    %53 = vector.shape_cast %52 : vector<4x16x256xbf16> to vector<64x256xbf16>
    %c7 = arith.constant 7 : index
    %c0_63 = arith.constant 0 : index
    %c0_64 = arith.constant 0 : index
    %54 = vector.load %arg2[%c7, %c0_63, %c0_64] : memref<9x256x512xbf16, #tpu.memory_space<vmem>>, vector<1x256x512xbf16>
    %55 = vector.shape_cast %54 : vector<1x256x512xbf16> to vector<256x512xbf16>
    %cst_65 = arith.constant dense<0.000000e+00> : vector<64x512xf32>
    %56 = tpu.matmul %53, %55, %cst_65 {dimension_numbers = #tpu.dot_dimension_numbers<[1], [0], [0], [1], [0, 0, 1, 1], [], []>} : vector<64x256xbf16>, vector<256x512xbf16>, vector<64x512xf32> -> vector<64x512xf32>
    %57 = arith.addf %50, %56 : vector<64x512xf32>
    %c0_66 = arith.constant 0 : index
    %c0_67 = arith.constant 0 : index
    %c2_68 = arith.constant 2 : index
    %c2_69 = arith.constant 2 : index
    %c0_70 = arith.constant 0 : index
    %58 = vector.load %arg1[%c0_66, %c0_67, %c2_68, %c2_69, %c0_70] : memref<1x1x6x18x256xbf16, #tpu.memory_space<vmem>>, vector<1x1x4x16x256xbf16>
    %59 = vector.shape_cast %58 : vector<1x1x4x16x256xbf16> to vector<4x16x256xbf16>
    %60 = vector.shape_cast %59 : vector<4x16x256xbf16> to vector<64x256xbf16>
    %c8 = arith.constant 8 : index
    %c0_71 = arith.constant 0 : index
    %c0_72 = arith.constant 0 : index
    %61 = vector.load %arg2[%c8, %c0_71, %c0_72] : memref<9x256x512xbf16, #tpu.memory_space<vmem>>, vector<1x256x512xbf16>
    %62 = vector.shape_cast %61 : vector<1x256x512xbf16> to vector<256x512xbf16>
    %cst_73 = arith.constant dense<0.000000e+00> : vector<64x512xf32>
    %63 = tpu.matmul %60, %62, %cst_73 {dimension_numbers = #tpu.dot_dimension_numbers<[1], [0], [0], [1], [0, 0, 1, 1], [], []>} : vector<64x256xbf16>, vector<256x512xbf16>, vector<64x512xf32> -> vector<64x512xf32>
    %64 = arith.addf %57, %63 : vector<64x512xf32>
    %65 = vector.broadcast %0 : vector<1x512xf32> to vector<64x512xf32>
    %66 = arith.addf %64, %65 : vector<64x512xf32>
    %c0_74 = arith.constant 0 : index
    %c0_75 = arith.constant 0 : index
    %67 = vector.load %arg6[%c0_74, %c0_75] : memref<64x512xf32, #tpu.memory_space<vmem>>, vector<64x512xf32>
    tpu.vector_store %arg6[%c0_74, %c0_75], %66 {strides = array<i32>} : memref<64x512xf32, #tpu.memory_space<vmem>>, vector<64x512xf32>,
    %c0_76 = arith.constant 0 : index
    %c0_77 = arith.constant 0 : index
    %68 = vector.load %arg4[%c0_76, %c0_77] : memref<64x1xf32, #tpu.memory_space<vmem>>, vector<64x1xf32>
    %c0_78 = arith.constant 0 : index
    %c0_79 = arith.constant 0 : index
    %69 = vector.load %arg6[%c0_78, %c0_79] : memref<64x512xf32, #tpu.memory_space<vmem>>, vector<64x512xf32>
    %70 = vector.broadcast %68 : vector<64x1xf32> to vector<64x512xf32>
    %71 = arith.mulf %69, %70 : vector<64x512xf32>
    %cst_80 = arith.constant dense<0.000000e+00> : vector<512xf32>
    %72 = vector.multi_reduction <add>, %71, %cst_80 [0] : vector<64x512xf32> to vector<512xf32>
    %73 = vector.shape_cast %72 : vector<512xf32> to vector<1x512xf32>
    %cst_81 = arith.constant 6.250000e-02 : f32
    %74 = vector.broadcast %cst_81 : f32 to vector<1x512xf32>
    %75 = arith.mulf %73, %74 : vector<1x512xf32>
    %76 = vector.broadcast %75 : vector<1x512xf32> to vector<64x512xf32>
    %77 = arith.subf %69, %76 : vector<64x512xf32>
    %78 = vector.broadcast %68 : vector<64x1xf32> to vector<64x512xf32>
    %79 = arith.mulf %77, %78 : vector<64x512xf32>
    %80 = arith.mulf %79, %79 : vector<64x512xf32>
    %cst_82 = arith.constant dense<0.000000e+00> : vector<512xf32>
    %81 = vector.multi_reduction <add>, %80, %cst_82 [0] : vector<64x512xf32> to vector<512xf32>
    %82 = vector.shape_cast %81 : vector<512xf32> to vector<1x512xf32>
    %cst_83 = arith.constant 6.250000e-02 : f32
    %83 = vector.broadcast %cst_83 : f32 to vector<1x512xf32>
    %84 = arith.mulf %82, %83 : vector<1x512xf32>
    %cst_84 = arith.constant 9.99999974E-6 : f32
    %85 = vector.broadcast %cst_84 : f32 to vector<1x512xf32>
    %86 = arith.addf %84, %85 : vector<1x512xf32>
    %87 = math.rsqrt %86 : vector<1x512xf32>
    %88 = vector.broadcast %87 : vector<1x512xf32> to vector<64x512xf32>
    %89 = arith.mulf %79, %88 : vector<64x512xf32>
    %cst_85 = arith.constant 0.000000e+00 : f32
    %90 = vector.broadcast %cst_85 : f32 to vector<64x512xf32>
    %91 = arith.cmpf ogt, %89, %90 : vector<64x512xf32>
    %cst_86 = arith.constant 2.000000e-01 : f32
    %92 = vector.broadcast %cst_86 : f32 to vector<64x512xf32>
    %93 = arith.mulf %92, %89 : vector<64x512xf32>
    %94 = arith.select %91, %89, %93 : vector<64x512xi1>, vector<64x512xf32>
    %95 = vector.shape_cast %94 : vector<64x512xf32> to vector<4x16x512xf32>
    %96 = arith.truncf %95 : vector<4x16x512xf32> to vector<4x16x512xbf16>
    %c0_87 = arith.constant 0 : index
    %c0_88 = arith.constant 0 : index
    %c0_89 = arith.constant 0 : index
    %c0_90 = arith.constant 0 : index
    %97 = vector.load %arg5[%c0_87, %c0_88, %c0_89, %c0_90] : memref<1x4x16x512xbf16, #tpu.memory_space<vmem>>, vector<1x4x16x512xbf16>
    %98 = vector.shape_cast %97 : vector<1x4x16x512xbf16> to vector<4x16x512xbf16>
    %99 = vector.shape_cast %96 : vector<4x16x512xbf16> to vector<1x4x16x512xbf16>
    tpu.vector_store %arg5[%c0_87, %c0_88, %c0_89, %c0_90], %99 {strides = array<i32>} : memref<1x4x16x512xbf16, #tpu.memory_space<vmem>>, vector<1x4x16x512xbf16>,
    return
  }
  func.func @transform_0(%arg0: i32) -> (i32, i32, i32, i32, i32) {
    %c0_i32 = arith.constant 0 : i32
    %c0_i32_0 = arith.constant 0 : i32
    %c0_i32_1 = arith.constant 0 : i32
    %c0_i32_2 = arith.constant 0 : i32
    %c0_i32_3 = arith.constant 0 : i32
    return %arg0, %c0_i32, %c0_i32_0, %c0_i32_1, %c0_i32_2 : i32, i32, i32, i32, i32
  }
  func.func @transform_1(%arg0: i32) -> (i32, i32, i32) {
    %c0_i32 = arith.constant 0 : i32
    %c0_i32_0 = arith.constant 0 : i32
    %c0_i32_1 = arith.constant 0 : i32
    %c0_i32_2 = arith.constant 0 : i32
    return %c0_i32, %c0_i32_0, %c0_i32_1 : i32, i32, i32
  }
  func.func @transform_2(%arg0: i32) -> (i32, i32) {
    %c0_i32 = arith.constant 0 : i32
    %c0_i32_0 = arith.constant 0 : i32
    %c0_i32_1 = arith.constant 0 : i32
    return %c0_i32, %c0_i32_0 : i32, i32
  }
  func.func @transform_3(%arg0: i32) -> (i32, i32) {
    %c0_i32 = arith.constant 0 : i32
    %c0_i32_0 = arith.constant 0 : i32
    %c0_i32_1 = arith.constant 0 : i32
    return %c0_i32, %c0_i32_0 : i32, i32
  }
  func.func @transform_4(%arg0: i32) -> (i32, i32, i32, i32) {
    %c0_i32 = arith.constant 0 : i32
    %c0_i32_0 = arith.constant 0 : i32
    %c0_i32_1 = arith.constant 0 : i32
    %c0_i32_2 = arith.constant 0 : i32
    return %arg0, %c0_i32, %c0_i32_0, %c0_i32_1 : i32, i32, i32, i32
  }
}

module attributes {stable_mosaic.version = 11 : i64} {
  func.func @_conv_fused_kernel(%arg0: i32, %arg1: memref<1x1x6x18x512xbf16, #tpu.memory_space<vmem>>, %arg2: memref<9x512x128xbf16, #tpu.memory_space<vmem>>, %arg3: memref<1x128xf32, #tpu.memory_space<vmem>>, %arg4: memref<64x1xf32, #tpu.memory_space<vmem>>, %arg5: memref<1x4x16x128xf32, #tpu.memory_space<vmem>>) attributes {dimension_semantics = [#tpu.dimension_semantics<parallel>], iteration_bounds = array<i64: 2>, scalar_prefetch = 0 : i64, scratch_operands = 0 : i64, tpu.core_type = #tpu.core_type<tc>, window_params = [{transform_indices = @transform_0, window_bounds = array<i64: 1, 1, 6, 18, 512>}, {pipeline_mode = #tpu.pipeline_mode<synchronous>, transform_indices = @transform_1, window_bounds = array<i64: 9, 512, 128>}, {pipeline_mode = #tpu.pipeline_mode<synchronous>, transform_indices = @transform_2, window_bounds = array<i64: 1, 128>}, {pipeline_mode = #tpu.pipeline_mode<synchronous>, transform_indices = @transform_3, window_bounds = array<i64: 64, 1>}, {transform_indices = @transform_4, window_bounds = array<i64: 1, 4, 16, 128>}]} {
    %c0 = arith.constant 0 : index
    %c0_0 = arith.constant 0 : index
    %0 = vector.load %arg3[%c0, %c0_0] : memref<1x128xf32, #tpu.memory_space<vmem>>, vector<1x128xf32>
    %cst = arith.constant 0.000000e+00 : f32
    %1 = vector.broadcast %cst : f32 to vector<64x128xf32>
    %c0_1 = arith.constant 0 : index
    %c0_2 = arith.constant 0 : index
    %c0_3 = arith.constant 0 : index
    %c0_4 = arith.constant 0 : index
    %c0_5 = arith.constant 0 : index
    %2 = vector.load %arg1[%c0_1, %c0_2, %c0_3, %c0_4, %c0_5] : memref<1x1x6x18x512xbf16, #tpu.memory_space<vmem>>, vector<1x1x4x16x512xbf16>
    %3 = vector.shape_cast %2 : vector<1x1x4x16x512xbf16> to vector<4x16x512xbf16>
    %4 = vector.shape_cast %3 : vector<4x16x512xbf16> to vector<64x512xbf16>
    %c0_6 = arith.constant 0 : index
    %c0_7 = arith.constant 0 : index
    %c0_8 = arith.constant 0 : index
    %5 = vector.load %arg2[%c0_6, %c0_7, %c0_8] : memref<9x512x128xbf16, #tpu.memory_space<vmem>>, vector<1x512x128xbf16>
    %6 = vector.shape_cast %5 : vector<1x512x128xbf16> to vector<512x128xbf16>
    %cst_9 = arith.constant dense<0.000000e+00> : vector<64x128xf32>
    %7 = tpu.matmul %4, %6, %cst_9 {dimension_numbers = #tpu.dot_dimension_numbers<[1], [0], [0], [1], [0, 0, 1, 1], [], []>} : vector<64x512xbf16>, vector<512x128xbf16>, vector<64x128xf32> -> vector<64x128xf32>
    %8 = arith.addf %1, %7 : vector<64x128xf32>
    %c0_10 = arith.constant 0 : index
    %c0_11 = arith.constant 0 : index
    %c0_12 = arith.constant 0 : index
    %c1 = arith.constant 1 : index
    %c0_13 = arith.constant 0 : index
    %9 = vector.load %arg1[%c0_10, %c0_11, %c0_12, %c1, %c0_13] : memref<1x1x6x18x512xbf16, #tpu.memory_space<vmem>>, vector<1x1x4x16x512xbf16>
    %10 = vector.shape_cast %9 : vector<1x1x4x16x512xbf16> to vector<4x16x512xbf16>
    %11 = vector.shape_cast %10 : vector<4x16x512xbf16> to vector<64x512xbf16>
    %c1_14 = arith.constant 1 : index
    %c0_15 = arith.constant 0 : index
    %c0_16 = arith.constant 0 : index
    %12 = vector.load %arg2[%c1_14, %c0_15, %c0_16] : memref<9x512x128xbf16, #tpu.memory_space<vmem>>, vector<1x512x128xbf16>
    %13 = vector.shape_cast %12 : vector<1x512x128xbf16> to vector<512x128xbf16>
    %cst_17 = arith.constant dense<0.000000e+00> : vector<64x128xf32>
    %14 = tpu.matmul %11, %13, %cst_17 {dimension_numbers = #tpu.dot_dimension_numbers<[1], [0], [0], [1], [0, 0, 1, 1], [], []>} : vector<64x512xbf16>, vector<512x128xbf16>, vector<64x128xf32> -> vector<64x128xf32>
    %15 = arith.addf %8, %14 : vector<64x128xf32>
    %c0_18 = arith.constant 0 : index
    %c0_19 = arith.constant 0 : index
    %c0_20 = arith.constant 0 : index
    %c2 = arith.constant 2 : index
    %c0_21 = arith.constant 0 : index
    %16 = vector.load %arg1[%c0_18, %c0_19, %c0_20, %c2, %c0_21] : memref<1x1x6x18x512xbf16, #tpu.memory_space<vmem>>, vector<1x1x4x16x512xbf16>
    %17 = vector.shape_cast %16 : vector<1x1x4x16x512xbf16> to vector<4x16x512xbf16>
    %18 = vector.shape_cast %17 : vector<4x16x512xbf16> to vector<64x512xbf16>
    %c2_22 = arith.constant 2 : index
    %c0_23 = arith.constant 0 : index
    %c0_24 = arith.constant 0 : index
    %19 = vector.load %arg2[%c2_22, %c0_23, %c0_24] : memref<9x512x128xbf16, #tpu.memory_space<vmem>>, vector<1x512x128xbf16>
    %20 = vector.shape_cast %19 : vector<1x512x128xbf16> to vector<512x128xbf16>
    %cst_25 = arith.constant dense<0.000000e+00> : vector<64x128xf32>
    %21 = tpu.matmul %18, %20, %cst_25 {dimension_numbers = #tpu.dot_dimension_numbers<[1], [0], [0], [1], [0, 0, 1, 1], [], []>} : vector<64x512xbf16>, vector<512x128xbf16>, vector<64x128xf32> -> vector<64x128xf32>
    %22 = arith.addf %15, %21 : vector<64x128xf32>
    %c0_26 = arith.constant 0 : index
    %c0_27 = arith.constant 0 : index
    %c1_28 = arith.constant 1 : index
    %c0_29 = arith.constant 0 : index
    %c0_30 = arith.constant 0 : index
    %23 = vector.load %arg1[%c0_26, %c0_27, %c1_28, %c0_29, %c0_30] : memref<1x1x6x18x512xbf16, #tpu.memory_space<vmem>>, vector<1x1x4x16x512xbf16>
    %24 = vector.shape_cast %23 : vector<1x1x4x16x512xbf16> to vector<4x16x512xbf16>
    %25 = vector.shape_cast %24 : vector<4x16x512xbf16> to vector<64x512xbf16>
    %c3 = arith.constant 3 : index
    %c0_31 = arith.constant 0 : index
    %c0_32 = arith.constant 0 : index
    %26 = vector.load %arg2[%c3, %c0_31, %c0_32] : memref<9x512x128xbf16, #tpu.memory_space<vmem>>, vector<1x512x128xbf16>
    %27 = vector.shape_cast %26 : vector<1x512x128xbf16> to vector<512x128xbf16>
    %cst_33 = arith.constant dense<0.000000e+00> : vector<64x128xf32>
    %28 = tpu.matmul %25, %27, %cst_33 {dimension_numbers = #tpu.dot_dimension_numbers<[1], [0], [0], [1], [0, 0, 1, 1], [], []>} : vector<64x512xbf16>, vector<512x128xbf16>, vector<64x128xf32> -> vector<64x128xf32>
    %29 = arith.addf %22, %28 : vector<64x128xf32>
    %c0_34 = arith.constant 0 : index
    %c0_35 = arith.constant 0 : index
    %c1_36 = arith.constant 1 : index
    %c1_37 = arith.constant 1 : index
    %c0_38 = arith.constant 0 : index
    %30 = vector.load %arg1[%c0_34, %c0_35, %c1_36, %c1_37, %c0_38] : memref<1x1x6x18x512xbf16, #tpu.memory_space<vmem>>, vector<1x1x4x16x512xbf16>
    %31 = vector.shape_cast %30 : vector<1x1x4x16x512xbf16> to vector<4x16x512xbf16>
    %32 = vector.shape_cast %31 : vector<4x16x512xbf16> to vector<64x512xbf16>
    %c4 = arith.constant 4 : index
    %c0_39 = arith.constant 0 : index
    %c0_40 = arith.constant 0 : index
    %33 = vector.load %arg2[%c4, %c0_39, %c0_40] : memref<9x512x128xbf16, #tpu.memory_space<vmem>>, vector<1x512x128xbf16>
    %34 = vector.shape_cast %33 : vector<1x512x128xbf16> to vector<512x128xbf16>
    %cst_41 = arith.constant dense<0.000000e+00> : vector<64x128xf32>
    %35 = tpu.matmul %32, %34, %cst_41 {dimension_numbers = #tpu.dot_dimension_numbers<[1], [0], [0], [1], [0, 0, 1, 1], [], []>} : vector<64x512xbf16>, vector<512x128xbf16>, vector<64x128xf32> -> vector<64x128xf32>
    %36 = arith.addf %29, %35 : vector<64x128xf32>
    %c0_42 = arith.constant 0 : index
    %c0_43 = arith.constant 0 : index
    %c1_44 = arith.constant 1 : index
    %c2_45 = arith.constant 2 : index
    %c0_46 = arith.constant 0 : index
    %37 = vector.load %arg1[%c0_42, %c0_43, %c1_44, %c2_45, %c0_46] : memref<1x1x6x18x512xbf16, #tpu.memory_space<vmem>>, vector<1x1x4x16x512xbf16>
    %38 = vector.shape_cast %37 : vector<1x1x4x16x512xbf16> to vector<4x16x512xbf16>
    %39 = vector.shape_cast %38 : vector<4x16x512xbf16> to vector<64x512xbf16>
    %c5 = arith.constant 5 : index
    %c0_47 = arith.constant 0 : index
    %c0_48 = arith.constant 0 : index
    %40 = vector.load %arg2[%c5, %c0_47, %c0_48] : memref<9x512x128xbf16, #tpu.memory_space<vmem>>, vector<1x512x128xbf16>
    %41 = vector.shape_cast %40 : vector<1x512x128xbf16> to vector<512x128xbf16>
    %cst_49 = arith.constant dense<0.000000e+00> : vector<64x128xf32>
    %42 = tpu.matmul %39, %41, %cst_49 {dimension_numbers = #tpu.dot_dimension_numbers<[1], [0], [0], [1], [0, 0, 1, 1], [], []>} : vector<64x512xbf16>, vector<512x128xbf16>, vector<64x128xf32> -> vector<64x128xf32>
    %43 = arith.addf %36, %42 : vector<64x128xf32>
    %c0_50 = arith.constant 0 : index
    %c0_51 = arith.constant 0 : index
    %c2_52 = arith.constant 2 : index
    %c0_53 = arith.constant 0 : index
    %c0_54 = arith.constant 0 : index
    %44 = vector.load %arg1[%c0_50, %c0_51, %c2_52, %c0_53, %c0_54] : memref<1x1x6x18x512xbf16, #tpu.memory_space<vmem>>, vector<1x1x4x16x512xbf16>
    %45 = vector.shape_cast %44 : vector<1x1x4x16x512xbf16> to vector<4x16x512xbf16>
    %46 = vector.shape_cast %45 : vector<4x16x512xbf16> to vector<64x512xbf16>
    %c6 = arith.constant 6 : index
    %c0_55 = arith.constant 0 : index
    %c0_56 = arith.constant 0 : index
    %47 = vector.load %arg2[%c6, %c0_55, %c0_56] : memref<9x512x128xbf16, #tpu.memory_space<vmem>>, vector<1x512x128xbf16>
    %48 = vector.shape_cast %47 : vector<1x512x128xbf16> to vector<512x128xbf16>
    %cst_57 = arith.constant dense<0.000000e+00> : vector<64x128xf32>
    %49 = tpu.matmul %46, %48, %cst_57 {dimension_numbers = #tpu.dot_dimension_numbers<[1], [0], [0], [1], [0, 0, 1, 1], [], []>} : vector<64x512xbf16>, vector<512x128xbf16>, vector<64x128xf32> -> vector<64x128xf32>
    %50 = arith.addf %43, %49 : vector<64x128xf32>
    %c0_58 = arith.constant 0 : index
    %c0_59 = arith.constant 0 : index
    %c2_60 = arith.constant 2 : index
    %c1_61 = arith.constant 1 : index
    %c0_62 = arith.constant 0 : index
    %51 = vector.load %arg1[%c0_58, %c0_59, %c2_60, %c1_61, %c0_62] : memref<1x1x6x18x512xbf16, #tpu.memory_space<vmem>>, vector<1x1x4x16x512xbf16>
    %52 = vector.shape_cast %51 : vector<1x1x4x16x512xbf16> to vector<4x16x512xbf16>
    %53 = vector.shape_cast %52 : vector<4x16x512xbf16> to vector<64x512xbf16>
    %c7 = arith.constant 7 : index
    %c0_63 = arith.constant 0 : index
    %c0_64 = arith.constant 0 : index
    %54 = vector.load %arg2[%c7, %c0_63, %c0_64] : memref<9x512x128xbf16, #tpu.memory_space<vmem>>, vector<1x512x128xbf16>
    %55 = vector.shape_cast %54 : vector<1x512x128xbf16> to vector<512x128xbf16>
    %cst_65 = arith.constant dense<0.000000e+00> : vector<64x128xf32>
    %56 = tpu.matmul %53, %55, %cst_65 {dimension_numbers = #tpu.dot_dimension_numbers<[1], [0], [0], [1], [0, 0, 1, 1], [], []>} : vector<64x512xbf16>, vector<512x128xbf16>, vector<64x128xf32> -> vector<64x128xf32>
    %57 = arith.addf %50, %56 : vector<64x128xf32>
    %c0_66 = arith.constant 0 : index
    %c0_67 = arith.constant 0 : index
    %c2_68 = arith.constant 2 : index
    %c2_69 = arith.constant 2 : index
    %c0_70 = arith.constant 0 : index
    %58 = vector.load %arg1[%c0_66, %c0_67, %c2_68, %c2_69, %c0_70] : memref<1x1x6x18x512xbf16, #tpu.memory_space<vmem>>, vector<1x1x4x16x512xbf16>
    %59 = vector.shape_cast %58 : vector<1x1x4x16x512xbf16> to vector<4x16x512xbf16>
    %60 = vector.shape_cast %59 : vector<4x16x512xbf16> to vector<64x512xbf16>
    %c8 = arith.constant 8 : index
    %c0_71 = arith.constant 0 : index
    %c0_72 = arith.constant 0 : index
    %61 = vector.load %arg2[%c8, %c0_71, %c0_72] : memref<9x512x128xbf16, #tpu.memory_space<vmem>>, vector<1x512x128xbf16>
    %62 = vector.shape_cast %61 : vector<1x512x128xbf16> to vector<512x128xbf16>
    %cst_73 = arith.constant dense<0.000000e+00> : vector<64x128xf32>
    %63 = tpu.matmul %60, %62, %cst_73 {dimension_numbers = #tpu.dot_dimension_numbers<[1], [0], [0], [1], [0, 0, 1, 1], [], []>} : vector<64x512xbf16>, vector<512x128xbf16>, vector<64x128xf32> -> vector<64x128xf32>
    %64 = arith.addf %57, %63 : vector<64x128xf32>
    %65 = vector.broadcast %0 : vector<1x128xf32> to vector<64x128xf32>
    %66 = arith.addf %64, %65 : vector<64x128xf32>
    %c0_74 = arith.constant 0 : index
    %c0_75 = arith.constant 0 : index
    %67 = vector.load %arg4[%c0_74, %c0_75] : memref<64x1xf32, #tpu.memory_space<vmem>>, vector<64x1xf32>
    %68 = vector.broadcast %67 : vector<64x1xf32> to vector<64x128xf32>
    %69 = arith.mulf %66, %68 : vector<64x128xf32>
    %70 = vector.shape_cast %69 : vector<64x128xf32> to vector<4x16x128xf32>
    %c0_76 = arith.constant 0 : index
    %c0_77 = arith.constant 0 : index
    %c0_78 = arith.constant 0 : index
    %c0_79 = arith.constant 0 : index
    %71 = vector.load %arg5[%c0_76, %c0_77, %c0_78, %c0_79] : memref<1x4x16x128xf32, #tpu.memory_space<vmem>>, vector<1x4x16x128xf32>
    %72 = vector.shape_cast %71 : vector<1x4x16x128xf32> to vector<4x16x128xf32>
    %73 = vector.shape_cast %70 : vector<4x16x128xf32> to vector<1x4x16x128xf32>
    tpu.vector_store %arg5[%c0_76, %c0_77, %c0_78, %c0_79], %73 {strides = array<i32>} : memref<1x4x16x128xf32, #tpu.memory_space<vmem>>, vector<1x4x16x128xf32>,
    return
  }
  func.func @transform_0(%arg0: i32) -> (i32, i32, i32, i32, i32) {
    %c0_i32 = arith.constant 0 : i32
    %c0_i32_0 = arith.constant 0 : i32
    %c0_i32_1 = arith.constant 0 : i32
    %c0_i32_2 = arith.constant 0 : i32
    %c0_i32_3 = arith.constant 0 : i32
    return %arg0, %c0_i32, %c0_i32_0, %c0_i32_1, %c0_i32_2 : i32, i32, i32, i32, i32
  }
  func.func @transform_1(%arg0: i32) -> (i32, i32, i32) {
    %c0_i32 = arith.constant 0 : i32
    %c0_i32_0 = arith.constant 0 : i32
    %c0_i32_1 = arith.constant 0 : i32
    %c0_i32_2 = arith.constant 0 : i32
    return %c0_i32, %c0_i32_0, %c0_i32_1 : i32, i32, i32
  }
  func.func @transform_2(%arg0: i32) -> (i32, i32) {
    %c0_i32 = arith.constant 0 : i32
    %c0_i32_0 = arith.constant 0 : i32
    %c0_i32_1 = arith.constant 0 : i32
    return %c0_i32, %c0_i32_0 : i32, i32
  }
  func.func @transform_3(%arg0: i32) -> (i32, i32) {
    %c0_i32 = arith.constant 0 : i32
    %c0_i32_0 = arith.constant 0 : i32
    %c0_i32_1 = arith.constant 0 : i32
    return %c0_i32, %c0_i32_0 : i32, i32
  }
  func.func @transform_4(%arg0: i32) -> (i32, i32, i32, i32) {
    %c0_i32 = arith.constant 0 : i32
    %c0_i32_0 = arith.constant 0 : i32
    %c0_i32_1 = arith.constant 0 : i32
    %c0_i32_2 = arith.constant 0 : i32
    return %arg0, %c0_i32, %c0_i32_0, %c0_i32_1 : i32, i32, i32, i32
  }
}

</mosaic_0001>

<bundles_post_ra>
// kernel: tile.28
= control target key start
LH: loop header
LB: loop body
LE: loop exit
PB: predicated region body
PF: predicated region fallthrough
CT: control target
= control target key end

     0   :  { %s22_s0 = inlined_call_operand.vmem [shape: f32[16], index: 0, kind: input, shape index: {}]   ;;  %s23_s1 = inlined_call_operand.vmem [shape: f32[8,16], index: 1, kind: output, shape index: {}]  }
   0x1   :  { %v4_v0 = vld [vmem:[%s22_s0] ss:$0 sm:$0xff] }
   0x2   :  { %5 = vst [vmem:[%s23_s1] sm:$0xff] %v4_v0 }

// kernel: tile.0
= control target key start
LH: loop header
LB: loop body
LE: loop exit
PB: predicated region body
PF: predicated region fallthrough
CT: control target
= control target key end

     0   :  { %vm3_vm0 = vcmask 7168   ;;  %s264_s8 = smov 125   ;;  %s265_s17 = smov 126   ;;  %s547_s0 = inlined_call_operand.vmem [shape: f32[8,16], index: 0, kind: input, shape index: {}]   ;;  %s548_s1 = inlined_call_operand.vmem [shape: f32[128,1], index: 1, kind: output, shape index: {}]  }
   0x1   :  { %v8_v0 = vld [vmem:[%s547_s0] sm:$0xff]   ;;  %s263_s0 = smov 127   ;;  %s266_s18 = smov 124  }
   0x2   :  { %9 = vrot.lane.b32.xlu0 %v8_v0, %s263_s0  ;;  %33 = vrot.lane.b32.xlu1 %v8_v0, %s264_s8  ;;  %4 = vst.msk [vmem:[%s548_s1] ss:$16 sm:$0x3] %vm3_vm0, %v8_v0   ;;  %5 = vst.msk [vmem:[%s548_s1] ss:$16 sm:$0xc] %vm3_vm0, %v8_v0  }
   0x3   :  { %6 = vst.msk [vmem:[%s548_s1] ss:$16 sm:$0x30] %vm3_vm0, %v8_v0   ;;  %7 = vst.msk [vmem:[%s548_s1] ss:$16 sm:$0xc0] %vm3_vm0, %v8_v0  }
   0x4   :  { %s267_s19 = smov 123   ;;  %s268_s20 = smov 122  }
   0x5   :  { %s269_s21 = smov 121   ;;  %s270_s22 = smov 120  }
   0x6   :  { %21 = vrot.lane.b32.xlu0 %v8_v0, %s265_s17  ;;  %45 = vrot.lane.b32.xlu1 %v8_v0, %s266_s18  ;;  %s271_s23 = smov 119   ;;  %s272_s24 = smov 118  }
   0x7   :  { %s273_s25 = smov 117   ;;  %s274_s26 = smov 116  }
   0x8   :  { %s275_s27 = smov 115   ;;  %s276_s28 = smov 114  }
   0x9   :  { %s277_s29 = smov 113  }
   0xa   :  { %57 = vrot.lane.b32.xlu0 %v8_v0, %s267_s19  ;;  %69 = vrot.lane.b32.xlu1 %v8_v0, %s268_s20 }
   0xe   :  { %81 = vrot.lane.b32.xlu0 %v8_v0, %s269_s21  ;;  %93 = vrot.lane.b32.xlu1 %v8_v0, %s270_s22 }
  0x12   :  { %105 = vrot.lane.b32.xlu0 %v8_v0, %s271_s23  ;;  %117 = vrot.lane.b32.xlu1 %v8_v0, %s272_s24 }
  0x16   :  { %129 = vrot.lane.b32.xlu0 %v8_v0, %s273_s25  ;;  %141 = vrot.lane.b32.xlu1 %v8_v0, %s274_s26 }
  0x1a   :  { %153 = vrot.lane.b32.xlu0 %v8_v0, %s275_s27  ;;  %165 = vrot.lane.b32.xlu1 %v8_v0, %s276_s28 }
  0x1e   :  { %177 = vrot.lane.b32.xlu0 %v8_v0, %s277_s29 }
  0x74   :  { %v10_v1 = vpop.permute.xlu0 %9   ;;  %v34_v2 = vpop.permute.xlu1 %33  }
  0x75   :  { %188 = vst.msk [vmem:[%s548_s1 + $0x1] ss:$16 sm:$0x3] %vm3_vm0, %v10_v1   ;;  %189 = vst.msk [vmem:[%s548_s1 + $0x1] ss:$16 sm:$0xc] %vm3_vm0, %v10_v1  }
  0x76   :  { %190 = vst.msk [vmem:[%s548_s1 + $0x1] ss:$16 sm:$0x30] %vm3_vm0, %v10_v1   ;;  %191 = vst.msk [vmem:[%s548_s1 + $0x1] ss:$16 sm:$0xc0] %vm3_vm0, %v10_v1  }
  0x77   :  { %196 = vst.msk [vmem:[%s548_s1 + $0x3] ss:$16 sm:$0x3] %vm3_vm0, %v34_v2   ;;  %197 = vst.msk [vmem:[%s548_s1 + $0x3] ss:$16 sm:$0xc] %vm3_vm0, %v34_v2  }
  0x78   :  { %198 = vst.msk [vmem:[%s548_s1 + $0x3] ss:$16 sm:$0x30] %vm3_vm0, %v34_v2   ;;  %199 = vst.msk [vmem:[%s548_s1 + $0x3] ss:$16 sm:$0xc0] %vm3_vm0, %v34_v2   ;;  %v22_v3 = vpop.permute.xlu0 %21   ;;  %v46_v4 = vpop.permute.xlu1 %45  }
  0x79   :  { %192 = vst.msk [vmem:[%s548_s1 + $0x2] ss:$16 sm:$0x3] %vm3_vm0, %v22_v3   ;;  %193 = vst.msk [vmem:[%s548_s1 + $0x2] ss:$16 sm:$0xc] %vm3_vm0, %v22_v3  }
  0x7a   :  { %194 = vst.msk [vmem:[%s548_s1 + $0x2] ss:$16 sm:$0x30] %vm3_vm0, %v22_v3   ;;  %195 = vst.msk [vmem:[%s548_s1 + $0x2] ss:$16 sm:$0xc0] %vm3_vm0, %v22_v3  }
  0x7b   :  { %200 = vst.msk [vmem:[%s548_s1 + $0x4] ss:$16 sm:$0x3] %vm3_vm0, %v46_v4   ;;  %201 = vst.msk [vmem:[%s548_s1 + $0x4] ss:$16 sm:$0xc] %vm3_vm0, %v46_v4  }
  0x7c   :  { %202 = vst.msk [vmem:[%s548_s1 + $0x4] ss:$16 sm:$0x30] %vm3_vm0, %v46_v4   ;;  %203 = vst.msk [vmem:[%s548_s1 + $0x4] ss:$16 sm:$0xc0] %vm3_vm0, %v46_v4   ;;  %v58_v5 = vpop.permute.xlu0 %57   ;;  %v70_v6 = vpop.permute.xlu1 %69  }
  0x7d   :  { %204 = vst.msk [vmem:[%s548_s1 + $0x5] ss:$16 sm:$0x3] %vm3_vm0, %v58_v5   ;;  %205 = vst.msk [vmem:[%s548_s1 + $0x5] ss:$16 sm:$0xc] %vm3_vm0, %v58_v5  }
  0x7e   :  { %206 = vst.msk [vmem:[%s548_s1 + $0x5] ss:$16 sm:$0x30] %vm3_vm0, %v58_v5   ;;  %207 = vst.msk [vmem:[%s548_s1 + $0x5] ss:$16 sm:$0xc0] %vm3_vm0, %v58_v5  }
  0x7f   :  { %208 = vst.msk [vmem:[%s548_s1 + $0x6] ss:$16 sm:$0x3] %vm3_vm0, %v70_v6   ;;  %209 = vst.msk [vmem:[%s548_s1 + $0x6] ss:$16 sm:$0xc] %vm3_vm0, %v70_v6  }
  0x80   :  { %210 = vst.msk [vmem:[%s548_s1 + $0x6] ss:$16 sm:$0x30] %vm3_vm0, %v70_v6   ;;  %211 = vst.msk [vmem:[%s548_s1 + $0x6] ss:$16 sm:$0xc0] %vm3_vm0, %v70_v6   ;;  %v82_v7 = vpop.permute.xlu0 %81   ;;  %v94_v8 = vpop.permute.xlu1 %93  }
  0x81   :  { %212 = vst.msk [vmem:[%s548_s1 + $0x7] ss:$16 sm:$0x3] %vm3_vm0, %v82_v7   ;;  %213 = vst.msk [vmem:[%s548_s1 + $0x7] ss:$16 sm:$0xc] %vm3_vm0, %v82_v7  }
  0x82   :  { %214 = vst.msk [vmem:[%s548_s1 + $0x7] ss:$16 sm:$0x30] %vm3_vm0, %v82_v7   ;;  %215 = vst.msk [vmem:[%s548_s1 + $0x7] ss:$16 sm:$0xc0] %vm3_vm0, %v82_v7  }
  0x83   :  { %216 = vst.msk [vmem:[%s548_s1 + $0x8] ss:$16 sm:$0x3] %vm3_vm0, %v94_v8   ;;  %217 = vst.msk [vmem:[%s548_s1 + $0x8] ss:$16 sm:$0xc] %vm3_vm0, %v94_v8  }
  0x84   :  { %218 = vst.msk [vmem:[%s548_s1 + $0x8] ss:$16 sm:$0x30] %vm3_vm0, %v94_v8   ;;  %219 = vst.msk [vmem:[%s548_s1 + $0x8] ss:$16 sm:$0xc0] %vm3_vm0, %v94_v8   ;;  %v106_v9 = vpop.permute.xlu0 %105   ;;  %v118_v10 = vpop.permute.xlu1 %117  }
  0x85   :  { %220 = vst.msk [vmem:[%s548_s1 + $0x9] ss:$16 sm:$0x3] %vm3_vm0, %v106_v9   ;;  %221 = vst.msk [vmem:[%s548_s1 + $0x9] ss:$16 sm:$0xc] %vm3_vm0, %v106_v9  }
  0x86   :  { %222 = vst.msk [vmem:[%s548_s1 + $0x9] ss:$16 sm:$0x30] %vm3_vm0, %v106_v9   ;;  %223 = vst.msk [vmem:[%s548_s1 + $0x9] ss:$16 sm:$0xc0] %vm3_vm0, %v106_v9  }
  0x87   :  { %224 = vst.msk [vmem:[%s548_s1 + $0xa] ss:$16 sm:$0x3] %vm3_vm0, %v118_v10   ;;  %225 = vst.msk [vmem:[%s548_s1 + $0xa] ss:$16 sm:$0xc] %vm3_vm0, %v118_v10  }
  0x88   :  { %226 = vst.msk [vmem:[%s548_s1 + $0xa] ss:$16 sm:$0x30] %vm3_vm0, %v118_v10   ;;  %227 = vst.msk [vmem:[%s548_s1 + $0xa] ss:$16 sm:$0xc0] %vm3_vm0, %v118_v10   ;;  %v130_v11 = vpop.permute.xlu0 %129   ;;  %v142_v12 = vpop.permute.xlu1 %141  }
  0x89   :  { %228 = vst.msk [vmem:[%s548_s1 + $0xb] ss:$16 sm:$0x3] %vm3_vm0, %v130_v11   ;;  %229 = vst.msk [vmem:[%s548_s1 + $0xb] ss:$16 sm:$0xc] %vm3_vm0, %v130_v11  }
  0x8a   :  { %230 = vst.msk [vmem:[%s548_s1 + $0xb] ss:$16 sm:$0x30] %vm3_vm0, %v130_v11   ;;  %231 = vst.msk [vmem:[%s548_s1 + $0xb] ss:$16 sm:$0xc0] %vm3_vm0, %v130_v11  }
  0x8b   :  { %232 = vst.msk [vmem:[%s548_s1 + $0xc] ss:$16 sm:$0x3] %vm3_vm0, %v142_v12   ;;  %233 = vst.msk [vmem:[%s548_s1 + $0xc] ss:$16 sm:$0xc] %vm3_vm0, %v142_v12  }
  0x8c   :  { %234 = vst.msk [vmem:[%s548_s1 + $0xc] ss:$16 sm:$0x30] %vm3_vm0, %v142_v12   ;;  %235 = vst.msk [vmem:[%s548_s1 + $0xc] ss:$16 sm:$0xc0] %vm3_vm0, %v142_v12   ;;  %v154_v13 = vpop.permute.xlu0 %153   ;;  %v166_v14 = vpop.permute.xlu1 %165  }
  0x8d   :  { %236 = vst.msk [vmem:[%s548_s1 + $0xd] ss:$16 sm:$0x3] %vm3_vm0, %v154_v13   ;;  %237 = vst.msk [vmem:[%s548_s1 + $0xd] ss:$16 sm:$0xc] %vm3_vm0, %v154_v13  }
  0x8e   :  { %238 = vst.msk [vmem:[%s548_s1 + $0xd] ss:$16 sm:$0x30] %vm3_vm0, %v154_v13   ;;  %239 = vst.msk [vmem:[%s548_s1 + $0xd] ss:$16 sm:$0xc0] %vm3_vm0, %v154_v13  }
  0x8f   :  { %240 = vst.msk [vmem:[%s548_s1 + $0xe] ss:$16 sm:$0x3] %vm3_vm0, %v166_v14   ;;  %241 = vst.msk [vmem:[%s548_s1 + $0xe] ss:$16 sm:$0xc] %vm3_vm0, %v166_v14  }
  0x90   :  { %242 = vst.msk [vmem:[%s548_s1 + $0xe] ss:$16 sm:$0x30] %vm3_vm0, %v166_v14   ;;  %243 = vst.msk [vmem:[%s548_s1 + $0xe] ss:$16 sm:$0xc0] %vm3_vm0, %v166_v14   ;;  %v178_v15 = vpop.permute.xlu0 %177  }
  0x91   :  { %244 = vst.msk [vmem:[%s548_s1 + $0xf] ss:$16 sm:$0x3] %vm3_vm0, %v178_v15   ;;  %245 = vst.msk [vmem:[%s548_s1 + $0xf] ss:$16 sm:$0xc] %vm3_vm0, %v178_v15  }
  0x92   :  { %246 = vst.msk [vmem:[%s548_s1 + $0xf] ss:$16 sm:$0x30] %vm3_vm0, %v178_v15   ;;  %247 = vst.msk [vmem:[%s548_s1 + $0xf] ss:$16 sm:$0xc0] %vm3_vm0, %v178_v15  }

// kernel: discriminator_forward.5
= control target key start
LH: loop header
LB: loop body
LE: loop exit
PB: predicated region body
PF: predicated region fallthrough
CT: control target
= control target key end

     0   :  { %s895_s15 = smov 0   ;;  %s1030_s0 = inlined_call_operand.vmem [shape: bf16[2,1,8,16,32], index: 0, kind: input, shape index: {}]   ;;  %s1031_s1 = inlined_call_operand.vmem [shape: bf16[1,32,128], index: 1, kind: input, shape index: {}]   ;;  %s1032_s2 = inlined_call_operand.vmem [shape: f32[1,128], index: 2, kind: input, shape index: {}]   ;;  %s1033_s3 = inlined_call_operand.vmem [shape: f32[128,1], index: 3, kind: input, shape index: {}]   ;;  %s1034_s4 = inlined_call_operand.vmem [shape: bf16[2,8,16,128], index: 4, kind: output, shape index: {}]  }
   0x1 LB: > { %s695_s16 = sadd.s32 4294967295, %s867_s15   ;;  %p699_p0 = scmp.ge.s32.totalorder %s867_s15, 1  ;;  %s867_s15 = sphi %s895_s15, %s14_s15  }
   0x2   : > { %p162_p1 = scmp.lt.s32.totalorder %s867_s15, 3 }
   0x4   : > { %p163_p2 = pnand %p699_p0, %p162_p1 }
   0x5   : > { %v851_v0 = vld [vmem:[%s1031_s1] sm:$0xff] (!%p163_p2)   ;;  %p188_p3 = scmp.lt.s32.totalorder (!%p163_p2), %s695_s16, 1  ;;  %v852_v1 = vld [vmem:[%s1031_s1 + $0x8] sm:$0xff] (!%p163_p2)   ;;  %v450_v2 = vld [vmem:[%s1033_s3 + $0x10] sm:$0xff] (!%p163_p2)  ;;  %vm278_vm0 = vcmask (!%p163_p2), 261120   ;;  %v869_v4 = vmov (!%p163_p2), 0  }
   0x6   : > { %166 = sbr.rel (%p163_p2) target bundleno = 257 (0x101), region = 36  ;;  %816 = vmatprep.subr.bf16.mxu0 (!%p163_p2), %v851_v0  ;;  %836 = vmatprep.subr.bf16.mxu1 (!%p163_p2), %v851_v0  ;;  %v448_v3 = vld [vmem:[%s1033_s3] sm:$0xff] (!%p163_p2)  ;;  %v451_v5 = vld [vmem:[%s1033_s3 + $0x18] sm:$0xff] (!%p163_p2)  ;;  %v449_v7 = vld [vmem:[%s1033_s3 + $0x8] sm:$0xff] (!%p163_p2) }
   0x7   : > { %817 = vmatpush3.bf16.msra.mxu0 (!%p163_p2), %v851_v0  ;;  %838 = vmatpush3.bf16.msra.mxu1 (!%p163_p2), %v851_v0  ;;  %v453_v11 = vld [vmem:[%s1033_s3 + $0x28] sm:$0xff] (!%p163_p2)  ;;  %v452_v14 = vld [vmem:[%s1033_s3 + $0x20] sm:$0xff] (!%p163_p2)  ;;  %v455_v17 = vld [vmem:[%s1033_s3 + $0x38] sm:$0xff] (!%p163_p2) }
   0x8   : > { %818 = vmatprep.subr.bf16.mxu0 (!%p163_p2), %v852_v1  ;;  %837 = vmatprep.subr.bf16.mxu1 (!%p163_p2), %v852_v1  ;;  %v454_v18 = vld [vmem:[%s1033_s3 + $0x30] sm:$0xff] (!%p163_p2)  ;;  %v457_v19 = vld [vmem:[%s1033_s3 + $0x48] sm:$0xff] (!%p163_p2)  ;;  %v456_v20 = vld [vmem:[%s1033_s3 + $0x40] sm:$0xff] (!%p163_p2) }
   0x9   : > { %850 = vset.pattern.permute.xlu1 (!%p163_p2), %v869_v4  ;;  %849 = vset.pattern.permute.xlu0 (!%p163_p2), %v869_v4  ;;  %v459_v21 = vld [vmem:[%s1033_s3 + $0x58] sm:$0xff] (!%p163_p2)  ;;  %v458_v22 = vld [vmem:[%s1033_s3 + $0x50] sm:$0xff] (!%p163_p2)  ;;  %v461_v23 = vld [vmem:[%s1033_s3 + $0x68] sm:$0xff] (!%p163_p2) }
   0xa   : > { %476 = vperm.xlu1 (!%p163_p2), %850, %v450_v2   ;;  %466 = vperm.xlu0 (!%p163_p2), %849, %v448_v3   ;;  %v460_v24 = vld [vmem:[%s1033_s3 + $0x60] sm:$0xff] (!%p163_p2)  ;;  %v463_v25 = vld [vmem:[%s1033_s3 + $0x78] sm:$0xff] (!%p163_p2)  ;;  %v462_v26 = vld [vmem:[%s1033_s3 + $0x70] sm:$0xff] (!%p163_p2) }
   0xb   : > { %819 = vmatpush3.bf16.msra.mxu0 (!%p163_p2), %v852_v1  ;;  %839 = vmatpush3.bf16.msra.mxu1 (!%p163_p2), %v852_v1  ;;  %v986_v35 = vld [vmem:[%s1032_s2] ss:$0 sm:$0xff] (!%p163_p2) }
   0xd   : > { %s1036_s16 = smov (!%p188_p3, %s695_s16), 1 }
   0xe   : > { %s741_s25 = sshll.u32 %s1036_s16, 6  ;;  %481 = vperm.xlu1 %850, %v451_v5   ;;  %471 = vperm.xlu0 %849, %v449_v7  }
   0xf   : > { %s192_s28 = scalar_lea.vmem %s1030_s0, %s741_s25  ;;  %s1004_s12 = scalar_lea.vmem %s1034_s4, %s741_s25 }
  0x10   : > { %v853_v6 = vld [vmem:[%s192_s28] sm:$0xff]   ;;  %v855_v9 = vld [vmem:[%s192_s28 + $0x8] sm:$0xff]   ;;  %v857_v12 = vld [vmem:[%s192_s28 + $0x10] sm:$0xff]  }
  0x11   : > { %v854_v8 = vld [vmem:[%s192_s28 + $0x20] sm:$0xff]   ;;  %820 = vmatprep.mubr.msk.bf16.mxu0 %vm278_vm0, %v853_v6  ;;  %v856_v10 = vld [vmem:[%s192_s28 + $0x28] sm:$0xff]   ;;  %v858_v13 = vld [vmem:[%s192_s28 + $0x30] sm:$0xff]  }
  0x12   : > { %828 = vmatprep.mubr.msk.bf16.mxu1 %vm278_vm0, %v854_v8  ;;  %821 = vmatmul.mubr.msk.bf16.vlgmr.msra.gmra.mrb[0].mxu0 %vm278_vm0, %v855_v9  ;;  %v859_v15 = vld [vmem:[%s192_s28 + $0x18] sm:$0xff]  }
  0x13   : > { %829 = vmatmul.mubr.msk.bf16.vlgmr.msra.gmra.mrb[0].mxu1 %vm278_vm0, %v856_v10  ;;  %824 = vmatprep.mubr.msk.bf16.mxu0 %vm278_vm0, %v857_v12  ;;  %v860_v16 = vld [vmem:[%s192_s28 + $0x38] sm:$0xff]  }
  0x14   : > { %832 = vmatprep.mubr.msk.bf16.mxu1 %vm278_vm0, %v858_v13  ;;  %491 = vperm.xlu1 %850, %v453_v11  }
  0x15   : > { %486 = vperm.xlu0 %849, %v452_v14  }
  0x18   : > { %501 = vperm.xlu1 %850, %v455_v17  }
  0x19   : > { %496 = vperm.xlu0 %849, %v454_v18  }
  0x1a   : > { %825 = vmatmul.mubr.msk.bf16.gmra.mrb[4].mxu0 %vm278_vm0, %v859_v15 }
  0x1b   : > { %833 = vmatmul.mubr.msk.bf16.gmra.mrb[4].mxu1 %vm278_vm0, %v860_v16 }
  0x1c   : > { %511 = vperm.xlu1 %850, %v457_v19  }
  0x1d   : > { %506 = vperm.xlu0 %849, %v456_v20  }
  0x20   : > { %521 = vperm.xlu1 %850, %v459_v21  }
  0x21   : > { %516 = vperm.xlu0 %849, %v458_v22  }
  0x24   : > { %531 = vperm.xlu1 %850, %v461_v23  }
  0x25   : > { %526 = vperm.xlu0 %849, %v460_v24  }
  0x28   : > { %541 = vperm.xlu1 %850, %v463_v25  }
  0x29   : > { %536 = vperm.xlu0 %849, %v462_v26  }
  0x89   : > { %v477_v27 = vpop.permute.xlu1 %476  ;;  %v467_v28 = vpop.permute.xlu0 %466 }
  0x8d   : > { %v482_v29 = vpop.permute.xlu1 %481  ;;  %v973_v30 = vpop.permute.xlu0 %471 }
  0x93   : > { %v975_v31 = vpop.permute.xlu1 %491 }
  0x94   : > { %v977_v32 = vpop.permute.xlu0 %486 }
  0x97   : > { %v979_v33 = vpop.permute.xlu1 %501 }
  0x98   : > { %v981_v34 = vpop.permute.xlu0 %496 }
  0x9b   : > { %v988_v36 = vpop.permute.xlu1 %511 }
  0x9c   : > { %v507_v37 = vpop.permute.xlu0 %506 }
  0x9f   : > { %v522_v63 = vpop.permute.xlu1 %521 }
  0xa0   : > { %v517_v56 = vpop.permute.xlu0 %516 }
  0xe5   : > { %v822_v38 = vpop.f32.mrb[0].mxu0 }
  0xe6   : > { %v346_v39 = vadd.f32 %v822_v38, %v986_v35  ;;  %v830_v40 = vpop.f32.mrb[0].mxu1  ;;  %v337_v41 = vpop.f32.mrb[1].mxu0 }
  0xe7   : > { %v378_v42 = vadd.f32 %v830_v40, %v986_v35  ;;  %v338_v43 = vadd.f32 %v986_v35, %v337_v41  ;;  %v369_v44 = vpop.f32.mrb[1].mxu1  ;;  %v823_v45 = vpop.f32.mrb[2].mxu0 }
  0xe8   : > { %vm402_vm1 = vcmp.gt.f32.partialorder %v346_v39, 0.0  ;;  %v418_v46 = vmul.f32 0.2, %v346_v39  ;;  %v370_v47 = vadd.f32 %v986_v35, %v369_v44  ;;  %v349_v48 = vadd.f32 %v823_v45, %v986_v35  ;;  %v831_v49 = vpop.f32.mrb[2].mxu1  ;;  %v340_v50 = vpop.f32.mrb[3].mxu0 }
  0xe9   : > { %vm410_vm2 = vcmp.gt.f32.partialorder %v378_v42, 0.0  ;;  %v426_v51 = vmul.f32 0.2, %v378_v42  ;;  %vm400_vm3 = vcmp.gt.f32.partialorder %v338_v43, 0.0  ;;  %v416_v52 = vmul.f32 0.2, %v338_v43 }
  0xea   : > { %v434_v53 = vsel %vm402_vm1, %v346_v39, %v418_v46  ;;  %vm408_vm4 = vcmp.gt.f32.partialorder %v370_v47, 0.0  ;;  %v424_v54 = vmul.f32 0.2, %v370_v47  ;;  %vm403_vm5 = vcmp.gt.f32.partialorder %v349_v48, 0.0  ;;  %v372_v55 = vpop.f32.mrb[3].mxu1  ;;  %v532_v39 = vpop.permute.xlu1 %531 }
  0xeb   : > { %v442_v57 = vsel %vm410_vm2, %v378_v42, %v426_v51  ;;  %v419_v58 = vmul.f32 0.2, %v349_v48  ;;  %v546_v59 = vmul.f32 %v477_v27, %v434_v53  ;;  %v432_v61 = vsel %vm400_vm3, %v338_v43, %v416_v52 }
  0xec   : > { %v554_v60 = vmul.f32 %v517_v56, %v442_v57  ;;  %v381_v62 = vadd.f32 %v831_v49, %v986_v35  ;;  %v440_v0 = vsel %vm408_vm4, %v370_v47, %v424_v54  ;;  %v341_v2 = vadd.f32 %v986_v35, %v340_v50 }
  0xed   : > { %v435_v1 = vsel %vm403_vm5, %v349_v48, %v419_v58  ;;  %v373_v3 = vadd.f32 %v986_v35, %v372_v55  ;;  %v826_v4 = vpop.f32.mrb[4].mxu0  ;;  %v544_v12 = vmul.f32 %v467_v28, %v432_v61  ;;  %v552_v13 = vmul.f32 %v507_v37, %v440_v0 }
  0xee   : > { %v547_v5 = vmul.f32 %v482_v29, %v435_v1  ;;  %vm411_vm6 = vcmp.gt.f32.partialorder %v381_v62, 0.0  ;;  %v427_v6 = vmul.f32 0.2, %v381_v62  ;;  %v362_v7 = vadd.f32 %v826_v4, %v986_v35  ;;  %v834_v8 = vpop.f32.mrb[4].mxu1  ;;  %v353_v9 = vpop.f32.mrb[5].mxu0 }
  0xef   : > { %vm401_vm7 = vcmp.gt.f32.partialorder %v341_v2, 0.0  ;;  %v417_v10 = vmul.f32 0.2, %v341_v2  ;;  %vm409_vm8 = vcmp.gt.f32.partialorder %v373_v3, 0.0  ;;  %v425_v11 = vmul.f32 0.2, %v373_v3  ;;  %v527_v29 = vpop.permute.xlu0 %526  ;;  %v542_v56 = vpop.permute.xlu1 %541 }
  0xf0   : > { %v767_v14 = vpack.c.bf16 %v547_v5, %v546_v59  ;;  %v443_v15 = vsel %vm411_vm6, %v381_v62, %v427_v6  ;;  %v385_v16 = vpop.f32.mrb[5].mxu1  ;;  %v827_v17 = vpop.f32.mrb[6].mxu0  ;;  %v394_v21 = vadd.f32 %v834_v8, %v986_v35  ;;  %v422_v26 = vmul.f32 0.2, %v362_v7 }
  0xf1   : > { %v555_v18 = vmul.f32 %v522_v63, %v443_v15  ;;  %v433_v19 = vsel %vm401_vm7, %v341_v2, %v417_v10  ;;  %v441_v20 = vsel %vm409_vm8, %v373_v3, %v425_v11  ;;  %v835_v22 = vpop.f32.mrb[6].mxu1  ;;  %v356_v23 = vpop.f32.mrb[7].mxu0  ;;  %v354_v27 = vadd.f32 %v986_v35, %v353_v9 }
  0xf2   : > { %799 = vst [vmem:[%s1004_s12 + $0x8] sm:$0xff] %v767_v14   ;;  %v545_v24 = vmul.f32 %v973_v30, %v433_v19  ;;  %v553_v25 = vmul.f32 %v988_v36, %v441_v20  ;;  %v388_v28 = vpop.f32.mrb[7].mxu1  ;;  %vm406_vm9 = vcmp.gt.f32.partialorder %v362_v7, 0.0  ;;  %vm414_vm10 = vcmp.gt.f32.partialorder %v394_v21, 0.0 }
  0xf3   : > { %v787_v37 = vpack.c.bf16 %v555_v18, %v554_v60  ;;  %v430_v38 = vmul.f32 0.2, %v394_v21  ;;  %vm404_vm11 = vcmp.gt.f32.partialorder %v354_v27, 0.0  ;;  %v420_v42 = vmul.f32 0.2, %v354_v27  ;;  %v537_v52 = vpop.permute.xlu0 %536 }
  0xf4   : > { %v762_v40 = vpack.c.bf16 %v545_v24, %v544_v12  ;;  %v782_v41 = vpack.c.bf16 %v553_v25, %v552_v13  ;;  %v386_v30 = vadd.f32 %v986_v35, %v385_v16  ;;  %v365_v36 = vadd.f32 %v827_v17, %v986_v35 }
  0xf5   : > { %803 = vst [vmem:[%s1004_s12 + $0x28] sm:$0xff] %v787_v37   ;;  %v397_v43 = vadd.f32 %v835_v22, %v986_v35  ;;  %v438_v44 = vsel %vm406_vm9, %v362_v7, %v422_v26  ;;  %v446_v45 = vsel %vm414_vm10, %v394_v21, %v430_v38  ;;  %v357_v46 = vadd.f32 %v986_v35, %v356_v23 }
  0xf6   : > { %763 = vst [vmem:[%s1004_s12] sm:$0xff] %v762_v40   ;;  %802 = vst [vmem:[%s1004_s12 + $0x20] sm:$0xff] %v782_v41   ;;  %v389_v47 = vadd.f32 %v986_v35, %v388_v28  ;;  %v436_v48 = vsel %vm404_vm11, %v354_v27, %v420_v42  ;;  %vm412_vm12 = vcmp.gt.f32.partialorder %v386_v30, 0.0  ;;  %v428_v49 = vmul.f32 0.2, %v386_v30 }
  0xf7   : > { %vm407_vm13 = vcmp.gt.f32.partialorder %v365_v36, 0.0  ;;  %v423_v50 = vmul.f32 0.2, %v365_v36  ;;  %vm415_vm14 = vcmp.gt.f32.partialorder %v397_v43, 0.0  ;;  %v431_v51 = vmul.f32 0.2, %v397_v43 }
  0xf8   : > { %vm405_vm15 = vcmp.gt.f32.partialorder %v357_v46, 0.0  ;;  %v444_v53 = vsel %vm412_vm12, %v386_v30, %v428_v49  ;;  %v421_v54 = vmul.f32 0.2, %v357_v46  ;;  %vm413_vm0 = vcmp.gt.f32.partialorder %v389_v47, 0.0 }
  0xf9   : > { %v429_v55 = vmul.f32 0.2, %v389_v47  ;;  %v550_v57 = vmul.f32 %v981_v34, %v438_v44  ;;  %v558_v58 = vmul.f32 %v537_v52, %v446_v45  ;;  %v439_v35 = vsel %vm407_vm13, %v365_v36, %v423_v50 }
  0xfa   : > { %v447_v59 = vsel %vm415_vm14, %v397_v43, %v431_v51  ;;  %v551_v60 = vmul.f32 %v979_v33, %v439_v35  ;;  %v437_v62 = vsel %vm405_vm15, %v357_v46, %v421_v54  ;;  %v548_v0 = vmul.f32 %v977_v32, %v436_v48 }
  0xfb   : > { %v559_v61 = vmul.f32 %v542_v56, %v447_v59  ;;  %v445_v63 = vsel %vm413_vm0, %v389_v47, %v429_v55  ;;  %v556_v1 = vmul.f32 %v527_v29, %v444_v53  ;;  %v549_v2 = vmul.f32 %v975_v31, %v437_v62 }
  0xfc   : > { %v557_v3 = vmul.f32 %v532_v39, %v445_v63  ;;  %v777_v4 = vpack.c.bf16 %v551_v60, %v550_v57 }
  0xfd   : > { %v797_v34 = vpack.c.bf16 %v559_v61, %v558_v58  ;;  %v772_v5 = vpack.c.bf16 %v549_v2, %v548_v0 }
  0xfe   : > { %v792_v6 = vpack.c.bf16 %v557_v3, %v556_v1  ;;  %801 = vst [vmem:[%s1004_s12 + $0x18] sm:$0xff] %v777_v4  }
  0xff   : > { %805 = vst [vmem:[%s1004_s12 + $0x38] sm:$0xff] %v797_v34   ;;  %800 = vst [vmem:[%s1004_s12 + $0x10] sm:$0xff] %v772_v5  }
 0x100   : > { %804 = vst [vmem:[%s1004_s12 + $0x30] sm:$0xff] %v792_v6  }
 0x101 PF: > { %s14_s15 = sadd.s32 1, %s867_s15  }
 0x102   : > { %p11_p4 = scmp.ge.s32.totalorder %s14_s15, 4  }
 0x104   :  { %13 = sbr.rel (!%p11_p4) target bundleno = 1 (0x1), region = 66 }

// kernel: tile.33
= control target key start
LH: loop header
LB: loop body
LE: loop exit
PB: predicated region body
PF: predicated region fallthrough
CT: control target
= control target key end

     0   :  { %s22_s0 = inlined_call_operand.vmem [shape: f32[16], index: 0, kind: input, shape index: {}]   ;;  %s23_s1 = inlined_call_operand.vmem [shape: f32[4,16], index: 1, kind: output, shape index: {}]  }
   0x1   :  { %v4_v0 = vld [vmem:[%s22_s0] ss:$0 sm:$0xff] }
   0x2   :  { %5 = vst [vmem:[%s23_s1] sm:$0xf] %v4_v0 }

// kernel: tile.1
= control target key start
LH: loop header
LB: loop body
LE: loop exit
PB: predicated region body
PF: predicated region fallthrough
CT: control target
= control target key end

     0   :  { %s176_s8 = smov 125   ;;  %s177_s9 = smov 126   ;;  %vm7_vm0 = vcmask 7168   ;;  %s331_s0 = inlined_call_operand.vmem [shape: f32[4,16], index: 0, kind: input, shape index: {}]   ;;  %s332_s1 = inlined_call_operand.vmem [shape: f32[64,1], index: 1, kind: output, shape index: {}]  }
   0x1   :  { %v4_v0 = vld [vmem:[%s331_s0] sm:$0xf]  ;;  %s175_s0 = smov 127   ;;  %s178_s10 = smov 124  }
   0x2   :  { %5 = vst [vmem:[#allocation0] sm:$0xf] %v4_v0  ;;  %s179_s11 = smov 123   ;;  %s180_s12 = smov 122  }
   0x3   :  { %s181_s13 = smov 121   ;;  %s182_s14 = smov 120  }
   0x4   :  { %s183_s19 = smov 119   ;;  %s184_s20 = smov 118  }
   0x5   :  { %s185_s21 = smov 117   ;;  %s186_s22 = smov 116  }
   0x6   :  { %s187_s23 = smov 115   ;;  %s188_s24 = smov 114  }
   0x7   :  { %s189_s25 = smov 113  }
   0x9   :  { %v10_v1 = vld [vmem:[#allocation0] sm:$0xf]  }
   0xa   :  { %v26_v2 = vld [vmem:[#allocation0] sm:$0xf]   ;;  %11 = vrot.lane.b32.xlu0 %v10_v1, %s175_s0 }
   0xb   :  { %27 = vrot.lane.b32.xlu1 %v26_v2, %s176_s8  ;;  %v18_v3 = vld [vmem:[#allocation0] sm:$0xf]  }
   0xc   :  { %v34_v4 = vld [vmem:[#allocation0] sm:$0xf]  }
   0xd   :  { %v42_v5 = vld [vmem:[#allocation0] sm:$0xf]  }
   0xe   :  { %19 = vrot.lane.b32.xlu0 %v18_v3, %s177_s9  ;;  %v50_v6 = vld [vmem:[#allocation0] sm:$0xf]  }
   0xf   :  { %35 = vrot.lane.b32.xlu1 %v34_v4, %s178_s10  ;;  %v58_v7 = vld [vmem:[#allocation0] sm:$0xf]  }
  0x10   :  { %v66_v8 = vld [vmem:[#allocation0] sm:$0xf]  }
  0x11   :  { %v74_v9 = vld [vmem:[#allocation0] sm:$0xf]  }
  0x12   :  { %43 = vrot.lane.b32.xlu0 %v42_v5, %s179_s11  ;;  %v82_v10 = vld [vmem:[#allocation0] sm:$0xf]  }
  0x13   :  { %51 = vrot.lane.b32.xlu1 %v50_v6, %s180_s12  ;;  %v6_v11 = vld [vmem:[#allocation0] sm:$0xf]  }
  0x14   :  { %8 = vst.msk [vmem:[%s332_s1] ss:$16 sm:$0x3] %vm7_vm0, %v6_v11   ;;  %9 = vst.msk [vmem:[%s332_s1] ss:$16 sm:$0xc] %vm7_vm0, %v6_v11  }
  0x15   :  { %v90_v12 = vld [vmem:[#allocation0] sm:$0xf]  }
  0x16   :  { %59 = vrot.lane.b32.xlu0 %v58_v7, %s181_s13  ;;  %v98_v13 = vld [vmem:[#allocation0] sm:$0xf]  }
  0x17   :  { %67 = vrot.lane.b32.xlu1 %v66_v8, %s182_s14  ;;  %v106_v14 = vld [vmem:[#allocation0] sm:$0xf]  }
  0x18   :  { %v114_v15 = vld [vmem:[#allocation0] sm:$0xf]  }
  0x19   :  { %v122_v16 = vld [vmem:[#allocation0] sm:$0xf]  }
  0x1a   :  { %75 = vrot.lane.b32.xlu0 %v74_v9, %s183_s19 }
  0x1b   :  { %83 = vrot.lane.b32.xlu1 %v82_v10, %s184_s20 }
  0x1e   :  { %91 = vrot.lane.b32.xlu0 %v90_v12, %s185_s21 }
  0x1f   :  { %99 = vrot.lane.b32.xlu1 %v98_v13, %s186_s22 }
  0x22   :  { %107 = vrot.lane.b32.xlu0 %v106_v14, %s187_s23 }
  0x23   :  { %115 = vrot.lane.b32.xlu1 %v114_v15, %s188_s24 }
  0x26   :  { %123 = vrot.lane.b32.xlu0 %v122_v16, %s189_s25 }
  0x7c   :  { %v12_v17 = vpop.permute.xlu0 %11  }
  0x7d   :  { %v28_v18 = vpop.permute.xlu1 %27   ;;  %130 = vst.msk [vmem:[%s332_s1 + $0x1] ss:$16 sm:$0x3] %vm7_vm0, %v12_v17   ;;  %131 = vst.msk [vmem:[%s332_s1 + $0x1] ss:$16 sm:$0xc] %vm7_vm0, %v12_v17  }
  0x7e   :  { %134 = vst.msk [vmem:[%s332_s1 + $0x3] ss:$16 sm:$0x3] %vm7_vm0, %v28_v18   ;;  %135 = vst.msk [vmem:[%s332_s1 + $0x3] ss:$16 sm:$0xc] %vm7_vm0, %v28_v18  }
  0x80   :  { %v20_v19 = vpop.permute.xlu0 %19  }
  0x81   :  { %v36_v20 = vpop.permute.xlu1 %35   ;;  %132 = vst.msk [vmem:[%s332_s1 + $0x2] ss:$16 sm:$0x3] %vm7_vm0, %v20_v19   ;;  %133 = vst.msk [vmem:[%s332_s1 + $0x2] ss:$16 sm:$0xc] %vm7_vm0, %v20_v19  }
  0x82   :  { %136 = vst.msk [vmem:[%s332_s1 + $0x4] ss:$16 sm:$0x3] %vm7_vm0, %v36_v20   ;;  %137 = vst.msk [vmem:[%s332_s1 + $0x4] ss:$16 sm:$0xc] %vm7_vm0, %v36_v20  }
  0x84   :  { %v44_v21 = vpop.permute.xlu0 %43  }
  0x85   :  { %v52_v22 = vpop.permute.xlu1 %51   ;;  %138 = vst.msk [vmem:[%s332_s1 + $0x5] ss:$16 sm:$0x3] %vm7_vm0, %v44_v21   ;;  %139 = vst.msk [vmem:[%s332_s1 + $0x5] ss:$16 sm:$0xc] %vm7_vm0, %v44_v21  }
  0x86   :  { %140 = vst.msk [vmem:[%s332_s1 + $0x6] ss:$16 sm:$0x3] %vm7_vm0, %v52_v22   ;;  %141 = vst.msk [vmem:[%s332_s1 + $0x6] ss:$16 sm:$0xc] %vm7_vm0, %v52_v22  }
  0x88   :  { %v60_v23 = vpop.permute.xlu0 %59  }
  0x89   :  { %v68_v24 = vpop.permute.xlu1 %67   ;;  %142 = vst.msk [vmem:[%s332_s1 + $0x7] ss:$16 sm:$0x3] %vm7_vm0, %v60_v23   ;;  %143 = vst.msk [vmem:[%s332_s1 + $0x7] ss:$16 sm:$0xc] %vm7_vm0, %v60_v23  }
  0x8a   :  { %144 = vst.msk [vmem:[%s332_s1 + $0x8] ss:$16 sm:$0x3] %vm7_vm0, %v68_v24   ;;  %145 = vst.msk [vmem:[%s332_s1 + $0x8] ss:$16 sm:$0xc] %vm7_vm0, %v68_v24  }
  0x8c   :  { %v76_v25 = vpop.permute.xlu0 %75  }
  0x8d   :  { %v84_v26 = vpop.permute.xlu1 %83   ;;  %146 = vst.msk [vmem:[%s332_s1 + $0x9] ss:$16 sm:$0x3] %vm7_vm0, %v76_v25   ;;  %147 = vst.msk [vmem:[%s332_s1 + $0x9] ss:$16 sm:$0xc] %vm7_vm0, %v76_v25  }
  0x8e   :  { %148 = vst.msk [vmem:[%s332_s1 + $0xa] ss:$16 sm:$0x3] %vm7_vm0, %v84_v26   ;;  %149 = vst.msk [vmem:[%s332_s1 + $0xa] ss:$16 sm:$0xc] %vm7_vm0, %v84_v26  }
  0x90   :  { %v92_v27 = vpop.permute.xlu0 %91  }
  0x91   :  { %v100_v28 = vpop.permute.xlu1 %99   ;;  %150 = vst.msk [vmem:[%s332_s1 + $0xb] ss:$16 sm:$0x3] %vm7_vm0, %v92_v27   ;;  %151 = vst.msk [vmem:[%s332_s1 + $0xb] ss:$16 sm:$0xc] %vm7_vm0, %v92_v27  }
  0x92   :  { %152 = vst.msk [vmem:[%s332_s1 + $0xc] ss:$16 sm:$0x3] %vm7_vm0, %v100_v28   ;;  %153 = vst.msk [vmem:[%s332_s1 + $0xc] ss:$16 sm:$0xc] %vm7_vm0, %v100_v28  }
  0x94   :  { %v108_v29 = vpop.permute.xlu0 %107  }
  0x95   :  { %v116_v30 = vpop.permute.xlu1 %115   ;;  %154 = vst.msk [vmem:[%s332_s1 + $0xd] ss:$16 sm:$0x3] %vm7_vm0, %v108_v29   ;;  %155 = vst.msk [vmem:[%s332_s1 + $0xd] ss:$16 sm:$0xc] %vm7_vm0, %v108_v29  }
  0x96   :  { %156 = vst.msk [vmem:[%s332_s1 + $0xe] ss:$16 sm:$0x3] %vm7_vm0, %v116_v30   ;;  %157 = vst.msk [vmem:[%s332_s1 + $0xe] ss:$16 sm:$0xc] %vm7_vm0, %v116_v30  }
  0x98   :  { %v124_v31 = vpop.permute.xlu0 %123  }
  0x99   :  { %158 = vst.msk [vmem:[%s332_s1 + $0xf] ss:$16 sm:$0x3] %vm7_vm0, %v124_v31   ;;  %159 = vst.msk [vmem:[%s332_s1 + $0xf] ss:$16 sm:$0xc] %vm7_vm0, %v124_v31  }

// kernel: discriminator_forward.6
= control target key start
LH: loop header
LB: loop body
LE: loop exit
PB: predicated region body
PF: predicated region fallthrough
CT: control target
= control target key end

     0   :  { %s1453_s15 = smov 0   ;;  %s1727_s0 = inlined_call_operand.vmem [shape: bf16[2,2,5,16,192], index: 0, kind: input, shape index: {}]   ;;  %s1728_s1 = inlined_call_operand.vmem [shape: bf16[3,192,128], index: 1, kind: input, shape index: {}]   ;;  %s1729_s2 = inlined_call_operand.vmem [shape: f32[1,128], index: 2, kind: input, shape index: {}]   ;;  %s1730_s3 = inlined_call_operand.vmem [shape: f32[64,1], index: 3, kind: input, shape index: {}]   ;;  %s1731_s4 = inlined_call_operand.vmem [shape: bf16[2,4,16,128], index: 4, kind: output, shape index: {}]  }
   0x1 LB: > { %s1131_s16 = sadd.s32 4294967295, %s1425_s15   ;;  %p1135_p0 = scmp.ge.s32.totalorder %s1425_s15, 1  ;;  %s1425_s15 = sphi %s1453_s15, %s14_s15  }
   0x2   : > { %p162_p1 = scmp.lt.s32.totalorder %s1425_s15, 3 }
   0x4   : > { %p163_p2 = pnand %p1135_p0, %p162_p1 }
   0x5   : > { %v1354_v0 = vld [vmem:[%s1728_s1 + $0x60] sm:$0xff] (!%p163_p2)   ;;  %v1427_v1 = vmov (!%p163_p2), 0   ;;  %v1356_v3 = vld [vmem:[%s1728_s1 + $0x68] sm:$0xff] (!%p163_p2)   ;;  %v1358_v5 = vld [vmem:[%s1728_s1 + $0x70] sm:$0xff] (!%p163_p2)   ;;  %p188_p3 = scmp.lt.s32.totalorder (!%p163_p2), %s1131_s16, 1  ;;  %vm374_vm0 = vcmask (!%p163_p2), 523264  }
   0x6   : > { %166 = sbr.rel (%p163_p2) target bundleno = 413 (0x19d), region = 36  ;;  %387 = vmatprep.subr.bf16.mxu0 (!%p163_p2), %v1427_v1  ;;  %572 = vmatprep.subr.bf16.mxu1 (!%p163_p2), %v1427_v1  ;;  %v1355_v2 = vld [vmem:[%s1728_s1] sm:$0xff] (!%p163_p2)   ;;  %v1357_v4 = vld [vmem:[%s1728_s1 + $0x8] sm:$0xff] (!%p163_p2)   ;;  %v1359_v6 = vld [vmem:[%s1728_s1 + $0x10] sm:$0xff] (!%p163_p2)  }
   0x7   : > { %388 = vmatpush1.bf16.msra.mxu0 (!%p163_p2), %v1354_v0  ;;  %1352 = vset.pattern.permute.xlu0 (!%p163_p2), %v1427_v1  ;;  %v1360_v7 = vld [vmem:[%s1728_s1 + $0x78] sm:$0xff] (!%p163_p2)   ;;  %v1362_v9 = vld [vmem:[%s1728_s1 + $0x80] sm:$0xff] (!%p163_p2)   ;;  %v1364_v11 = vld [vmem:[%s1728_s1 + $0x88] sm:$0xff] (!%p163_p2)  }
   0x8   : > { %573 = vmatpush1.bf16.msra.mxu1 (!%p163_p2), %v1355_v2  ;;  %389 = vmatprep.subr.bf16.mxu0 (!%p163_p2), %v1427_v1  ;;  %v1361_v8 = vld [vmem:[%s1728_s1 + $0x18] sm:$0xff] (!%p163_p2)   ;;  %v1363_v10 = vld [vmem:[%s1728_s1 + $0x20] sm:$0xff] (!%p163_p2)   ;;  %v1365_v12 = vld [vmem:[%s1728_s1 + $0x28] sm:$0xff] (!%p163_p2)  }
   0x9   : > { %574 = vmatprep.subr.bf16.mxu1 (!%p163_p2), %v1427_v1  ;;  %1353 = vset.pattern.permute.xlu1 (!%p163_p2), %v1427_v1  ;;  %v1366_v13 = vld [vmem:[%s1728_s1 + $0x90] sm:$0xff] (!%p163_p2)   ;;  %v1368_v16 = vld [vmem:[%s1728_s1 + $0x98] sm:$0xff] (!%p163_p2)   ;;  %v1370_v19 = vld [vmem:[%s1728_s1 + $0xa0] sm:$0xff] (!%p163_p2)  }
   0xa   : > { %v1367_v14 = vld [vmem:[%s1728_s1 + $0x30] sm:$0xff] (!%p163_p2)   ;;  %v1369_v18 = vld [vmem:[%s1728_s1 + $0x38] sm:$0xff] (!%p163_p2)   ;;  %v1371_v20 = vld [vmem:[%s1728_s1 + $0x40] sm:$0xff] (!%p163_p2)  }
   0xb   : > { %390 = vmatpush1.bf16.msra.mxu0 (!%p163_p2), %v1356_v3  ;;  %v1372_v21 = vld [vmem:[%s1728_s1 + $0xa8] sm:$0xff] (!%p163_p2)   ;;  %v1374_v23 = vld [vmem:[%s1728_s1 + $0xb0] sm:$0xff] (!%p163_p2)   ;;  %v1376_v25 = vld [vmem:[%s1728_s1 + $0xb8] sm:$0xff] (!%p163_p2)  }
   0xc   : > { %575 = vmatpush1.bf16.msra.mxu1 (!%p163_p2), %v1357_v4  ;;  %391 = vmatprep.subr.bf16.mxu0 (!%p163_p2), %v1427_v1  ;;  %v1373_v22 = vld [vmem:[%s1728_s1 + $0x48] sm:$0xff] (!%p163_p2)   ;;  %v1375_v24 = vld [vmem:[%s1728_s1 + $0x50] sm:$0xff] (!%p163_p2)   ;;  %v1377_v26 = vld [vmem:[%s1728_s1 + $0x58] sm:$0xff] (!%p163_p2)  }
   0xd   : > { %576 = vmatprep.subr.bf16.mxu1 %v1427_v1  ;;  %s1733_s16 = smov (!%p188_p3, %s1131_s16), 1  ;;  %v1384_v29 = vld [vmem:[%s1728_s1 + $0xc0] sm:$0xff]   ;;  %v1385_v33 = vld [vmem:[%s1728_s1 + $0xc8] sm:$0xff]   ;;  %v888_v34 = vld [vmem:[%s1730_s3 + $0x10] sm:$0xff] }
   0xe   : > { %s1342_s13 = smul.u32 160, %s1733_s16  ;;  %v886_v31 = vld [vmem:[%s1730_s3] sm:$0xff]  ;;  %v887_v35 = vld [vmem:[%s1730_s3 + $0x8] sm:$0xff]  ;;  %914 = vperm.xlu1 %1353, %v888_v34   ;;  %v1386_v37 = vld [vmem:[%s1728_s1 + $0xd0] sm:$0xff]   ;;  %s1286_s14 = sshll.u32 %s1733_s16, 5 }
   0xf   : > { %392 = vmatpush1.bf16.msra.mxu0 %v1358_v5  ;;  %904 = vperm.xlu0 %1352, %v886_v31   ;;  %v889_v39 = vld [vmem:[%s1730_s3 + $0x18] sm:$0xff]  ;;  %v890_v43 = vld [vmem:[%s1730_s3 + $0x20] sm:$0xff]  ;;  %v891_v44 = vld [vmem:[%s1730_s3 + $0x28] sm:$0xff]  ;;  %s197_s16 = scalar_lea.vmem %s1731_s4, %s1286_s14 }
  0x10   : > { %577 = vmatpush1.bf16.msra.mxu1 %v1359_v6  ;;  %393 = vmatprep.subr.bf16.mxu0 %v1427_v1  ;;  %s1524_s22 = scalar_lea.vmem %s1727_s0, %s1342_s13  ;;  %v1387_v42 = vld [vmem:[%s1728_s1 + $0xd8] sm:$0xff]   ;;  %v1388_v46 = vld [vmem:[%s1728_s1 + $0xe0] sm:$0xff]   ;;  %v892_v48 = vld [vmem:[%s1730_s3 + $0x30] sm:$0xff] }
  0x11   : > { %578 = vmatprep.subr.bf16.mxu1 %v1427_v1  ;;  %v1380_v15 = vld [vmem:[%s1524_s22 + $0x54] ss:$8 sps:$4 sm:$0xff]   ;;  %v1383_v17 = vld [vmem:[%s1524_s22 + $0x4] ss:$8 sps:$4 sm:$0xff]   ;;  %v1378_v27 = vld [vmem:[%s1524_s22 + $0x50] ss:$8 sps:$4 sm:$0xff]  }
  0x12   : > { %1191 = vmatprep.mubr.msk.bf16.mxu0 %vm374_vm0, %v1380_v15  ;;  %1215 = vmatprep.mubr.msk.bf16.mxu1 %vm374_vm0, %v1383_v17  ;;  %v1381_v28 = vld [vmem:[%s1524_s22] ss:$8 sps:$4 sm:$0xff]   ;;  %v1389_v30 = vld [vmem:[%s1524_s22 + $0x64] ss:$8 sps:$4 sm:$0xff]   ;;  %v1587_v32 = vld [vmem:[%s1524_s22 + $0x14] ss:$8 sps:$4 sm:$0xff]  }
  0x13   : > { %394 = vmatpush1.bf16.msra.mxu0 %v1360_v7  ;;  %v1391_v36 = vld [vmem:[%s1524_s22 + $0x60] ss:$8 sps:$4 sm:$0xff]   ;;  %v1608_v38 = vld [vmem:[%s1524_s22 + $0x10] ss:$8 sps:$4 sm:$0xff]   ;;  %909 = vperm.xlu0 %1352, %v887_v35   ;;  %v1397_v40 = vld [vmem:[%s1524_s22 + $0x74] ss:$8 sps:$4 sm:$0xff]  }
  0x14   : > { %579 = vmatpush1.bf16.msra.mxu1 %v1361_v8  ;;  %395 = vmatprep.subr.bf16.mxu0 %v1427_v1  ;;  %v1617_v41 = vld [vmem:[%s1524_s22 + $0x24] ss:$8 sps:$4 sm:$0xff]   ;;  %v1399_v45 = vld [vmem:[%s1524_s22 + $0x70] ss:$8 sps:$4 sm:$0xff]   ;;  %v1639_v47 = vld [vmem:[%s1524_s22 + $0x20] ss:$8 sps:$4 sm:$0xff]  }
  0x15   : > { %580 = vmatprep.subr.bf16.mxu1 %v1427_v1  ;;  %919 = vperm.xlu1 %1353, %v889_v39   ;;  %v1405_v49 = vld [vmem:[%s1524_s22 + $0x84] ss:$8 sps:$4 sm:$0xff]   ;;  %v1408_v50 = vld [vmem:[%s1524_s22 + $0x34] ss:$8 sps:$4 sm:$0xff]   ;;  %v1407_v53 = vld [vmem:[%s1524_s22 + $0x80] ss:$8 sps:$4 sm:$0xff]  }
  0x16   : > { %v1394_v51 = vld [vmem:[%s1728_s1 + $0xe8] sm:$0xff]   ;;  %v893_v52 = vld [vmem:[%s1730_s3 + $0x38] sm:$0xff]  ;;  %v1396_v54 = vld [vmem:[%s1728_s1 + $0xf0] sm:$0xff]  }
  0x17   : > { %396 = vmatpush1.bf16.msra.mxu0 %v1362_v9  ;;  %924 = vperm.xlu0 %1352, %v890_v43   ;;  %v1411_v55 = vld [vmem:[%s1524_s22 + $0x30] ss:$8 sps:$4 sm:$0xff]   ;;  %v1404_v57 = vld [vmem:[%s1728_s1 + $0x100] sm:$0xff]   ;;  %v1410_v58 = vld [vmem:[%s1728_s1 + $0x108] sm:$0xff]  }
  0x18   : > { %581 = vmatpush1.bf16.msra.mxu1 %v1363_v10  ;;  %397 = vmatprep.subr.bf16.mxu0 %v1427_v1  ;;  %v1402_v56 = vld [vmem:[%s1728_s1 + $0xf8] sm:$0xff]   ;;  %v1412_v59 = vld [vmem:[%s1728_s1 + $0x110] sm:$0xff]   ;;  %v1414_v61 = vld [vmem:[%s1524_s22 + $0x44] ss:$8 sps:$4 sm:$0xff]  }
  0x19   : > { %582 = vmatprep.subr.bf16.mxu1 %v1427_v1  ;;  %929 = vperm.xlu1 %1353, %v891_v44   ;;  %v1413_v60 = vld [vmem:[%s1728_s1 + $0x118] sm:$0xff]   ;;  %v1416_v62 = vld [vmem:[%s1524_s22 + $0x40] ss:$8 sps:$4 sm:$0xff]  }
  0x1b   : > { %398 = vmatpush1.bf16.msra.mxu0 %v1364_v11  ;;  %934 = vperm.xlu0 %1352, %v892_v48  }
  0x1c   : > { %583 = vmatpush1.bf16.msra.mxu1 %v1365_v12  ;;  %399 = vmatprep.subr.bf16.mxu0 %v1427_v1 }
  0x1d   : > { %584 = vmatprep.subr.bf16.mxu1 %v1427_v1  ;;  %939 = vperm.xlu1 %1353, %v893_v52  }
  0x1f   : > { %400 = vmatpush1.bf16.msra.mxu0 %v1366_v13 }
  0x20   : > { %585 = vmatpush1.bf16.msra.mxu1 %v1367_v14  ;;  %401 = vmatprep.subr.bf16.mxu0 %v1427_v1 }
  0x21   : > { %586 = vmatprep.subr.bf16.mxu1 %v1427_v1 }
  0x23   : > { %402 = vmatpush1.bf16.msra.mxu0 %v1368_v16 }
  0x24   : > { %587 = vmatpush1.bf16.msra.mxu1 %v1369_v18  ;;  %403 = vmatprep.subr.bf16.mxu0 %v1427_v1 }
  0x25   : > { %588 = vmatprep.subr.bf16.mxu1 %v1427_v1 }
  0x27   : > { %404 = vmatpush1.bf16.msra.mxu0 %v1370_v19 }
  0x28   : > { %589 = vmatpush1.bf16.msra.mxu1 %v1371_v20  ;;  %405 = vmatprep.subr.bf16.mxu0 %v1427_v1 }
  0x29   : > { %590 = vmatprep.subr.bf16.mxu1 %v1427_v1 }
  0x2b   : > { %406 = vmatpush1.bf16.msra.mxu0 %v1372_v21 }
  0x2c   : > { %591 = vmatpush1.bf16.msra.mxu1 %v1373_v22  ;;  %407 = vmatprep.subr.bf16.mxu0 %v1427_v1 }
  0x2d   : > { %592 = vmatprep.subr.bf16.mxu1 %v1427_v1 }
  0x2f   : > { %408 = vmatpush1.bf16.msra.mxu0 %v1374_v23 }
  0x30   : > { %593 = vmatpush1.bf16.msra.mxu1 %v1375_v24  ;;  %409 = vmatprep.subr.bf16.mxu0 %v1427_v1 }
  0x31   : > { %594 = vmatprep.subr.bf16.mxu1 %v1427_v1 }
  0x33   : > { %410 = vmatpush1.bf16.msra.mxu0 %v1376_v25 }
  0x34   : > { %595 = vmatpush1.bf16.msra.mxu1 %v1377_v26  ;;  %791 = vmatprep.subr.bf16.mxu0 %v1427_v1 }
  0x35   : > { %1318 = vmatprep.subr.bf16.mxu1 %v1427_v1 }
  0x36   : > { %420 = vmatmul.mubr.bf16.vlgmr.msra.gmra.mrb[0].mxu0 %v1378_v27 }
  0x37   : > { %605 = vmatmul.mubr.bf16.vlgmr.msra.gmra.mrb[0].mxu1 %v1381_v28  ;;  %792 = vmatpush1.bf16.msra.mxu0 %v1384_v29 }
  0x38   : > { %1330 = vmatpush1.bf16.msra.mxu1 %v1384_v29  ;;  %793 = vmatprep.subr.bf16.mxu0 %v1427_v1 }
  0x39   : > { %1319 = vmatprep.subr.bf16.mxu1 %v1427_v1  ;;  %1192 = vmatprep.mubr.msk.bf16.mxu0 %vm374_vm0, %v1389_v30 }
  0x3a   : > { %1216 = vmatprep.mubr.msk.bf16.mxu1 %vm374_vm0, %v1587_v32 }
  0x3b   : > { %794 = vmatpush1.bf16.msra.mxu0 %v1385_v33 }
  0x3c   : > { %1331 = vmatpush1.bf16.msra.mxu1 %v1385_v33  ;;  %795 = vmatprep.subr.bf16.mxu0 %v1427_v1 }
  0x3d   : > { %1320 = vmatprep.subr.bf16.mxu1 %v1427_v1 }
  0x3e   : > { %428 = vmatmul.mubr.bf16.gmra.mrb[4].mxu0 %v1391_v36 }
  0x3f   : > { %796 = vmatpush1.bf16.msra.mxu0 %v1386_v37  ;;  %613 = vmatmul.mubr.bf16.gmra.mrb[4].mxu1 %v1608_v38 }
  0x40   : > { %1332 = vmatpush1.bf16.msra.mxu1 %v1386_v37  ;;  %797 = vmatprep.subr.bf16.mxu0 %v1427_v1 }
  0x41   : > { %1321 = vmatprep.subr.bf16.mxu1 %v1427_v1  ;;  %1193 = vmatprep.mubr.msk.bf16.mxu0 %vm374_vm0, %v1397_v40 }
  0x42   : > { %1217 = vmatprep.mubr.msk.bf16.mxu1 %vm374_vm0, %v1617_v41 }
  0x43   : > { %798 = vmatpush1.bf16.msra.mxu0 %v1387_v42 }
  0x44   : > { %1333 = vmatpush1.bf16.msra.mxu1 %v1387_v42  ;;  %799 = vmatprep.subr.bf16.mxu0 %v1427_v1 }
  0x45   : > { %1322 = vmatprep.subr.bf16.mxu1 %v1427_v1 }
  0x46   : > { %436 = vmatmul.mubr.bf16.gmra.mrb[8].mxu0 %v1399_v45 }
  0x47   : > { %800 = vmatpush1.bf16.msra.mxu0 %v1388_v46  ;;  %621 = vmatmul.mubr.bf16.gmra.mrb[8].mxu1 %v1639_v47 }
  0x48   : > { %1334 = vmatpush1.bf16.msra.mxu1 %v1388_v46  ;;  %801 = vmatprep.subr.bf16.mxu0 %v1427_v1 }
  0x49   : > { %1323 = vmatprep.subr.bf16.mxu1 %v1427_v1  ;;  %1194 = vmatprep.mubr.msk.bf16.mxu0 %vm374_vm0, %v1405_v49 }
  0x4a   : > { %1218 = vmatprep.mubr.msk.bf16.mxu1 %vm374_vm0, %v1408_v50 }
  0x4b   : > { %802 = vmatpush1.bf16.msra.mxu0 %v1394_v51 }
  0x4c   : > { %1335 = vmatpush1.bf16.msra.mxu1 %v1394_v51  ;;  %803 = vmatprep.subr.bf16.mxu0 %v1427_v1 }
  0x4d   : > { %1324 = vmatprep.subr.bf16.mxu1 %v1427_v1 }
  0x4e   : > { %444 = vmatmul.mubr.bf16.gmra.mrb[12].mxu0 %v1407_v53 }
  0x4f   : > { %804 = vmatpush1.bf16.msra.mxu0 %v1396_v54  ;;  %629 = vmatmul.mubr.bf16.gmra.mrb[12].mxu1 %v1411_v55 }
  0x50   : > { %1336 = vmatpush1.bf16.msra.mxu1 %v1396_v54  ;;  %805 = vmatprep.subr.bf16.mxu0 %v1427_v1 }
  0x51   : > { %1325 = vmatprep.subr.bf16.mxu1 %v1427_v1  ;;  %1271 = vmatprep.mubr.msk.bf16.mxu0 %vm374_vm0, %v1587_v32 }
  0x52   : > { %1273 = vmatprep.mubr.msk.bf16.mxu1 %vm374_vm0, %v1408_v50 }
  0x53   : > { %806 = vmatpush1.bf16.msra.mxu0 %v1402_v56 }
  0x54   : > { %1337 = vmatpush1.bf16.msra.mxu1 %v1402_v56  ;;  %807 = vmatprep.subr.bf16.mxu0 %v1427_v1 }
  0x55   : > { %1326 = vmatprep.subr.bf16.mxu1 %v1427_v1 }
  0x57   : > { %808 = vmatpush1.bf16.msra.mxu0 %v1404_v57 }
  0x58   : > { %1338 = vmatpush1.bf16.msra.mxu1 %v1404_v57  ;;  %809 = vmatprep.subr.bf16.mxu0 %v1427_v1 }
  0x59   : > { %1327 = vmatprep.subr.bf16.mxu1 %v1427_v1 }
  0x5b   : > { %810 = vmatpush1.bf16.msra.mxu0 %v1410_v58 }
  0x5c   : > { %1339 = vmatpush1.bf16.msra.mxu1 %v1410_v58  ;;  %811 = vmatprep.subr.bf16.mxu0 %v1427_v1 }
  0x5d   : > { %1328 = vmatprep.subr.bf16.mxu1 %v1427_v1 }
  0x5f   : > { %812 = vmatpush1.bf16.msra.mxu0 %v1412_v59 }
  0x60   : > { %1340 = vmatpush1.bf16.msra.mxu1 %v1412_v59  ;;  %813 = vmatprep.subr.bf16.mxu0 %v1427_v1 }
  0x61   : > { %1329 = vmatprep.subr.bf16.mxu1 %v1427_v1 }
  0x63   : > { %814 = vmatpush1.bf16.msra.mxu0 %v1413_v60 }
  0x64   : > { %1341 = vmatpush1.bf16.msra.mxu1 %v1413_v60 }
  0x66   : > { %824 = vmatmul.mubr.bf16.vlgmr.msra.gmra.mrb[16].mxu0 %v1608_v38 }
  0x67   : > { %840 = vmatmul.mubr.bf16.vlgmr.msra.gmra.mrb[16].mxu1 %v1411_v55  ;;  %1272 = vmatprep.mubr.msk.bf16.mxu0 %vm374_vm0, %v1617_v41  ;;  %v1275_v41 = vld [vmem:[%s1729_s2] ss:$0 sm:$0xff] }
  0x68   : > { %1274 = vmatprep.mubr.msk.bf16.mxu1 %vm374_vm0, %v1414_v61 }
  0x6e   : > { %832 = vmatmul.mubr.bf16.gmra.mrb[20].mxu0 %v1639_v47 }
  0x6f   : > { %848 = vmatmul.mubr.bf16.gmra.mrb[20].mxu1 %v1416_v62 }
  0x8d   : > { %v1703_v40 = vpop.permute.xlu1 %914 }
  0x8e   : > { %v1701_v39 = vpop.permute.xlu0 %904 }
  0x92   : > { %v910_v56 = vpop.permute.xlu0 %909 }
  0x94   : > { %v920_v59 = vpop.permute.xlu1 %919 }
 0x109   : > { %v421_v63 = vpop.f32.mrb[0].mxu0 }
 0x10a   : > { %v606_v0 = vpop.f32.mrb[0].mxu1  ;;  %v423_v2 = vpop.f32.mrb[1].mxu0 }
 0x10b   : > { %v607_v3 = vadd.f32 %v606_v0, %v421_v63  ;;  %v608_v1 = vpop.f32.mrb[1].mxu1  ;;  %v424_v4 = vpop.f32.mrb[2].mxu0 }
 0x10c   : > { %v609_v5 = vpop.f32.mrb[2].mxu1  ;;  %v426_v6 = vpop.f32.mrb[3].mxu0 }
 0x10d   : > { %v610_v7 = vadd.f32 %v609_v5, %v424_v4  ;;  %v611_v8 = vpop.f32.mrb[3].mxu1 }
 0x111   : > { %v429_v9 = vpop.f32.mrb[4].mxu0 }
 0x112   : > { %v431_v10 = vpop.f32.mrb[5].mxu0  ;;  %v614_v11 = vpop.f32.mrb[4].mxu1 }
 0x113   : > { %v615_v12 = vadd.f32 %v614_v11, %v429_v9  ;;  %v432_v13 = vpop.f32.mrb[6].mxu0  ;;  %v616_v14 = vpop.f32.mrb[5].mxu1 }
 0x114   : > { %v434_v15 = vpop.f32.mrb[7].mxu0  ;;  %v617_v16 = vpop.f32.mrb[6].mxu1 }
 0x115   : > { %v618_v17 = vadd.f32 %v617_v16, %v432_v13  ;;  %v619_v18 = vpop.f32.mrb[7].mxu1  ;;  %v925_v14 = vpop.permute.xlu0 %924 }
 0x119   : > { %v437_v19 = vpop.f32.mrb[8].mxu0 }
 0x11a   : > { %v439_v20 = vpop.f32.mrb[9].mxu0  ;;  %v622_v21 = vpop.f32.mrb[8].mxu1 }
 0x11b   : > { %v623_v22 = vadd.f32 %v622_v21, %v437_v19  ;;  %v440_v23 = vpop.f32.mrb[10].mxu0  ;;  %v624_v24 = vpop.f32.mrb[9].mxu1 }
 0x11c   : > { %v442_v25 = vpop.f32.mrb[11].mxu0  ;;  %v625_v26 = vpop.f32.mrb[10].mxu1 }
 0x11d   : > { %v626_v27 = vadd.f32 %v625_v26, %v440_v23  ;;  %v627_v28 = vpop.f32.mrb[11].mxu1 }
 0x121   : > { %v445_v29 = vpop.f32.mrb[12].mxu0 }
 0x122   : > { %v447_v30 = vpop.f32.mrb[13].mxu0  ;;  %v630_v31 = vpop.f32.mrb[12].mxu1 }
 0x123   : > { %v631_v32 = vadd.f32 %v630_v31, %v445_v29  ;;  %v448_v33 = vpop.f32.mrb[14].mxu0  ;;  %v632_v34 = vpop.f32.mrb[13].mxu1 }
 0x124   : > { %v450_v35 = vpop.f32.mrb[15].mxu0  ;;  %v633_v36 = vpop.f32.mrb[14].mxu1 }
 0x125   : > { %v634_v37 = vadd.f32 %v633_v36, %v448_v33  ;;  %v635_v38 = vpop.f32.mrb[15].mxu1 }
 0x139   : > { %v825_v42 = vpop.f32.mrb[16].mxu0 }
 0x13a   : > { %v856_v43 = vadd.f32 %v825_v42, %v607_v3  ;;  %v841_v44 = vpop.f32.mrb[16].mxu1  ;;  %v827_v45 = vpop.f32.mrb[17].mxu0 }
 0x13b   : > { %v860_v46 = vadd.f32 %v841_v44, %v623_v22  ;;  %v843_v47 = vpop.f32.mrb[17].mxu1  ;;  %v828_v48 = vpop.f32.mrb[18].mxu0 }
 0x13c   : > { %v870_v49 = vadd.f32 %v1275_v41, %v856_v43  ;;  %v857_v50 = vadd.f32 %v828_v48, %v610_v7  ;;  %v844_v51 = vpop.f32.mrb[18].mxu1  ;;  %v830_v52 = vpop.f32.mrb[19].mxu0 }
 0x13d   : > { %v861_v53 = vadd.f32 %v844_v51, %v626_v27  ;;  %v846_v54 = vpop.f32.mrb[19].mxu1  ;;  %v874_v10 = vadd.f32 %v1275_v41, %v860_v46 }
 0x13e   : > { %v871_v55 = vadd.f32 %v1275_v41, %v857_v50  ;;  %v942_v57 = vmul.f32 %v1701_v39, %v870_v49 }
 0x13f   : > { %v875_v15 = vadd.f32 %v1275_v41, %v861_v53  ;;  %v946_v19 = vmul.f32 %v925_v14, %v874_v10 }
 0x140   : > { %v943_v58 = vmul.f32 %v910_v56, %v871_v55 }
 0x141   : > { %v833_v60 = vpop.f32.mrb[20].mxu0 }
 0x142   : > { %v950_v61 = vadd.f32 %v943_v58, %v942_v57  ;;  %v858_v62 = vadd.f32 %v833_v60, %v615_v12  ;;  %v849_v63 = vpop.f32.mrb[20].mxu1  ;;  %v835_v0 = vpop.f32.mrb[21].mxu0 }
 0x143   : > { %v862_v2 = vadd.f32 %v849_v63, %v631_v32  ;;  %v851_v3 = vpop.f32.mrb[21].mxu1  ;;  %v836_v1 = vpop.f32.mrb[22].mxu0 }
 0x144   : > { %v872_v4 = vadd.f32 %v1275_v41, %v858_v62  ;;  %v859_v5 = vadd.f32 %v836_v1, %v618_v17  ;;  %v852_v6 = vpop.f32.mrb[22].mxu1  ;;  %v838_v7 = vpop.f32.mrb[23].mxu0 }
 0x145   : > { %v863_v8 = vadd.f32 %v852_v6, %v634_v37  ;;  %v854_v9 = vpop.f32.mrb[23].mxu1  ;;  %v930_v12 = vpop.permute.xlu1 %929  ;;  %v876_v20 = vadd.f32 %v1275_v41, %v862_v2 }
 0x146   : > { %v944_v11 = vmul.f32 %v1703_v40, %v872_v4  ;;  %v873_v13 = vadd.f32 %v1275_v41, %v859_v5  ;;  %v947_v22 = vmul.f32 %v930_v12, %v875_v15  ;;  %v935_v17 = vpop.permute.xlu0 %934 }
 0x147   : > { %v877_v24 = vadd.f32 %v1275_v41, %v863_v8  ;;  %v948_v25 = vmul.f32 %v935_v17, %v876_v20 }
 0x148   : > { %v951_v16 = vadd.f32 %v950_v61, %v944_v11  ;;  %v945_v18 = vmul.f32 %v920_v59, %v873_v13 }
 0x149   : > { %v940_v27 = vpop.permute.xlu1 %939 }
 0x14a   : > { %v952_v21 = vadd.f32 %v951_v16, %v945_v18  ;;  %v949_v28 = vmul.f32 %v940_v27, %v877_v24 }
 0x14c   : > { %v953_v23 = vadd.f32 %v952_v21, %v946_v19 }
 0x14e   : > { %v954_v26 = vadd.f32 %v953_v23, %v947_v22 }
 0x150   : > { %v955_v29 = vadd.f32 %v954_v26, %v948_v25 }
 0x152   : > { %v956_v30 = vadd.f32 %v955_v29, %v949_v28 }
 0x154   : > { %v957_v31 = vrot.slane %v956_v30, 4 }
 0x156   : > { %v958_v32 = vadd.f32 %v957_v31, %v956_v30 }
 0x158   : > { %v959_v33 = vrot.slane %v958_v32, 2 }
 0x15a   : > { %v960_v34 = vadd.f32 %v959_v33, %v958_v32 }
 0x15c   : > { %v961_v35 = vrot.slane %v960_v34, 1 }
 0x15e   : > { %v962_v36 = vadd.f32 %v961_v35, %v960_v34 }
 0x160   : > { %v963_v37 = vmul.f32 0.0625, %v962_v36 }
 0x162   : > { %v964_v38 = vsub.f32 %v870_v49, %v963_v37  ;;  %v965_v42 = vsub.f32 %v871_v55, %v963_v37  ;;  %v966_v43 = vsub.f32 %v872_v4, %v963_v37  ;;  %v967_v44 = vsub.f32 %v873_v13, %v963_v37 }
 0x163   : > { %v968_v45 = vsub.f32 %v874_v10, %v963_v37  ;;  %v969_v41 = vsub.f32 %v875_v15, %v963_v37  ;;  %v970_v46 = vsub.f32 %v876_v20, %v963_v37  ;;  %v971_v47 = vsub.f32 %v877_v24, %v963_v37 }
 0x164   : > { %v972_v48 = vmul.f32 %v964_v38, %v1701_v39  ;;  %v973_v50 = vmul.f32 %v965_v42, %v910_v56  ;;  %v974_v51 = vmul.f32 %v966_v43, %v1703_v40  ;;  %v975_v52 = vmul.f32 %v967_v44, %v920_v59 }
 0x165   : > { %v976_v57 = vmul.f32 %v968_v45, %v925_v14  ;;  %v977_v61 = vmul.f32 %v969_v41, %v930_v12  ;;  %v978_v62 = vmul.f32 %v970_v46, %v935_v17  ;;  %v979_v2 = vmul.f32 %v971_v47, %v940_v27 }
 0x166   : > { %v980_v53 = vmul.f32 %v972_v48, %v972_v48  ;;  %v981_v54 = vmul.f32 %v973_v50, %v973_v50  ;;  %v982_v58 = vmul.f32 %v974_v51, %v974_v51  ;;  %v983_v49 = vmul.f32 %v975_v52, %v975_v52 }
 0x167   : > { %v984_v63 = vmul.f32 %v976_v57, %v976_v57  ;;  %v985_v3 = vmul.f32 %v977_v61, %v977_v61  ;;  %v986_v4 = vmul.f32 %v978_v62, %v978_v62  ;;  %v987_v56 = vmul.f32 %v979_v2, %v979_v2 }
 0x168   : > { %v988_v60 = vadd.f32 %v981_v54, %v980_v53 }
 0x16a   : > { %v989_v55 = vadd.f32 %v988_v60, %v982_v58 }
 0x16c   : > { %v990_v0 = vadd.f32 %v989_v55, %v983_v49 }
 0x16e   : > { %v991_v1 = vadd.f32 %v990_v0, %v984_v63 }
 0x170   : > { %v992_v39 = vadd.f32 %v991_v1, %v985_v3 }
 0x172   : > { %v993_v5 = vadd.f32 %v992_v39, %v986_v4 }
 0x174   : > { %v994_v40 = vadd.f32 %v993_v5, %v987_v56 }
 0x176   : > { %v995_v59 = vrot.slane %v994_v40, 4 }
 0x178   : > { %v996_v6 = vadd.f32 %v995_v59, %v994_v40 }
 0x17a   : > { %v997_v7 = vrot.slane %v996_v6, 2 }
 0x17c   : > { %v998_v8 = vadd.f32 %v997_v7, %v996_v6 }
 0x17e   : > { %v999_v9 = vrot.slane %v998_v8, 1 }
 0x180   : > { %v1000_v10 = vadd.f32 %v999_v9, %v998_v8 }
 0x182   : > { %v1001_v11 = vmul.f32 0.0625, %v1000_v10 }
 0x184   : > { %v1002_v13 = vadd.f32 1e-05, %v1001_v11 }
 0x186   : > { %1417 = vrsqrt.f32 %v1002_v13 }
 0x190   : > { %v1418_v14 = vpop.eup %1417 }
 0x191   : > { %v1004_v15 = vmul.f32 %v1418_v14, %v972_v48  ;;  %v1005_v16 = vmul.f32 %v1418_v14, %v973_v50  ;;  %v1006_v18 = vmul.f32 %v1418_v14, %v974_v51  ;;  %v1007_v12 = vmul.f32 %v1418_v14, %v975_v52 }
 0x192   : > { %v1008_v19 = vmul.f32 %v1418_v14, %v976_v57  ;;  %v1009_v20 = vmul.f32 %v1418_v14, %v977_v61  ;;  %v1010_v21 = vmul.f32 %v1418_v14, %v978_v62  ;;  %v1011_v22 = vmul.f32 %v1418_v14, %v979_v2 }
 0x193   : > { %vm1012_vm1 = vcmp.gt.f32.partialorder %v1004_v15, 0.0  ;;  %vm1013_vm2 = vcmp.gt.f32.partialorder %v1005_v16, 0.0  ;;  %vm1014_vm3 = vcmp.gt.f32.partialorder %v1006_v18, 0.0  ;;  %vm1015_vm4 = vcmp.gt.f32.partialorder %v1007_v12, 0.0 }
 0x194   : > { %vm1016_vm5 = vcmp.gt.f32.partialorder %v1008_v19, 0.0  ;;  %vm1017_vm6 = vcmp.gt.f32.partialorder %v1009_v20, 0.0  ;;  %vm1018_vm7 = vcmp.gt.f32.partialorder %v1010_v21, 0.0  ;;  %vm1019_vm8 = vcmp.gt.f32.partialorder %v1011_v22, 0.0 }
 0x195   : > { %v1020_v23 = vmul.f32 0.2, %v1004_v15  ;;  %v1021_v24 = vmul.f32 0.2, %v1005_v16  ;;  %v1022_v17 = vmul.f32 0.2, %v1006_v18 }
 0x196   : > { %v1023_v25 = vmul.f32 0.2, %v1007_v12  ;;  %v1024_v26 = vmul.f32 0.2, %v1008_v19  ;;  %v1025_v27 = vmul.f32 0.2, %v1009_v20 }
 0x197   : > { %v1026_v28 = vmul.f32 0.2, %v1010_v21  ;;  %v1027_v29 = vmul.f32 0.2, %v1011_v22  ;;  %v1028_v30 = vsel %vm1012_vm1, %v1004_v15, %v1020_v23  ;;  %v1029_v31 = vsel %vm1013_vm2, %v1005_v16, %v1021_v24 }
 0x198   : > { %v1030_v32 = vsel %vm1014_vm3, %v1006_v18, %v1022_v17  ;;  %v1031_v33 = vsel %vm1015_vm4, %v1007_v12, %v1023_v25  ;;  %v1032_v34 = vsel %vm1016_vm5, %v1008_v19, %v1024_v26  ;;  %v1033_v35 = vsel %vm1017_vm6, %v1009_v20, %v1025_v27 }
 0x199   : > { %v1034_v36 = vsel %vm1018_vm7, %v1010_v21, %v1026_v28  ;;  %v1035_v37 = vsel %vm1019_vm8, %v1011_v22, %v1027_v29  ;;  %v1298_v38 = vpack.c.bf16 %v1029_v31, %v1028_v30  ;;  %v1303_v42 = vpack.c.bf16 %v1031_v33, %v1030_v32 }
 0x19a   : > { %v1308_v43 = vpack.c.bf16 %v1033_v35, %v1032_v34  ;;  %v1313_v44 = vpack.c.bf16 %v1035_v37, %v1034_v36 }
 0x19b   : > { %1299 = vst [vmem:[%s197_s16] sm:$0xff] %v1298_v38   ;;  %1315 = vst [vmem:[%s197_s16 + $0x8] sm:$0xff] %v1303_v42  }
 0x19c   : > { %1316 = vst [vmem:[%s197_s16 + $0x10] sm:$0xff] %v1308_v43   ;;  %1317 = vst [vmem:[%s197_s16 + $0x18] sm:$0xff] %v1313_v44  }
 0x19d PF: > { %s14_s15 = sadd.s32 1, %s1425_s15  }
 0x19e   : > { %p11_p4 = scmp.ge.s32.totalorder %s14_s15, 4  }
 0x1a0   :  { %13 = sbr.rel (!%p11_p4) target bundleno = 1 (0x1), region = 70 }

// kernel: discriminator_forward.7
= control target key start
LH: loop header
LB: loop body
LE: loop exit
PB: predicated region body
PF: predicated region fallthrough
CT: control target
= control target key end

     0   :  { %s3708_s15 = smov 0   ;;  %s4767_s0 = inlined_call_operand.vmem [shape: bf16[2,1,6,18,128], index: 0, kind: input, shape index: {}]   ;;  %s4768_s1 = inlined_call_operand.vmem [shape: bf16[9,128,256], index: 1, kind: input, shape index: {}]   ;;  %s4769_s2 = inlined_call_operand.vmem [shape: f32[1,256], index: 2, kind: input, shape index: {}]   ;;  %s4770_s3 = inlined_call_operand.vmem [shape: f32[64,1], index: 3, kind: input, shape index: {}]   ;;  %s4771_s4 = inlined_call_operand.vmem [shape: bf16[2,4,16,256], index: 4, kind: output, shape index: {}]  }
   0x1 LB: > { %s2891_s16 = sadd.s32 4294967295, %s3680_s15   ;;  %p2895_p0 = scmp.ge.s32.totalorder %s3680_s15, 1  ;;  %s3680_s15 = sphi %s3708_s15, %s14_s15  }
   0x2   : > { %p162_p1 = scmp.lt.s32.totalorder %s3680_s15, 3 }
   0x4   : > { %p163_p2 = pnand %p2895_p0, %p162_p1 }
   0x5   : > { %v3442_v0 = vld [vmem:[%s4768_s1 + $0x84] ss:$8 sps:$4 sm:$0xff] (!%p163_p2)   ;;  %v3682_v2 = vmov (!%p163_p2), 0   ;;  %v3446_v3 = vld [vmem:[%s4768_s1 + $0x80] ss:$8 sps:$4 sm:$0xff] (!%p163_p2)   ;;  %p188_p3 = scmp.lt.s32.totalorder (!%p163_p2), %s2891_s16, 1 }
   0x6   : > { %166 = sbr.rel (%p163_p2) target bundleno = 494 (0x1ee), region = 36  ;;  %v3444_v1 = vld [vmem:[%s4768_s1 + $0x204] ss:$8 sps:$4 sm:$0xff] (!%p163_p2)   ;;  %472 = vmatprep.mubr.bf16.mxu1 (!%p163_p2), %v3682_v2  ;;  %1407 = vmatprep.mubr.bf16.mxu0 (!%p163_p2), %v3682_v2  ;;  %v3447_v4 = vld [vmem:[%s4768_s1 + $0x200] ss:$8 sps:$4 sm:$0xff] (!%p163_p2)   ;;  %vm702_vm3 = vcmask (!%p163_p2), 1042432  }
   0x7   : > { %440 = vmatprep.subr.bf16.mxu1 (!%p163_p2), %v3442_v0  ;;  %3440 = vset.pattern.permute.xlu0 (!%p163_p2), %v3682_v2  ;;  %v3448_v5 = vld [vmem:[%s4768_s1 + $0x94] ss:$8 sps:$4 sm:$0xff] (!%p163_p2)   ;;  %v3452_v7 = vld [vmem:[%s4768_s1 + $0x90] ss:$8 sps:$4 sm:$0xff] (!%p163_p2)   ;;  %v3454_v9 = vld [vmem:[%s4768_s1 + $0xa4] ss:$8 sps:$4 sm:$0xff] (!%p163_p2)  }
   0x8   : > { %1375 = vmatprep.subr.bf16.mxu0 (!%p163_p2), %v3444_v1  ;;  %3441 = vset.pattern.permute.xlu1 (!%p163_p2), %v3682_v2  ;;  %v3450_v6 = vld [vmem:[%s4768_s1 + $0x214] ss:$8 sps:$4 sm:$0xff] (!%p163_p2)   ;;  %v3453_v8 = vld [vmem:[%s4768_s1 + $0x210] ss:$8 sps:$4 sm:$0xff] (!%p163_p2)   ;;  %v3456_v10 = vld [vmem:[%s4768_s1 + $0x224] ss:$8 sps:$4 sm:$0xff] (!%p163_p2)  }
   0x9   : > { %441 = vmatpush1.bf16.msra.mxu1 (!%p163_p2), %v3446_v3  ;;  %1376 = vmatpush1.bf16.msra.mxu0 (!%p163_p2), %v3447_v4  ;;  %v3458_v11 = vld [vmem:[%s4768_s1 + $0xa0] ss:$8 sps:$4 sm:$0xff] (!%p163_p2)   ;;  %v3460_v13 = vld [vmem:[%s4768_s1 + $0xb4] ss:$8 sps:$4 sm:$0xff] (!%p163_p2)   ;;  %v3464_v15 = vld [vmem:[%s4768_s1 + $0xb0] ss:$8 sps:$4 sm:$0xff] (!%p163_p2)  }
   0xa   : > { %442 = vmatprep.subr.bf16.mxu1 (!%p163_p2), %v3448_v5  ;;  %1377 = vmatprep.subr.bf16.mxu0 (!%p163_p2), %v3450_v6  ;;  %v3459_v12 = vld [vmem:[%s4768_s1 + $0x220] ss:$8 sps:$4 sm:$0xff] (!%p163_p2)   ;;  %v3462_v14 = vld [vmem:[%s4768_s1 + $0x234] ss:$8 sps:$4 sm:$0xff] (!%p163_p2)   ;;  %v3465_v16 = vld [vmem:[%s4768_s1 + $0x230] ss:$8 sps:$4 sm:$0xff] (!%p163_p2)  }
   0xb   : > { %v3466_v17 = vld [vmem:[%s4768_s1 + $0xc4] ss:$8 sps:$4 sm:$0xff] (!%p163_p2)   ;;  %v3470_v19 = vld [vmem:[%s4768_s1 + $0xc0] ss:$8 sps:$4 sm:$0xff] (!%p163_p2)   ;;  %v3472_v21 = vld [vmem:[%s4768_s1 + $0xd4] ss:$8 sps:$4 sm:$0xff] (!%p163_p2)  }
   0xc   : > { %v3468_v18 = vld [vmem:[%s4768_s1 + $0x244] ss:$8 sps:$4 sm:$0xff] (!%p163_p2)   ;;  %v3471_v20 = vld [vmem:[%s4768_s1 + $0x240] ss:$8 sps:$4 sm:$0xff] (!%p163_p2)   ;;  %v3474_v22 = vld [vmem:[%s4768_s1 + $0x254] ss:$8 sps:$4 sm:$0xff] (!%p163_p2)  }
   0xd   : > { %443 = vmatpush1.bf16.msra.mxu1 %v3452_v7  ;;  %1378 = vmatpush1.bf16.msra.mxu0 %v3453_v8  ;;  %s4777_s16 = smov (!%p188_p3, %s2891_s16), 1  ;;  %vm228_vm0 = vsmask.f32 3328  ;;  %v3476_v23 = vld [vmem:[%s4768_s1 + $0xd0] ss:$8 sps:$4 sm:$0xff]   ;;  %vm703_vm4 = vcmask 1046532  }
   0xe   : > { %444 = vmatprep.subr.bf16.mxu1 %v3454_v9  ;;  %1379 = vmatprep.subr.bf16.mxu0 %v3456_v10  ;;  %s3430_s29 = smul.u32 72, %s4777_s16  ;;  %vm229_vm1 = vsmask.f32 7440  ;;  %v3477_v24 = vld [vmem:[%s4768_s1 + $0x250] ss:$8 sps:$4 sm:$0xff]   ;;  %vm4074_vm5 = vmor %vm702_vm3, %vm703_vm4  ;;  %s3277_s25 = sshll.u32 %s4777_s16, 6 }
   0xf   : > { %v3478_v25 = vld [vmem:[%s4768_s1 + $0xe4] ss:$8 sps:$4 sm:$0xff]   ;;  %v3482_v29 = vld [vmem:[%s4768_s1 + $0xe0] ss:$8 sps:$4 sm:$0xff]   ;;  %v3484_v36 = vld [vmem:[%s4768_s1 + $0xf4] ss:$8 sps:$4 sm:$0xff]   ;;  %s197_s28 = scalar_lea.vmem %s4771_s4, %s3277_s25 }
  0x10   : > { %s3796_s14 = scalar_lea.vmem %s4767_s0, %s3430_s29  ;;  %v3480_v26 = vld [vmem:[%s4768_s1 + $0x264] ss:$8 sps:$4 sm:$0xff]   ;;  %v3483_v30 = vld [vmem:[%s4768_s1 + $0x260] ss:$8 sps:$4 sm:$0xff]   ;;  %v3486_v38 = vld [vmem:[%s4768_s1 + $0x274] ss:$8 sps:$4 sm:$0xff]  }
  0x11   : > { %445 = vmatpush1.bf16.msra.mxu1 %v3458_v11  ;;  %1380 = vmatpush1.bf16.msra.mxu0 %v3459_v12  ;;  %v3811_v27 = vld [vmem:[%s3796_s14] sm:$0xf]  ;;  %v3814_v28 = vld [vmem:[%s3796_s14 + $0x4] sm:$0xf]  ;;  %v3823_v31 = vld [vmem:[%s3796_s14 + $0x8] sm:$0x1] }
  0x12   : > { %446 = vmatprep.subr.bf16.mxu1 %v3460_v13  ;;  %1381 = vmatprep.subr.bf16.mxu0 %v3462_v14  ;;  %v232_v32 = vshrl.u32 %v3811_v27, 16  ;;  %v235_v33 = vshll.u32 %v3811_v27, 16  ;;  %v241_v34 = vshll.u32 %v3814_v28, 16  ;;  %v245_v35 = vshrl.u32 %v3814_v28, 16  ;;  %v3039_v44 = vld [vmem:[%s3796_s14 + $0xc] sm:$0xf]  ;;  %vm3851_vm2 = vmor %vm228_vm0, %vm229_vm1 }
  0x13   : > { %v251_v37 = vshll.u32 %v3823_v31, 16  ;;  %v3838_v45 = vld [vmem:[%s3796_s14 + $0x10] sm:$0xf]  ;;  %v3844_v49 = vld [vmem:[%s3796_s14 + $0x14] sm:$0x1]  ;;  %v1167_v50 = vshrl.u32 %v3039_v44, 16 }
  0x14   : > { %v234_v39 = vrot.slane %v232_v32, 4  ;;  %v237_v40 = vrot.slane %v235_v33, 5  ;;  %v243_v41 = vrot.slane %v241_v34, 5  ;;  %v247_v42 = vrot.slane %v245_v35, 4  ;;  %v3488_v46 = vld [vmem:[%s4768_s1 + $0xf0] ss:$8 sps:$4 sm:$0xff]  }
  0x15   : > { %447 = vmatpush1.bf16.msra.mxu1 %v3464_v15  ;;  %1382 = vmatpush1.bf16.msra.mxu0 %v3465_v16  ;;  %v253_v43 = vrot.slane %v251_v37, 5  ;;  %v1170_v51 = vshll.u32 %v3039_v44, 16  ;;  %v3489_v52 = vld [vmem:[%s4768_s1 + $0x270] ss:$8 sps:$4 sm:$0xff]   ;;  %v1176_v54 = vshll.u32 %v3838_v45, 16  ;;  %v1180_v55 = vshrl.u32 %v3838_v45, 16 }
  0x16   : > { %448 = vmatprep.subr.bf16.mxu1 %v3466_v17  ;;  %1383 = vmatprep.subr.bf16.mxu0 %v3468_v18  ;;  %v238_v47 = vor.u32 %v237_v40, %v234_v39  ;;  %v248_v48 = vor.u32 %v247_v42, %v243_v41  ;;  %v1186_v56 = vshll.u32 %v3844_v49, 16  ;;  %v3492_v59 = vld [vmem:[%s4768_s1 + $0x4] ss:$8 sps:$4 sm:$0xff]   ;;  %v1169_v60 = vrot.slane %v1167_v50, 4  ;;  %v3490_v4 = vld [vmem:[%s4768_s1] ss:$8 sps:$4 sm:$0xff]  }
  0x17   : > { %v1172_v61 = vrot.slane %v1170_v51, 5  ;;  %v1178_v62 = vrot.slane %v1176_v54, 5  ;;  %v1182_v63 = vrot.slane %v1180_v55, 4  ;;  %v3495_v0 = vld [vmem:[%s4768_s1 + $0x284] ss:$8 sps:$4 sm:$0xff]  }
  0x18   : > { %v239_v57 = vrot.slane %v238_v47, 4  ;;  %v249_v58 = vrot.slane %v248_v48, 4  ;;  %v1188_v8 = vrot.slane %v1186_v56, 5  ;;  %v3498_v9 = vld [vmem:[%s4768_s1 + $0x14] ss:$8 sps:$4 sm:$0xff]  }
  0x19   : > { %449 = vmatpush1.bf16.msra.mxu1 %v3470_v19  ;;  %1384 = vmatpush1.bf16.msra.mxu0 %v3471_v20  ;;  %v1173_v5 = vor.u32 %v1172_v61, %v1169_v60  ;;  %v1183_v7 = vor.u32 %v1182_v63, %v1178_v62  ;;  %v3875_v10 = vld [vmem:[%s3796_s14 + $0xc] sm:$0xf]  ;;  %v3878_v12 = vld [vmem:[%s3796_s14 + $0x10] sm:$0xf]  ;;  %v3881_v13 = vld [vmem:[%s3796_s14 + $0x14] sm:$0x1] }
  0x1a   : > { %450 = vmatprep.subr.bf16.mxu1 %v3472_v21  ;;  %1385 = vmatprep.subr.bf16.mxu0 %v3474_v22  ;;  %v244_v1 = vsel %vm3851_vm2, %v239_v57, %v243_v41  ;;  %v254_v3 = vsel %vm3851_vm2, %v249_v58, %v253_v43  ;;  %v256_v14 = vshrl.u32 %v3875_v10, 16  ;;  %v3493_v16 = vld [vmem:[%s4768_s1 + $0x280] ss:$8 sps:$4 sm:$0xff]   ;;  %v259_v17 = vshll.u32 %v3875_v10, 16  ;;  %v3496_v21 = vld [vmem:[%s4768_s1 + $0x10] ss:$8 sps:$4 sm:$0xff]  }
  0x1b   : > { %v2915_v6 = vcombine.low %v244_v1, %v254_v3  ;;  %v1174_v11 = vrot.slane %v1173_v5, 4  ;;  %v1184_v15 = vrot.slane %v1183_v7, 4  ;;  %v265_v18 = vshll.u32 %v3878_v12, 16  ;;  %v3501_v22 = vld [vmem:[%s4768_s1 + $0x294] ss:$8 sps:$4 sm:$0xff]  }
  0x1c   : > { %v269_v19 = vshrl.u32 %v3878_v12, 16  ;;  %v3042_v32 = vld [vmem:[%s3796_s14 + $0x18] sm:$0xf]  ;;  %v3904_v35 = vld [vmem:[%s3796_s14 + $0x1c] sm:$0xf] }
  0x1d   : > { %451 = vmatpush1.bf16.msra.mxu1 %v3476_v23  ;;  %1386 = vmatpush1.bf16.msra.mxu0 %v3477_v24  ;;  %v1179_v20 = vsel %vm3851_vm2, %v1174_v11, %v1178_v62  ;;  %v258_v23 = vrot.slane %v256_v14, 4  ;;  %v275_v24 = vshll.u32 %v3881_v13, 16  ;;  %v1191_v37 = vshrl.u32 %v3042_v32, 16  ;;  %v3504_v40 = vld [vmem:[%s4768_s1 + $0x24] ss:$8 sps:$4 sm:$0xff]  }
  0x1e   : > { %452 = vmatprep.subr.bf16.mxu1 %v3478_v25  ;;  %1387 = vmatprep.subr.bf16.mxu0 %v3480_v26  ;;  %v1189_v25 = vsel %vm3851_vm2, %v1184_v15, %v1188_v8  ;;  %v261_v26 = vrot.slane %v259_v17, 5  ;;  %v1194_v41 = vshll.u32 %v3042_v32, 16  ;;  %v1200_v42 = vshll.u32 %v3904_v35, 16  ;;  %v3499_v43 = vld [vmem:[%s4768_s1 + $0x290] ss:$8 sps:$4 sm:$0xff]  }
  0x1f   : > { %v3067_v33 = vcombine.low %v1179_v20, %v1189_v25  ;;  %v277_v34 = vrot.slane %v275_v24, 5  ;;  %v1193_v44 = vrot.slane %v1191_v37, 4  ;;  %v3502_v51 = vld [vmem:[%s4768_s1 + $0x20] ss:$8 sps:$4 sm:$0xff]   ;;  %v3507_v56 = vld [vmem:[%s4768_s1 + $0x2a4] ss:$8 sps:$4 sm:$0xff]  }
  0x20   : > { %v1202_v54 = vrot.slane %v1200_v42, 5  ;;  %v3505_v61 = vld [vmem:[%s4768_s1 + $0x2a0] ss:$8 sps:$4 sm:$0xff]   ;;  %v3510_v62 = vld [vmem:[%s4768_s1 + $0x34] ss:$8 sps:$4 sm:$0xff]  }
  0x21   : > { %453 = vmatpush1.bf16.msra.mxu1 %v3482_v29  ;;  %1388 = vmatpush1.bf16.msra.mxu0 %v3483_v30  ;;  %v267_v29 = vrot.slane %v265_v18, 5  ;;  %v271_v30 = vrot.slane %v269_v19, 4  ;;  %v3936_v63 = vld [vmem:[%s3796_s14 + $0x18] sm:$0xf]  ;;  %v3939_v3 = vld [vmem:[%s3796_s14 + $0x1c] sm:$0xf] }
  0x22   : > { %454 = vmatprep.subr.bf16.mxu1 %v3484_v36  ;;  %1389 = vmatprep.subr.bf16.mxu0 %v3486_v38  ;;  %v3907_v36 = vld [vmem:[%s3796_s14 + $0x20] sm:$0x1]  ;;  %v262_v38 = vor.u32 %v261_v26, %v258_v23  ;;  %v280_v5 = vshrl.u32 %v3936_v63, 16  ;;  %v3508_v8 = vld [vmem:[%s4768_s1 + $0x30] ss:$8 sps:$4 sm:$0xff]   ;;  %v293_v11 = vshrl.u32 %v3939_v3, 16 }
  0x23   : > { %v272_v39 = vor.u32 %v271_v30, %v267_v29  ;;  %v1210_v47 = vshll.u32 %v3907_v36, 16  ;;  %v3511_v20 = vld [vmem:[%s4768_s1 + $0x2b0] ss:$8 sps:$4 sm:$0xff]   ;;  %v3516_v24 = vld [vmem:[%s4768_s1 + $0x44] ss:$8 sps:$4 sm:$0xff]  }
  0x24   : > { %v263_v48 = vrot.slane %v262_v38, 4  ;;  %v282_v17 = vrot.slane %v280_v5, 4  ;;  %v3968_v30 = vld [vmem:[%s3796_s14 + $0x28] sm:$0xf]  ;;  %v3971_v32 = vld [vmem:[%s3796_s14 + $0x2c] sm:$0x1] }
  0x25   : > { %455 = vmatpush1.bf16.msra.mxu1 %v3488_v46  ;;  %1390 = vmatpush1.bf16.msra.mxu0 %v3489_v52  ;;  %v1204_v46 = vshrl.u32 %v3904_v35, 16  ;;  %v273_v50 = vrot.slane %v272_v39, 4  ;;  %v1196_v52 = vrot.slane %v1194_v41, 5  ;;  %v1212_v60 = vrot.slane %v1210_v47, 5  ;;  %v3514_v37 = vld [vmem:[%s4768_s1 + $0x40] ss:$8 sps:$4 sm:$0xff]  }
  0x26   : > { %617 = vmatprep.subr.bf16.mxu1 %v3492_v59  ;;  %1621 = vmatprep.subr.bf16.mxu0 %v3495_v0  ;;  %v268_v57 = vsel %vm3851_vm2, %v263_v48, %v267_v29  ;;  %v3045_v29 = vld [vmem:[%s3796_s14 + $0x24] sm:$0xf]  ;;  %v1224_v42 = vshll.u32 %v3968_v30, 16  ;;  %v4006_v5 = vld [vmem:[%s3796_s14 + $0x2c] sm:$0x1] }
  0x27   : > { %v1206_v55 = vrot.slane %v1204_v46, 4  ;;  %v278_v58 = vsel %vm3851_vm2, %v273_v50, %v277_v34  ;;  %v1197_v59 = vor.u32 %v1196_v52, %v1193_v44  ;;  %v1215_v38 = vshrl.u32 %v3045_v29, 16  ;;  %v3517_v50 = vld [vmem:[%s4768_s1 + $0x2c0] ss:$8 sps:$4 sm:$0xff]  }
  0x28   : > { %473 = vmatmul.mubr.bf16.vlgmr.msra.gmra.mrb[0].mxu1 %v2915_v6  ;;  %1408 = vmatmul.mubr.bf16.vlgmr.msra.gmra.mrb[0].mxu0 %v3067_v33  ;;  %v2916_v0 = vcombine.low %v268_v57, %v278_v58  ;;  %v283_v6 = vshll.u32 %v3936_v63, 16  ;;  %v1218_v39 = vshll.u32 %v3045_v29, 16  ;;  %v1234_v44 = vshll.u32 %v3971_v32, 16  ;;  %v4026_v29 = vld [vmem:[%s3796_s14 + $0x34] sm:$0xf] }
  0x29   : > { %618 = vmatpush1.bf16.msra.mxu1 %v3490_v4  ;;  %482 = vmatprep.mubr.bf16.mxu1 %v3682_v2  ;;  %v1207_v1 = vor.u32 %v1206_v55, %v1202_v54  ;;  %v3942_v4 = vld [vmem:[%s3796_s14 + $0x20] sm:$0x1]  ;;  %v1198_v7 = vrot.slane %v1197_v59, 4  ;;  %v1217_v47 = vrot.slane %v1215_v38, 4  ;;  %v1226_v52 = vrot.slane %v1224_v42, 5 }
  0x2a   : > { %619 = vmatprep.subr.bf16.mxu1 %v3498_v9  ;;  %1622 = vmatpush1.bf16.msra.mxu0 %v3493_v16  ;;  %v289_v9 = vshll.u32 %v3939_v3, 16  ;;  %v299_v14 = vshll.u32 %v3942_v4, 16  ;;  %v3513_v16 = vld [vmem:[%s4768_s1 + $0x2b4] ss:$8 sps:$4 sm:$0xff]   ;;  %v285_v18 = vrot.slane %v283_v6, 5  ;;  %v1220_v48 = vrot.slane %v1218_v39, 5 }
  0x2b   : > { %1417 = vmatprep.mubr.bf16.mxu0 %v3682_v2  ;;  %1623 = vmatprep.subr.bf16.mxu0 %v3501_v22  ;;  %v1208_v15 = vrot.slane %v1207_v1, 4  ;;  %v1203_v19 = vsel %vm3851_vm2, %v1198_v7, %v1202_v54  ;;  %v295_v22 = vrot.slane %v293_v11, 4  ;;  %v3522_v55 = vld [vmem:[%s4768_s1 + $0x54] ss:$8 sps:$4 sm:$0xff]   ;;  %v1236_v58 = vrot.slane %v1234_v44, 5 }
  0x2c   : > { %v301_v23 = vrot.slane %v299_v14, 5  ;;  %v286_v26 = vor.u32 %v285_v18, %v282_v17  ;;  %v1221_v57 = vor.u32 %v1220_v48, %v1217_v47  ;;  %v3520_v59 = vld [vmem:[%s4768_s1 + $0x50] ss:$8 sps:$4 sm:$0xff]   ;;  %v4003_v1 = vld [vmem:[%s3796_s14 + $0x28] sm:$0xf]  ;;  %v323_v14 = vshll.u32 %v4006_v5, 16 }
  0x2d   : > { %620 = vmatpush1.bf16.msra.mxu1 %v3496_v21  ;;  %v291_v21 = vrot.slane %v289_v9, 5  ;;  %v1213_v25 = vsel %vm3851_vm2, %v1208_v15, %v1212_v60  ;;  %v3525_v60 = vld [vmem:[%s4768_s1 + $0x2d4] ss:$8 sps:$4 sm:$0xff]   ;;  %v313_v9 = vshll.u32 %v4003_v1, 16  ;;  %v317_v11 = vshrl.u32 %v4003_v1, 16 }
  0x2e   : > { %621 = vmatprep.subr.bf16.mxu1 %v3504_v40  ;;  %1624 = vmatpush1.bf16.msra.mxu0 %v3499_v43  ;;  %v3068_v33 = vcombine.low %v1203_v19, %v1213_v25  ;;  %v3519_v40 = vld [vmem:[%s4768_s1 + $0x2c4] ss:$8 sps:$4 sm:$0xff]   ;;  %v287_v41 = vrot.slane %v286_v26, 4  ;;  %v1228_v43 = vshrl.u32 %v3968_v30, 16  ;;  %v3048_v26 = vld [vmem:[%s3796_s14 + $0x30] sm:$0xf] }
  0x2f   : > { %1625 = vmatprep.subr.bf16.mxu0 %v3507_v56  ;;  %v296_v34 = vor.u32 %v295_v22, %v291_v21  ;;  %v325_v22 = vrot.slane %v323_v14, 5  ;;  %v3526_v38 = vld [vmem:[%s4768_s1 + $0x60] ss:$8 sps:$4 sm:$0xff]   ;;  %v1239_v39 = vshrl.u32 %v3048_v26, 16  ;;  %v1252_v44 = vshrl.u32 %v4026_v29, 16 }
  0x30   : > { %483 = vmatmul.mubr.bf16.gmra.mrb[4].mxu1 %v2916_v0  ;;  %1418 = vmatmul.mubr.bf16.gmra.mrb[4].mxu0 %v3068_v33  ;;  %v1230_v54 = vrot.slane %v1228_v43, 4  ;;  %v4029_v33 = vld [vmem:[%s3796_s14 + $0x38] sm:$0x1]  ;;  %v1248_v43 = vshll.u32 %v4026_v29, 16 }
  0x31   : > { %622 = vmatpush1.bf16.msra.mxu1 %v3502_v51  ;;  %492 = vmatprep.mubr.bf16.mxu1 %v3682_v2  ;;  %v297_v46 = vrot.slane %v296_v34, 4  ;;  %v292_v51 = vsel %vm3851_vm2, %v287_v41, %v291_v21  ;;  %v319_v21 = vrot.slane %v317_v11, 4  ;;  %v3531_v41 = vld [vmem:[%s4768_s1 + $0x2e4] ss:$8 sps:$4 sm:$0xff]   ;;  %v1241_v48 = vrot.slane %v1239_v39, 4 }
  0x32   : > { %623 = vmatprep.subr.bf16.mxu1 %v3510_v62  ;;  %1626 = vmatpush1.bf16.msra.mxu0 %v3505_v61  ;;  %v4000_v61 = vld [vmem:[%s3796_s14 + $0x24] sm:$0xf]  ;;  %v1231_v0 = vor.u32 %v1230_v54, %v1226_v52  ;;  %v1250_v54 = vrot.slane %v1248_v43, 5  ;;  %v3087_v11 = vld [vmem:[%s3796_s14 + $0xc] sm:$0xe] }
  0x33   : > { %1627 = vmatprep.subr.bf16.mxu0 %v3513_v16  ;;  %1427 = vmatprep.mubr.bf16.mxu0 %v3682_v2  ;;  %v302_v56 = vsel %vm3851_vm2, %v297_v46, %v301_v23  ;;  %v304_v6 = vshrl.u32 %v4000_v61, 16  ;;  %v307_v7 = vshll.u32 %v4000_v61, 16  ;;  %v3523_v16 = vld [vmem:[%s4768_s1 + $0x2d0] ss:$8 sps:$4 sm:$0xff]   ;;  %v3528_v23 = vld [vmem:[%s4768_s1 + $0x64] ss:$8 sps:$4 sm:$0xff]  }
  0x34   : > { %v2917_v62 = vcombine.low %v292_v51, %v302_v56  ;;  %v1232_v15 = vrot.slane %v1231_v0, 4  ;;  %v1258_v46 = vshll.u32 %v4029_v33, 16  ;;  %v3529_v51 = vld [vmem:[%s4768_s1 + $0x2e0] ss:$8 sps:$4 sm:$0xff]   ;;  %v3534_v56 = vld [vmem:[%s4768_s1 + $0x74] ss:$8 sps:$4 sm:$0xff]  }
  0x35   : > { %624 = vmatpush1.bf16.msra.mxu1 %v3508_v8  ;;  %v1222_v8 = vrot.slane %v1221_v57, 4  ;;  %v306_v17 = vrot.slane %v304_v6, 4  ;;  %v309_v18 = vrot.slane %v307_v7, 5 }
  0x36   : > { %625 = vmatprep.subr.bf16.mxu1 %v3516_v24  ;;  %1628 = vmatpush1.bf16.msra.mxu0 %v3511_v20  ;;  %v315_v20 = vrot.slane %v313_v9, 5  ;;  %v1237_v24 = vsel %vm3851_vm2, %v1232_v15, %v1236_v58  ;;  %v1260_v7 = vrot.slane %v1258_v46, 5  ;;  %v3535_v15 = vld [vmem:[%s4768_s1 + $0x2f0] ss:$8 sps:$4 sm:$0xff]   ;;  %v721_v46 = vrot.slane %v3939_v3, 5 }
  0x37   : > { %1629 = vmatprep.subr.bf16.mxu0 %v3519_v40  ;;  %v1227_v19 = vsel %vm3851_vm2, %v1222_v8, %v1226_v52  ;;  %v310_v25 = vor.u32 %v309_v18, %v306_v17  ;;  %v1242_v40 = vshll.u32 %v3048_v26, 16  ;;  %v3541_v8 = vld [vmem:[%s4768_s1 + $0x104] ss:$8 sps:$4 sm:$0xff]   ;;  %v1485_v18 = vrot.slane %v3844_v49, 5  ;;  %v3539_v49 = vld [vmem:[%s4768_s1 + $0x100] ss:$8 sps:$4 sm:$0xff]  }
  0x38   : > { %493 = vmatmul.mubr.bf16.gmra.mrb[8].mxu1 %v2917_v62  ;;  %v3069_v34 = vcombine.low %v1227_v19, %v1237_v24  ;;  %v1482_v62 = vrot.slane %v3838_v45, 5  ;;  %v2935_v24 = vcombine.low %v3811_v27, %v3814_v28  ;;  %v714_v26 = vrot.slane %v3878_v12, 5  ;;  %v3547_v27 = vld [vmem:[%s4768_s1 + $0x114] ss:$8 sps:$4 sm:$0xff]  }
  0x39   : > { %626 = vmatpush1.bf16.msra.mxu1 %v3514_v37  ;;  %502 = vmatprep.mubr.bf16.mxu1 %v3682_v2  ;;  %v320_v37 = vor.u32 %v319_v21, %v315_v20  ;;  %v311_v42 = vrot.slane %v310_v25, 4  ;;  %v707_v25 = vrot.slane %v3814_v28, 5  ;;  %v1506_v28 = vrot.slane %v4029_v33, 5 }
  0x3a   : > { %627 = vmatprep.subr.bf16.mxu1 %v3522_v55  ;;  %1630 = vmatpush1.bf16.msra.mxu0 %v3517_v50  ;;  %v1244_v50 = vrot.slane %v1242_v40, 5  ;;  %v1254_v55 = vrot.slane %v1252_v44, 4  ;;  %v1484_v17 = vrot.slane %v1482_v62, 4  ;;  %v1492_v40 = vrot.slane %v3907_v36, 5  ;;  %v3545_v44 = vld [vmem:[%s4768_s1 + $0x110] ss:$8 sps:$4 sm:$0xff]  }
  0x3b   : > { %1631 = vmatprep.subr.bf16.mxu0 %v3525_v60  ;;  %1428 = vmatmul.mubr.bf16.gmra.mrb[8].mxu0 %v3069_v34  ;;  %v321_v47 = vrot.slane %v320_v37, 4  ;;  %v316_v52 = vsel %vm3851_vm2, %v311_v42, %v315_v20  ;;  %v3537_v60 = vld [vmem:[%s4768_s1 + $0x2f4] ss:$8 sps:$4 sm:$0xff]   ;;  %v3091_v20 = vrot.slane %v3087_v11, 9  ;;  %v1489_v37 = vrot.slane %v3904_v35, 5 }
  0x3c   : > { %1437 = vmatprep.mubr.bf16.mxu0 %v3682_v2  ;;  %v1245_v58 = vor.u32 %v1244_v50, %v1241_v48  ;;  %v1255_v6 = vor.u32 %v1254_v55, %v1250_v54  ;;  %v709_v39 = vrot.slane %v707_v25, 4  ;;  %v717_v42 = vrot.slane %v3881_v13, 5  ;;  %v3542_v13 = vld [vmem:[%s4768_s1 + $0x300] ss:$8 sps:$4 sm:$0xff]   ;;  %v3558_v11 = vld [vmem:[%s4768_s1 + $0x130] ss:$8 sps:$4 sm:$0xff]  }
  0x3d   : > { %628 = vmatpush1.bf16.msra.mxu1 %v3520_v59  ;;  %v326_v57 = vsel %vm3851_vm2, %v321_v47, %v325_v22  ;;  %v3532_v59 = vld [vmem:[%s4768_s1 + $0x70] ss:$8 sps:$4 sm:$0xff]   ;;  %v1483_v34 = vsel %vm4074_vm5, %v3091_v20, %v1482_v62  ;;  %v724_v36 = vrot.slane %v3942_v4, 5  ;;  %v3550_v47 = vld [vmem:[%s4768_s1 + $0x314] ss:$8 sps:$4 sm:$0xff]   ;;  %v1491_v50 = vrot.slane %v1489_v37, 4 }
  0x3e   : > { %629 = vmatprep.subr.bf16.mxu1 %v3528_v23  ;;  %1632 = vmatpush1.bf16.msra.mxu0 %v3523_v16  ;;  %v2918_v0 = vcombine.low %v316_v52, %v326_v57  ;;  %v1246_v9 = vrot.slane %v1245_v58, 4  ;;  %v1256_v14 = vrot.slane %v1255_v6, 4  ;;  %v3544_v16 = vld [vmem:[%s4768_s1 + $0x304] ss:$8 sps:$4 sm:$0xff]   ;;  %v710_v23 = vrot.slane %v3823_v31, 5 }
  0x3f   : > { %1633 = vmatprep.subr.bf16.mxu0 %v3531_v41  ;;  %v1486_v31 = vsel %vm4074_vm5, %v1484_v17, %v1485_v18  ;;  %v716_v41 = vrot.slane %v714_v26, 4  ;;  %v3554_v52 = vld [vmem:[%s4768_s1 + $0x124] ss:$8 sps:$4 sm:$0xff]   ;;  %v723_v4 = vrot.slane %v721_v46, 4  ;;  %v728_v55 = vrot.slane %v4003_v1, 5 }
  0x40   : > { %503 = vmatmul.mubr.bf16.gmra.mrb[12].mxu1 %v2918_v0  ;;  %v1251_v45 = vsel %vm3851_vm2, %v1246_v9, %v1250_v54  ;;  %v1261_v19 = vsel %vm3851_vm2, %v1256_v14, %v1260_v7  ;;  %v3111_v43 = vcombine.low %v1483_v34, %v1486_v31  ;;  %v4108_v35 = vsel %vm4074_vm5, %v709_v39, %v710_v23  ;;  %v3548_v57 = vld [vmem:[%s4768_s1 + $0x310] ss:$8 sps:$4 sm:$0xff]   ;;  %v3552_v58 = vld [vmem:[%s4768_s1 + $0x120] ss:$8 sps:$4 sm:$0xff]   ;;  %v3557_v62 = vld [vmem:[%s4768_s1 + $0x324] ss:$8 sps:$4 sm:$0xff]  }
  0x41   : > { %630 = vmatpush1.bf16.msra.mxu1 %v3526_v38  ;;  %649 = vmatprep.mubr.bf16.mxu1 %v3682_v2  ;;  %v3070_v21 = vcombine.low %v1251_v45, %v1261_v19  ;;  %v3088_v38 = vld [vmem:[%s3796_s14 + $0x18] sm:$0xe]  ;;  %v2936_v54 = vcombine.low %v3875_v10, %v3878_v12  ;;  %v4140_v10 = vsel %vm4074_vm5, %v723_v4, %v724_v36  ;;  %v730_v0 = vrot.slane %v728_v55, 4  ;;  %v3089_v6 = vld [vmem:[%s3796_s14 + $0x24] sm:$0xe] }
  0x42   : > { %631 = vmatprep.subr.bf16.mxu1 %v3534_v56  ;;  %1634 = vmatpush1.bf16.msra.mxu0 %v3529_v51  ;;  %v3092_v48 = vrot.slane %v3088_v38, 9  ;;  %v4120_v51 = vsel %vm4074_vm5, %v716_v41, %v717_v42  ;;  %v731_v56 = vrot.slane %v4006_v5, 5  ;;  %v3555_v9 = vld [vmem:[%s4768_s1 + $0x320] ss:$8 sps:$4 sm:$0xff]   ;;  %v1499_v14 = vrot.slane %v3971_v32, 5 }
  0x43   : > { %1635 = vmatprep.subr.bf16.mxu0 %v3537_v60  ;;  %1438 = vmatmul.mubr.bf16.gmra.mrb[12].mxu0 %v3070_v21  ;;  %v1493_v60 = vsel %vm4074_vm5, %v1491_v50, %v1492_v40  ;;  %v3093_v45 = vrot.slane %v3089_v6, 9  ;;  %v3567_v17 = vld [vmem:[%s4768_s1 + $0x144] ss:$8 sps:$4 sm:$0xff]   ;;  %v3561_v18 = vld [vmem:[%s4768_s1 + $0x330] ss:$8 sps:$4 sm:$0xff]   ;;  %v2937_v32 = vcombine.low %v3936_v63, %v3939_v3  ;;  %v1503_v23 = vrot.slane %v4026_v29, 5 }
  0x44   : > { %1653 = vmatprep.mubr.bf16.mxu0 %v3682_v2  ;;  %v1490_v5 = vsel %vm4074_vm5, %v3092_v48, %v1489_v37  ;;  %v4158_v7 = vsel %vm4074_vm5, %v730_v0, %v731_v56  ;;  %v3565_v19 = vld [vmem:[%s4768_s1 + $0x140] ss:$8 sps:$4 sm:$0xff]   ;;  %v3570_v21 = vld [vmem:[%s4768_s1 + $0x344] ss:$8 sps:$4 sm:$0xff]   ;;  %v3573_v34 = vld [vmem:[%s4768_s1 + $0x154] ss:$8 sps:$4 sm:$0xff]   ;;  %v2938_v33 = vcombine.low %v4000_v61, %v4003_v1 }
  0x45   : > { %632 = vmatpush1.bf16.msra.mxu1 %v3532_v59  ;;  %v1496_v59 = vrot.slane %v3968_v30, 5  ;;  %v3560_v30 = vld [vmem:[%s4768_s1 + $0x134] ss:$8 sps:$4 sm:$0xff]   ;;  %v690_v20 = vld [vmem:[%s3796_s14] sm:$0xe]  ;;  %v1505_v41 = vrot.slane %v1503_v23, 4 }
  0x46   : > { %846 = vmatprep.subr.bf16.mxu1 %v3541_v8  ;;  %1636 = vmatpush1.bf16.msra.mxu0 %v3535_v15  ;;  %v3112_v8 = vcombine.low %v1490_v5, %v1493_v60  ;;  %v3563_v15 = vld [vmem:[%s4768_s1 + $0x334] ss:$8 sps:$4 sm:$0xff]   ;;  %v3090_v31 = vld [vmem:[%s3796_s14 + $0x30] sm:$0xe]  ;;  %v3568_v38 = vld [vmem:[%s4768_s1 + $0x340] ss:$8 sps:$4 sm:$0xff]  }
  0x47   : > { %1840 = vmatprep.subr.bf16.mxu0 %v3544_v16  ;;  %v1498_v16 = vrot.slane %v1496_v59, 4  ;;  %v1497_v63 = vsel %vm4074_vm5, %v3093_v45, %v1496_v59  ;;  %v3571_v39 = vld [vmem:[%s4768_s1 + $0x150] ss:$8 sps:$4 sm:$0xff]   ;;  %v3094_v40 = vrot.slane %v3090_v31, 9  ;;  %v3580_v42 = vld [vmem:[%s4768_s1 + $0x164] ss:$8 sps:$4 sm:$0xff]  }
  0x48   : > { %650 = vmatmul.mubr.bf16.vlgmr.msra.gmra.mrb[0].mxu1 %v2935_v24  ;;  %v2955_v24 = vrot.slane %v690_v20, 9  ;;  %v3578_v36 = vld [vmem:[%s4768_s1 + $0x160] ss:$8 sps:$4 sm:$0xff]   ;;  %v3586_v61 = vld [vmem:[%s4768_s1 + $0x174] ss:$8 sps:$4 sm:$0xff]  }
  0x49   : > { %847 = vmatpush1.bf16.msra.mxu1 %v3539_v49  ;;  %659 = vmatprep.mubr.bf16.mxu1 %v3682_v2  ;;  %v1500_v49 = vsel %vm4074_vm5, %v1498_v16, %v1499_v14  ;;  %v3583_v50 = vld [vmem:[%s4768_s1 + $0x364] ss:$8 sps:$4 sm:$0xff]   ;;  %v3584_v12 = vld [vmem:[%s4768_s1 + $0x170] ss:$8 sps:$4 sm:$0xff]   ;;  %v3590_v59 = vld [vmem:[%s4768_s1 + $0x180] ss:$8 sps:$4 sm:$0xff]  }
  0x4a   : > { %848 = vmatprep.subr.bf16.mxu1 %v3547_v27  ;;  %v708_v29 = vsel %vm4074_vm5, %v2955_v24, %v707_v25  ;;  %v3113_v37 = vcombine.low %v1497_v63, %v1500_v49  ;;  %v3576_v25 = vld [vmem:[%s4768_s1 + $0x354] ss:$8 sps:$4 sm:$0xff]   ;;  %v3592_v56 = vld [vmem:[%s4768_s1 + $0x184] ss:$8 sps:$4 sm:$0xff]   ;;  %v3597_v6 = vld [vmem:[%s4768_s1 + $0x190] ss:$8 sps:$4 sm:$0xff]  }
  0x4b   : > { %1654 = vmatmul.mubr.bf16.vlgmr.msra.gmra.mrb[0].mxu0 %v3111_v43  ;;  %v2975_v27 = vcombine.low %v708_v29, %v4108_v35  ;;  %v691_v43 = vld [vmem:[%s3796_s14 + $0xc] sm:$0xe]  ;;  %v3599_v60 = vld [vmem:[%s4768_s1 + $0x194] ss:$8 sps:$4 sm:$0xff]   ;;  %v693_v0 = vld [vmem:[%s3796_s14 + $0x24] sm:$0xe] }
  0x4c   : > { %1841 = vmatpush1.bf16.msra.mxu0 %v3542_v13  ;;  %1663 = vmatprep.mubr.bf16.mxu0 %v3682_v2  ;;  %v2956_v35 = vrot.slane %v691_v43, 9  ;;  %v1504_v13 = vsel %vm4074_vm5, %v3094_v40, %v1503_v23  ;;  %v3596_v3 = vld [vmem:[%s4768_s1 + $0x384] ss:$8 sps:$4 sm:$0xff]   ;;  %v3603_v45 = vld [vmem:[%s4768_s1 + $0x1a0] ss:$8 sps:$4 sm:$0xff]  }
  0x4d   : > { %849 = vmatpush1.bf16.msra.mxu1 %v3545_v44  ;;  %1842 = vmatprep.subr.bf16.mxu0 %v3550_v47  ;;  %v3574_v44 = vld [vmem:[%s4768_s1 + $0x350] ss:$8 sps:$4 sm:$0xff]   ;;  %v1507_v47 = vsel %vm4074_vm5, %v1505_v41, %v1506_v28  ;;  %v3612_v1 = vld [vmem:[%s4768_s1 + $0x1b4] ss:$8 sps:$4 sm:$0xff]   ;;  %v3622_v29 = vld [vmem:[%s4768_s1 + $0x3c4] ss:$8 sps:$4 sm:$0xff]  }
  0x4e   : > { %850 = vmatprep.subr.bf16.mxu1 %v3554_v52  ;;  %v715_v48 = vsel %vm4074_vm5, %v2956_v35, %v714_v26  ;;  %v3114_v4 = vcombine.low %v1504_v13, %v1507_v47  ;;  %v692_v26 = vld [vmem:[%s3796_s14 + $0x18] sm:$0xe]  ;;  %v3615_v20 = vld [vmem:[%s4768_s1 + $0x3b4] ss:$8 sps:$4 sm:$0xff]   ;;  %v3620_v41 = vld [vmem:[%s4768_s1 + $0x3c0] ss:$8 sps:$4 sm:$0xff]  }
  0x4f   : > { %v2976_v52 = vcombine.low %v715_v48, %v4120_v51  ;;  %v3589_v51 = vld [vmem:[%s4768_s1 + $0x374] ss:$8 sps:$4 sm:$0xff]   ;;  %v3175_v16 = vld [vmem:[%s3796_s14 + $0x18] sm:$0xf]  ;;  %v3178_v43 = vld [vmem:[%s3796_s14 + $0x24] sm:$0xf] }
  0x50   : > { %660 = vmatmul.mubr.bf16.gmra.mrb[4].mxu1 %v2936_v54  ;;  %1843 = vmatpush1.bf16.msra.mxu0 %v3548_v57  ;;  %v3581_v54 = vld [vmem:[%s4768_s1 + $0x360] ss:$8 sps:$4 sm:$0xff]   ;;  %v2957_v57 = vrot.slane %v692_v26, 9  ;;  %v1942_v23 = vshrl.u32 %v3175_v16, 16  ;;  %v1945_v24 = vshll.u32 %v3175_v16, 16  ;;  %v1969_v48 = vshll.u32 %v3178_v43, 16 }
  0x51   : > { %851 = vmatpush1.bf16.msra.mxu1 %v3552_v58  ;;  %669 = vmatprep.mubr.bf16.mxu1 %v3682_v2  ;;  %v3587_v58 = vld [vmem:[%s4768_s1 + $0x370] ss:$8 sps:$4 sm:$0xff]   ;;  %v3631_v35 = vld [vmem:[%s4768_s1 + $0x1e4] ss:$8 sps:$4 sm:$0xff]   ;;  %v3638_v26 = vld [vmem:[%s4768_s1 + $0x1f4] ss:$8 sps:$4 sm:$0xff]  }
  0x52   : > { %852 = vmatprep.subr.bf16.mxu1 %v3560_v30  ;;  %1844 = vmatprep.subr.bf16.mxu0 %v3557_v62  ;;  %v4264_v5 = vsel %vm4074_vm5, %v2957_v57, %v721_v46  ;;  %v3593_v30 = vld [vmem:[%s3796_s14 + $0x18] sm:$0xff]   ;;  %v3594_v46 = vld [vmem:[%s4768_s1 + $0x380] ss:$8 sps:$4 sm:$0xff]   ;;  %v1947_v28 = vrot.slane %v1945_v24, 5 }
  0x53   : > { %1664 = vmatmul.mubr.bf16.gmra.mrb[4].mxu0 %v3112_v8  ;;  %v2977_v62 = vcombine.low %v4264_v5, %v4140_v10  ;;  %v2958_v10 = vrot.slane %v693_v0, 9  ;;  %v3602_v8 = vld [vmem:[%s4768_s1 + $0x394] ss:$8 sps:$4 sm:$0xff]   ;;  %v3613_v31 = vld [vmem:[%s4768_s1 + $0x3b0] ss:$8 sps:$4 sm:$0xff]  }
  0x54   : > { %1845 = vmatpush1.bf16.msra.mxu0 %v3555_v9  ;;  %1673 = vmatprep.mubr.bf16.mxu0 %v3682_v2  ;;  %v3605_v9 = vld [vmem:[%s4768_s1 + $0x1a4] ss:$8 sps:$4 sm:$0xff]   ;;  %v4402_v0 = vld [vmem:[%s3796_s14 + $0x34] sm:$0xf] }
  0x55   : > { %853 = vmatpush1.bf16.msra.mxu1 %v3558_v11  ;;  %1846 = vmatprep.subr.bf16.mxu0 %v3563_v15  ;;  %v4294_v11 = vsel %vm4074_vm5, %v2958_v10, %v728_v55  ;;  %v3600_v15 = vld [vmem:[%s4768_s1 + $0x390] ss:$8 sps:$4 sm:$0xff]   ;;  %v3609_v55 = vld [vmem:[%s4768_s1 + $0x3a4] ss:$8 sps:$4 sm:$0xff]   ;;  %v3648_v16 = vld [vmem:[%s4768_s1 + $0x414] ss:$8 sps:$4 sm:$0xff]  }
  0x56   : > { %854 = vmatprep.subr.bf16.mxu1 %v3567_v17  ;;  %v2978_v14 = vcombine.low %v4294_v11, %v4158_v7  ;;  %v4313_v17 = vld [vmem:[%s3796_s14 + $0x1c] sm:$0xf]  ;;  %v3181_v7 = vld [vmem:[%s3796_s14 + $0x30] sm:$0xf] }
  0x57   : > { %v1951_v63 = vshll.u32 %v4313_v17, 16  ;;  %v1955_v49 = vshrl.u32 %v4313_v17, 16  ;;  %v3642_v10 = vld [vmem:[%s3796_s14 + $0xc] sm:$0xff]  }
  0x58   : > { %670 = vmatmul.mubr.bf16.gmra.mrb[8].mxu1 %v2937_v32  ;;  %1847 = vmatpush1.bf16.msra.mxu0 %v3561_v18  ;;  %v3606_v18 = vld [vmem:[%s3796_s14 + $0x24] sm:$0xff]   ;;  %v3639_v11 = vld [vmem:[%s4768_s1 + $0x3f0] ss:$8 sps:$4 sm:$0xff]  }
  0x59   : > { %855 = vmatpush1.bf16.msra.mxu1 %v3565_v19  ;;  %679 = vmatprep.mubr.bf16.mxu1 %v3682_v2  ;;  %v3607_v32 = vld [vmem:[%s4768_s1 + $0x3a0] ss:$8 sps:$4 sm:$0xff]   ;;  %v3610_v19 = vld [vmem:[%s4768_s1 + $0x1b0] ss:$8 sps:$4 sm:$0xff]   ;;  %v1957_v40 = vrot.slane %v1955_v49, 4 }
  0x5a   : > { %856 = vmatprep.subr.bf16.mxu1 %v3573_v34  ;;  %1848 = vmatprep.subr.bf16.mxu0 %v3570_v21  ;;  %v3618_v21 = vld [vmem:[%s4768_s1 + $0x1c4] ss:$8 sps:$4 sm:$0xff]   ;;  %v3616_v34 = vld [vmem:[%s4768_s1 + $0x1c0] ss:$8 sps:$4 sm:$0xff]  }
  0x5b   : > { %1674 = vmatmul.mubr.bf16.gmra.mrb[8].mxu0 %v3113_v37  ;;  %v3619_v37 = vld [vmem:[%s3796_s14 + $0x30] sm:$0xff]  }
  0x5c   : > { %1849 = vmatpush1.bf16.msra.mxu0 %v3568_v38  ;;  %1683 = vmatprep.mubr.bf16.mxu0 %v3682_v2  ;;  %v4346_v38 = vld [vmem:[%s3796_s14 + $0x20] sm:$0x1] }
  0x5d   : > { %857 = vmatpush1.bf16.msra.mxu1 %v3571_v39  ;;  %1850 = vmatprep.subr.bf16.mxu0 %v3576_v25  ;;  %v1944_v39 = vrot.slane %v1942_v23, 4  ;;  %v4348_v25 = vrot.slane %v1951_v63, 5  ;;  %v1961_v47 = vshll.u32 %v4346_v38, 16 }
  0x5e   : > { %858 = vmatprep.subr.bf16.mxu1 %v3580_v42  ;;  %v3623_v42 = vld [vmem:[%s4768_s1 + $0x1d0] ss:$8 sps:$4 sm:$0xff]  }
  0x5f   : > { %v1958_v13 = vor.u32 %v1957_v40, %v4348_v25  ;;  %v1963_v57 = vrot.slane %v1961_v47, 5  ;;  %v3184_v40 = vld [vmem:[%s3796_s14 + $0x3c] sm:$0xf] }
  0x60   : > { %680 = vmatmul.mubr.bf16.gmra.mrb[12].mxu1 %v2938_v33  ;;  %1851 = vmatpush1.bf16.msra.mxu0 %v3574_v44  ;;  %v4359_v44 = vld [vmem:[%s3796_s14 + $0x28] sm:$0xf]  ;;  %v3628_v33 = vld [vmem:[%s4768_s1 + $0x3d4] ss:$8 sps:$4 sm:$0xff]  }
  0x61   : > { %859 = vmatpush1.bf16.msra.mxu1 %v3578_v36  ;;  %878 = vmatprep.mubr.bf16.mxu1 %v3682_v2  ;;  %v1948_v36 = vor.u32 %v1947_v28, %v1944_v39  ;;  %v4440_v39 = vld [vmem:[%s3796_s14 + $0x38] sm:$0x1]  ;;  %v2530_v28 = vld [vmem:[%s4770_s3 + $0x10] sm:$0xff] }
  0x62   : > { %860 = vmatprep.subr.bf16.mxu1 %v3586_v61  ;;  %1852 = vmatprep.subr.bf16.mxu0 %v3583_v50  ;;  %v1966_v61 = vshrl.u32 %v3178_v43, 16  ;;  %v1975_v50 = vshll.u32 %v4359_v44, 16  ;;  %v2009_v47 = vshll.u32 %v4440_v39, 16 }
  0x63   : > { %1684 = vmatmul.mubr.bf16.gmra.mrb[12].mxu0 %v3114_v4  ;;  %v3626_v4 = vld [vmem:[%s4768_s1 + $0x3d0] ss:$8 sps:$4 sm:$0xff]   ;;  %2564 = vperm.xlu1 %3441, %v2530_v28   ;;  %v3669_v28 = vld [vmem:[%s4768_s1 + $0x474] ss:$8 sps:$4 sm:$0xff]  }
  0x64   : > { %1853 = vmatpush1.bf16.msra.mxu0 %v3581_v54  ;;  %1872 = vmatprep.mubr.bf16.mxu0 %v3682_v2  ;;  %v3629_v54 = vld [vmem:[%s4768_s1 + $0x1e0] ss:$8 sps:$4 sm:$0xff]   ;;  %v1968_v5 = vrot.slane %v1966_v61, 4 }
  0x65   : > { %861 = vmatpush1.bf16.msra.mxu1 %v3584_v12  ;;  %1854 = vmatprep.subr.bf16.mxu0 %v3589_v51  ;;  %v3635_v12 = vld [vmem:[%s4768_s1 + $0x3e4] ss:$8 sps:$4 sm:$0xff]   ;;  %v1949_v51 = vrot.slane %v1948_v36, 4 }
  0x66   : > { %1065 = vmatprep.subr.bf16.mxu1 %v3592_v56  ;;  %v1959_v56 = vrot.slane %v1958_v13, 4  ;;  %v2529_v61 = vld [vmem:[%s4770_s3 + $0x8] sm:$0xff] }
  0x68   : > { %879 = vmatmul.mubr.bf16.vlgmr.msra.gmra.mrb[0].mxu1 %v2975_v27  ;;  %1855 = vmatpush1.bf16.msra.mxu0 %v3587_v58  ;;  %v3625_v27 = vld [vmem:[%s4768_s1 + $0x1d4] ss:$8 sps:$4 sm:$0xff]   ;;  %v4385_v58 = vld [vmem:[%s3796_s14 + $0x2c] sm:$0x1] }
  0x69   : > { %1066 = vmatpush1.bf16.msra.mxu1 %v3590_v59  ;;  %888 = vmatprep.mubr.bf16.mxu1 %v3682_v2  ;;  %v3632_v59 = vld [vmem:[%s3796_s14 + $0x3c] sm:$0xff]  }
  0x6a   : > { %1067 = vmatprep.subr.bf16.mxu1 %v3599_v60  ;;  %2150 = vmatprep.subr.bf16.mxu0 %v3596_v3  ;;  %v1971_v60 = vrot.slane %v1969_v48, 5  ;;  %v3655_v48 = vld [vmem:[%s4768_s1 + $0x434] ss:$8 sps:$4 sm:$0xff]  }
  0x6b   : > { %1873 = vmatmul.mubr.bf16.vlgmr.msra.gmra.mrb[0].mxu0 %v3593_v30  ;;  %v3633_v30 = vld [vmem:[%s4768_s1 + $0x3e0] ss:$8 sps:$4 sm:$0xff]  }
  0x6c   : > { %2151 = vmatpush1.bf16.msra.mxu0 %v3594_v46  ;;  %1882 = vmatprep.mubr.bf16.mxu0 %v3682_v2  ;;  %v3636_v46 = vld [vmem:[%s4768_s1 + $0x1f0] ss:$8 sps:$4 sm:$0xff]  }
  0x6d   : > { %1068 = vmatpush1.bf16.msra.mxu1 %v3597_v6  ;;  %2152 = vmatprep.subr.bf16.mxu0 %v3602_v8  ;;  %v3641_v6 = vld [vmem:[%s4768_s1 + $0x3f4] ss:$8 sps:$4 sm:$0xff]   ;;  %v3645_v8 = vld [vmem:[%s4768_s1 + $0x404] ss:$8 sps:$4 sm:$0xff]  }
  0x6e   : > { %1069 = vmatprep.subr.bf16.mxu1 %v3605_v9  ;;  %v1985_v9 = vshll.u32 %v4385_v58, 16 }
  0x70   : > { %889 = vmatmul.mubr.bf16.gmra.mrb[4].mxu1 %v2976_v52  ;;  %2153 = vmatpush1.bf16.msra.mxu0 %v3600_v15  ;;  %v1979_v52 = vshrl.u32 %v4359_v44, 16  ;;  %v1964_v15 = vsel %vm3851_vm2, %v1959_v56, %v1963_v57  ;;  %v1987_v49 = vrot.slane %v1985_v9, 5  ;;  %v2533_v9 = vld [vmem:[%s4770_s3 + $0x28] sm:$0xff] }
  0x71   : > { %1070 = vmatpush1.bf16.msra.mxu1 %v3603_v45  ;;  %898 = vmatprep.mubr.bf16.mxu1 %v3682_v2  ;;  %v3643_v45 = vld [vmem:[%s4768_s1 + $0x400] ss:$8 sps:$4 sm:$0xff]  }
  0x72   : > { %1071 = vmatprep.subr.bf16.mxu1 %v3612_v1  ;;  %2154 = vmatprep.subr.bf16.mxu0 %v3609_v55  ;;  %v1981_v3 = vrot.slane %v1979_v52, 4  ;;  %v1972_v1 = vor.u32 %v1971_v60, %v1968_v5  ;;  %v2017_v52 = vshll.u32 %v3184_v40, 16  ;;  %v2532_v5 = vld [vmem:[%s4770_s3 + $0x20] sm:$0xff] }
  0x73   : > { %1883 = vmatmul.mubr.bf16.gmra.mrb[4].mxu0 %v3606_v18  ;;  %v1990_v18 = vshrl.u32 %v3181_v7, 16 }
  0x74   : > { %2155 = vmatpush1.bf16.msra.mxu0 %v3607_v32  ;;  %1892 = vmatprep.mubr.bf16.mxu0 %v3682_v2  ;;  %v1993_v32 = vshll.u32 %v3181_v7, 16  ;;  %v1973_v24 = vrot.slane %v1972_v1, 4  ;;  %v4486_v7 = vld [vmem:[%s3796_s14 + $0x44] sm:$0x1] }
  0x75   : > { %1072 = vmatpush1.bf16.msra.mxu1 %v3610_v19  ;;  %2156 = vmatprep.subr.bf16.mxu0 %v3615_v20  ;;  %v1999_v19 = vshll.u32 %v4402_v0, 16  ;;  %v2003_v20 = vshrl.u32 %v4402_v0, 16  ;;  %v2033_v1 = vshll.u32 %v4486_v7, 16 }
  0x76   : > { %1073 = vmatprep.subr.bf16.mxu1 %v3618_v21  ;;  %v2528_v21 = vld [vmem:[%s4770_s3] sm:$0xff] }
  0x77   : > { %2554 = vperm.xlu0 %3440, %v2528_v21  }
  0x78   : > { %899 = vmatmul.mubr.bf16.gmra.mrb[8].mxu1 %v2977_v62  ;;  %2157 = vmatpush1.bf16.msra.mxu0 %v3613_v31  ;;  %v4391_v62 = vrot.slane %v1975_v50, 5  ;;  %v1992_v31 = vrot.slane %v1990_v18, 4  ;;  %v2014_v50 = vshrl.u32 %v3184_v40, 16  ;;  %v2271_v18 = vrot.slane %v4402_v0, 5  ;;  %v3666_v0 = vld [vmem:[%s4768_s1 + $0x464] ss:$8 sps:$4 sm:$0xff]  }
  0x79   : > { %1074 = vmatpush1.bf16.msra.mxu1 %v3616_v34  ;;  %908 = vmatprep.mubr.bf16.mxu1 %v3682_v2  ;;  %v3646_v34 = vld [vmem:[%s4768_s1 + $0x410] ss:$8 sps:$4 sm:$0xff]  }
  0x7a   : > { %1075 = vmatprep.subr.bf16.mxu1 %v3625_v27  ;;  %2158 = vmatprep.subr.bf16.mxu0 %v3622_v29  ;;  %v1982_v55 = vor.u32 %v1981_v3, %v4391_v62  ;;  %v1995_v29 = vrot.slane %v1993_v32, 5  ;;  %v4437_v27 = vrot.slane %v1999_v19, 5  ;;  %v1978_v43 = vsel %vm3851_vm2, %v1973_v24, %v4391_v62  ;;  %v3660_v32 = vld [vmem:[%s4768_s1 + $0x450] ss:$8 sps:$4 sm:$0xff]  }
  0x7b   : > { %1893 = vmatmul.mubr.bf16.gmra.mrb[8].mxu0 %v3619_v37  ;;  %v2005_v37 = vrot.slane %v2003_v20, 4  ;;  %2559 = vperm.xlu0 %3440, %v2529_v61   ;;  %v2016_v60 = vrot.slane %v2014_v50, 4  ;;  %v2019_v62 = vrot.slane %v2017_v52, 5  ;;  %v2535_v19 = vld [vmem:[%s4770_s3 + $0x38] sm:$0xff]  ;;  %v3225_v24 = vld [vmem:[%s3796_s14 + $0x30] sm:$0xe] }
  0x7c   : > { %2159 = vmatpush1.bf16.msra.mxu0 %v3620_v41  ;;  %1902 = vmatprep.mubr.bf16.mxu0 %v3682_v2  ;;  %v1983_v63 = vrot.slane %v1982_v55, 4  ;;  %v4450_v41 = vld [vmem:[%s3796_s14 + $0x40] sm:$0xf]  ;;  %v1996_v36 = vor.u32 %v1995_v29, %v1992_v31  ;;  %v2534_v55 = vld [vmem:[%s4770_s3 + $0x30] sm:$0xff]  ;;  %v3229_v29 = vrot.slane %v3225_v24, 9  ;;  %v2281_v50 = vrot.slane %v4486_v7, 5 }
  0x7d   : > { %1076 = vmatpush1.bf16.msra.mxu1 %v3623_v42  ;;  %2160 = vmatprep.subr.bf16.mxu0 %v3628_v33  ;;  %v3649_v42 = vld [vmem:[%s3796_s14 + $0x18] sm:$0xff]   ;;  %v2006_v13 = vor.u32 %v2005_v37, %v4437_v27  ;;  %v3664_v31 = vld [vmem:[%s4768_s1 + $0x460] ss:$8 sps:$4 sm:$0xff]  }
  0x7e   : > { %1077 = vmatprep.subr.bf16.mxu1 %v3631_v35  ;;  %v1988_v33 = vsel %vm3851_vm2, %v1983_v63, %v1987_v49  ;;  %v3650_v35 = vld [vmem:[%s4768_s1 + $0x420] ss:$8 sps:$4 sm:$0xff]   ;;  %v1997_v56 = vrot.slane %v1996_v36, 4  ;;  %v3663_v63 = vld [vmem:[%s3796_s14 + $0x30] sm:$0xff]   ;;  %v2273_v49 = vrot.slane %v2271_v18, 4  ;;  %v2272_v53 = vsel %vm4074_vm5, %v3229_v29, %v2271_v18 }
  0x7f   : > { %v2007_v57 = vrot.slane %v2006_v13, 4  ;;  %2574 = vperm.xlu0 %3440, %v2532_v5   ;;  %v2260_v36 = vrot.slane %v4346_v38, 5  ;;  %v3226_v13 = vld [vmem:[%s3796_s14 + $0x3c] sm:$0xe]  ;;  %v2264_v38 = vrot.slane %v4359_v44, 5 }
  0x80   : > { %909 = vmatmul.mubr.bf16.gmra.mrb[12].mxu1 %v2978_v14  ;;  %2161 = vmatpush1.bf16.msra.mxu0 %v3626_v4  ;;  %v1954_v14 = vsel %vm3851_vm2, %v1949_v51, %v4348_v25  ;;  %v3652_v25 = vld [vmem:[%s4768_s1 + $0x424] ss:$8 sps:$4 sm:$0xff]   ;;  %v2023_v4 = vshll.u32 %v4450_v41, 16  ;;  %v3653_v51 = vld [vmem:[%s4768_s1 + $0x430] ss:$8 sps:$4 sm:$0xff]   ;;  %v3230_v61 = vrot.slane %v3226_v13, 9 }
  0x81   : > { %1078 = vmatpush1.bf16.msra.mxu1 %v3629_v54  ;;  %1097 = vmatprep.mubr.bf16.mxu1 %v3682_v2  ;;  %v3203_v23 = vcombine.low %v1954_v14, %v1964_v15  ;;  %v2027_v54 = vshrl.u32 %v4450_v41, 16  ;;  %v3662_v14 = vld [vmem:[%s4768_s1 + $0x454] ss:$8 sps:$4 sm:$0xff]   ;;  %v2020_v15 = vor.u32 %v2019_v62, %v2016_v60 }
  0x82   : > { %1079 = vmatprep.subr.bf16.mxu1 %v3638_v26  ;;  %2162 = vmatprep.subr.bf16.mxu0 %v3635_v12  ;;  %v2531_v12 = vld [vmem:[%s4770_s3 + $0x18] sm:$0xff]  ;;  %v3204_v26 = vcombine.low %v1978_v43, %v1988_v33  ;;  %v2025_v3 = vrot.slane %v2023_v4, 5  ;;  %v3224_v4 = vld [vmem:[%s3796_s14 + $0x24] sm:$0xe] }
  0x83   : > { %1903 = vmatmul.mubr.bf16.gmra.mrb[12].mxu0 %v3632_v59  ;;  %v2011_v59 = vrot.slane %v2009_v47, 5  ;;  %2569 = vperm.xlu1 %3441, %v2531_v12   ;;  %v2021_v20 = vrot.slane %v2020_v15, 4 }
  0x84   : > { %2163 = vmatpush1.bf16.msra.mxu0 %v3633_v30  ;;  %2182 = vmatprep.mubr.bf16.mxu0 %v3682_v2  ;;  %v2029_v30 = vrot.slane %v2027_v54, 4 }
  0x85   : > { %1080 = vmatpush1.bf16.msra.mxu1 %v3636_v46  ;;  %2164 = vmatprep.subr.bf16.mxu0 %v3641_v6  ;;  %v3659_v46 = vld [vmem:[%s4768_s1 + $0x444] ss:$8 sps:$4 sm:$0xff]  }
  0x86   : > { %3286 = vmatprep.subr.bf16.mxu1 %v3645_v8  ;;  %v3656_v6 = vld [vmem:[%s3796_s14 + $0x24] sm:$0xff]   ;;  %2584 = vperm.xlu0 %3440, %v2534_v55  }
  0x87   : > { %2579 = vperm.xlu1 %3441, %v2533_v9  }
  0x88   : > { %1098 = vmatmul.mubr.bf16.vlgmr.msra.gmra.mrb[0].mxu1 %v3642_v10  ;;  %2165 = vmatpush1.bf16.msra.mxu0 %v3639_v11  ;;  %v2002_v10 = vsel %vm3851_vm2, %v1997_v56, %v4437_v27  ;;  %v2012_v11 = vsel %vm3851_vm2, %v2007_v57, %v2011_v59  ;;  %v2026_v27 = vsel %vm3851_vm2, %v2021_v20, %v2025_v3  ;;  %v2266_v56 = vrot.slane %v2264_v38, 4 }
  0x89   : > { %3294 = vmatpush1.bf16.msra.mxu1 %v3643_v45  ;;  %1107 = vmatprep.mubr.bf16.mxu1 %v3682_v2  ;;  %v2267_v57 = vrot.slane %v4385_v58, 5 }
  0x8a   : > { %3287 = vmatprep.subr.bf16.mxu1 %v3648_v16  ;;  %2396 = vmatprep.subr.bf16.mxu0 %v3645_v8  ;;  %v3657_v8 = vld [vmem:[%s4768_s1 + $0x440] ss:$8 sps:$4 sm:$0xff]  }
  0x8b   : > { %2183 = vmatmul.mubr.bf16.vlgmr.msra.gmra.mrb[0].mxu0 %v3203_v23  ;;  %v2035_v23 = vrot.slane %v2033_v1, 5  ;;  %2589 = vperm.xlu1 %3441, %v2535_v19   ;;  %v2268_v5 = vsel %vm4074_vm5, %v2266_v56, %v2267_v57 }
  0x8c   : > { %2397 = vmatpush1.bf16.msra.mxu0 %v3643_v45  ;;  %2192 = vmatprep.mubr.bf16.mxu0 %v3682_v2  ;;  %v2030_v45 = vor.u32 %v2029_v30, %v2025_v3 }
  0x8d   : > { %3295 = vmatpush1.bf16.msra.mxu1 %v3646_v34  ;;  %2398 = vmatprep.subr.bf16.mxu0 %v3648_v16  ;;  %v3205_v16 = vcombine.low %v2002_v10, %v2012_v11 }
  0x8e   : > { %3288 = vmatprep.subr.bf16.mxu1 %v3652_v25  ;;  %v2031_v21 = vrot.slane %v2030_v45, 4 }
  0x90   : > { %1108 = vmatmul.mubr.bf16.gmra.mrb[4].mxu1 %v3649_v42  ;;  %2399 = vmatpush1.bf16.msra.mxu0 %v3646_v34  ;;  %v2274_v34 = vrot.slane %v4440_v39, 5  ;;  %v2036_v37 = vsel %vm3851_vm2, %v2031_v21, %v2035_v23  ;;  %v2257_v39 = vrot.slane %v4313_v17, 5  ;;  %v3667_v42 = vld [vmem:[%s4768_s1 + $0x470] ss:$8 sps:$4 sm:$0xff]   ;;  %v2278_v17 = vrot.slane %v4450_v41, 5 }
  0x91   : > { %3296 = vmatpush1.bf16.msra.mxu1 %v3650_v35  ;;  %1117 = vmatprep.mubr.bf16.mxu1 %v3682_v2  ;;  %v3206_v40 = vcombine.low %v2026_v27, %v2036_v37 }
  0x92   : > { %3289 = vmatprep.subr.bf16.mxu1 %v3655_v48  ;;  %2400 = vmatprep.subr.bf16.mxu0 %v3652_v25  ;;  %v3223_v25 = vld [vmem:[%s3796_s14 + $0x18] sm:$0xe]  ;;  %v2275_v43 = vsel %vm4074_vm5, %v2273_v49, %v2274_v34  ;;  %v2279_v12 = vsel %vm4074_vm5, %v3230_v61, %v2278_v17 }
  0x93   : > { %2193 = vmatmul.mubr.bf16.gmra.mrb[4].mxu0 %v3204_v26  ;;  %v3227_v33 = vrot.slane %v3223_v25, 9  ;;  %v3249_v47 = vcombine.low %v2272_v53, %v2275_v43  ;;  %v199_v25 = vld [vmem:[%s4769_s2] sm:$0x3] }
  0x94   : > { %2401 = vmatpush1.bf16.msra.mxu0 %v3650_v35  ;;  %2202 = vmatprep.mubr.bf16.mxu0 %v3682_v2  ;;  %v2259_v35 = vrot.slane %v2257_v39, 4 }
  0x95   : > { %3297 = vmatpush1.bf16.msra.mxu1 %v3653_v51  ;;  %2402 = vmatprep.subr.bf16.mxu0 %v3655_v48  ;;  %v2280_v48 = vrot.slane %v2278_v17, 4  ;;  %v2258_v41 = vsel %vm4074_vm5, %v3227_v33, %v2257_v39 }
  0x96   : > { %3290 = vmatprep.subr.bf16.mxu1 %v3659_v46  ;;  %v2261_v52 = vsel %vm4074_vm5, %v2259_v35, %v2260_v36 }
  0x97   : > { %v3247_v54 = vcombine.low %v2258_v41, %v2261_v52  ;;  %v2282_v26 = vsel %vm4074_vm5, %v2280_v48, %v2281_v50 }
  0x98   : > { %1118 = vmatmul.mubr.bf16.gmra.mrb[8].mxu1 %v3656_v6  ;;  %2403 = vmatpush1.bf16.msra.mxu0 %v3653_v51  ;;  %v3228_v51 = vrot.slane %v3224_v4, 9  ;;  %v3250_v59 = vcombine.low %v2279_v12, %v2282_v26 }
  0x99   : > { %3298 = vmatpush1.bf16.msra.mxu1 %v3657_v8  ;;  %1127 = vmatprep.mubr.bf16.mxu1 %v3682_v2 }
  0x9a   : > { %3291 = vmatprep.subr.bf16.mxu1 %v3662_v14  ;;  %2404 = vmatprep.subr.bf16.mxu0 %v3659_v46  ;;  %v2265_v44 = vsel %vm4074_vm5, %v3228_v51, %v2264_v38 }
  0x9b   : > { %2203 = vmatmul.mubr.bf16.gmra.mrb[8].mxu0 %v3205_v16  ;;  %v3248_v60 = vcombine.low %v2265_v44, %v2268_v5 }
  0x9c   : > { %2405 = vmatpush1.bf16.msra.mxu0 %v3657_v8  ;;  %2212 = vmatprep.mubr.bf16.mxu0 %v3682_v2 }
  0x9d   : > { %3299 = vmatpush1.bf16.msra.mxu1 %v3660_v32  ;;  %2406 = vmatprep.subr.bf16.mxu0 %v3662_v14 }
  0x9e   : > { %3292 = vmatprep.subr.bf16.mxu1 %v3666_v0 }
  0xa0   : > { %1128 = vmatmul.mubr.bf16.gmra.mrb[12].mxu1 %v3663_v63  ;;  %2407 = vmatpush1.bf16.msra.mxu0 %v3660_v32  ;;  %v2486_v32 = vlaneseq }
  0xa1   : > { %3300 = vmatpush1.bf16.msra.mxu1 %v3664_v31  ;;  %2448 = vmatprep.mubr.bf16.mxu1 %v3682_v2 }
  0xa2   : > { %3293 = vmatprep.subr.bf16.mxu1 %v3669_v28  ;;  %2408 = vmatprep.subr.bf16.mxu0 %v3666_v0  ;;  %v2487_v24 = vshrl.u32 %v2486_v32, 7 }
  0xa3   : > { %2213 = vmatmul.mubr.bf16.gmra.mrb[12].mxu0 %v3206_v40 }
  0xa4   : > { %2409 = vmatpush1.bf16.msra.mxu0 %v3664_v31  ;;  %2428 = vmatprep.mubr.bf16.mxu0 %v3682_v2  ;;  %v2488_v37 = vsub.s32 0, %v2487_v24 }
  0xa5   : > { %3301 = vmatpush1.bf16.msra.mxu1 %v3667_v42  ;;  %2410 = vmatprep.subr.bf16.mxu0 %v3669_v28 }
  0xa6   : > { %v4576_v36 = vrot.slane %v199_v25, %v2488_v37 }
  0xa8   : > { %2449 = vmatmul.mubr.bf16.vlgmr.msra.gmra.mrb[16].mxu1 %v3249_v47  ;;  %2411 = vmatpush1.bf16.msra.mxu0 %v3667_v42  ;;  %v2492_v42 = vsub.s32 1, %v2487_v24 }
  0xa9   : > { %2458 = vmatprep.mubr.bf16.mxu1 %v3682_v2 }
  0xaa   : > { %v4580_v48 = vrot.slane %v199_v25, %v2492_v42 }
  0xab   : > { %2429 = vmatmul.mubr.bf16.vlgmr.msra.gmra.mrb[0].mxu0 %v3247_v54 }
  0xac   : > { %2438 = vmatprep.mubr.bf16.mxu0 %v3682_v2 }
  0xb0   : > { %2459 = vmatmul.mubr.bf16.gmra.mrb[20].mxu1 %v3250_v59 }
  0xb3   : > { %2439 = vmatmul.mubr.bf16.gmra.mrb[4].mxu0 %v3248_v60 }
  0xe2   : > { %v4585_v51 = vpop.permute.xlu1 %2564 }
  0xf6   : > { %v4578_v47 = vpop.permute.xlu0 %2554 }
 0x15b   : > { %v1099_v62 = vpop.f32.mrb[0].mxu1 }
 0x15c   : > { %v1101_v3 = vpop.f32.mrb[1].mxu1 }
 0x15d   : > { %v1103_v30 = vpop.f32.mrb[2].mxu1 }
 0x15e   : > { %v1105_v46 = vpop.f32.mrb[3].mxu1 }
 0x163   : > { %v4565_v7 = vpop.f32.mrb[4].mxu1 }
 0x164   : > { %v4567_v58 = vpop.f32.mrb[5].mxu1 }
 0x165   : > { %v4569_v6 = vpop.f32.mrb[6].mxu1 }
 0x166   : > { %v4571_v2 = vpop.f32.mrb[7].mxu1 }
 0x16b   : > { %v1119_v10 = vpop.f32.mrb[8].mxu1 }
 0x16c   : > { %v1121_v8 = vpop.f32.mrb[9].mxu1 }
 0x16d   : > { %v1123_v9 = vpop.f32.mrb[10].mxu1 }
 0x16e   : > { %v1125_v22 = vpop.f32.mrb[11].mxu1  ;;  %v2204_v11 = vpop.f32.mrb[8].mxu0 }
 0x16f   : > { %v3310_v14 = vadd.f32 %v2204_v11, %v1119_v10  ;;  %v2206_v15 = vpop.f32.mrb[9].mxu0 }
 0x170   : > { %v3312_v45 = vadd.f32 %v2206_v15, %v1121_v8  ;;  %v2208_v1 = vpop.f32.mrb[10].mxu0 }
 0x171   : > { %v3314_v55 = vadd.f32 %v2208_v1, %v1123_v9  ;;  %v2210_v16 = vpop.f32.mrb[11].mxu0 }
 0x172   : > { %v3316_v19 = vadd.f32 %v2210_v16, %v1125_v22  ;;  %v4607_v16 = vpop.permute.xlu1 %2569 }
 0x173   : > { %v1129_v18 = vpop.f32.mrb[12].mxu1 }
 0x174   : > { %v1131_v20 = vpop.f32.mrb[13].mxu1 }
 0x175   : > { %v1133_v21 = vpop.f32.mrb[14].mxu1 }
 0x176   : > { %v1135_v23 = vpop.f32.mrb[15].mxu1  ;;  %v2214_v0 = vpop.f32.mrb[12].mxu0 }
 0x177   : > { %v3318_v63 = vadd.f32 %v2214_v0, %v1129_v18  ;;  %v2216_v49 = vpop.f32.mrb[13].mxu0 }
 0x178   : > { %v3320_v34 = vadd.f32 %v2216_v49, %v1131_v20  ;;  %v2218_v31 = vpop.f32.mrb[14].mxu0 }
 0x179   : > { %v3322_v29 = vadd.f32 %v2218_v31, %v1133_v21  ;;  %v2220_v27 = vpop.f32.mrb[15].mxu0 }
 0x17a   : > { %v3324_v39 = vadd.f32 %v2220_v27, %v1135_v23 }
 0x17b   : > { %v2450_v28 = vpop.f32.mrb[16].mxu1 }
 0x17c   : > { %v3311_v40 = vadd.f32 %v3310_v14, %v2450_v28  ;;  %v2452_v53 = vpop.f32.mrb[17].mxu1  ;;  %v4644_v28 = vpop.permute.xlu1 %2579 }
 0x17d   : > { %v3313_v43 = vadd.f32 %v3312_v45, %v2452_v53  ;;  %v2454_v17 = vpop.f32.mrb[18].mxu1 }
 0x17e   : > { %v3315_v33 = vadd.f32 %v3314_v55, %v2454_v17  ;;  %v2456_v35 = vpop.f32.mrb[19].mxu1  ;;  %v2430_v61 = vpop.f32.mrb[0].mxu0 }
 0x17f   : > { %v3317_v13 = vadd.f32 %v3316_v19, %v2456_v35  ;;  %v3302_v50 = vadd.f32 %v2430_v61, %v1099_v62  ;;  %v2432_v41 = vpop.f32.mrb[1].mxu0  ;;  %v4627_v49 = vadd.f32 %v3313_v43, %v4580_v48 }
 0x180   : > { %v3303_v52 = vadd.f32 %v2432_v41, %v1101_v3  ;;  %v2434_v38 = vpop.f32.mrb[2].mxu0  ;;  %v4593_v3 = vpop.permute.xlu0 %2559 }
 0x181   : > { %v4583_v4 = vadd.f32 %v3302_v50, %v4576_v36  ;;  %v3304_v54 = vadd.f32 %v2434_v38, %v1103_v30  ;;  %v2436_v12 = vpop.f32.mrb[3].mxu0  ;;  %v4642_v37 = vadd.f32 %v3317_v13, %v4580_v48 }
 0x182   : > { %v4588_v56 = vadd.f32 %v3303_v52, %v4580_v48  ;;  %v3305_v57 = vadd.f32 %v2436_v12, %v1105_v46 }
 0x183   : > { %v2460_v26 = vpop.f32.mrb[20].mxu1  ;;  %v4591_v5 = vadd.f32 %v3304_v54, %v4576_v36  ;;  %v2592_v9 = vmul.f32 %v4578_v47, %v4583_v4  ;;  %v2603_v50 = vmul.f32 %v4644_v28, %v4642_v37 }
 0x184   : > { %v3319_v59 = vadd.f32 %v3318_v63, %v2460_v26  ;;  %v2462_v44 = vpop.f32.mrb[21].mxu1  ;;  %v4596_v10 = vadd.f32 %v3305_v57, %v4580_v48  ;;  %v2593_v11 = vmul.f32 %v4578_v47, %v4588_v56  ;;  %v4674_v57 = vpop.permute.xlu1 %2589 }
 0x185   : > { %v3321_v60 = vadd.f32 %v3320_v34, %v2462_v44  ;;  %v2464_v62 = vpop.f32.mrb[22].mxu1  ;;  %v2594_v46 = vmul.f32 %v4593_v3, %v4591_v5  ;;  %v4629_v34 = vpop.permute.xlu0 %2574 }
 0x186   : > { %v3323_v30 = vadd.f32 %v3322_v29, %v2464_v62  ;;  %v2466_v8 = vpop.f32.mrb[23].mxu1  ;;  %v2595_v14 = vmul.f32 %v4593_v3, %v4596_v10  ;;  %v2440_v15 = vpop.f32.mrb[4].mxu0  ;;  %v4651_v42 = vadd.f32 %v3319_v59, %v4576_v36  ;;  %v2601_v43 = vmul.f32 %v4629_v34, %v4627_v49 }
 0x187   : > { %v3325_v22 = vadd.f32 %v3324_v39, %v2466_v8  ;;  %v2608_v45 = vadd.f32 %v2594_v46, %v2592_v9  ;;  %v3306_v1 = vadd.f32 %v2440_v15, %v4565_v7  ;;  %v2442_v55 = vpop.f32.mrb[5].mxu0  ;;  %v4619_v7 = vadd.f32 %v3311_v40, %v4576_v36 }
 0x188   : > { %v2621_v18 = vadd.f32 %v2595_v14, %v2593_v11  ;;  %v3307_v32 = vadd.f32 %v2442_v55, %v4567_v58  ;;  %v2444_v19 = vpop.f32.mrb[6].mxu0  ;;  %v4656_v17 = vadd.f32 %v3321_v60, %v4580_v48  ;;  %v4661_v61 = vadd.f32 %v3323_v30, %v4576_v36 }
 0x189   : > { %v4611_v20 = vadd.f32 %v3306_v1, %v4576_v36  ;;  %v3308_v21 = vadd.f32 %v2444_v19, %v4569_v6  ;;  %v2446_v23 = vpop.f32.mrb[7].mxu0  ;;  %v2600_v40 = vmul.f32 %v4629_v34, %v4619_v7  ;;  %v4665_v41 = vpop.permute.xlu0 %2584  ;;  %v4668_v38 = vadd.f32 %v3325_v22, %v4580_v48 }
 0x18a   : > { %v4615_v24 = vadd.f32 %v3307_v32, %v4580_v48  ;;  %v3309_v0 = vadd.f32 %v2446_v23, %v4571_v2  ;;  %v4637_v2 = vadd.f32 %v3315_v33, %v4576_v36  ;;  %v2604_v54 = vmul.f32 %v4665_v41, %v4651_v42 }
 0x18b   : > { %v2596_v63 = vmul.f32 %v4585_v51, %v4611_v20  ;;  %v4624_v58 = vadd.f32 %v3308_v21, %v4576_v36  ;;  %v2605_v26 = vmul.f32 %v4665_v41, %v4656_v17  ;;  %v2606_v59 = vmul.f32 %v4674_v57, %v4661_v61 }
 0x18c   : > { %v2597_v6 = vmul.f32 %v4585_v51, %v4615_v24  ;;  %v4634_v31 = vadd.f32 %v3309_v0, %v4580_v48  ;;  %v2602_v35 = vmul.f32 %v4644_v28, %v4637_v2  ;;  %v2607_v60 = vmul.f32 %v4674_v57, %v4668_v38 }
 0x18d   : > { %v2609_v29 = vadd.f32 %v2608_v45, %v2596_v63  ;;  %v2598_v27 = vmul.f32 %v4607_v16, %v4624_v58 }
 0x18e   : > { %v2622_v39 = vadd.f32 %v2621_v18, %v2597_v6  ;;  %v2599_v25 = vmul.f32 %v4607_v16, %v4634_v31 }
 0x18f   : > { %v2610_v53 = vadd.f32 %v2609_v29, %v2598_v27 }
 0x190   : > { %v2623_v33 = vadd.f32 %v2622_v39, %v2599_v25 }
 0x191   : > { %v2611_v13 = vadd.f32 %v2610_v53, %v2600_v40 }
 0x192   : > { %v2624_v52 = vadd.f32 %v2623_v33, %v2601_v43 }
 0x193   : > { %v2612_v12 = vadd.f32 %v2611_v13, %v2602_v35 }
 0x194   : > { %v2625_v36 = vadd.f32 %v2624_v52, %v2603_v50 }
 0x195   : > { %v2613_v44 = vadd.f32 %v2612_v12, %v2604_v54 }
 0x196   : > { %v2626_v62 = vadd.f32 %v2625_v36, %v2605_v26 }
 0x197   : > { %v2614_v48 = vadd.f32 %v2613_v44, %v2606_v59 }
 0x198   : > { %v2627_v30 = vadd.f32 %v2626_v62, %v2607_v60 }
 0x199   : > { %v2615_v8 = vrot.slane %v2614_v48, 4 }
 0x19a   : > { %v2628_v9 = vrot.slane %v2627_v30, 4 }
 0x19b   : > { %v2616_v46 = vadd.f32 %v2615_v8, %v2614_v48 }
 0x19c   : > { %v2629_v22 = vadd.f32 %v2628_v9, %v2627_v30 }
 0x19d   : > { %v2617_v11 = vrot.slane %v2616_v46, 2 }
 0x19e   : > { %v2630_v14 = vrot.slane %v2629_v22, 2 }
 0x19f   : > { %v2618_v15 = vadd.f32 %v2617_v11, %v2616_v46 }
 0x1a0   : > { %v2631_v45 = vadd.f32 %v2630_v14, %v2629_v22 }
 0x1a1   : > { %v2619_v1 = vrot.slane %v2618_v15, 1 }
 0x1a2   : > { %v2632_v55 = vrot.slane %v2631_v45, 1 }
 0x1a3   : > { %v2620_v18 = vadd.f32 %v2619_v1, %v2618_v15 }
 0x1a4   : > { %v2633_v32 = vadd.f32 %v2632_v55, %v2631_v45 }
 0x1a5   : > { %v2634_v19 = vmul.f32 0.0625, %v2620_v18 }
 0x1a6   : > { %v2635_v21 = vmul.f32 0.0625, %v2633_v32 }
 0x1a7   : > { %v2636_v23 = vsub.f32 %v4583_v4, %v2634_v19  ;;  %v2638_v0 = vsub.f32 %v4591_v5, %v2634_v19  ;;  %v2640_v63 = vsub.f32 %v4611_v20, %v2634_v19  ;;  %v2642_v6 = vsub.f32 %v4624_v58, %v2634_v19 }
 0x1a8   : > { %v2637_v29 = vsub.f32 %v4588_v56, %v2635_v21  ;;  %v2639_v27 = vsub.f32 %v4596_v10, %v2635_v21  ;;  %v2641_v39 = vsub.f32 %v4615_v24, %v2635_v21  ;;  %v2643_v25 = vsub.f32 %v4634_v31, %v2635_v21 }
 0x1a9   : > { %v2644_v40 = vsub.f32 %v4619_v7, %v2634_v19  ;;  %v2645_v53 = vsub.f32 %v4627_v49, %v2635_v21  ;;  %v2646_v4 = vsub.f32 %v4637_v2, %v2634_v19  ;;  %v2647_v5 = vsub.f32 %v4642_v37, %v2635_v21 }
 0x1aa   : > { %v2648_v20 = vsub.f32 %v4651_v42, %v2634_v19  ;;  %v2649_v58 = vsub.f32 %v4656_v17, %v2635_v21  ;;  %v2650_v56 = vsub.f32 %v4661_v61, %v2634_v19  ;;  %v2651_v10 = vsub.f32 %v4668_v38, %v2635_v21 }
 0x1ab   : > { %v4697_v24 = vmul.f32 %v2636_v23, %v4578_v47  ;;  %v4700_v31 = vmul.f32 %v2637_v29, %v4578_v47  ;;  %v4703_v7 = vmul.f32 %v2638_v0, %v4593_v3  ;;  %v4706_v49 = vmul.f32 %v2639_v27, %v4593_v3 }
 0x1ac   : > { %v4709_v2 = vmul.f32 %v2640_v63, %v4585_v51  ;;  %v4712_v37 = vmul.f32 %v2641_v39, %v4585_v51  ;;  %v2658_v3 = vmul.f32 %v2642_v6, %v4607_v16  ;;  %v2659_v33 = vmul.f32 %v2643_v25, %v4607_v16 }
 0x1ad   : > { %v2668_v42 = vmul.f32 %v4697_v24, %v4697_v24  ;;  %v2669_v43 = vmul.f32 %v4700_v31, %v4700_v31  ;;  %v2670_v47 = vmul.f32 %v4703_v7, %v4703_v7  ;;  %v2671_v17 = vmul.f32 %v4706_v49, %v4706_v49 }
 0x1ae   : > { %v2660_v35 = vmul.f32 %v2644_v40, %v4629_v34  ;;  %v2661_v51 = vmul.f32 %v2645_v53, %v4629_v34  ;;  %v2672_v13 = vmul.f32 %v4709_v2, %v4709_v2  ;;  %v2673_v61 = vmul.f32 %v4712_v37, %v4712_v37 }
 0x1af   : > { %v2684_v50 = vadd.f32 %v2670_v47, %v2668_v42  ;;  %v2697_v52 = vadd.f32 %v2671_v17, %v2669_v43  ;;  %v2662_v38 = vmul.f32 %v2646_v4, %v4644_v28  ;;  %v2663_v54 = vmul.f32 %v2647_v5, %v4644_v28 }
 0x1b0   : > { %v2674_v12 = vmul.f32 %v2658_v3, %v2658_v3  ;;  %v2675_v26 = vmul.f32 %v2659_v33, %v2659_v33  ;;  %v2664_v59 = vmul.f32 %v2648_v20, %v4665_v41  ;;  %v2665_v34 = vmul.f32 %v2649_v58, %v4665_v41 }
 0x1b1   : > { %v2685_v36 = vadd.f32 %v2684_v50, %v2672_v13  ;;  %v2698_v16 = vadd.f32 %v2697_v52, %v2673_v61  ;;  %v2676_v44 = vmul.f32 %v2660_v35, %v2660_v35  ;;  %v2677_v60 = vmul.f32 %v2661_v51, %v2661_v51 }
 0x1b2   : > { %v2666_v30 = vmul.f32 %v2650_v56, %v4674_v57  ;;  %v2667_v8 = vmul.f32 %v2651_v10, %v4674_v57  ;;  %v2678_v9 = vmul.f32 %v2662_v38, %v2662_v38  ;;  %v2679_v46 = vmul.f32 %v2663_v54, %v2663_v54 }
 0x1b3   : > { %v2686_v62 = vadd.f32 %v2685_v36, %v2674_v12  ;;  %v2699_v48 = vadd.f32 %v2698_v16, %v2675_v26  ;;  %v2680_v11 = vmul.f32 %v2664_v59, %v2664_v59  ;;  %v2681_v14 = vmul.f32 %v2665_v34, %v2665_v34 }
 0x1b4   : > { %v2682_v1 = vmul.f32 %v2666_v30, %v2666_v30  ;;  %v2683_v55 = vmul.f32 %v2667_v8, %v2667_v8 }
 0x1b5   : > { %v2687_v22 = vadd.f32 %v2686_v62, %v2676_v44  ;;  %v2700_v28 = vadd.f32 %v2699_v48, %v2677_v60 }
 0x1b7   : > { %v2688_v15 = vadd.f32 %v2687_v22, %v2678_v9  ;;  %v2701_v45 = vadd.f32 %v2700_v28, %v2679_v46 }
 0x1b9   : > { %v2689_v18 = vadd.f32 %v2688_v15, %v2680_v11  ;;  %v2702_v41 = vadd.f32 %v2701_v45, %v2681_v14 }
 0x1bb   : > { %v2690_v32 = vadd.f32 %v2689_v18, %v2682_v1  ;;  %v2703_v19 = vadd.f32 %v2702_v41, %v2683_v55 }
 0x1bd   : > { %v2691_v21 = vrot.slane %v2690_v32, 4  ;;  %v2704_v23 = vrot.slane %v2703_v19, 4 }
 0x1bf   : > { %v2692_v0 = vadd.f32 %v2691_v21, %v2690_v32  ;;  %v2705_v63 = vadd.f32 %v2704_v23, %v2703_v19 }
 0x1c1   : > { %v2693_v6 = vrot.slane %v2692_v0, 2  ;;  %v2706_v57 = vrot.slane %v2705_v63, 2 }
 0x1c3   : > { %v2694_v29 = vadd.f32 %v2693_v6, %v2692_v0  ;;  %v2707_v27 = vadd.f32 %v2706_v57, %v2705_v63 }
 0x1c5   : > { %v2695_v39 = vrot.slane %v2694_v29, 1  ;;  %v2708_v25 = vrot.slane %v2707_v27, 1 }
 0x1c7   : > { %v2696_v40 = vadd.f32 %v2695_v39, %v2694_v29  ;;  %v2709_v53 = vadd.f32 %v2708_v25, %v2707_v27 }
 0x1c9   : > { %v2710_v4 = vmul.f32 0.0625, %v2696_v40  ;;  %v2711_v5 = vmul.f32 0.0625, %v2709_v53 }
 0x1cb   : > { %v2712_v20 = vadd.f32 1e-05, %v2710_v4  ;;  %v2713_v58 = vadd.f32 1e-05, %v2711_v5 }
 0x1cd   : > { %3670 = vrsqrt.f32 %v2712_v20 }
 0x1ce   : > { %3672 = vrsqrt.f32 %v2713_v58 }
 0x1d7   : > { %v3671_v56 = vpop.eup %3670 }
 0x1d8   : > { %v3673_v10 = vpop.eup %3672  ;;  %v2716_v42 = vmul.f32 %v3671_v56, %v4697_v24  ;;  %v2718_v43 = vmul.f32 %v3671_v56, %v4703_v7  ;;  %v2720_v47 = vmul.f32 %v3671_v56, %v4709_v2  ;;  %v2722_v17 = vmul.f32 %v3671_v56, %v2658_v3 }
 0x1d9   : > { %v2717_v13 = vmul.f32 %v3673_v10, %v4700_v31  ;;  %v2719_v61 = vmul.f32 %v3673_v10, %v4706_v49  ;;  %v2721_v50 = vmul.f32 %v3673_v10, %v4712_v37  ;;  %v2723_v52 = vmul.f32 %v3673_v10, %v2659_v33 }
 0x1da   : > { %v2724_v12 = vmul.f32 %v3671_v56, %v2660_v35  ;;  %v2725_v26 = vmul.f32 %v3673_v10, %v2661_v51  ;;  %v2726_v36 = vmul.f32 %v3671_v56, %v2662_v38  ;;  %v2727_v16 = vmul.f32 %v3673_v10, %v2663_v54 }
 0x1db   : > { %v2728_v44 = vmul.f32 %v3671_v56, %v2664_v59  ;;  %v2729_v60 = vmul.f32 %v3673_v10, %v2665_v34  ;;  %v2730_v24 = vmul.f32 %v3671_v56, %v2666_v30  ;;  %v2731_v62 = vmul.f32 %v3673_v10, %v2667_v8 }
 0x1dc   : > { %vm2732_vm6 = vcmp.gt.f32.partialorder %v2716_v42, 0.0  ;;  %vm2733_vm7 = vcmp.gt.f32.partialorder %v2717_v13, 0.0  ;;  %vm2734_vm8 = vcmp.gt.f32.partialorder %v2718_v43, 0.0  ;;  %vm2735_vm9 = vcmp.gt.f32.partialorder %v2719_v61, 0.0 }
 0x1dd   : > { %vm2736_vm10 = vcmp.gt.f32.partialorder %v2720_v47, 0.0  ;;  %vm2737_vm11 = vcmp.gt.f32.partialorder %v2721_v50, 0.0  ;;  %vm2738_vm12 = vcmp.gt.f32.partialorder %v2722_v17, 0.0  ;;  %vm2739_vm13 = vcmp.gt.f32.partialorder %v2723_v52, 0.0 }
 0x1de   : > { %vm2740_vm14 = vcmp.gt.f32.partialorder %v2724_v12, 0.0  ;;  %vm2741_vm15 = vcmp.gt.f32.partialorder %v2725_v26, 0.0  ;;  %vm2742_vm0 = vcmp.gt.f32.partialorder %v2726_v36, 0.0  ;;  %vm2743_vm1 = vcmp.gt.f32.partialorder %v2727_v16, 0.0 }
 0x1df   : > { %vm2744_vm2 = vcmp.gt.f32.partialorder %v2728_v44, 0.0  ;;  %vm2745_vm3 = vcmp.gt.f32.partialorder %v2729_v60, 0.0  ;;  %vm2746_vm4 = vcmp.gt.f32.partialorder %v2730_v24, 0.0  ;;  %vm2747_vm5 = vcmp.gt.f32.partialorder %v2731_v62, 0.0 }
 0x1e0   : > { %v2748_v31 = vmul.f32 0.2, %v2716_v42  ;;  %v2749_v7 = vmul.f32 0.2, %v2717_v13  ;;  %v2750_v49 = vmul.f32 0.2, %v2718_v43 }
 0x1e1   : > { %v2751_v2 = vmul.f32 0.2, %v2719_v61  ;;  %v2752_v37 = vmul.f32 0.2, %v2720_v47  ;;  %v2753_v3 = vmul.f32 0.2, %v2721_v50 }
 0x1e2   : > { %v2754_v33 = vmul.f32 0.2, %v2722_v17  ;;  %v2755_v35 = vmul.f32 0.2, %v2723_v52  ;;  %v2756_v51 = vmul.f32 0.2, %v2724_v12  ;;  %v2764_v38 = vsel %vm2732_vm6, %v2716_v42, %v2748_v31 }
 0x1e3   : > { %v2757_v54 = vmul.f32 0.2, %v2725_v26  ;;  %v2758_v59 = vmul.f32 0.2, %v2726_v36  ;;  %v2759_v34 = vmul.f32 0.2, %v2727_v16  ;;  %v2765_v48 = vsel %vm2733_vm7, %v2717_v13, %v2749_v7 }
 0x1e4   : > { %v2760_v30 = vmul.f32 0.2, %v2728_v44  ;;  %v2761_v8 = vmul.f32 0.2, %v2729_v60  ;;  %v2762_v9 = vmul.f32 0.2, %v2730_v24  ;;  %v2766_v46 = vsel %vm2734_vm8, %v2718_v43, %v2750_v49 }
 0x1e5   : > { %v2763_v22 = vmul.f32 0.2, %v2731_v62  ;;  %v2767_v28 = vsel %vm2735_vm9, %v2719_v61, %v2751_v2  ;;  %v2768_v11 = vsel %vm2736_vm10, %v2720_v47, %v2752_v37  ;;  %v2769_v14 = vsel %vm2737_vm11, %v2721_v50, %v2753_v3 }
 0x1e6   : > { %v2770_v15 = vsel %vm2738_vm12, %v2722_v17, %v2754_v33  ;;  %v2771_v45 = vsel %vm2739_vm13, %v2723_v52, %v2755_v35  ;;  %v2772_v1 = vsel %vm2740_vm14, %v2724_v12, %v2756_v51  ;;  %v2773_v55 = vsel %vm2741_vm15, %v2725_v26, %v2757_v54 }
 0x1e7   : > { %v2774_v18 = vsel %vm2742_vm0, %v2726_v36, %v2758_v59  ;;  %v2775_v41 = vsel %vm2743_vm1, %v2727_v16, %v2759_v34  ;;  %v2776_v32 = vsel %vm2744_vm2, %v2728_v44, %v2760_v30  ;;  %v2777_v19 = vsel %vm2745_vm3, %v2729_v60, %v2761_v8 }
 0x1e8   : > { %v2778_v21 = vsel %vm2746_vm4, %v2730_v24, %v2762_v9  ;;  %v2779_v23 = vsel %vm2747_vm5, %v2731_v62, %v2763_v22  ;;  %v3278_v0 = vpack.c.bf16 %v2765_v48, %v2764_v38  ;;  %v3279_v63 = vpack.c.bf16 %v2767_v28, %v2766_v46 }
 0x1e9   : > { %v3280_v6 = vpack.c.bf16 %v2769_v14, %v2768_v11  ;;  %v3281_v57 = vpack.c.bf16 %v2771_v45, %v2770_v15  ;;  %v3282_v29 = vpack.c.bf16 %v2773_v55, %v2772_v1  ;;  %v3283_v27 = vpack.c.bf16 %v2775_v41, %v2774_v18 }
 0x1ea   : > { %v3284_v39 = vpack.c.bf16 %v2777_v19, %v2776_v32  ;;  %v3285_v25 = vpack.c.bf16 %v2779_v23, %v2778_v21  ;;  %2828 = vst [vmem:[%s197_s28] sm:$0xff] %v3278_v0  ;;  %2829 = vst [vmem:[%s197_s28 + $0x8] sm:$0xff] %v3279_v63 }
 0x1eb   : > { %2830 = vst [vmem:[%s197_s28 + $0x10] sm:$0xff] %v3280_v6  ;;  %2831 = vst [vmem:[%s197_s28 + $0x18] sm:$0xff] %v3281_v57 }
 0x1ec   : > { %2832 = vst [vmem:[%s197_s28 + $0x20] sm:$0xff] %v3282_v29  ;;  %2833 = vst [vmem:[%s197_s28 + $0x28] sm:$0xff] %v3283_v27 }
 0x1ed   : > { %2834 = vst [vmem:[%s197_s28 + $0x30] sm:$0xff] %v3284_v39  ;;  %2835 = vst [vmem:[%s197_s28 + $0x38] sm:$0xff] %v3285_v25 }
 0x1ee PF: > { %s14_s15 = sadd.s32 1, %s3680_s15  }
 0x1ef   : > { %p11_p4 = scmp.ge.s32.totalorder %s14_s15, 4  }
 0x1f1   :  { %13 = sbr.rel (!%p11_p4) target bundleno = 1 (0x1), region = 76 }

// kernel: discriminator_forward.8
= control target key start
LH: loop header
LB: loop body
LE: loop exit
PB: predicated region body
PF: predicated region fallthrough
CT: control target
= control target key end

     0   :  { %s9162_s15 = smov 0   ;;  %s11952_s0 = inlined_call_operand.vmem [shape: bf16[2,1,6,18,256], index: 0, kind: input, shape index: {}]   ;;  %s11953_s1 = inlined_call_operand.vmem [shape: bf16[9,256,512], index: 1, kind: input, shape index: {}]   ;;  %s11954_s2 = inlined_call_operand.vmem [shape: f32[1,512], index: 2, kind: input, shape index: {}]   ;;  %s11955_s3 = inlined_call_operand.vmem [shape: f32[64,1], index: 3, kind: input, shape index: {}]   ;;  %s11956_s4 = inlined_call_operand.vmem [shape: bf16[2,4,16,512], index: 4, kind: output, shape index: {}]  }
   0x1 LB: > { %s6697_s16 = sadd.s32 4294967295, %s9134_s15   ;;  %p6701_p0 = scmp.ge.s32.totalorder %s9134_s15, 1  ;;  %s9134_s15 = sphi %s9162_s15, %s14_s15  }
   0x2   : > { %p162_p1 = scmp.lt.s32.totalorder %s9134_s15, 3 }
   0x4   : > { %p163_p2 = pnand %p6701_p0, %p162_p1 }
   0x6   : > { %166 = sbr.rel (%p163_p2) target bundleno = 946 (0x3b2), region = 36 }
   0xd   : > { %v8228_v0 = vld [vmem:[%s11953_s1 + $0x204] ss:$16 sps:$4 sm:$0xff]   ;;  %v8230_v1 = vld [vmem:[%s11953_s1 + $0x20c] ss:$16 sps:$4 sm:$0xff]   ;;  %v8232_v2 = vld [vmem:[%s11953_s1 + $0x200] ss:$16 sps:$4 sm:$0xff]  }
   0xe   : > { %791 = vmatprep.subr.bf16.mxu0 %v8228_v0  ;;  %v8233_v3 = vld [vmem:[%s11953_s1 + $0x208] ss:$16 sps:$4 sm:$0xff]   ;;  %864 = vmatprep.subr.bf16.mxu1 %v8230_v1  ;;  %v8234_v4 = vld [vmem:[%s11953_s1 + $0x224] ss:$16 sps:$4 sm:$0xff]   ;;  %v8236_v5 = vld [vmem:[%s11953_s1 + $0x22c] ss:$16 sps:$4 sm:$0xff]  }
   0xf   : > { %792 = vmatpush1.bf16.msra.mxu0 %v8232_v2  ;;  %865 = vmatpush1.bf16.msra.mxu1 %v8233_v3  ;;  %v8238_v6 = vld [vmem:[%s11953_s1 + $0x220] ss:$16 sps:$4 sm:$0xff]   ;;  %v8239_v7 = vld [vmem:[%s11953_s1 + $0x228] ss:$16 sps:$4 sm:$0xff]   ;;  %v8240_v8 = vld [vmem:[%s11953_s1 + $0x244] ss:$16 sps:$4 sm:$0xff]  }
  0x10   : > { %793 = vmatprep.subr.bf16.mxu0 %v8234_v4  ;;  %866 = vmatprep.subr.bf16.mxu1 %v8236_v5  ;;  %v8242_v9 = vld [vmem:[%s11953_s1 + $0x24c] ss:$16 sps:$4 sm:$0xff]   ;;  %v8244_v10 = vld [vmem:[%s11953_s1 + $0x240] ss:$16 sps:$4 sm:$0xff]   ;;  %v8245_v11 = vld [vmem:[%s11953_s1 + $0x248] ss:$16 sps:$4 sm:$0xff]  }
  0x11   : > { %v8246_v12 = vld [vmem:[%s11953_s1 + $0x264] ss:$16 sps:$4 sm:$0xff]   ;;  %v8248_v13 = vld [vmem:[%s11953_s1 + $0x26c] ss:$16 sps:$4 sm:$0xff]   ;;  %v8250_v14 = vld [vmem:[%s11953_s1 + $0x260] ss:$16 sps:$4 sm:$0xff]  }
  0x12   : > { %v8251_v15 = vld [vmem:[%s11953_s1 + $0x268] ss:$16 sps:$4 sm:$0xff]   ;;  %v8252_v16 = vld [vmem:[%s11953_s1 + $0x284] ss:$16 sps:$4 sm:$0xff]   ;;  %v8254_v17 = vld [vmem:[%s11953_s1 + $0x28c] ss:$16 sps:$4 sm:$0xff]  }
  0x13   : > { %794 = vmatpush1.bf16.msra.mxu0 %v8238_v6  ;;  %867 = vmatpush1.bf16.msra.mxu1 %v8239_v7  ;;  %v8256_v18 = vld [vmem:[%s11953_s1 + $0x280] ss:$16 sps:$4 sm:$0xff]   ;;  %v8257_v19 = vld [vmem:[%s11953_s1 + $0x288] ss:$16 sps:$4 sm:$0xff]   ;;  %v8258_v20 = vld [vmem:[%s11953_s1 + $0x2a4] ss:$16 sps:$4 sm:$0xff]  }
  0x14   : > { %795 = vmatprep.subr.bf16.mxu0 %v8240_v8  ;;  %868 = vmatprep.subr.bf16.mxu1 %v8242_v9  ;;  %v8260_v21 = vld [vmem:[%s11953_s1 + $0x2ac] ss:$16 sps:$4 sm:$0xff]   ;;  %v8262_v22 = vld [vmem:[%s11953_s1 + $0x2a0] ss:$16 sps:$4 sm:$0xff]   ;;  %v8263_v23 = vld [vmem:[%s11953_s1 + $0x2a8] ss:$16 sps:$4 sm:$0xff]  }
  0x15   : > { %v8264_v24 = vld [vmem:[%s11953_s1 + $0x2c4] ss:$16 sps:$4 sm:$0xff]   ;;  %v8266_v25 = vld [vmem:[%s11953_s1 + $0x2cc] ss:$16 sps:$4 sm:$0xff]   ;;  %v8268_v26 = vld [vmem:[%s11953_s1 + $0x2c0] ss:$16 sps:$4 sm:$0xff]  }
  0x16   : > { %v8269_v27 = vld [vmem:[%s11953_s1 + $0x2c8] ss:$16 sps:$4 sm:$0xff]   ;;  %v8270_v28 = vld [vmem:[%s11953_s1 + $0x2e4] ss:$16 sps:$4 sm:$0xff]   ;;  %v8272_v29 = vld [vmem:[%s11953_s1 + $0x2ec] ss:$16 sps:$4 sm:$0xff]  }
  0x17   : > { %796 = vmatpush1.bf16.msra.mxu0 %v8244_v10  ;;  %869 = vmatpush1.bf16.msra.mxu1 %v8245_v11  ;;  %v8274_v30 = vld [vmem:[%s11953_s1 + $0x2e0] ss:$16 sps:$4 sm:$0xff]   ;;  %p188_p3 = scmp.lt.s32.totalorder %s6697_s16, 1  ;;  %v8275_v31 = vld [vmem:[%s11953_s1 + $0x2e8] ss:$16 sps:$4 sm:$0xff]   ;;  %vm1455_vm3 = vcmask 1042432  }
  0x18   : > { %797 = vmatprep.subr.bf16.mxu0 %v8246_v12  ;;  %870 = vmatprep.subr.bf16.mxu1 %v8248_v13  ;;  %v8276_v32 = vld [vmem:[%s11953_s1 + $0x304] ss:$16 sps:$4 sm:$0xff]   ;;  %v8278_v33 = vld [vmem:[%s11953_s1 + $0x30c] ss:$16 sps:$4 sm:$0xff]   ;;  %v8280_v34 = vld [vmem:[%s11953_s1 + $0x300] ss:$16 sps:$4 sm:$0xff]  }
  0x19   : > { %v8281_v35 = vld [vmem:[%s11953_s1 + $0x308] ss:$16 sps:$4 sm:$0xff]   ;;  %s11974_s16 = smov (!%p188_p3, %s6697_s16), 1  ;;  %v8282_v36 = vld [vmem:[%s11953_s1 + $0x324] ss:$16 sps:$4 sm:$0xff]   ;;  %vm1456_vm4 = vcmask 1046532  }
  0x1a   : > { %v8284_v37 = vld [vmem:[%s11953_s1 + $0x32c] ss:$16 sps:$4 sm:$0xff]   ;;  %v8286_v38 = vld [vmem:[%s11953_s1 + $0x320] ss:$16 sps:$4 sm:$0xff]   ;;  %s8216_s23 = smul.u32 144, %s11974_s16  ;;  %vm9460_vm5 = vmor %vm1455_vm3, %vm1456_vm4  ;;  %s7943_s11 = sshll.u32 %s11974_s16, 7 }
  0x1b   : > { %798 = vmatpush1.bf16.msra.mxu0 %v8250_v14  ;;  %871 = vmatpush1.bf16.msra.mxu1 %v8251_v15  ;;  %v8287_v39 = vld [vmem:[%s11953_s1 + $0x328] ss:$16 sps:$4 sm:$0xff]   ;;  %v8288_v40 = vld [vmem:[%s11953_s1 + $0x344] ss:$16 sps:$4 sm:$0xff]   ;;  %v8290_v41 = vld [vmem:[%s11953_s1 + $0x34c] ss:$16 sps:$4 sm:$0xff]   ;;  %s11890_s13 = scalar_lea.vmem %s11956_s4, %s7943_s11 }
  0x1c   : > { %799 = vmatprep.subr.bf16.mxu0 %v8252_v16  ;;  %872 = vmatprep.subr.bf16.mxu1 %v8254_v17  ;;  %v8292_v42 = vld [vmem:[%s11953_s1 + $0x340] ss:$16 sps:$4 sm:$0xff]   ;;  %v8293_v43 = vld [vmem:[%s11953_s1 + $0x348] ss:$16 sps:$4 sm:$0xff]   ;;  %s9312_s10 = scalar_lea.vmem %s11952_s0, %s8216_s23  ;;  %v8294_v44 = vld [vmem:[%s11953_s1 + $0x364] ss:$16 sps:$4 sm:$0xff]  }
  0x1d   : > { %vm275_vm0 = vsmask.f32 3328  ;;  %v8296_v45 = vld [vmem:[%s11953_s1 + $0x36c] ss:$16 sps:$4 sm:$0xff]   ;;  %vm276_vm1 = vsmask.f32 7440 }
  0x1e   : > { %v8298_v46 = vld [vmem:[%s11953_s1 + $0x360] ss:$16 sps:$4 sm:$0xff]   ;;  %v8299_v47 = vld [vmem:[%s11953_s1 + $0x368] ss:$16 sps:$4 sm:$0xff]   ;;  %v8300_v56 = vld [vmem:[%s11953_s1 + $0x384] ss:$16 sps:$4 sm:$0xff]  }
  0x1f   : > { %800 = vmatpush1.bf16.msra.mxu0 %v8256_v18  ;;  %873 = vmatpush1.bf16.msra.mxu1 %v8257_v19  ;;  %v9327_v48 = vld [vmem:[%s9312_s10] sm:$0xff]  ;;  %v9330_v49 = vld [vmem:[%s9312_s10 + $0x8] sm:$0xff]  ;;  %v9333_v50 = vld [vmem:[%s9312_s10 + $0x10] sm:$0x11] }
  0x20   : > { %801 = vmatprep.subr.bf16.mxu0 %v8258_v20  ;;  %874 = vmatprep.subr.bf16.mxu1 %v8260_v21  ;;  %v279_v51 = vshrl.u32 %v9327_v48, 16  ;;  %v282_v52 = vshll.u32 %v9327_v48, 16  ;;  %v288_v53 = vshll.u32 %v9330_v49, 16  ;;  %v292_v54 = vshrl.u32 %v9330_v49, 16  ;;  %v8302_v57 = vld [vmem:[%s11953_s1 + $0x38c] ss:$16 sps:$4 sm:$0xff]   ;;  %vm9358_vm2 = vmor %vm275_vm0, %vm276_vm1 }
  0x21   : > { %v298_v55 = vshll.u32 %v9333_v50, 16  ;;  %v9348_v60 = vcombine.low %v9327_v48, %v9330_v49  ;;  %v8304_v63 = vld [vmem:[%s11953_s1 + $0x380] ss:$16 sps:$4 sm:$0xff]   ;;  %v8305_v1 = vld [vmem:[%s11953_s1 + $0x388] ss:$16 sps:$4 sm:$0xff]  }
  0x22   : > { %v281_v58 = vrot.slane %v279_v51, 4  ;;  %v284_v59 = vrot.slane %v282_v52, 5  ;;  %v290_v61 = vrot.slane %v288_v53, 5  ;;  %v294_v62 = vrot.slane %v292_v54, 4  ;;  %v8306_v5 = vld [vmem:[%s11953_s1 + $0x3a4] ss:$16 sps:$4 sm:$0xff]  }
  0x23   : > { %802 = vmatpush1.bf16.msra.mxu0 %v8262_v22  ;;  %875 = vmatpush1.bf16.msra.mxu1 %v8263_v23  ;;  %v300_v4 = vrot.slane %v298_v55, 5  ;;  %v8308_v6 = vld [vmem:[%s11953_s1 + $0x3ac] ss:$16 sps:$4 sm:$0xff]   ;;  %v8310_v10 = vld [vmem:[%s11953_s1 + $0x3a0] ss:$16 sps:$4 sm:$0xff]  }
  0x24   : > { %803 = vmatprep.subr.bf16.mxu0 %v8264_v24  ;;  %876 = vmatprep.subr.bf16.mxu1 %v8266_v25  ;;  %v285_v0 = vor.u32 %v284_v59, %v281_v58  ;;  %v295_v3 = vor.u32 %v294_v62, %v290_v61  ;;  %v8311_v11 = vld [vmem:[%s11953_s1 + $0x3a8] ss:$16 sps:$4 sm:$0xff]   ;;  %v8312_v13 = vld [vmem:[%s11953_s1 + $0x3c4] ss:$16 sps:$4 sm:$0xff]   ;;  %v8314_v14 = vld [vmem:[%s11953_s1 + $0x3cc] ss:$16 sps:$4 sm:$0xff]  }
  0x25   : > { %v8316_v16 = vld [vmem:[%s11953_s1 + $0x3c0] ss:$16 sps:$4 sm:$0xff]   ;;  %v8317_v17 = vld [vmem:[%s11953_s1 + $0x3c8] ss:$16 sps:$4 sm:$0xff]   ;;  %v8318_v18 = vld [vmem:[%s11953_s1 + $0x3e4] ss:$16 sps:$4 sm:$0xff]  }
  0x26   : > { %v286_v7 = vrot.slane %v285_v0, 4  ;;  %v296_v8 = vrot.slane %v295_v3, 4  ;;  %v8320_v19 = vld [vmem:[%s11953_s1 + $0x3ec] ss:$16 sps:$4 sm:$0xff]   ;;  %v8322_v20 = vld [vmem:[%s11953_s1 + $0x3e0] ss:$16 sps:$4 sm:$0xff]  }
  0x27   : > { %804 = vmatpush1.bf16.msra.mxu0 %v8268_v26  ;;  %877 = vmatpush1.bf16.msra.mxu1 %v8269_v27  ;;  %v8323_v21 = vld [vmem:[%s11953_s1 + $0x3e8] ss:$16 sps:$4 sm:$0xff]   ;;  %v8326_v22 = vld [vmem:[%s11953_s1 + $0x4] ss:$16 sps:$4 sm:$0xff]   ;;  %v8329_v23 = vld [vmem:[%s11953_s1 + $0xc] ss:$16 sps:$4 sm:$0xff]  }
  0x28   : > { %805 = vmatprep.subr.bf16.mxu0 %v8270_v28  ;;  %878 = vmatprep.subr.bf16.mxu1 %v8272_v29  ;;  %v291_v9 = vsel %vm9358_vm2, %v286_v7, %v290_v61  ;;  %v301_v12 = vsel %vm9358_vm2, %v296_v8, %v300_v4  ;;  %v8324_v25 = vld [vmem:[%s11953_s1] ss:$16 sps:$4 sm:$0xff]   ;;  %v8327_v26 = vld [vmem:[%s11953_s1 + $0x8] ss:$16 sps:$4 sm:$0xff]   ;;  %v8332_v27 = vld [vmem:[%s11953_s1 + $0x24] ss:$16 sps:$4 sm:$0xff]  }
  0x29   : > { %v6770_v15 = vcombine.high %v291_v9, %v301_v12  ;;  %v6769_v24 = vcombine.low %v291_v9, %v301_v12  ;;  %v8335_v28 = vld [vmem:[%s11953_s1 + $0x2c] ss:$16 sps:$4 sm:$0xff]   ;;  %v1460_v29 = vrot.slane %v9330_v49, 5  ;;  %v8345_v58 = vld [vmem:[%s11953_s1 + $0x68] ss:$16 sps:$4 sm:$0xff]  }
  0x2a   : > { %v8353_v0 = vld [vmem:[%s11953_s1 + $0x8c] ss:$16 sps:$4 sm:$0xff]   ;;  %v9501_v8 = vld [vmem:[%s9312_s10 + $0x40] sm:$0x11] }
  0x2b   : > { %806 = vmatpush1.bf16.msra.mxu0 %v8274_v30  ;;  %879 = vmatpush1.bf16.msra.mxu1 %v8275_v31  ;;  %v8330_v30 = vld [vmem:[%s11953_s1 + $0x20] ss:$16 sps:$4 sm:$0xff]   ;;  %v8333_v31 = vld [vmem:[%s11953_s1 + $0x28] ss:$16 sps:$4 sm:$0xff]   ;;  %v9052_v2 = vld [vmem:[%s11953_s1 + $0x10a4] ss:$16 sps:$4 sm:$0xff]  }
  0x2c   : > { %807 = vmatprep.subr.bf16.mxu0 %v8276_v32  ;;  %880 = vmatprep.subr.bf16.mxu1 %v8278_v33  ;;  %v8338_v32 = vld [vmem:[%s11953_s1 + $0x44] ss:$16 sps:$4 sm:$0xff]   ;;  %v8341_v33 = vld [vmem:[%s11953_s1 + $0x4c] ss:$16 sps:$4 sm:$0xff]  }
  0x2d   : > { %823 = vmatprep.mubr.bf16.mxu0 %v6770_v15  ;;  %896 = vmatprep.mubr.bf16.mxu1 %v6770_v15  ;;  %v9498_v7 = vld [vmem:[%s9312_s10 + $0x38] sm:$0xff] }
  0x2e   : > { %v8359_v15 = vld [vmem:[%s11953_s1 + $0xac] ss:$16 sps:$4 sm:$0xff]  }
  0x2f   : > { %808 = vmatpush1.bf16.msra.mxu0 %v8280_v34  ;;  %881 = vmatpush1.bf16.msra.mxu1 %v8281_v35  ;;  %v1462_v34 = vrot.slane %v1460_v29, 4  ;;  %v1463_v35 = vrot.slane %v9333_v50, 5 }
  0x30   : > { %809 = vmatprep.subr.bf16.mxu0 %v8282_v36  ;;  %882 = vmatprep.subr.bf16.mxu1 %v8284_v37  ;;  %v8336_v36 = vld [vmem:[%s11953_s1 + $0x40] ss:$16 sps:$4 sm:$0xff]   ;;  %v8339_v37 = vld [vmem:[%s11953_s1 + $0x48] ss:$16 sps:$4 sm:$0xff]  }
  0x31   : > { %v9474_v52 = vsel %vm9460_vm5, %v1462_v34, %v1463_v35  ;;  %v8363_v34 = vld [vmem:[%s11953_s1 + $0xc8] ss:$16 sps:$4 sm:$0xff]  }
  0x33   : > { %810 = vmatpush1.bf16.msra.mxu0 %v8286_v38  ;;  %883 = vmatpush1.bf16.msra.mxu1 %v8287_v39  ;;  %v8344_v38 = vld [vmem:[%s11953_s1 + $0x64] ss:$16 sps:$4 sm:$0xff]   ;;  %v9446_v39 = vld [vmem:[%s9312_s10 + $0x18] sm:$0xff] }
  0x34   : > { %811 = vmatprep.subr.bf16.mxu0 %v8288_v40  ;;  %884 = vmatprep.subr.bf16.mxu1 %v8290_v41  ;;  %v9449_v40 = vld [vmem:[%s9312_s10 + $0x20] sm:$0xff]  ;;  %v9452_v41 = vld [vmem:[%s9312_s10 + $0x28] sm:$0x11] }
  0x35   : > { %v322_v50 = vshll.u32 %v9452_v41, 16  ;;  %v9470_v51 = vcombine.low %v9446_v39, %v9449_v40 }
  0x37   : > { %812 = vmatpush1.bf16.msra.mxu0 %v8292_v42  ;;  %885 = vmatpush1.bf16.msra.mxu1 %v8293_v43  ;;  %v303_v42 = vshrl.u32 %v9446_v39, 16  ;;  %v306_v43 = vshll.u32 %v9446_v39, 16  ;;  %v324_v62 = vrot.slane %v322_v50, 5  ;;  %v8368_v50 = vld [vmem:[%s11953_s1 + $0xe4] ss:$16 sps:$4 sm:$0xff]  }
  0x38   : > { %813 = vmatprep.subr.bf16.mxu0 %v8294_v44  ;;  %886 = vmatprep.subr.bf16.mxu1 %v8296_v45  ;;  %v312_v44 = vshll.u32 %v9449_v40, 16  ;;  %v316_v45 = vshrl.u32 %v9449_v40, 16 }
  0x39   : > { %v305_v53 = vrot.slane %v303_v42, 4  ;;  %v308_v54 = vrot.slane %v306_v43, 5 }
  0x3a   : > { %v314_v55 = vrot.slane %v312_v44, 5 }
  0x3b   : > { %814 = vmatpush1.bf16.msra.mxu0 %v8298_v46  ;;  %887 = vmatpush1.bf16.msra.mxu1 %v8299_v47  ;;  %v8347_v47 = vld [vmem:[%s11953_s1 + $0x6c] ss:$16 sps:$4 sm:$0xff]   ;;  %v309_v59 = vor.u32 %v308_v54, %v305_v53  ;;  %v198_v46 = vld [vmem:[%s11954_s2] sm:$0xf] }
  0x3c   : > { %815 = vmatprep.subr.bf16.mxu0 %v8300_v56  ;;  %888 = vmatprep.subr.bf16.mxu1 %v8302_v57  ;;  %v318_v56 = vrot.slane %v316_v45, 4  ;;  %v8342_v57 = vld [vmem:[%s11953_s1 + $0x60] ss:$16 sps:$4 sm:$0xff]   ;;  %v8371_v53 = vld [vmem:[%s11953_s1 + $0xec] ss:$16 sps:$4 sm:$0xff]  }
  0x3d   : > { %v310_v3 = vrot.slane %v309_v59, 4 }
  0x3e   : > { %v319_v61 = vor.u32 %v318_v56, %v314_v55 }
  0x3f   : > { %816 = vmatpush1.bf16.msra.mxu0 %v8304_v63  ;;  %889 = vmatpush1.bf16.msra.mxu1 %v8305_v1  ;;  %v8350_v63 = vld [vmem:[%s11953_s1 + $0x84] ss:$16 sps:$4 sm:$0xff]   ;;  %v8348_v1 = vld [vmem:[%s11953_s1 + $0x80] ss:$16 sps:$4 sm:$0xff]  }
  0x40   : > { %817 = vmatprep.subr.bf16.mxu0 %v8306_v5  ;;  %890 = vmatprep.subr.bf16.mxu1 %v8308_v6  ;;  %v320_v4 = vrot.slane %v319_v61, 4  ;;  %v9492_v5 = vld [vmem:[%s9312_s10 + $0x30] sm:$0xff]  ;;  %v8351_v6 = vld [vmem:[%s11953_s1 + $0x88] ss:$16 sps:$4 sm:$0xff]  }
  0x41   : > { %v327_v9 = vshrl.u32 %v9492_v5, 16 }
  0x42   : > { %v325_v12 = vsel %vm9358_vm2, %v320_v4, %v324_v62 }
  0x43   : > { %818 = vmatpush1.bf16.msra.mxu0 %v8310_v10  ;;  %891 = vmatpush1.bf16.msra.mxu1 %v8311_v11  ;;  %v8356_v10 = vld [vmem:[%s11953_s1 + $0xa4] ss:$16 sps:$4 sm:$0xff]   ;;  %v315_v11 = vsel %vm9358_vm2, %v310_v3, %v314_v55 }
  0x44   : > { %819 = vmatprep.subr.bf16.mxu0 %v8312_v13  ;;  %892 = vmatprep.subr.bf16.mxu1 %v8314_v14  ;;  %v330_v13 = vshll.u32 %v9492_v5, 16  ;;  %v336_v14 = vshll.u32 %v9498_v7, 16 }
  0x47   : > { %820 = vmatpush1.bf16.msra.mxu0 %v8316_v16  ;;  %893 = vmatpush1.bf16.msra.mxu1 %v8317_v17  ;;  %v6772_v16 = vcombine.high %v315_v11, %v325_v12  ;;  %v329_v17 = vrot.slane %v327_v9, 4  ;;  %v8374_v9 = vld [vmem:[%s11953_s1 + $0x104] ss:$16 sps:$4 sm:$0xff]  }
  0x48   : > { %821 = vmatprep.subr.bf16.mxu0 %v8318_v18  ;;  %894 = vmatprep.subr.bf16.mxu1 %v8320_v19  ;;  %v340_v18 = vshrl.u32 %v9498_v7, 16  ;;  %v6771_v19 = vcombine.low %v315_v11, %v325_v12  ;;  %v8377_v11 = vld [vmem:[%s11953_s1 + $0x10c] ss:$16 sps:$4 sm:$0xff]  }
  0x4b   : > { %822 = vmatpush1.bf16.msra.mxu0 %v8322_v20  ;;  %895 = vmatpush1.bf16.msra.mxu1 %v8323_v21  ;;  %v332_v20 = vrot.slane %v330_v13, 5  ;;  %v338_v21 = vrot.slane %v336_v14, 5  ;;  %v8372_v14 = vld [vmem:[%s11953_s1 + $0x100] ss:$16 sps:$4 sm:$0xff]  }
  0x4c   : > { %1297 = vmatprep.subr.bf16.mxu0 %v8326_v22  ;;  %1370 = vmatprep.subr.bf16.mxu1 %v8329_v23  ;;  %v346_v22 = vshll.u32 %v9501_v8, 16  ;;  %v8354_v23 = vld [vmem:[%s11953_s1 + $0xa0] ss:$16 sps:$4 sm:$0xff]  }
  0x4e   : > { %824 = vmatmul.mubr.bf16.vlgmr.msra.gmra.mrb[0].mxu0 %v6769_v24  ;;  %897 = vmatmul.mubr.bf16.vlgmr.msra.gmra.mrb[0].mxu1 %v6769_v24  ;;  %v342_v24 = vrot.slane %v340_v18, 4 }
  0x4f   : > { %1298 = vmatpush1.bf16.msra.mxu0 %v8324_v25  ;;  %1371 = vmatpush1.bf16.msra.mxu1 %v8327_v26  ;;  %v8357_v25 = vld [vmem:[%s11953_s1 + $0xa8] ss:$16 sps:$4 sm:$0xff]   ;;  %v333_v26 = vor.u32 %v332_v20, %v329_v17  ;;  %v8380_v17 = vld [vmem:[%s11953_s1 + $0x124] ss:$16 sps:$4 sm:$0xff]   ;;  %v8378_v20 = vld [vmem:[%s11953_s1 + $0x120] ss:$16 sps:$4 sm:$0xff]  }
  0x50   : > { %1299 = vmatprep.subr.bf16.mxu0 %v8332_v27  ;;  %1372 = vmatprep.subr.bf16.mxu1 %v8335_v28  ;;  %v8362_v27 = vld [vmem:[%s11953_s1 + $0xc4] ss:$16 sps:$4 sm:$0xff]   ;;  %v8365_v28 = vld [vmem:[%s11953_s1 + $0xcc] ss:$16 sps:$4 sm:$0xff]  }
  0x51   : > { %833 = vmatprep.mubr.bf16.mxu0 %v6772_v16  ;;  %906 = vmatprep.mubr.bf16.mxu1 %v6772_v16  ;;  %v334_v35 = vrot.slane %v333_v26, 4  ;;  %v8375_v16 = vld [vmem:[%s11953_s1 + $0x108] ss:$16 sps:$4 sm:$0xff]   ;;  %v6842_v26 = vcombine.high %v9327_v48, %v9330_v49  ;;  %v8392_v48 = vld [vmem:[%s11953_s1 + $0x164] ss:$16 sps:$4 sm:$0xff]  }
  0x53   : > { %1300 = vmatpush1.bf16.msra.mxu0 %v8330_v30  ;;  %1373 = vmatpush1.bf16.msra.mxu1 %v8333_v31  ;;  %v343_v30 = vor.u32 %v342_v24, %v338_v21  ;;  %v348_v31 = vrot.slane %v346_v22, 5  ;;  %v339_v54 = vsel %vm9358_vm2, %v334_v35, %v338_v21  ;;  %v8381_v22 = vld [vmem:[%s11953_s1 + $0x128] ss:$16 sps:$4 sm:$0xff]   ;;  %v1467_v24 = vrot.slane %v9449_v40, 5 }
  0x54   : > { %1301 = vmatprep.subr.bf16.mxu0 %v8338_v32  ;;  %1374 = vmatprep.subr.bf16.mxu1 %v8341_v33  ;;  %v9531_v32 = vld [vmem:[%s9312_s10 + $0x48] sm:$0xff]  ;;  %v8360_v33 = vld [vmem:[%s11953_s1 + $0xc0] ss:$16 sps:$4 sm:$0xff]  }
  0x55   : > { %v354_v42 = vshll.u32 %v9531_v32, 16  ;;  %v344_v43 = vrot.slane %v343_v30, 4  ;;  %v8384_v30 = vld [vmem:[%s11953_s1 + $0x140] ss:$16 sps:$4 sm:$0xff]   ;;  %v8393_v35 = vld [vmem:[%s11953_s1 + $0x168] ss:$16 sps:$4 sm:$0xff]  }
  0x56   : > { %834 = vmatmul.mubr.bf16.gmra.mrb[4].mxu0 %v6771_v19  ;;  %907 = vmatmul.mubr.bf16.gmra.mrb[4].mxu1 %v6771_v19  ;;  %v8383_v19 = vld [vmem:[%s11953_s1 + $0x12c] ss:$16 sps:$4 sm:$0xff]  }
  0x57   : > { %1302 = vmatpush1.bf16.msra.mxu0 %v8336_v36  ;;  %1375 = vmatpush1.bf16.msra.mxu1 %v8339_v37  ;;  %v9540_v36 = vld [vmem:[%s9312_s10 + $0x50] sm:$0xff]  ;;  %v9543_v37 = vld [vmem:[%s9312_s10 + $0x58] sm:$0x11]  ;;  %v356_v56 = vrot.slane %v354_v42, 5  ;;  %v1474_v42 = vrot.slane %v9498_v7, 5 }
  0x58   : > { %1303 = vmatprep.subr.bf16.mxu0 %v8344_v38  ;;  %1376 = vmatprep.subr.bf16.mxu1 %v8347_v47  ;;  %v351_v38 = vshrl.u32 %v9531_v32, 16  ;;  %v360_v44 = vshll.u32 %v9540_v36, 16  ;;  %v364_v45 = vshrl.u32 %v9540_v36, 16  ;;  %v370_v47 = vshll.u32 %v9543_v37, 16 }
  0x5a   : > { %v353_v55 = vrot.slane %v351_v38, 4  ;;  %v366_v59 = vrot.slane %v364_v45, 4  ;;  %v372_v4 = vrot.slane %v370_v47, 5  ;;  %v8398_v38 = vld [vmem:[%s11953_s1 + $0x184] ss:$16 sps:$4 sm:$0xff]   ;;  %v1477_v45 = vrot.slane %v9501_v8, 5 }
  0x5b   : > { %1304 = vmatpush1.bf16.msra.mxu0 %v8342_v57  ;;  %1377 = vmatpush1.bf16.msra.mxu1 %v8345_v58  ;;  %v349_v57 = vsel %vm9358_vm2, %v344_v43, %v348_v31  ;;  %v362_v58 = vrot.slane %v360_v44, 5  ;;  %v8387_v31 = vld [vmem:[%s11953_s1 + $0x148] ss:$16 sps:$4 sm:$0xff]   ;;  %v8401_v43 = vld [vmem:[%s11953_s1 + $0x18c] ss:$16 sps:$4 sm:$0xff]   ;;  %v1476_v44 = vrot.slane %v1474_v42, 4 }
  0x5c   : > { %1305 = vmatprep.subr.bf16.mxu0 %v8350_v63  ;;  %1378 = vmatprep.subr.bf16.mxu1 %v8353_v0  ;;  %v6774_v61 = vcombine.high %v339_v54, %v349_v57  ;;  %v357_v62 = vor.u32 %v356_v56, %v353_v55  ;;  %v9562_v63 = vcombine.low %v9531_v32, %v9540_v36  ;;  %v8366_v0 = vld [vmem:[%s11953_s1 + $0xe0] ss:$16 sps:$4 sm:$0xff]   ;;  %v8407_v8 = vld [vmem:[%s11953_s1 + $0x1ac] ss:$16 sps:$4 sm:$0xff]   ;;  %v8405_v56 = vld [vmem:[%s11953_s1 + $0x1a8] ss:$16 sps:$4 sm:$0xff]  }
  0x5d   : > { %v367_v3 = vor.u32 %v366_v59, %v362_v58  ;;  %v8396_v47 = vld [vmem:[%s11953_s1 + $0x180] ss:$16 sps:$4 sm:$0xff]   ;;  %v8413_v59 = vld [vmem:[%s11953_s1 + $0x1cc] ss:$16 sps:$4 sm:$0xff]  }
  0x5e   : > { %843 = vmatprep.mubr.bf16.mxu0 %v6774_v61  ;;  %916 = vmatprep.mubr.bf16.mxu1 %v6774_v61  ;;  %v8402_v55 = vld [vmem:[%s11953_s1 + $0x1a0] ss:$16 sps:$4 sm:$0xff]  }
  0x5f   : > { %1306 = vmatpush1.bf16.msra.mxu0 %v8348_v1  ;;  %1379 = vmatpush1.bf16.msra.mxu1 %v8351_v6  ;;  %v6773_v1 = vcombine.low %v339_v54, %v349_v57  ;;  %v8369_v6 = vld [vmem:[%s11953_s1 + $0xe8] ss:$16 sps:$4 sm:$0xff]   ;;  %v368_v12 = vrot.slane %v367_v3, 4  ;;  %v9653_v54 = vsel %vm9460_vm5, %v1476_v44, %v1477_v45  ;;  %v8410_v57 = vld [vmem:[%s11953_s1 + $0x1c4] ss:$16 sps:$4 sm:$0xff]  }
  0x60   : > { %1307 = vmatprep.subr.bf16.mxu0 %v8356_v10  ;;  %1380 = vmatprep.subr.bf16.mxu1 %v8359_v15  ;;  %v358_v10 = vrot.slane %v357_v62, 4  ;;  %v1484_v62 = vrot.slane %v9543_v37, 5  ;;  %v8416_v3 = vld [vmem:[%s11953_s1 + $0x1e4] ss:$16 sps:$4 sm:$0xff]   ;;  %v8419_v37 = vld [vmem:[%s11953_s1 + $0x1ec] ss:$16 sps:$4 sm:$0xff]  }
  0x61   : > { %844 = vmatmul.mubr.bf16.gmra.mrb[8].mxu0 %v6773_v1  ;;  %917 = vmatmul.mubr.bf16.gmra.mrb[8].mxu1 %v6773_v1  ;;  %v373_v15 = vsel %vm9358_vm2, %v368_v12, %v372_v4  ;;  %v8411_v1 = vld [vmem:[%s11953_s1 + $0x1c8] ss:$16 sps:$4 sm:$0xff]   ;;  %v8421_v12 = vld [vmem:[%s11953_s1 + $0x400] ss:$16 sps:$4 sm:$0xff]   ;;  %v8460_v44 = vld [vmem:[%s11953_s1 + $0x4c4] ss:$16 sps:$4 sm:$0xff]  }
  0x62   : > { %v363_v13 = vsel %vm9358_vm2, %v358_v10, %v362_v58  ;;  %v1481_v58 = vrot.slane %v9540_v36, 5  ;;  %v8423_v10 = vld [vmem:[%s11953_s1 + $0x404] ss:$16 sps:$4 sm:$0xff]   ;;  %v8458_v45 = vld [vmem:[%s11953_s1 + $0x4c0] ss:$16 sps:$4 sm:$0xff]  }
  0x63   : > { %1308 = vmatpush1.bf16.msra.mxu0 %v8354_v23  ;;  %1381 = vmatpush1.bf16.msra.mxu1 %v8357_v25  ;;  %v6776_v18 = vcombine.high %v363_v13, %v373_v15  ;;  %v6775_v21 = vcombine.low %v363_v13, %v373_v15  ;;  %v8386_v23 = vld [vmem:[%s11953_s1 + $0x144] ss:$16 sps:$4 sm:$0xff]   ;;  %v8389_v25 = vld [vmem:[%s11953_s1 + $0x14c] ss:$16 sps:$4 sm:$0xff]   ;;  %v8424_v13 = vld [vmem:[%s11953_s1 + $0x408] ss:$16 sps:$4 sm:$0xff]  }
  0x64   : > { %1309 = vmatprep.subr.bf16.mxu0 %v8362_v27  ;;  %1382 = vmatprep.subr.bf16.mxu1 %v8365_v28  ;;  %v1469_v27 = vrot.slane %v1467_v24, 4  ;;  %v1470_v28 = vrot.slane %v9452_v41, 5  ;;  %v8395_v41 = vld [vmem:[%s11953_s1 + $0x16c] ss:$16 sps:$4 sm:$0xff]   ;;  %v1483_v61 = vrot.slane %v1481_v58, 4 }
  0x65   : > { %853 = vmatprep.mubr.bf16.mxu0 %v6776_v18  ;;  %926 = vmatprep.mubr.bf16.mxu1 %v6776_v18  ;;  %v8433_v15 = vld [vmem:[%s11953_s1 + $0x42c] ss:$16 sps:$4 sm:$0xff]   ;;  %v8431_v18 = vld [vmem:[%s11953_s1 + $0x428] ss:$16 sps:$4 sm:$0xff]  }
  0x66   : > { %v9685_v4 = vsel %vm9460_vm5, %v1483_v61, %v1484_v62  ;;  %v8478_v61 = vld [vmem:[%s11953_s1 + $0x524] ss:$16 sps:$4 sm:$0xff]   ;;  %v8481_v62 = vld [vmem:[%s11953_s1 + $0x52c] ss:$16 sps:$4 sm:$0xff]  }
  0x67   : > { %1310 = vmatpush1.bf16.msra.mxu0 %v8360_v33  ;;  %1383 = vmatpush1.bf16.msra.mxu1 %v8363_v34  ;;  %v9621_v33 = vsel %vm9460_vm5, %v1469_v27, %v1470_v28  ;;  %v8390_v34 = vld [vmem:[%s11953_s1 + $0x160] ss:$16 sps:$4 sm:$0xff]  }
  0x68   : > { %1311 = vmatprep.subr.bf16.mxu0 %v8368_v50  ;;  %1384 = vmatprep.subr.bf16.mxu1 %v8371_v53  ;;  %v8399_v50 = vld [vmem:[%s11953_s1 + $0x188] ss:$16 sps:$4 sm:$0xff]   ;;  %v8404_v53 = vld [vmem:[%s11953_s1 + $0x1a4] ss:$16 sps:$4 sm:$0xff]   ;;  %v8440_v28 = vld [vmem:[%s11953_s1 + $0x460] ss:$16 sps:$4 sm:$0xff]  }
  0x69   : > { %854 = vmatmul.mubr.bf16.gmra.mrb[12].mxu0 %v6775_v21  ;;  %927 = vmatmul.mubr.bf16.gmra.mrb[12].mxu1 %v6775_v21  ;;  %v1443_v21 = vld [vmem:[%s9312_s10] sm:$0xee] }
  0x6a   : > { %1329 = vmatprep.mubr.bf16.mxu0 %v6842_v26  ;;  %1402 = vmatprep.mubr.bf16.mxu1 %v6842_v26  ;;  %v6846_v26 = vcombine.high %v9492_v5, %v9498_v7 }
  0x6b   : > { %1312 = vmatpush1.bf16.msra.mxu0 %v8366_v0  ;;  %1385 = vmatpush1.bf16.msra.mxu1 %v8369_v6  ;;  %v8408_v0 = vld [vmem:[%s11953_s1 + $0x1c0] ss:$16 sps:$4 sm:$0xff]  }
  0x6c   : > { %1313 = vmatprep.subr.bf16.mxu0 %v8374_v9  ;;  %1386 = vmatprep.subr.bf16.mxu1 %v8377_v11  ;;  %v8414_v6 = vld [vmem:[%s11953_s1 + $0x1e0] ss:$16 sps:$4 sm:$0xff]   ;;  %v8417_v9 = vld [vmem:[%s11953_s1 + $0x1e8] ss:$16 sps:$4 sm:$0xff]   ;;  %v8426_v11 = vld [vmem:[%s11953_s1 + $0x40c] ss:$16 sps:$4 sm:$0xff]  }
  0x6f   : > { %1314 = vmatpush1.bf16.msra.mxu0 %v8372_v14  ;;  %1387 = vmatpush1.bf16.msra.mxu1 %v8375_v16  ;;  %v8430_v14 = vld [vmem:[%s11953_s1 + $0x424] ss:$16 sps:$4 sm:$0xff]   ;;  %v6844_v16 = vcombine.high %v9446_v39, %v9449_v40  ;;  %v8434_v39 = vld [vmem:[%s11953_s1 + $0x440] ss:$16 sps:$4 sm:$0xff]  }
  0x70   : > { %1315 = vmatprep.subr.bf16.mxu0 %v8380_v17  ;;  %1388 = vmatprep.subr.bf16.mxu1 %v8383_v19  ;;  %v8428_v17 = vld [vmem:[%s11953_s1 + $0x420] ss:$16 sps:$4 sm:$0xff]   ;;  %v8436_v19 = vld [vmem:[%s11953_s1 + $0x444] ss:$16 sps:$4 sm:$0xff]  }
  0x71   : > { %v1445_v40 = vld [vmem:[%s9312_s10 + $0x30] sm:$0xee] }
  0x73   : > { %1316 = vmatpush1.bf16.msra.mxu0 %v8378_v20  ;;  %1389 = vmatpush1.bf16.msra.mxu1 %v8381_v22  ;;  %v8437_v20 = vld [vmem:[%s11953_s1 + $0x448] ss:$16 sps:$4 sm:$0xff]   ;;  %v8442_v22 = vld [vmem:[%s11953_s1 + $0x464] ss:$16 sps:$4 sm:$0xff]  }
  0x74   : > { %1317 = vmatprep.subr.bf16.mxu0 %v8386_v23  ;;  %1390 = vmatprep.subr.bf16.mxu1 %v8389_v25  ;;  %v6913_v23 = vrot.slane %v1443_v21, 9  ;;  %v8445_v25 = vld [vmem:[%s11953_s1 + $0x46c] ss:$16 sps:$4 sm:$0xff]  }
  0x76   : > { %v1461_v27 = vsel %vm9460_vm5, %v6913_v23, %v1460_v29  ;;  %v8448_v29 = vld [vmem:[%s11953_s1 + $0x484] ss:$16 sps:$4 sm:$0xff]   ;;  %v8509_v23 = vld [vmem:[%s11953_s1 + $0x5ac] ss:$16 sps:$4 sm:$0xff]  }
  0x77   : > { %1318 = vmatpush1.bf16.msra.mxu0 %v8384_v30  ;;  %1391 = vmatpush1.bf16.msra.mxu1 %v8387_v31  ;;  %v8443_v30 = vld [vmem:[%s11953_s1 + $0x468] ss:$16 sps:$4 sm:$0xff]   ;;  %v9758_v31 = vcombine.low %v1461_v27, %v9474_v52  ;;  %v6982_v49 = vcombine.high %v1461_v27, %v9474_v52 }
  0x78   : > { %1319 = vmatprep.subr.bf16.mxu0 %v8392_v48  ;;  %1392 = vmatprep.subr.bf16.mxu1 %v8395_v41  ;;  %v8451_v48 = vld [vmem:[%s11953_s1 + $0x48c] ss:$16 sps:$4 sm:$0xff]   ;;  %v8449_v52 = vld [vmem:[%s11953_s1 + $0x488] ss:$16 sps:$4 sm:$0xff]   ;;  %v6845_v41 = vcombine.low %v9492_v5, %v9498_v7  ;;  %v8499_v7 = vld [vmem:[%s11953_s1 + $0x584] ss:$16 sps:$4 sm:$0xff]  }
  0x79   : > { %v8455_v5 = vld [vmem:[%s11953_s1 + $0x4a8] ss:$16 sps:$4 sm:$0xff]  }
  0x7b   : > { %1320 = vmatpush1.bf16.msra.mxu0 %v8390_v34  ;;  %1393 = vmatpush1.bf16.msra.mxu1 %v8393_v35  ;;  %v8454_v34 = vld [vmem:[%s11953_s1 + $0x4a4] ss:$16 sps:$4 sm:$0xff]   ;;  %v8457_v35 = vld [vmem:[%s11953_s1 + $0x4ac] ss:$16 sps:$4 sm:$0xff]  }
  0x7c   : > { %1321 = vmatprep.subr.bf16.mxu0 %v8398_v38  ;;  %1394 = vmatprep.subr.bf16.mxu1 %v8401_v43  ;;  %v6848_v38 = vcombine.high %v9531_v32, %v9540_v36  ;;  %v8452_v43 = vld [vmem:[%s11953_s1 + $0x4a0] ss:$16 sps:$4 sm:$0xff]   ;;  %v8463_v32 = vld [vmem:[%s11953_s1 + $0x4cc] ss:$16 sps:$4 sm:$0xff]   ;;  %v8513_v36 = vld [vmem:[%s11953_s1 + $0x5c4] ss:$16 sps:$4 sm:$0xff]  }
  0x7f   : > { %1322 = vmatpush1.bf16.msra.mxu0 %v8396_v47  ;;  %1395 = vmatpush1.bf16.msra.mxu1 %v8399_v50  ;;  %v8461_v47 = vld [vmem:[%s11953_s1 + $0x4c8] ss:$16 sps:$4 sm:$0xff]   ;;  %v8466_v50 = vld [vmem:[%s11953_s1 + $0x4e4] ss:$16 sps:$4 sm:$0xff]  }
  0x80   : > { %1323 = vmatprep.subr.bf16.mxu0 %v8404_v53  ;;  %1396 = vmatprep.subr.bf16.mxu1 %v8407_v8  ;;  %v8469_v53 = vld [vmem:[%s11953_s1 + $0x4ec] ss:$16 sps:$4 sm:$0xff]   ;;  %v8464_v8 = vld [vmem:[%s11953_s1 + $0x4e0] ss:$16 sps:$4 sm:$0xff]  }
  0x83   : > { %1324 = vmatpush1.bf16.msra.mxu0 %v8402_v55  ;;  %1397 = vmatpush1.bf16.msra.mxu1 %v8405_v56  ;;  %v8467_v55 = vld [vmem:[%s11953_s1 + $0x4e8] ss:$16 sps:$4 sm:$0xff]   ;;  %v8472_v56 = vld [vmem:[%s11953_s1 + $0x504] ss:$16 sps:$4 sm:$0xff]  }
  0x84   : > { %1325 = vmatprep.subr.bf16.mxu0 %v8410_v57  ;;  %1398 = vmatprep.subr.bf16.mxu1 %v8413_v59  ;;  %v8475_v57 = vld [vmem:[%s11953_s1 + $0x50c] ss:$16 sps:$4 sm:$0xff]   ;;  %v8470_v59 = vld [vmem:[%s11953_s1 + $0x500] ss:$16 sps:$4 sm:$0xff]  }
  0x87   : > { %1326 = vmatpush1.bf16.msra.mxu0 %v8408_v0  ;;  %1399 = vmatpush1.bf16.msra.mxu1 %v8411_v1  ;;  %v1444_v0 = vld [vmem:[%s9312_s10 + $0x18] sm:$0xee]  ;;  %v8476_v1 = vld [vmem:[%s11953_s1 + $0x520] ss:$16 sps:$4 sm:$0xff]  }
  0x88   : > { %1327 = vmatprep.subr.bf16.mxu0 %v8416_v3  ;;  %1400 = vmatprep.subr.bf16.mxu1 %v8419_v37  ;;  %v6914_v3 = vrot.slane %v1444_v0, 9  ;;  %v8479_v37 = vld [vmem:[%s11953_s1 + $0x528] ss:$16 sps:$4 sm:$0xff]   ;;  %v8559_v0 = vld [vmem:[%s11953_s1 + $0x6ac] ss:$16 sps:$4 sm:$0xff]  }
  0x8b   : > { %1328 = vmatpush1.bf16.msra.mxu0 %v8414_v6  ;;  %1401 = vmatpush1.bf16.msra.mxu1 %v8417_v9  ;;  %v8485_v6 = vld [vmem:[%s11953_s1 + $0x544] ss:$16 sps:$4 sm:$0xff]   ;;  %v8488_v9 = vld [vmem:[%s11953_s1 + $0x54c] ss:$16 sps:$4 sm:$0xff]  }
  0x8c   : > { %1903 = vmatprep.subr.bf16.mxu0 %v8423_v10  ;;  %1976 = vmatprep.subr.bf16.mxu1 %v8426_v11  ;;  %v1468_v10 = vsel %vm9460_vm5, %v6914_v3, %v1467_v24  ;;  %v8492_v24 = vld [vmem:[%s11953_s1 + $0x564] ss:$16 sps:$4 sm:$0xff]   ;;  %v8557_v3 = vld [vmem:[%s11953_s1 + $0x6a8] ss:$16 sps:$4 sm:$0xff]  }
  0x8d   : > { %v9851_v11 = vcombine.high %v1468_v10, %v9621_v33 }
  0x8e   : > { %1330 = vmatmul.mubr.bf16.vlgmr.msra.gmra.mrb[0].mxu0 %v9348_v60  ;;  %1403 = vmatmul.mubr.bf16.vlgmr.msra.gmra.mrb[0].mxu1 %v9348_v60  ;;  %v8439_v60 = vld [vmem:[%s11953_s1 + $0x44c] ss:$16 sps:$4 sm:$0xff]  }
  0x8f   : > { %1904 = vmatpush1.bf16.msra.mxu0 %v8421_v12  ;;  %1977 = vmatpush1.bf16.msra.mxu1 %v8424_v13  ;;  %v9854_v12 = vcombine.low %v1468_v10, %v9621_v33  ;;  %v8483_v13 = vld [vmem:[%s11953_s1 + $0x540] ss:$16 sps:$4 sm:$0xff]   ;;  %v8495_v33 = vld [vmem:[%s11953_s1 + $0x56c] ss:$16 sps:$4 sm:$0xff]  }
  0x90   : > { %1905 = vmatprep.subr.bf16.mxu0 %v8430_v14  ;;  %1978 = vmatprep.subr.bf16.mxu1 %v8433_v15  ;;  %v8486_v14 = vld [vmem:[%s11953_s1 + $0x548] ss:$16 sps:$4 sm:$0xff]   ;;  %v6915_v15 = vrot.slane %v1445_v40, 9 }
  0x91   : > { %1339 = vmatprep.mubr.bf16.mxu0 %v6844_v16  ;;  %1412 = vmatprep.mubr.bf16.mxu1 %v6844_v16  ;;  %v10038_v10 = vld [vmem:[%s9312_s10 + $0x18] sm:$0xff] }
  0x92   : > { %v1475_v16 = vsel %vm9460_vm5, %v6915_v15, %v1474_v42  ;;  %v8502_v42 = vld [vmem:[%s11953_s1 + $0x58c] ss:$16 sps:$4 sm:$0xff]   ;;  %v8574_v15 = vld [vmem:[%s11953_s1 + $0x704] ss:$16 sps:$4 sm:$0xff]  }
  0x93   : > { %1906 = vmatpush1.bf16.msra.mxu0 %v8428_v17  ;;  %1979 = vmatpush1.bf16.msra.mxu1 %v8431_v18  ;;  %v8490_v17 = vld [vmem:[%s11953_s1 + $0x560] ss:$16 sps:$4 sm:$0xff]   ;;  %v8493_v18 = vld [vmem:[%s11953_s1 + $0x568] ss:$16 sps:$4 sm:$0xff]  }
  0x94   : > { %1907 = vmatprep.subr.bf16.mxu0 %v8436_v19  ;;  %1980 = vmatprep.subr.bf16.mxu1 %v8439_v60  ;;  %v9880_v19 = vcombine.high %v1475_v16, %v9653_v54  ;;  %v9883_v60 = vcombine.low %v1475_v16, %v9653_v54  ;;  %v8500_v54 = vld [vmem:[%s11953_s1 + $0x588] ss:$16 sps:$4 sm:$0xff]   ;;  %v8577_v16 = vld [vmem:[%s11953_s1 + $0x70c] ss:$16 sps:$4 sm:$0xff]  }
  0x96   : > { %1340 = vmatmul.mubr.bf16.gmra.mrb[4].mxu0 %v9470_v51  ;;  %1413 = vmatmul.mubr.bf16.gmra.mrb[4].mxu1 %v9470_v51  ;;  %v8446_v51 = vld [vmem:[%s11953_s1 + $0x480] ss:$16 sps:$4 sm:$0xff]  }
  0x97   : > { %1908 = vmatpush1.bf16.msra.mxu0 %v8434_v39  ;;  %1981 = vmatpush1.bf16.msra.mxu1 %v8437_v20  ;;  %v1446_v39 = vld [vmem:[%s9312_s10 + $0x48] sm:$0xee]  ;;  %v8497_v20 = vld [vmem:[%s11953_s1 + $0x580] ss:$16 sps:$4 sm:$0xff]  }
  0x98   : > { %1909 = vmatprep.subr.bf16.mxu0 %v8442_v22  ;;  %1982 = vmatprep.subr.bf16.mxu1 %v8445_v25  ;;  %v6916_v21 = vrot.slane %v1446_v39, 9  ;;  %v8506_v22 = vld [vmem:[%s11953_s1 + $0x5a4] ss:$16 sps:$4 sm:$0xff]  }
  0x99   : > { %1349 = vmatprep.mubr.bf16.mxu0 %v6846_v26  ;;  %1422 = vmatprep.mubr.bf16.mxu1 %v6846_v26  ;;  %v8586_v39 = vld [vmem:[%s11953_s1 + $0x744] ss:$16 sps:$4 sm:$0xff]  }
  0x9a   : > { %v1482_v25 = vsel %vm9460_vm5, %v6916_v21, %v1481_v58  ;;  %v8516_v58 = vld [vmem:[%s11953_s1 + $0x5cc] ss:$16 sps:$4 sm:$0xff]   ;;  %v8584_v21 = vld [vmem:[%s11953_s1 + $0x740] ss:$16 sps:$4 sm:$0xff]  }
  0x9b   : > { %1910 = vmatpush1.bf16.msra.mxu0 %v8440_v28  ;;  %1983 = vmatpush1.bf16.msra.mxu1 %v8443_v30  ;;  %v9909_v26 = vcombine.high %v1482_v25, %v9685_v4  ;;  %v9912_v27 = vcombine.low %v1482_v25, %v9685_v4  ;;  %v8504_v28 = vld [vmem:[%s11953_s1 + $0x5a0] ss:$16 sps:$4 sm:$0xff]   ;;  %v8507_v30 = vld [vmem:[%s11953_s1 + $0x5a8] ss:$16 sps:$4 sm:$0xff]  }
  0x9c   : > { %1911 = vmatprep.subr.bf16.mxu0 %v8448_v29  ;;  %1984 = vmatprep.subr.bf16.mxu1 %v8451_v48  ;;  %v8511_v4 = vld [vmem:[%s11953_s1 + $0x5c0] ss:$16 sps:$4 sm:$0xff]   ;;  %v8520_v29 = vld [vmem:[%s11953_s1 + $0x5e4] ss:$16 sps:$4 sm:$0xff]   ;;  %v8523_v48 = vld [vmem:[%s11953_s1 + $0x5ec] ss:$16 sps:$4 sm:$0xff]  }
  0x9d   : > { %v8590_v25 = vld [vmem:[%s11953_s1 + $0x760] ss:$16 sps:$4 sm:$0xff]  }
  0x9e   : > { %1350 = vmatmul.mubr.bf16.gmra.mrb[8].mxu0 %v6845_v41  ;;  %1423 = vmatmul.mubr.bf16.gmra.mrb[8].mxu1 %v6845_v41  ;;  %v8526_v41 = vld [vmem:[%s11953_s1 + $0x604] ss:$16 sps:$4 sm:$0xff]  }
  0x9f   : > { %1912 = vmatpush1.bf16.msra.mxu0 %v8446_v51  ;;  %1985 = vmatpush1.bf16.msra.mxu1 %v8449_v52  ;;  %v8518_v51 = vld [vmem:[%s11953_s1 + $0x5e0] ss:$16 sps:$4 sm:$0xff]   ;;  %v8521_v52 = vld [vmem:[%s11953_s1 + $0x5e8] ss:$16 sps:$4 sm:$0xff]  }
  0xa0   : > { %1913 = vmatprep.subr.bf16.mxu0 %v8454_v34  ;;  %1986 = vmatprep.subr.bf16.mxu1 %v8457_v35  ;;  %v8529_v34 = vld [vmem:[%s11953_s1 + $0x60c] ss:$16 sps:$4 sm:$0xff]   ;;  %v8524_v35 = vld [vmem:[%s11953_s1 + $0x600] ss:$16 sps:$4 sm:$0xff]  }
  0xa1   : > { %1359 = vmatprep.mubr.bf16.mxu0 %v6848_v38  ;;  %1432 = vmatprep.mubr.bf16.mxu1 %v6848_v38  ;;  %v8527_v38 = vld [vmem:[%s11953_s1 + $0x608] ss:$16 sps:$4 sm:$0xff]  }
  0xa3   : > { %1914 = vmatpush1.bf16.msra.mxu0 %v8452_v43  ;;  %1987 = vmatpush1.bf16.msra.mxu1 %v8455_v5  ;;  %v8532_v43 = vld [vmem:[%s11953_s1 + $0x624] ss:$16 sps:$4 sm:$0xff]   ;;  %v8535_v5 = vld [vmem:[%s11953_s1 + $0x62c] ss:$16 sps:$4 sm:$0xff]  }
  0xa4   : > { %1915 = vmatprep.subr.bf16.mxu0 %v8460_v44  ;;  %1988 = vmatprep.subr.bf16.mxu1 %v8463_v32  ;;  %v8530_v44 = vld [vmem:[%s11953_s1 + $0x620] ss:$16 sps:$4 sm:$0xff]   ;;  %v8533_v32 = vld [vmem:[%s11953_s1 + $0x628] ss:$16 sps:$4 sm:$0xff]  }
  0xa6   : > { %1360 = vmatmul.mubr.bf16.gmra.mrb[12].mxu0 %v9562_v63  ;;  %1433 = vmatmul.mubr.bf16.gmra.mrb[12].mxu1 %v9562_v63  ;;  %v8473_v63 = vld [vmem:[%s11953_s1 + $0x508] ss:$16 sps:$4 sm:$0xff]  }
  0xa7   : > { %1916 = vmatpush1.bf16.msra.mxu0 %v8458_v45  ;;  %1989 = vmatpush1.bf16.msra.mxu1 %v8461_v47  ;;  %v8538_v45 = vld [vmem:[%s11953_s1 + $0x644] ss:$16 sps:$4 sm:$0xff]   ;;  %v8536_v47 = vld [vmem:[%s11953_s1 + $0x640] ss:$16 sps:$4 sm:$0xff]  }
  0xa8   : > { %1917 = vmatprep.subr.bf16.mxu0 %v8466_v50  ;;  %1990 = vmatprep.subr.bf16.mxu1 %v8469_v53  ;;  %v8539_v50 = vld [vmem:[%s11953_s1 + $0x648] ss:$16 sps:$4 sm:$0xff]   ;;  %v8544_v53 = vld [vmem:[%s11953_s1 + $0x664] ss:$16 sps:$4 sm:$0xff]  }
  0xa9   : > { %1935 = vmatprep.mubr.bf16.mxu0 %v6982_v49  ;;  %2008 = vmatprep.mubr.bf16.mxu1 %v6982_v49  ;;  %v8514_v49 = vld [vmem:[%s11953_s1 + $0x5c8] ss:$16 sps:$4 sm:$0xff]  }
  0xab   : > { %1918 = vmatpush1.bf16.msra.mxu0 %v8464_v8  ;;  %1991 = vmatpush1.bf16.msra.mxu1 %v8467_v55  ;;  %v8547_v8 = vld [vmem:[%s11953_s1 + $0x66c] ss:$16 sps:$4 sm:$0xff]   ;;  %v8542_v55 = vld [vmem:[%s11953_s1 + $0x660] ss:$16 sps:$4 sm:$0xff]  }
  0xac   : > { %1919 = vmatprep.subr.bf16.mxu0 %v8472_v56  ;;  %1992 = vmatprep.subr.bf16.mxu1 %v8475_v57  ;;  %v8545_v56 = vld [vmem:[%s11953_s1 + $0x668] ss:$16 sps:$4 sm:$0xff]   ;;  %v8550_v57 = vld [vmem:[%s11953_s1 + $0x684] ss:$16 sps:$4 sm:$0xff]  }
  0xaf   : > { %1920 = vmatpush1.bf16.msra.mxu0 %v8470_v59  ;;  %1993 = vmatpush1.bf16.msra.mxu1 %v8473_v63  ;;  %v8553_v59 = vld [vmem:[%s11953_s1 + $0x68c] ss:$16 sps:$4 sm:$0xff]   ;;  %v8548_v63 = vld [vmem:[%s11953_s1 + $0x680] ss:$16 sps:$4 sm:$0xff]  }
  0xb0   : > { %1921 = vmatprep.subr.bf16.mxu0 %v8478_v61  ;;  %1994 = vmatprep.subr.bf16.mxu1 %v8481_v62  ;;  %v8551_v61 = vld [vmem:[%s11953_s1 + $0x688] ss:$16 sps:$4 sm:$0xff]   ;;  %v8556_v62 = vld [vmem:[%s11953_s1 + $0x6a4] ss:$16 sps:$4 sm:$0xff]  }
  0xb3   : > { %1922 = vmatpush1.bf16.msra.mxu0 %v8476_v1  ;;  %1995 = vmatpush1.bf16.msra.mxu1 %v8479_v37  ;;  %v8554_v1 = vld [vmem:[%s11953_s1 + $0x6a0] ss:$16 sps:$4 sm:$0xff]   ;;  %v8562_v37 = vld [vmem:[%s11953_s1 + $0x6c4] ss:$16 sps:$4 sm:$0xff]  }
  0xb4   : > { %1923 = vmatprep.subr.bf16.mxu0 %v8485_v6  ;;  %1996 = vmatprep.subr.bf16.mxu1 %v8488_v9  ;;  %v8565_v6 = vld [vmem:[%s11953_s1 + $0x6cc] ss:$16 sps:$4 sm:$0xff]   ;;  %v8560_v9 = vld [vmem:[%s11953_s1 + $0x6c0] ss:$16 sps:$4 sm:$0xff]  }
  0xb7   : > { %1924 = vmatpush1.bf16.msra.mxu0 %v8483_v13  ;;  %1997 = vmatpush1.bf16.msra.mxu1 %v8486_v14  ;;  %v8568_v13 = vld [vmem:[%s11953_s1 + $0x6e4] ss:$16 sps:$4 sm:$0xff]   ;;  %v8571_v14 = vld [vmem:[%s11953_s1 + $0x6ec] ss:$16 sps:$4 sm:$0xff]  }
  0xb8   : > { %1925 = vmatprep.subr.bf16.mxu0 %v8492_v24  ;;  %1998 = vmatprep.subr.bf16.mxu1 %v8495_v33  ;;  %v8566_v24 = vld [vmem:[%s11953_s1 + $0x6e0] ss:$16 sps:$4 sm:$0xff]   ;;  %v8569_v33 = vld [vmem:[%s11953_s1 + $0x6e8] ss:$16 sps:$4 sm:$0xff]  }
  0xbb   : > { %1926 = vmatpush1.bf16.msra.mxu0 %v8490_v17  ;;  %1999 = vmatpush1.bf16.msra.mxu1 %v8493_v18  ;;  %v8572_v17 = vld [vmem:[%s11953_s1 + $0x700] ss:$16 sps:$4 sm:$0xff]   ;;  %v8575_v18 = vld [vmem:[%s11953_s1 + $0x708] ss:$16 sps:$4 sm:$0xff]  }
  0xbc   : > { %1927 = vmatprep.subr.bf16.mxu0 %v8499_v7  ;;  %2000 = vmatprep.subr.bf16.mxu1 %v8502_v42  ;;  %v8578_v7 = vld [vmem:[%s11953_s1 + $0x720] ss:$16 sps:$4 sm:$0xff]   ;;  %v8581_v42 = vld [vmem:[%s11953_s1 + $0x728] ss:$16 sps:$4 sm:$0xff]  }
  0xbf   : > { %1928 = vmatpush1.bf16.msra.mxu0 %v8497_v20  ;;  %2001 = vmatpush1.bf16.msra.mxu1 %v8500_v54  ;;  %v8589_v20 = vld [vmem:[%s11953_s1 + $0x74c] ss:$16 sps:$4 sm:$0xff]   ;;  %v8587_v54 = vld [vmem:[%s11953_s1 + $0x748] ss:$16 sps:$4 sm:$0xff]  }
  0xc0   : > { %1929 = vmatprep.subr.bf16.mxu0 %v8506_v22  ;;  %2002 = vmatprep.subr.bf16.mxu1 %v8509_v23  ;;  %v8592_v22 = vld [vmem:[%s11953_s1 + $0x764] ss:$16 sps:$4 sm:$0xff]   ;;  %v8595_v23 = vld [vmem:[%s11953_s1 + $0x76c] ss:$16 sps:$4 sm:$0xff]  }
  0xc3   : > { %1930 = vmatpush1.bf16.msra.mxu0 %v8504_v28  ;;  %2003 = vmatpush1.bf16.msra.mxu1 %v8507_v30  ;;  %v8601_v28 = vld [vmem:[%s11953_s1 + $0x78c] ss:$16 sps:$4 sm:$0xff]   ;;  %v8596_v30 = vld [vmem:[%s11953_s1 + $0x780] ss:$16 sps:$4 sm:$0xff]  }
  0xc4   : > { %1931 = vmatprep.subr.bf16.mxu0 %v8513_v36  ;;  %2004 = vmatprep.subr.bf16.mxu1 %v8516_v58  ;;  %v8599_v36 = vld [vmem:[%s11953_s1 + $0x788] ss:$16 sps:$4 sm:$0xff]   ;;  %v8604_v58 = vld [vmem:[%s11953_s1 + $0x7a4] ss:$16 sps:$4 sm:$0xff]  }
  0xc7   : > { %1932 = vmatpush1.bf16.msra.mxu0 %v8511_v4  ;;  %2005 = vmatpush1.bf16.msra.mxu1 %v8514_v49  ;;  %v8607_v4 = vld [vmem:[%s11953_s1 + $0x7ac] ss:$16 sps:$4 sm:$0xff]   ;;  %v8602_v49 = vld [vmem:[%s11953_s1 + $0x7a0] ss:$16 sps:$4 sm:$0xff]  }
  0xc8   : > { %1933 = vmatprep.subr.bf16.mxu0 %v8520_v29  ;;  %2006 = vmatprep.subr.bf16.mxu1 %v8523_v48  ;;  %v8605_v29 = vld [vmem:[%s11953_s1 + $0x7a8] ss:$16 sps:$4 sm:$0xff]   ;;  %v8610_v48 = vld [vmem:[%s11953_s1 + $0x7c4] ss:$16 sps:$4 sm:$0xff]  }
  0xcb   : > { %1934 = vmatpush1.bf16.msra.mxu0 %v8518_v51  ;;  %2007 = vmatpush1.bf16.msra.mxu1 %v8521_v52  ;;  %v8613_v51 = vld [vmem:[%s11953_s1 + $0x7cc] ss:$16 sps:$4 sm:$0xff]   ;;  %v8608_v52 = vld [vmem:[%s11953_s1 + $0x7c0] ss:$16 sps:$4 sm:$0xff]  }
  0xcc   : > { %2515 = vmatprep.subr.bf16.mxu0 %v8526_v41  ;;  %2588 = vmatprep.subr.bf16.mxu1 %v8529_v34  ;;  %v8611_v41 = vld [vmem:[%s11953_s1 + $0x7c8] ss:$16 sps:$4 sm:$0xff]   ;;  %v8616_v34 = vld [vmem:[%s11953_s1 + $0x7e4] ss:$16 sps:$4 sm:$0xff]  }
  0xce   : > { %1936 = vmatmul.mubr.bf16.vlgmr.msra.gmra.mrb[0].mxu0 %v9758_v31  ;;  %2009 = vmatmul.mubr.bf16.vlgmr.msra.gmra.mrb[0].mxu1 %v9758_v31  ;;  %v8541_v31 = vld [vmem:[%s11953_s1 + $0x64c] ss:$16 sps:$4 sm:$0xff]  }
  0xcf   : > { %2516 = vmatpush1.bf16.msra.mxu0 %v8524_v35  ;;  %2589 = vmatpush1.bf16.msra.mxu1 %v8527_v38  ;;  %v8619_v35 = vld [vmem:[%s11953_s1 + $0x7ec] ss:$16 sps:$4 sm:$0xff]   ;;  %v8614_v38 = vld [vmem:[%s11953_s1 + $0x7e0] ss:$16 sps:$4 sm:$0xff]  }
  0xd0   : > { %2517 = vmatprep.subr.bf16.mxu0 %v8532_v43  ;;  %2590 = vmatprep.subr.bf16.mxu1 %v8535_v5  ;;  %v8617_v43 = vld [vmem:[%s11953_s1 + $0x7e8] ss:$16 sps:$4 sm:$0xff]   ;;  %v8624_v5 = vld [vmem:[%s11953_s1 + $0x804] ss:$16 sps:$4 sm:$0xff]  }
  0xd1   : > { %1945 = vmatprep.mubr.bf16.mxu0 %v9851_v11  ;;  %2018 = vmatprep.mubr.bf16.mxu1 %v9851_v11  ;;  %v10041_v11 = vld [vmem:[%s9312_s10 + $0x20] sm:$0xff] }
  0xd2   : > { %v7126_v40 = vcombine.high %v10038_v10, %v10041_v11 }
  0xd3   : > { %2518 = vmatpush1.bf16.msra.mxu0 %v8530_v44  ;;  %2591 = vmatpush1.bf16.msra.mxu1 %v8533_v32  ;;  %v8627_v44 = vld [vmem:[%s11953_s1 + $0x80c] ss:$16 sps:$4 sm:$0xff]   ;;  %v8622_v32 = vld [vmem:[%s11953_s1 + $0x800] ss:$16 sps:$4 sm:$0xff]  }
  0xd4   : > { %2519 = vmatprep.subr.bf16.mxu0 %v8538_v45  ;;  %2592 = vmatprep.subr.bf16.mxu1 %v8541_v31  ;;  %v10168_v45 = vld [vmem:[%s9312_s10 + $0x30] sm:$0xff]  ;;  %v7125_v31 = vcombine.low %v10038_v10, %v10041_v11 }
  0xd6   : > { %1946 = vmatmul.mubr.bf16.gmra.mrb[4].mxu0 %v9854_v12  ;;  %2019 = vmatmul.mubr.bf16.gmra.mrb[4].mxu1 %v9854_v12  ;;  %v8563_v12 = vld [vmem:[%s11953_s1 + $0x6c8] ss:$16 sps:$4 sm:$0xff]  }
  0xd7   : > { %2520 = vmatpush1.bf16.msra.mxu0 %v8536_v47  ;;  %2593 = vmatpush1.bf16.msra.mxu1 %v8539_v50  ;;  %v10173_v47 = vld [vmem:[%s9312_s10 + $0x38] sm:$0xff] }
  0xd8   : > { %2521 = vmatprep.subr.bf16.mxu0 %v8544_v53  ;;  %2594 = vmatprep.subr.bf16.mxu1 %v8547_v8  ;;  %v8625_v50 = vld [vmem:[%s11953_s1 + $0x808] ss:$16 sps:$4 sm:$0xff]   ;;  %v8630_v53 = vld [vmem:[%s11953_s1 + $0x824] ss:$16 sps:$4 sm:$0xff]   ;;  %v8633_v8 = vld [vmem:[%s11953_s1 + $0x82c] ss:$16 sps:$4 sm:$0xff]  }
  0xd9   : > { %1955 = vmatprep.mubr.bf16.mxu0 %v9880_v19  ;;  %2028 = vmatprep.mubr.bf16.mxu1 %v9880_v19  ;;  %v8580_v19 = vld [vmem:[%s11953_s1 + $0x724] ss:$16 sps:$4 sm:$0xff]  }
  0xdb   : > { %2522 = vmatpush1.bf16.msra.mxu0 %v8542_v55  ;;  %2595 = vmatpush1.bf16.msra.mxu1 %v8545_v56  ;;  %v7128_v55 = vcombine.high %v10168_v45, %v10173_v47  ;;  %v8628_v56 = vld [vmem:[%s11953_s1 + $0x820] ss:$16 sps:$4 sm:$0xff]  }
  0xdc   : > { %2523 = vmatprep.subr.bf16.mxu0 %v8550_v57  ;;  %2596 = vmatprep.subr.bf16.mxu1 %v8553_v59  ;;  %v8631_v57 = vld [vmem:[%s11953_s1 + $0x828] ss:$16 sps:$4 sm:$0xff]   ;;  %v8636_v59 = vld [vmem:[%s11953_s1 + $0x844] ss:$16 sps:$4 sm:$0xff]  }
  0xde   : > { %1956 = vmatmul.mubr.bf16.gmra.mrb[8].mxu0 %v9883_v60  ;;  %2029 = vmatmul.mubr.bf16.gmra.mrb[8].mxu1 %v9883_v60  ;;  %v8583_v60 = vld [vmem:[%s11953_s1 + $0x72c] ss:$16 sps:$4 sm:$0xff]  }
  0xdf   : > { %2524 = vmatpush1.bf16.msra.mxu0 %v8548_v63  ;;  %2597 = vmatpush1.bf16.msra.mxu1 %v8551_v61  ;;  %v8639_v63 = vld [vmem:[%s11953_s1 + $0x84c] ss:$16 sps:$4 sm:$0xff]   ;;  %v2706_v61 = vshrl.u32 %v10038_v10, 16 }
  0xe0   : > { %2525 = vmatprep.subr.bf16.mxu0 %v8556_v62  ;;  %2598 = vmatprep.subr.bf16.mxu1 %v8559_v0  ;;  %v8634_v62 = vld [vmem:[%s11953_s1 + $0x840] ss:$16 sps:$4 sm:$0xff]   ;;  %v2709_v0 = vshll.u32 %v10038_v10, 16  ;;  %v8642_v10 = vld [vmem:[%s11953_s1 + $0x864] ss:$16 sps:$4 sm:$0xff]  }
  0xe1   : > { %1965 = vmatprep.mubr.bf16.mxu0 %v9909_v26  ;;  %2038 = vmatprep.mubr.bf16.mxu1 %v9909_v26  ;;  %v8593_v26 = vld [vmem:[%s11953_s1 + $0x768] ss:$16 sps:$4 sm:$0xff]  }
  0xe3   : > { %2526 = vmatpush1.bf16.msra.mxu0 %v8554_v1  ;;  %2599 = vmatpush1.bf16.msra.mxu1 %v8557_v3  ;;  %v2715_v1 = vshll.u32 %v10041_v11, 16  ;;  %v7127_v3 = vcombine.low %v10168_v45, %v10173_v47 }
  0xe4   : > { %2527 = vmatprep.subr.bf16.mxu0 %v8562_v37  ;;  %2600 = vmatprep.subr.bf16.mxu1 %v8565_v6  ;;  %v10207_v37 = vld [vmem:[%s9312_s10 + $0x48] sm:$0xff]  ;;  %v10210_v6 = vld [vmem:[%s9312_s10 + $0x50] sm:$0xff] }
  0xe6   : > { %1966 = vmatmul.mubr.bf16.gmra.mrb[12].mxu0 %v9912_v27  ;;  %2039 = vmatmul.mubr.bf16.gmra.mrb[12].mxu1 %v9912_v27  ;;  %v8598_v27 = vld [vmem:[%s11953_s1 + $0x784] ss:$16 sps:$4 sm:$0xff]  }
  0xe7   : > { %2528 = vmatpush1.bf16.msra.mxu0 %v8560_v9  ;;  %2601 = vmatpush1.bf16.msra.mxu1 %v8563_v12  ;;  %v2719_v9 = vshrl.u32 %v10041_v11, 16  ;;  %v8637_v12 = vld [vmem:[%s11953_s1 + $0x848] ss:$16 sps:$4 sm:$0xff]   ;;  %v7130_v11 = vcombine.high %v10207_v37, %v10210_v6 }
  0xe8   : > { %2529 = vmatprep.subr.bf16.mxu0 %v8568_v13  ;;  %2602 = vmatprep.subr.bf16.mxu1 %v8571_v14  ;;  %v8645_v13 = vld [vmem:[%s11953_s1 + $0x86c] ss:$16 sps:$4 sm:$0xff]   ;;  %v2708_v14 = vrot.slane %v2706_v61, 4  ;;  %v8686_v61 = vld [vmem:[%s11953_s1 + $0x948] ss:$16 sps:$4 sm:$0xff]  }
  0xe9   : > { %2547 = vmatprep.mubr.bf16.mxu0 %v7126_v40  ;;  %2620 = vmatprep.mubr.bf16.mxu1 %v7126_v40  ;;  %v2711_v40 = vrot.slane %v2709_v0, 5  ;;  %v8695_v0 = vld [vmem:[%s11953_s1 + $0x96c] ss:$16 sps:$4 sm:$0xff]  }
  0xeb   : > { %2530 = vmatpush1.bf16.msra.mxu0 %v8566_v24  ;;  %2603 = vmatpush1.bf16.msra.mxu1 %v8569_v33  ;;  %v2717_v24 = vrot.slane %v2715_v1, 5  ;;  %v8640_v33 = vld [vmem:[%s11953_s1 + $0x860] ss:$16 sps:$4 sm:$0xff]  }
  0xec   : > { %2531 = vmatprep.subr.bf16.mxu0 %v8574_v15  ;;  %2604 = vmatprep.subr.bf16.mxu1 %v8577_v16  ;;  %v8643_v15 = vld [vmem:[%s11953_s1 + $0x868] ss:$16 sps:$4 sm:$0xff]   ;;  %v2721_v16 = vrot.slane %v2719_v9, 4  ;;  %v8690_v1 = vld [vmem:[%s11953_s1 + $0x960] ss:$16 sps:$4 sm:$0xff]  }
  0xed   : > { %v8699_v9 = vld [vmem:[%s11953_s1 + $0x984] ss:$16 sps:$4 sm:$0xff]  }
  0xef   : > { %2532 = vmatpush1.bf16.msra.mxu0 %v8572_v17  ;;  %2605 = vmatpush1.bf16.msra.mxu1 %v8575_v18  ;;  %v8648_v17 = vld [vmem:[%s11953_s1 + $0x884] ss:$16 sps:$4 sm:$0xff]   ;;  %v10234_v18 = vld [vmem:[%s9312_s10 + $0x28] sm:$0x11] }
  0xf0   : > { %2533 = vmatprep.subr.bf16.mxu0 %v8580_v19  ;;  %2606 = vmatprep.subr.bf16.mxu1 %v8583_v60  ;;  %v8651_v19 = vld [vmem:[%s11953_s1 + $0x88c] ss:$16 sps:$4 sm:$0xff]   ;;  %v8646_v60 = vld [vmem:[%s11953_s1 + $0x880] ss:$16 sps:$4 sm:$0xff]  }
  0xf3   : > { %2534 = vmatpush1.bf16.msra.mxu0 %v8578_v7  ;;  %2607 = vmatpush1.bf16.msra.mxu1 %v8581_v42  ;;  %v8649_v7 = vld [vmem:[%s11953_s1 + $0x888] ss:$16 sps:$4 sm:$0xff]   ;;  %v7129_v42 = vcombine.low %v10207_v37, %v10210_v6 }
  0xf4   : > { %2535 = vmatprep.subr.bf16.mxu0 %v8586_v39  ;;  %2608 = vmatprep.subr.bf16.mxu1 %v8589_v20  ;;  %v10248_v39 = vld [vmem:[%s9312_s10 + $0x60] sm:$0xff]  ;;  %v10251_v20 = vld [vmem:[%s9312_s10 + $0x68] sm:$0xff] }
  0xf7   : > { %2536 = vmatpush1.bf16.msra.mxu0 %v8584_v21  ;;  %2609 = vmatpush1.bf16.msra.mxu1 %v8587_v54  ;;  %v2712_v21 = vor.u32 %v2711_v40, %v2708_v14  ;;  %v2722_v54 = vor.u32 %v2721_v16, %v2717_v24  ;;  %v2743_v14 = vshrl.u32 %v10173_v47, 16  ;;  %v8697_v40 = vld [vmem:[%s11953_s1 + $0x980] ss:$16 sps:$4 sm:$0xff]  }
  0xf8   : > { %2537 = vmatprep.subr.bf16.mxu0 %v8592_v22  ;;  %2610 = vmatprep.subr.bf16.mxu1 %v8595_v23  ;;  %v2725_v22 = vshll.u32 %v10234_v18, 16  ;;  %v8654_v23 = vld [vmem:[%s11953_s1 + $0x8a4] ss:$16 sps:$4 sm:$0xff]  }
  0xfb   : > { %2538 = vmatpush1.bf16.msra.mxu0 %v8590_v25  ;;  %2611 = vmatpush1.bf16.msra.mxu1 %v8593_v26  ;;  %v8657_v25 = vld [vmem:[%s11953_s1 + $0x8ac] ss:$16 sps:$4 sm:$0xff]   ;;  %v8652_v26 = vld [vmem:[%s11953_s1 + $0x8a0] ss:$16 sps:$4 sm:$0xff]  }
  0xfc   : > { %2539 = vmatprep.subr.bf16.mxu0 %v8598_v27  ;;  %2612 = vmatprep.subr.bf16.mxu1 %v8601_v28  ;;  %v7132_v27 = vcombine.high %v10248_v39, %v10251_v20  ;;  %v8655_v28 = vld [vmem:[%s11953_s1 + $0x8a8] ss:$16 sps:$4 sm:$0xff]  }
  0xff   : > { %2540 = vmatpush1.bf16.msra.mxu0 %v8596_v30  ;;  %2613 = vmatpush1.bf16.msra.mxu1 %v8599_v36  ;;  %v2713_v30 = vrot.slane %v2712_v21, 4  ;;  %v2723_v36 = vrot.slane %v2722_v54, 4  ;;  %v8716_v21 = vld [vmem:[%s11953_s1 + $0x9cc] ss:$16 sps:$4 sm:$0xff]   ;;  %v2754_v54 = vshrl.u32 %v10207_v37, 16 }
 0x100   : > { %2541 = vmatprep.subr.bf16.mxu0 %v8604_v58  ;;  %2614 = vmatprep.subr.bf16.mxu1 %v8607_v4  ;;  %v2727_v58 = vrot.slane %v2725_v22, 5  ;;  %v8660_v4 = vld [vmem:[%s11953_s1 + $0x8c4] ss:$16 sps:$4 sm:$0xff]   ;;  %v2757_v22 = vshll.u32 %v10207_v37, 16 }
 0x101   : > { %v8720_v37 = vld [vmem:[%s11953_s1 + $0x9e4] ss:$16 sps:$4 sm:$0xff]  }
 0x103   : > { %2542 = vmatpush1.bf16.msra.mxu0 %v8602_v49  ;;  %2615 = vmatpush1.bf16.msra.mxu1 %v8605_v29  ;;  %v8663_v49 = vld [vmem:[%s11953_s1 + $0x8cc] ss:$16 sps:$4 sm:$0xff]   ;;  %v8658_v29 = vld [vmem:[%s11953_s1 + $0x8c0] ss:$16 sps:$4 sm:$0xff]  }
 0x104   : > { %2543 = vmatprep.subr.bf16.mxu0 %v8610_v48  ;;  %2616 = vmatprep.subr.bf16.mxu1 %v8613_v51  ;;  %v8661_v48 = vld [vmem:[%s11953_s1 + $0x8c8] ss:$16 sps:$4 sm:$0xff]   ;;  %v7131_v51 = vcombine.low %v10248_v39, %v10251_v20 }
 0x107   : > { %2544 = vmatpush1.bf16.msra.mxu0 %v8608_v52  ;;  %2617 = vmatpush1.bf16.msra.mxu1 %v8611_v41  ;;  %v10284_v52 = vsel %vm9358_vm2, %v2713_v30, %v2717_v24  ;;  %v10288_v41 = vsel %vm9358_vm2, %v2723_v36, %v2727_v58  ;;  %v8700_v24 = vld [vmem:[%s11953_s1 + $0x988] ss:$16 sps:$4 sm:$0xff]   ;;  %v2756_v58 = vrot.slane %v2754_v54, 4 }
 0x108   : > { %2545 = vmatprep.subr.bf16.mxu0 %v8616_v34  ;;  %2618 = vmatprep.subr.bf16.mxu1 %v8619_v35  ;;  %v8666_v34 = vld [vmem:[%s11953_s1 + $0x8e4] ss:$16 sps:$4 sm:$0xff]   ;;  %v8669_v35 = vld [vmem:[%s11953_s1 + $0x8ec] ss:$16 sps:$4 sm:$0xff]   ;;  %v8714_v36 = vld [vmem:[%s11953_s1 + $0x9c8] ss:$16 sps:$4 sm:$0xff]  }
 0x10b   : > { %2546 = vmatpush1.bf16.msra.mxu0 %v8614_v38  ;;  %2619 = vmatpush1.bf16.msra.mxu1 %v8617_v43  ;;  %v7274_v38 = vcombine.high %v10284_v52, %v10288_v41  ;;  %v8664_v43 = vld [vmem:[%s11953_s1 + $0x8e0] ss:$16 sps:$4 sm:$0xff]  }
 0x10c   : > { %3218 = vmatprep.subr.bf16.mxu0 %v8624_v5  ;;  %3291 = vmatprep.subr.bf16.mxu1 %v8627_v44  ;;  %v8667_v5 = vld [vmem:[%s11953_s1 + $0x8e8] ss:$16 sps:$4 sm:$0xff]   ;;  %v8672_v44 = vld [vmem:[%s11953_s1 + $0x904] ss:$16 sps:$4 sm:$0xff]  }
 0x10e   : > { %2548 = vmatmul.mubr.bf16.vlgmr.msra.gmra.mrb[0].mxu0 %v7125_v31  ;;  %2621 = vmatmul.mubr.bf16.vlgmr.msra.gmra.mrb[0].mxu1 %v7125_v31  ;;  %v8670_v31 = vld [vmem:[%s11953_s1 + $0x900] ss:$16 sps:$4 sm:$0xff]  }
 0x10f   : > { %3219 = vmatpush1.bf16.msra.mxu0 %v8622_v32  ;;  %3292 = vmatpush1.bf16.msra.mxu1 %v8625_v50  ;;  %v8675_v32 = vld [vmem:[%s11953_s1 + $0x90c] ss:$16 sps:$4 sm:$0xff]   ;;  %v8673_v50 = vld [vmem:[%s11953_s1 + $0x908] ss:$16 sps:$4 sm:$0xff]  }
 0x110   : > { %3220 = vmatprep.subr.bf16.mxu0 %v8630_v53  ;;  %3293 = vmatprep.subr.bf16.mxu1 %v8633_v8  ;;  %v8678_v53 = vld [vmem:[%s11953_s1 + $0x924] ss:$16 sps:$4 sm:$0xff]   ;;  %v8681_v8 = vld [vmem:[%s11953_s1 + $0x92c] ss:$16 sps:$4 sm:$0xff]  }
 0x111   : > { %2557 = vmatprep.mubr.bf16.mxu0 %v7128_v55  ;;  %2630 = vmatprep.mubr.bf16.mxu1 %v7128_v55  ;;  %v8676_v55 = vld [vmem:[%s11953_s1 + $0x920] ss:$16 sps:$4 sm:$0xff]  }
 0x113   : > { %3221 = vmatpush1.bf16.msra.mxu0 %v8628_v56  ;;  %3294 = vmatpush1.bf16.msra.mxu1 %v8631_v57  ;;  %v8679_v56 = vld [vmem:[%s11953_s1 + $0x928] ss:$16 sps:$4 sm:$0xff]   ;;  %v8685_v57 = vld [vmem:[%s11953_s1 + $0x944] ss:$16 sps:$4 sm:$0xff]  }
 0x114   : > { %3222 = vmatprep.subr.bf16.mxu0 %v8636_v59  ;;  %3295 = vmatprep.subr.bf16.mxu1 %v8639_v63  ;;  %v8688_v59 = vld [vmem:[%s11953_s1 + $0x94c] ss:$16 sps:$4 sm:$0xff]   ;;  %v8683_v63 = vld [vmem:[%s11953_s1 + $0x940] ss:$16 sps:$4 sm:$0xff]  }
 0x116   : > { %2558 = vmatmul.mubr.bf16.gmra.mrb[4].mxu0 %v7127_v3  ;;  %2631 = vmatmul.mubr.bf16.gmra.mrb[4].mxu1 %v7127_v3  ;;  %v8693_v3 = vld [vmem:[%s11953_s1 + $0x968] ss:$16 sps:$4 sm:$0xff]  }
 0x117   : > { %3223 = vmatpush1.bf16.msra.mxu0 %v8634_v62  ;;  %3296 = vmatpush1.bf16.msra.mxu1 %v8637_v12  ;;  %v8692_v62 = vld [vmem:[%s11953_s1 + $0x964] ss:$16 sps:$4 sm:$0xff]   ;;  %v8702_v12 = vld [vmem:[%s11953_s1 + $0x98c] ss:$16 sps:$4 sm:$0xff]  }
 0x118   : > { %3224 = vmatprep.subr.bf16.mxu0 %v8642_v10  ;;  %3297 = vmatprep.subr.bf16.mxu1 %v8645_v13  ;;  %v2730_v10 = vshrl.u32 %v10168_v45, 16  ;;  %v2733_v13 = vshll.u32 %v10168_v45, 16  ;;  %v8706_v45 = vld [vmem:[%s11953_s1 + $0x9a4] ss:$16 sps:$4 sm:$0xff]  }
 0x119   : > { %2567 = vmatprep.mubr.bf16.mxu0 %v7130_v11  ;;  %2640 = vmatprep.mubr.bf16.mxu1 %v7130_v11  ;;  %v2739_v11 = vshll.u32 %v10173_v47, 16  ;;  %v8709_v47 = vld [vmem:[%s11953_s1 + $0x9ac] ss:$16 sps:$4 sm:$0xff]  }
 0x11a   : > { %v2735_v16 = vrot.slane %v2733_v13, 5 }
 0x11b   : > { %3225 = vmatpush1.bf16.msra.mxu0 %v8640_v33  ;;  %3298 = vmatpush1.bf16.msra.mxu1 %v8643_v15  ;;  %v8704_v33 = vld [vmem:[%s11953_s1 + $0x9a0] ss:$16 sps:$4 sm:$0xff]   ;;  %v2732_v15 = vrot.slane %v2730_v10, 4 }
 0x11c   : > { %3226 = vmatprep.subr.bf16.mxu0 %v8648_v17  ;;  %3299 = vmatprep.subr.bf16.mxu1 %v8651_v19  ;;  %v2741_v17 = vrot.slane %v2739_v11, 5  ;;  %v2745_v19 = vrot.slane %v2743_v14, 4  ;;  %v8733_v11 = vld [vmem:[%s11953_s1 + $0xa28] ss:$16 sps:$4 sm:$0xff]   ;;  %v10451_v14 = vld [vmem:[%s9312_s10 + $0x70] sm:$0x11] }
 0x11e   : > { %2568 = vmatmul.mubr.bf16.gmra.mrb[8].mxu0 %v7129_v42  ;;  %2641 = vmatmul.mubr.bf16.gmra.mrb[8].mxu1 %v7129_v42  ;;  %v8713_v42 = vld [vmem:[%s11953_s1 + $0x9c4] ss:$16 sps:$4 sm:$0xff]  }
 0x11f   : > { %3227 = vmatpush1.bf16.msra.mxu0 %v8646_v60  ;;  %3300 = vmatpush1.bf16.msra.mxu1 %v8649_v7  ;;  %v8707_v60 = vld [vmem:[%s11953_s1 + $0x9a8] ss:$16 sps:$4 sm:$0xff]   ;;  %v10381_v7 = vld [vmem:[%s9312_s10 + $0x40] sm:$0x11] }
 0x120   : > { %3228 = vmatprep.subr.bf16.mxu0 %v8654_v23  ;;  %3301 = vmatprep.subr.bf16.mxu1 %v8657_v25  ;;  %v8711_v23 = vld [vmem:[%s11953_s1 + $0x9c0] ss:$16 sps:$4 sm:$0xff]   ;;  %v2736_v25 = vor.u32 %v2735_v16, %v2732_v15  ;;  %v2749_v30 = vshll.u32 %v10381_v7, 16 }
 0x121   : > { %2577 = vmatprep.mubr.bf16.mxu0 %v7132_v27  ;;  %2650 = vmatprep.mubr.bf16.mxu1 %v7132_v27  ;;  %v2767_v27 = vshrl.u32 %v10210_v6, 16 }
 0x123   : > { %3229 = vmatpush1.bf16.msra.mxu0 %v8652_v26  ;;  %3302 = vmatpush1.bf16.msra.mxu1 %v8655_v28  ;;  %v2763_v26 = vshll.u32 %v10210_v6, 16  ;;  %v2746_v28 = vor.u32 %v2745_v19, %v2741_v17  ;;  %v8723_v6 = vld [vmem:[%s11953_s1 + $0x9ec] ss:$16 sps:$4 sm:$0xff]   ;;  %v8736_v19 = vld [vmem:[%s11953_s1 + $0xa40] ss:$16 sps:$4 sm:$0xff]  }
 0x124   : > { %3230 = vmatprep.subr.bf16.mxu0 %v8660_v4  ;;  %3303 = vmatprep.subr.bf16.mxu1 %v8663_v49  ;;  %v2759_v4 = vrot.slane %v2757_v22, 5  ;;  %v8718_v49 = vld [vmem:[%s11953_s1 + $0x9e0] ss:$16 sps:$4 sm:$0xff]  }
 0x126   : > { %2578 = vmatmul.mubr.bf16.gmra.mrb[12].mxu0 %v7131_v51  ;;  %2651 = vmatmul.mubr.bf16.gmra.mrb[12].mxu1 %v7131_v51  ;;  %v2769_v51 = vrot.slane %v2767_v27, 4  ;;  %v8745_v27 = vld [vmem:[%s11953_s1 + $0xa68] ss:$16 sps:$4 sm:$0xff]  }
 0x127   : > { %3231 = vmatpush1.bf16.msra.mxu0 %v8658_v29  ;;  %3304 = vmatpush1.bf16.msra.mxu1 %v8661_v48  ;;  %v2737_v29 = vrot.slane %v2736_v25, 4  ;;  %v2765_v48 = vrot.slane %v2763_v26, 5  ;;  %v8742_v26 = vld [vmem:[%s11953_s1 + $0xa60] ss:$16 sps:$4 sm:$0xff]  }
 0x128   : > { %3232 = vmatprep.subr.bf16.mxu0 %v8666_v34  ;;  %3305 = vmatprep.subr.bf16.mxu1 %v8669_v35  ;;  %v2747_v34 = vrot.slane %v2746_v28, 4  ;;  %v2751_v35 = vrot.slane %v2749_v30, 5  ;;  %v8750_v28 = vld [vmem:[%s11953_s1 + $0xa84] ss:$16 sps:$4 sm:$0xff]   ;;  %v8753_v30 = vld [vmem:[%s11953_s1 + $0xa8c] ss:$16 sps:$4 sm:$0xff]  }
 0x129   : > { %3250 = vmatprep.mubr.bf16.mxu0 %v7274_v38  ;;  %3323 = vmatprep.mubr.bf16.mxu1 %v7274_v38  ;;  %v8721_v38 = vld [vmem:[%s11953_s1 + $0x9e8] ss:$16 sps:$4 sm:$0xff]  }
 0x12b   : > { %3233 = vmatpush1.bf16.msra.mxu0 %v8664_v43  ;;  %3306 = vmatpush1.bf16.msra.mxu1 %v8667_v5  ;;  %v10413_v43 = vld [vmem:[%s9312_s10 + $0x58] sm:$0x11]  ;;  %v7273_v5 = vcombine.low %v10284_v52, %v10288_v41  ;;  %v2752_v52 = vsel %vm9358_vm2, %v2747_v34, %v2751_v35 }
 0x12c   : > { %3234 = vmatprep.subr.bf16.mxu0 %v8672_v44  ;;  %3307 = vmatprep.subr.bf16.mxu1 %v8675_v32  ;;  %v8726_v44 = vld [vmem:[%s11953_s1 + $0xa04] ss:$16 sps:$4 sm:$0xff]   ;;  %v8729_v32 = vld [vmem:[%s11953_s1 + $0xa0c] ss:$16 sps:$4 sm:$0xff]   ;;  %v2773_v41 = vshll.u32 %v10413_v43, 16 }
 0x12d   : > { %v8759_v34 = vld [vmem:[%s11953_s1 + $0xaac] ss:$16 sps:$4 sm:$0xff]  }
 0x12f   : > { %3235 = vmatpush1.bf16.msra.mxu0 %v8670_v31  ;;  %3308 = vmatpush1.bf16.msra.mxu1 %v8673_v50  ;;  %v2760_v31 = vor.u32 %v2759_v4, %v2756_v58  ;;  %v2742_v50 = vsel %vm9358_vm2, %v2737_v29, %v2741_v17  ;;  %v2797_v17 = vshll.u32 %v10451_v14, 16  ;;  %v9124_v4 = vld [vmem:[%s9312_s10 + $0x20] sm:$0xff]  ;;  %v8751_v29 = vld [vmem:[%s11953_s1 + $0xa88] ss:$16 sps:$4 sm:$0xff]  }
 0x130   : > { %3236 = vmatprep.subr.bf16.mxu0 %v8678_v53  ;;  %3309 = vmatprep.subr.bf16.mxu1 %v8681_v8  ;;  %v2770_v53 = vor.u32 %v2769_v51, %v2765_v48  ;;  %v2778_v8 = vshrl.u32 %v10248_v39, 16  ;;  %v8756_v51 = vld [vmem:[%s11953_s1 + $0xaa4] ss:$16 sps:$4 sm:$0xff]  }
 0x131   : > { %v2799_v25 = vrot.slane %v2797_v17, 5  ;;  %v8796_v17 = vld [vmem:[%s11953_s1 + $0xb80] ss:$16 sps:$4 sm:$0xff]  }
 0x133   : > { %3237 = vmatpush1.bf16.msra.mxu0 %v8676_v55  ;;  %3310 = vmatpush1.bf16.msra.mxu1 %v8679_v56  ;;  %v2781_v55 = vshll.u32 %v10248_v39, 16  ;;  %v2787_v56 = vshll.u32 %v10251_v20, 16  ;;  %v8732_v39 = vld [vmem:[%s11953_s1 + $0xa24] ss:$16 sps:$4 sm:$0xff]  }
 0x134   : > { %3238 = vmatprep.subr.bf16.mxu0 %v8685_v57  ;;  %3311 = vmatprep.subr.bf16.mxu1 %v8688_v59  ;;  %v2791_v57 = vshrl.u32 %v10251_v20, 16  ;;  %v8724_v59 = vld [vmem:[%s11953_s1 + $0xa00] ss:$16 sps:$4 sm:$0xff]   ;;  %v8735_v20 = vld [vmem:[%s11953_s1 + $0xa2c] ss:$16 sps:$4 sm:$0xff]  }
 0x135   : > { %v2789_v10 = vrot.slane %v2787_v56, 5  ;;  %v8768_v56 = vld [vmem:[%s11953_s1 + $0xae4] ss:$16 sps:$4 sm:$0xff]  }
 0x136   : > { %v2793_v13 = vrot.slane %v2791_v57, 4  ;;  %v8771_v57 = vld [vmem:[%s11953_s1 + $0xaec] ss:$16 sps:$4 sm:$0xff]  }
 0x137   : > { %3239 = vmatpush1.bf16.msra.mxu0 %v8683_v63  ;;  %3312 = vmatpush1.bf16.msra.mxu1 %v8686_v61  ;;  %v8727_v63 = vld [vmem:[%s11953_s1 + $0xa08] ss:$16 sps:$4 sm:$0xff]   ;;  %v2761_v61 = vrot.slane %v2760_v31, 4 }
 0x138   : > { %3240 = vmatprep.subr.bf16.mxu0 %v8692_v62  ;;  %3313 = vmatprep.subr.bf16.mxu1 %v8695_v0  ;;  %v8730_v62 = vld [vmem:[%s11953_s1 + $0xa20] ss:$16 sps:$4 sm:$0xff]   ;;  %v7276_v0 = vcombine.high %v2742_v50, %v2752_v52  ;;  %v2794_v16 = vor.u32 %v2793_v13, %v2789_v10  ;;  %v8757_v31 = vld [vmem:[%s11953_s1 + $0xaa8] ss:$16 sps:$4 sm:$0xff]   ;;  %v8789_v13 = vld [vmem:[%s11953_s1 + $0xb4c] ss:$16 sps:$4 sm:$0xff]  }
 0x13b   : > { %3241 = vmatpush1.bf16.msra.mxu0 %v8690_v1  ;;  %3314 = vmatpush1.bf16.msra.mxu1 %v8693_v3  ;;  %v2771_v1 = vrot.slane %v2770_v53, 4  ;;  %v2780_v3 = vrot.slane %v2778_v8, 4 }
 0x13c   : > { %3242 = vmatprep.subr.bf16.mxu0 %v8699_v9  ;;  %3315 = vmatprep.subr.bf16.mxu1 %v8702_v12  ;;  %v2783_v9 = vrot.slane %v2781_v55, 5  ;;  %v2775_v12 = vrot.slane %v2773_v41, 5  ;;  %v8763_v41 = vld [vmem:[%s11953_s1 + $0xac8] ss:$16 sps:$4 sm:$0xff]  }
 0x13e   : > { %v2776_v15 = vsel %vm9358_vm2, %v2771_v1, %v2775_v12  ;;  %v8780_v1 = vld [vmem:[%s11953_s1 + $0xb24] ss:$16 sps:$4 sm:$0xff]   ;;  %v8781_v12 = vld [vmem:[%s11953_s1 + $0xb28] ss:$16 sps:$4 sm:$0xff]  }
 0x13f   : > { %3243 = vmatpush1.bf16.msra.mxu0 %v8697_v40  ;;  %3316 = vmatpush1.bf16.msra.mxu1 %v8700_v24  ;;  %v8738_v40 = vld [vmem:[%s11953_s1 + $0xa44] ss:$16 sps:$4 sm:$0xff]   ;;  %v8741_v24 = vld [vmem:[%s11953_s1 + $0xa4c] ss:$16 sps:$4 sm:$0xff]  }
 0x140   : > { %3244 = vmatprep.subr.bf16.mxu0 %v8706_v45  ;;  %3317 = vmatprep.subr.bf16.mxu1 %v8709_v47  ;;  %v2766_v45 = vsel %vm9358_vm2, %v2761_v61, %v2765_v48  ;;  %v2784_v47 = vor.u32 %v2783_v9, %v2780_v3  ;;  %v7345_v48 = vld [vmem:[%s9312_s10 + $0x18] sm:$0xee]  ;;  %v8778_v9 = vld [vmem:[%s11953_s1 + $0xb20] ss:$16 sps:$4 sm:$0xff]  }
 0x141   : > { %v7278_v54 = vcombine.high %v2766_v45, %v2776_v15  ;;  %v8777_v61 = vld [vmem:[%s11953_s1 + $0xb0c] ss:$16 sps:$4 sm:$0xff]  }
 0x142   : > { %v2785_v22 = vrot.slane %v2784_v47, 4  ;;  %v8783_v3 = vld [vmem:[%s11953_s1 + $0xb2c] ss:$16 sps:$4 sm:$0xff]   ;;  %v8790_v47 = vld [vmem:[%s11953_s1 + $0xb60] ss:$16 sps:$4 sm:$0xff]  }
 0x143   : > { %3245 = vmatpush1.bf16.msra.mxu0 %v8704_v33  ;;  %3318 = vmatpush1.bf16.msra.mxu1 %v8707_v60  ;;  %v7275_v33 = vcombine.low %v2742_v50, %v2752_v52  ;;  %v8739_v60 = vld [vmem:[%s11953_s1 + $0xa48] ss:$16 sps:$4 sm:$0xff]   ;;  %v8762_v50 = vld [vmem:[%s11953_s1 + $0xac4] ss:$16 sps:$4 sm:$0xff]   ;;  %v8760_v52 = vld [vmem:[%s11953_s1 + $0xac0] ss:$16 sps:$4 sm:$0xff]  }
 0x144   : > { %3246 = vmatprep.subr.bf16.mxu0 %v8713_v42  ;;  %3319 = vmatprep.subr.bf16.mxu1 %v8716_v21  ;;  %v8744_v42 = vld [vmem:[%s11953_s1 + $0xa64] ss:$16 sps:$4 sm:$0xff]   ;;  %v8747_v21 = vld [vmem:[%s11953_s1 + $0xa6c] ss:$16 sps:$4 sm:$0xff]  }
 0x147   : > { %3247 = vmatpush1.bf16.msra.mxu0 %v8711_v23  ;;  %3320 = vmatpush1.bf16.msra.mxu1 %v8714_v36  ;;  %v2795_v23 = vrot.slane %v2794_v16, 4  ;;  %v8748_v36 = vld [vmem:[%s11953_s1 + $0xa80] ss:$16 sps:$4 sm:$0xff]   ;;  %v8801_v16 = vld [vmem:[%s11953_s1 + $0xb8c] ss:$16 sps:$4 sm:$0xff]  }
 0x148   : > { %3248 = vmatprep.subr.bf16.mxu0 %v8720_v37  ;;  %3321 = vmatprep.subr.bf16.mxu1 %v8723_v6  ;;  %v7277_v37 = vcombine.low %v2766_v45, %v2776_v15  ;;  %v2790_v6 = vsel %vm9358_vm2, %v2785_v22, %v2789_v10  ;;  %v8786_v10 = vld [vmem:[%s11953_s1 + $0xb44] ss:$16 sps:$4 sm:$0xff]   ;;  %v8795_v45 = vld [vmem:[%s11953_s1 + $0xb6c] ss:$16 sps:$4 sm:$0xff]  }
 0x149   : > { %v2800_v58 = vsel %vm9358_vm2, %v2795_v23, %v2799_v25  ;;  %v8798_v15 = vld [vmem:[%s11953_s1 + $0xb84] ss:$16 sps:$4 sm:$0xff]   ;;  %v8813_v23 = vld [vmem:[%s11953_s1 + $0xbcc] ss:$16 sps:$4 sm:$0xff]  }
 0x14a   : > { %v7280_v35 = vcombine.high %v2790_v6, %v2800_v58  ;;  %v7279_v53 = vcombine.low %v2790_v6, %v2800_v58  ;;  %v8810_v22 = vld [vmem:[%s11953_s1 + $0xbc4] ss:$16 sps:$4 sm:$0xff]   ;;  %v9125_v25 = vld [vmem:[%s9312_s10 + $0x38] sm:$0xff] }
 0x14b   : > { %3249 = vmatpush1.bf16.msra.mxu0 %v8718_v49  ;;  %3322 = vmatpush1.bf16.msra.mxu1 %v8721_v38  ;;  %v3414_v49 = vrot.slane %v9124_v4, 5  ;;  %v7349_v38 = vrot.slane %v7345_v48, 9  ;;  %v3424_v4 = vrot.slane %v10381_v7, 5  ;;  %v8822_v48 = vld [vmem:[%s11953_s1 + $0xc04] ss:$16 sps:$4 sm:$0xff]  }
 0x14c   : > { %3857 = vmatprep.subr.bf16.mxu0 %v8726_v44  ;;  %3930 = vmatprep.subr.bf16.mxu1 %v8729_v32  ;;  %v3417_v44 = vrot.slane %v10234_v18, 5  ;;  %v8754_v32 = vld [vmem:[%s11953_s1 + $0xaa0] ss:$16 sps:$4 sm:$0xff]   ;;  %v8765_v18 = vld [vmem:[%s11953_s1 + $0xacc] ss:$16 sps:$4 sm:$0xff]  }
 0x14d   : > { %v10521_v8 = vsel %vm9460_vm5, %v7349_v38, %v3414_v49  ;;  %v8825_v7 = vld [vmem:[%s11953_s1 + $0xc0c] ss:$16 sps:$4 sm:$0xff]   ;;  %v9126_v38 = vld [vmem:[%s9312_s10 + $0x50] sm:$0xff] }
 0x14e   : > { %3251 = vmatmul.mubr.bf16.vlgmr.msra.gmra.mrb[0].mxu0 %v7273_v5  ;;  %3324 = vmatmul.mubr.bf16.vlgmr.msra.gmra.mrb[0].mxu1 %v7273_v5  ;;  %v3416_v5 = vrot.slane %v3414_v49, 4  ;;  %v8814_v49 = vld [vmem:[%s11953_s1 + $0xbe0] ss:$16 sps:$4 sm:$0xff]  }
 0x14f   : > { %3858 = vmatpush1.bf16.msra.mxu0 %v8724_v59  ;;  %3931 = vmatpush1.bf16.msra.mxu1 %v8727_v63  ;;  %v8766_v63 = vld [vmem:[%s11953_s1 + $0xae0] ss:$16 sps:$4 sm:$0xff]  }
 0x150   : > { %3859 = vmatprep.subr.bf16.mxu0 %v8732_v39  ;;  %3932 = vmatprep.subr.bf16.mxu1 %v8735_v20  ;;  %v10525_v55 = vsel %vm9460_vm5, %v3416_v5, %v3417_v44  ;;  %v8769_v39 = vld [vmem:[%s11953_s1 + $0xae8] ss:$16 sps:$4 sm:$0xff]   ;;  %v8774_v20 = vld [vmem:[%s11953_s1 + $0xb04] ss:$16 sps:$4 sm:$0xff]   ;;  %v3428_v5 = vrot.slane %v9126_v38, 5 }
 0x151   : > { %3260 = vmatprep.mubr.bf16.mxu0 %v7276_v0  ;;  %3333 = vmatprep.mubr.bf16.mxu1 %v7276_v0  ;;  %v7418_v59 = vcombine.high %v10521_v8, %v10525_v55  ;;  %v8775_v0 = vld [vmem:[%s11953_s1 + $0xb08] ss:$16 sps:$4 sm:$0xff]   ;;  %v8820_v44 = vld [vmem:[%s11953_s1 + $0xc00] ss:$16 sps:$4 sm:$0xff]  }
 0x152   : > { %v8877_v38 = vld [vmem:[%s11953_s1 + $0xd28] ss:$16 sps:$4 sm:$0xff]  }
 0x153   : > { %3860 = vmatpush1.bf16.msra.mxu0 %v8730_v62  ;;  %3933 = vmatpush1.bf16.msra.mxu1 %v8733_v11  ;;  %v8772_v62 = vld [vmem:[%s11953_s1 + $0xb00] ss:$16 sps:$4 sm:$0xff]  }
 0x154   : > { %3861 = vmatprep.subr.bf16.mxu0 %v8738_v40  ;;  %3934 = vmatprep.subr.bf16.mxu1 %v8741_v24  ;;  %v8784_v11 = vld [vmem:[%s11953_s1 + $0xb40] ss:$16 sps:$4 sm:$0xff]   ;;  %v8787_v40 = vld [vmem:[%s11953_s1 + $0xb48] ss:$16 sps:$4 sm:$0xff]   ;;  %v8792_v24 = vld [vmem:[%s11953_s1 + $0xb64] ss:$16 sps:$4 sm:$0xff]  }
 0x156   : > { %3261 = vmatmul.mubr.bf16.gmra.mrb[4].mxu0 %v7275_v33  ;;  %3334 = vmatmul.mubr.bf16.gmra.mrb[4].mxu1 %v7275_v33  ;;  %v8793_v33 = vld [vmem:[%s11953_s1 + $0xb68] ss:$16 sps:$4 sm:$0xff]  }
 0x157   : > { %3862 = vmatpush1.bf16.msra.mxu0 %v8736_v19  ;;  %3935 = vmatpush1.bf16.msra.mxu1 %v8739_v60  ;;  %v8799_v19 = vld [vmem:[%s11953_s1 + $0xb88] ss:$16 sps:$4 sm:$0xff]   ;;  %v8804_v60 = vld [vmem:[%s11953_s1 + $0xba4] ss:$16 sps:$4 sm:$0xff]  }
 0x158   : > { %3863 = vmatprep.subr.bf16.mxu0 %v8744_v42  ;;  %3936 = vmatprep.subr.bf16.mxu1 %v8747_v21  ;;  %v8807_v42 = vld [vmem:[%s11953_s1 + $0xbac] ss:$16 sps:$4 sm:$0xff]   ;;  %v8802_v21 = vld [vmem:[%s11953_s1 + $0xba0] ss:$16 sps:$4 sm:$0xff]  }
 0x159   : > { %3270 = vmatprep.mubr.bf16.mxu0 %v7278_v54  ;;  %3343 = vmatprep.mubr.bf16.mxu1 %v7278_v54  ;;  %v8805_v54 = vld [vmem:[%s11953_s1 + $0xba8] ss:$16 sps:$4 sm:$0xff]  }
 0x15b   : > { %3864 = vmatpush1.bf16.msra.mxu0 %v8742_v26  ;;  %3937 = vmatpush1.bf16.msra.mxu1 %v8745_v27  ;;  %v3421_v26 = vrot.slane %v9125_v25, 5  ;;  %v8808_v27 = vld [vmem:[%s11953_s1 + $0xbc0] ss:$16 sps:$4 sm:$0xff]  }
 0x15c   : > { %3865 = vmatprep.subr.bf16.mxu0 %v8750_v28  ;;  %3938 = vmatprep.subr.bf16.mxu1 %v8753_v30  ;;  %v8811_v28 = vld [vmem:[%s11953_s1 + $0xbc8] ss:$16 sps:$4 sm:$0xff]   ;;  %v7346_v30 = vld [vmem:[%s9312_s10 + $0x30] sm:$0xee] }
 0x15d   : > { %v7350_v6 = vrot.slane %v7346_v30, 9  ;;  %v3423_v58 = vrot.slane %v3421_v26, 4  ;;  %v8859_v30 = vld [vmem:[%s11953_s1 + $0xcc8] ss:$16 sps:$4 sm:$0xff]  }
 0x15e   : > { %3271 = vmatmul.mubr.bf16.gmra.mrb[8].mxu0 %v7277_v37  ;;  %3344 = vmatmul.mubr.bf16.gmra.mrb[8].mxu1 %v7277_v37  ;;  %v8819_v37 = vld [vmem:[%s11953_s1 + $0xbec] ss:$16 sps:$4 sm:$0xff]  }
 0x15f   : > { %3866 = vmatpush1.bf16.msra.mxu0 %v8748_v36  ;;  %3939 = vmatpush1.bf16.msra.mxu1 %v8751_v29  ;;  %v8816_v36 = vld [vmem:[%s11953_s1 + $0xbe4] ss:$16 sps:$4 sm:$0xff]   ;;  %v8817_v29 = vld [vmem:[%s11953_s1 + $0xbe8] ss:$16 sps:$4 sm:$0xff]  }
 0x160   : > { %3867 = vmatprep.subr.bf16.mxu0 %v8756_v51  ;;  %3940 = vmatprep.subr.bf16.mxu1 %v8759_v34  ;;  %v7417_v51 = vcombine.low %v10521_v8, %v10525_v55  ;;  %v3422_v34 = vsel %vm9460_vm5, %v7350_v6, %v3421_v26  ;;  %v3430_v55 = vrot.slane %v3428_v5, 4  ;;  %v10745_v26 = vld [vmem:[%s9312_s10 + $0x30] sm:$0xff] }
 0x161   : > { %3280 = vmatprep.mubr.bf16.mxu0 %v7280_v35  ;;  %3353 = vmatprep.mubr.bf16.mxu1 %v7280_v35  ;;  %v3425_v35 = vsel %vm9460_vm5, %v3423_v58, %v3424_v4  ;;  %v8862_v58 = vld [vmem:[%s11953_s1 + $0xce0] ss:$16 sps:$4 sm:$0xff]   ;;  %v8865_v4 = vld [vmem:[%s11953_s1 + $0xce8] ss:$16 sps:$4 sm:$0xff]  }
 0x163   : > { %3868 = vmatpush1.bf16.msra.mxu0 %v8754_v32  ;;  %3941 = vmatpush1.bf16.msra.mxu1 %v8757_v31  ;;  %v8823_v32 = vld [vmem:[%s11953_s1 + $0xc08] ss:$16 sps:$4 sm:$0xff]  }
 0x164   : > { %3869 = vmatprep.subr.bf16.mxu0 %v8762_v50  ;;  %3942 = vmatprep.subr.bf16.mxu1 %v8765_v18  ;;  %v7347_v31 = vld [vmem:[%s9312_s10 + $0x48] sm:$0xee]  ;;  %v8828_v50 = vld [vmem:[%s11953_s1 + $0xc24] ss:$16 sps:$4 sm:$0xff]  }
 0x165   : > { %v8831_v18 = vld [vmem:[%s11953_s1 + $0xc2c] ss:$16 sps:$4 sm:$0xff]   ;;  %v7351_v8 = vrot.slane %v7347_v31, 9  ;;  %v8883_v31 = vld [vmem:[%s11953_s1 + $0xd48] ss:$16 sps:$4 sm:$0xff]  }
 0x166   : > { %3281 = vmatmul.mubr.bf16.gmra.mrb[12].mxu0 %v7279_v53  ;;  %3354 = vmatmul.mubr.bf16.gmra.mrb[12].mxu1 %v7279_v53  ;;  %v7420_v53 = vcombine.high %v3422_v34, %v3425_v35 }
 0x167   : > { %3870 = vmatpush1.bf16.msra.mxu0 %v8760_v52  ;;  %3943 = vmatpush1.bf16.msra.mxu1 %v8763_v41  ;;  %v3431_v52 = vrot.slane %v10413_v43, 5  ;;  %v8826_v41 = vld [vmem:[%s11953_s1 + $0xc20] ss:$16 sps:$4 sm:$0xff]   ;;  %v8837_v43 = vld [vmem:[%s11953_s1 + $0xc4c] ss:$16 sps:$4 sm:$0xff]  }
 0x168   : > { %3871 = vmatprep.subr.bf16.mxu0 %v8768_v56  ;;  %3944 = vmatprep.subr.bf16.mxu1 %v8771_v57  ;;  %v8829_v56 = vld [vmem:[%s11953_s1 + $0xc28] ss:$16 sps:$4 sm:$0xff]   ;;  %v8834_v57 = vld [vmem:[%s11953_s1 + $0xc44] ss:$16 sps:$4 sm:$0xff]  }
 0x169   : > { %3889 = vmatprep.mubr.bf16.mxu0 %v7418_v59  ;;  %3962 = vmatprep.mubr.bf16.mxu1 %v7418_v59  ;;  %v7419_v59 = vcombine.low %v3422_v34, %v3425_v35  ;;  %v8879_v34 = vld [vmem:[%s11953_s1 + $0xd2c] ss:$16 sps:$4 sm:$0xff]   ;;  %v8874_v35 = vld [vmem:[%s11953_s1 + $0xd20] ss:$16 sps:$4 sm:$0xff]  }
 0x16b   : > { %3872 = vmatpush1.bf16.msra.mxu0 %v8766_v63  ;;  %3945 = vmatpush1.bf16.msra.mxu1 %v8769_v39  ;;  %v3429_v63 = vsel %vm9460_vm5, %v7351_v8, %v3428_v5  ;;  %v3432_v39 = vsel %vm9460_vm5, %v3430_v55, %v3431_v52  ;;  %v8882_v5 = vld [vmem:[%s11953_s1 + $0xd44] ss:$16 sps:$4 sm:$0xff]   ;;  %v8889_v8 = vld [vmem:[%s11953_s1 + $0xd68] ss:$16 sps:$4 sm:$0xff]   ;;  %v8897_v52 = vld [vmem:[%s11953_s1 + $0xd8c] ss:$16 sps:$4 sm:$0xff]  }
 0x16c   : > { %3873 = vmatprep.subr.bf16.mxu0 %v8774_v20  ;;  %3946 = vmatprep.subr.bf16.mxu1 %v8777_v61  ;;  %v9127_v20 = vld [vmem:[%s9312_s10 + $0x68] sm:$0xff]  ;;  %v8894_v55 = vld [vmem:[%s11953_s1 + $0xd84] ss:$16 sps:$4 sm:$0xff]  }
 0x16d   : > { %v3435_v61 = vrot.slane %v9127_v20, 5  ;;  %v8909_v20 = vld [vmem:[%s11953_s1 + $0xdcc] ss:$16 sps:$4 sm:$0xff]  }
 0x16f   : > { %3874 = vmatpush1.bf16.msra.mxu0 %v8772_v62  ;;  %3947 = vmatpush1.bf16.msra.mxu1 %v8775_v0  ;;  %v8832_v62 = vld [vmem:[%s11953_s1 + $0xc40] ss:$16 sps:$4 sm:$0xff]   ;;  %v8835_v0 = vld [vmem:[%s11953_s1 + $0xc48] ss:$16 sps:$4 sm:$0xff]  }
 0x170   : > { %3875 = vmatprep.subr.bf16.mxu0 %v8780_v1  ;;  %3948 = vmatprep.subr.bf16.mxu1 %v8783_v3  ;;  %v7348_v1 = vld [vmem:[%s9312_s10 + $0x60] sm:$0xee] }
 0x171   : > { %v8840_v3 = vld [vmem:[%s11953_s1 + $0xc64] ss:$16 sps:$4 sm:$0xff]  }
 0x173   : > { %3876 = vmatpush1.bf16.msra.mxu0 %v8778_v9  ;;  %3949 = vmatpush1.bf16.msra.mxu1 %v8781_v12  ;;  %v8843_v9 = vld [vmem:[%s11953_s1 + $0xc6c] ss:$16 sps:$4 sm:$0xff]   ;;  %v7422_v12 = vcombine.high %v3429_v63, %v3432_v39 }
 0x174   : > { %3877 = vmatprep.subr.bf16.mxu0 %v8786_v10  ;;  %3950 = vmatprep.subr.bf16.mxu1 %v8789_v13  ;;  %v7352_v10 = vrot.slane %v7348_v1, 9  ;;  %v3437_v13 = vrot.slane %v3435_v61, 4  ;;  %v8915_v1 = vld [vmem:[%s11953_s1 + $0xdec] ss:$16 sps:$4 sm:$0xff]  }
 0x177   : > { %3878 = vmatpush1.bf16.msra.mxu0 %v8784_v11  ;;  %3951 = vmatpush1.bf16.msra.mxu1 %v8787_v40  ;;  %v3438_v11 = vrot.slane %v10451_v14, 5  ;;  %v8838_v40 = vld [vmem:[%s11953_s1 + $0xc60] ss:$16 sps:$4 sm:$0xff]   ;;  %v8849_v14 = vld [vmem:[%s11953_s1 + $0xc8c] ss:$16 sps:$4 sm:$0xff]  }
 0x178   : > { %3879 = vmatprep.subr.bf16.mxu0 %v8792_v24  ;;  %3952 = vmatprep.subr.bf16.mxu1 %v8795_v45  ;;  %v8841_v24 = vld [vmem:[%s11953_s1 + $0xc68] ss:$16 sps:$4 sm:$0xff]   ;;  %v8846_v45 = vld [vmem:[%s11953_s1 + $0xc84] ss:$16 sps:$4 sm:$0xff]  }
 0x17b   : > { %3880 = vmatpush1.bf16.msra.mxu0 %v8790_v47  ;;  %3953 = vmatpush1.bf16.msra.mxu1 %v8793_v33  ;;  %v7421_v47 = vcombine.low %v3429_v63, %v3432_v39  ;;  %v3436_v33 = vsel %vm9460_vm5, %v7352_v10, %v3435_v61  ;;  %v8901_v63 = vld [vmem:[%s11953_s1 + $0xda8] ss:$16 sps:$4 sm:$0xff]   ;;  %v8906_v39 = vld [vmem:[%s11953_s1 + $0xdc4] ss:$16 sps:$4 sm:$0xff]   ;;  %v8904_v61 = vld [vmem:[%s11953_s1 + $0xdc0] ss:$16 sps:$4 sm:$0xff]  }
 0x17c   : > { %3881 = vmatprep.subr.bf16.mxu0 %v8798_v15  ;;  %3954 = vmatprep.subr.bf16.mxu1 %v8801_v16  ;;  %v3439_v15 = vsel %vm9460_vm5, %v3437_v13, %v3438_v11  ;;  %v8844_v16 = vld [vmem:[%s11953_s1 + $0xc80] ss:$16 sps:$4 sm:$0xff]   ;;  %v8923_v10 = vld [vmem:[%s11953_s1 + $0xe0c] ss:$16 sps:$4 sm:$0xff]  }
 0x17d   : > { %v7423_v25 = vcombine.low %v3436_v33, %v3439_v15  ;;  %v10875_v11 = vld [vmem:[%s9312_s10 + $0x48] sm:$0xff] }
 0x17f   : > { %3882 = vmatpush1.bf16.msra.mxu0 %v8796_v17  ;;  %3955 = vmatpush1.bf16.msra.mxu1 %v8799_v19  ;;  %v8847_v17 = vld [vmem:[%s11953_s1 + $0xc88] ss:$16 sps:$4 sm:$0xff]   ;;  %v8852_v19 = vld [vmem:[%s11953_s1 + $0xca4] ss:$16 sps:$4 sm:$0xff]  }
 0x180   : > { %3883 = vmatprep.subr.bf16.mxu0 %v8804_v60  ;;  %3956 = vmatprep.subr.bf16.mxu1 %v8807_v42  ;;  %v8855_v60 = vld [vmem:[%s11953_s1 + $0xcac] ss:$16 sps:$4 sm:$0xff]   ;;  %v7424_v42 = vcombine.high %v3436_v33, %v3439_v15  ;;  %v8924_v15 = vld [vmem:[%s11953_s1 + $0xe20] ss:$16 sps:$4 sm:$0xff]  }
 0x183   : > { %3884 = vmatpush1.bf16.msra.mxu0 %v8802_v21  ;;  %3957 = vmatpush1.bf16.msra.mxu1 %v8805_v54  ;;  %v8850_v21 = vld [vmem:[%s11953_s1 + $0xca0] ss:$16 sps:$4 sm:$0xff]   ;;  %v8853_v54 = vld [vmem:[%s11953_s1 + $0xca8] ss:$16 sps:$4 sm:$0xff]  }
 0x184   : > { %3885 = vmatprep.subr.bf16.mxu0 %v8810_v22  ;;  %3958 = vmatprep.subr.bf16.mxu1 %v8813_v23  ;;  %v8858_v22 = vld [vmem:[%s11953_s1 + $0xcc4] ss:$16 sps:$4 sm:$0xff]   ;;  %v8861_v23 = vld [vmem:[%s11953_s1 + $0xccc] ss:$16 sps:$4 sm:$0xff]  }
 0x187   : > { %3886 = vmatpush1.bf16.msra.mxu0 %v8808_v27  ;;  %3959 = vmatpush1.bf16.msra.mxu1 %v8811_v28  ;;  %v10748_v27 = vld [vmem:[%s9312_s10 + $0x38] sm:$0xff]  ;;  %v8856_v28 = vld [vmem:[%s11953_s1 + $0xcc0] ss:$16 sps:$4 sm:$0xff]  }
 0x188   : > { %3887 = vmatprep.subr.bf16.mxu0 %v8816_v36  ;;  %3960 = vmatprep.subr.bf16.mxu1 %v8819_v37  ;;  %v8864_v36 = vld [vmem:[%s11953_s1 + $0xce4] ss:$16 sps:$4 sm:$0xff]   ;;  %v8867_v37 = vld [vmem:[%s11953_s1 + $0xcec] ss:$16 sps:$4 sm:$0xff]   ;;  %v7562_v6 = vcombine.high %v10745_v26, %v10748_v27  ;;  %v7561_v13 = vcombine.low %v10745_v26, %v10748_v27 }
 0x18b   : > { %3888 = vmatpush1.bf16.msra.mxu0 %v8814_v49  ;;  %3961 = vmatpush1.bf16.msra.mxu1 %v8817_v29  ;;  %v8870_v49 = vld [vmem:[%s11953_s1 + $0xd04] ss:$16 sps:$4 sm:$0xff]   ;;  %v8873_v29 = vld [vmem:[%s11953_s1 + $0xd0c] ss:$16 sps:$4 sm:$0xff]  }
 0x18c   : > { %4469 = vmatprep.subr.bf16.mxu0 %v8822_v48  ;;  %4542 = vmatprep.subr.bf16.mxu1 %v8825_v7  ;;  %v8868_v48 = vld [vmem:[%s11953_s1 + $0xd00] ss:$16 sps:$4 sm:$0xff]   ;;  %v8871_v7 = vld [vmem:[%s11953_s1 + $0xd08] ss:$16 sps:$4 sm:$0xff]  }
 0x18e   : > { %3890 = vmatmul.mubr.bf16.vlgmr.msra.gmra.mrb[0].mxu0 %v7417_v51  ;;  %3963 = vmatmul.mubr.bf16.vlgmr.msra.gmra.mrb[0].mxu1 %v7417_v51  ;;  %v8876_v51 = vld [vmem:[%s11953_s1 + $0xd24] ss:$16 sps:$4 sm:$0xff]  }
 0x18f   : > { %4470 = vmatpush1.bf16.msra.mxu0 %v8820_v44  ;;  %4543 = vmatpush1.bf16.msra.mxu1 %v8823_v32  ;;  %v8885_v44 = vld [vmem:[%s11953_s1 + $0xd4c] ss:$16 sps:$4 sm:$0xff]   ;;  %v8880_v32 = vld [vmem:[%s11953_s1 + $0xd40] ss:$16 sps:$4 sm:$0xff]  }
 0x190   : > { %4471 = vmatprep.subr.bf16.mxu0 %v8828_v50  ;;  %4544 = vmatprep.subr.bf16.mxu1 %v8831_v18  ;;  %v8888_v50 = vld [vmem:[%s11953_s1 + $0xd64] ss:$16 sps:$4 sm:$0xff]   ;;  %v8891_v18 = vld [vmem:[%s11953_s1 + $0xd6c] ss:$16 sps:$4 sm:$0xff]  }
 0x191   : > { %3899 = vmatprep.mubr.bf16.mxu0 %v7420_v53  ;;  %3972 = vmatprep.mubr.bf16.mxu1 %v7420_v53  ;;  %v8886_v53 = vld [vmem:[%s11953_s1 + $0xd60] ss:$16 sps:$4 sm:$0xff]  }
 0x193   : > { %4472 = vmatpush1.bf16.msra.mxu0 %v8826_v41  ;;  %4545 = vmatpush1.bf16.msra.mxu1 %v8829_v56  ;;  %v8892_v41 = vld [vmem:[%s11953_s1 + $0xd80] ss:$16 sps:$4 sm:$0xff]   ;;  %v8895_v56 = vld [vmem:[%s11953_s1 + $0xd88] ss:$16 sps:$4 sm:$0xff]  }
 0x194   : > { %4473 = vmatprep.subr.bf16.mxu0 %v8834_v57  ;;  %4546 = vmatprep.subr.bf16.mxu1 %v8837_v43  ;;  %v8900_v57 = vld [vmem:[%s11953_s1 + $0xda4] ss:$16 sps:$4 sm:$0xff]   ;;  %v8903_v43 = vld [vmem:[%s11953_s1 + $0xdac] ss:$16 sps:$4 sm:$0xff]  }
 0x196   : > { %3900 = vmatmul.mubr.bf16.gmra.mrb[4].mxu0 %v7419_v59  ;;  %3973 = vmatmul.mubr.bf16.gmra.mrb[4].mxu1 %v7419_v59  ;;  %v8898_v59 = vld [vmem:[%s11953_s1 + $0xda0] ss:$16 sps:$4 sm:$0xff]  }
 0x197   : > { %4474 = vmatpush1.bf16.msra.mxu0 %v8832_v62  ;;  %4547 = vmatpush1.bf16.msra.mxu1 %v8835_v0  ;;  %v8907_v62 = vld [vmem:[%s11953_s1 + $0xdc8] ss:$16 sps:$4 sm:$0xff]   ;;  %v8912_v0 = vld [vmem:[%s11953_s1 + $0xde4] ss:$16 sps:$4 sm:$0xff]  }
 0x198   : > { %4475 = vmatprep.subr.bf16.mxu0 %v8840_v3  ;;  %4548 = vmatprep.subr.bf16.mxu1 %v8843_v9  ;;  %v8910_v3 = vld [vmem:[%s11953_s1 + $0xde0] ss:$16 sps:$4 sm:$0xff]   ;;  %v8913_v9 = vld [vmem:[%s11953_s1 + $0xde8] ss:$16 sps:$4 sm:$0xff]  }
 0x199   : > { %3909 = vmatprep.mubr.bf16.mxu0 %v7422_v12  ;;  %3982 = vmatprep.mubr.bf16.mxu1 %v7422_v12  ;;  %v8920_v12 = vld [vmem:[%s11953_s1 + $0xe04] ss:$16 sps:$4 sm:$0xff]  }
 0x19b   : > { %4476 = vmatpush1.bf16.msra.mxu0 %v8838_v40  ;;  %4549 = vmatpush1.bf16.msra.mxu1 %v8841_v24  ;;  %v10878_v40 = vld [vmem:[%s9312_s10 + $0x50] sm:$0xff] }
 0x19c   : > { %4477 = vmatprep.subr.bf16.mxu0 %v8846_v45  ;;  %4550 = vmatprep.subr.bf16.mxu1 %v8849_v14  ;;  %v8918_v24 = vld [vmem:[%s11953_s1 + $0xe00] ss:$16 sps:$4 sm:$0xff]   ;;  %v8921_v45 = vld [vmem:[%s11953_s1 + $0xe08] ss:$16 sps:$4 sm:$0xff]   ;;  %v8926_v14 = vld [vmem:[%s11953_s1 + $0xe24] ss:$16 sps:$4 sm:$0xff]   ;;  %v7564_v33 = vcombine.high %v10875_v11, %v10878_v40 }
 0x19e   : > { %3910 = vmatmul.mubr.bf16.gmra.mrb[8].mxu0 %v7421_v47  ;;  %3983 = vmatmul.mubr.bf16.gmra.mrb[8].mxu1 %v7421_v47  ;;  %v8929_v47 = vld [vmem:[%s11953_s1 + $0xe2c] ss:$16 sps:$4 sm:$0xff]  }
 0x19f   : > { %4478 = vmatpush1.bf16.msra.mxu0 %v8844_v16  ;;  %4551 = vmatpush1.bf16.msra.mxu1 %v8847_v17  ;;  %v8927_v16 = vld [vmem:[%s11953_s1 + $0xe28] ss:$16 sps:$4 sm:$0xff]   ;;  %v8932_v17 = vld [vmem:[%s11953_s1 + $0xe44] ss:$16 sps:$4 sm:$0xff]  }
 0x1a0   : > { %4479 = vmatprep.subr.bf16.mxu0 %v8852_v19  ;;  %4552 = vmatprep.subr.bf16.mxu1 %v8855_v60  ;;  %v8935_v19 = vld [vmem:[%s11953_s1 + $0xe4c] ss:$16 sps:$4 sm:$0xff]   ;;  %v7563_v60 = vcombine.low %v10875_v11, %v10878_v40 }
 0x1a1   : > { %3919 = vmatprep.mubr.bf16.mxu0 %v7424_v42  ;;  %3992 = vmatprep.mubr.bf16.mxu1 %v7424_v42  ;;  %v10909_v42 = vld [vmem:[%s9312_s10 + $0x60] sm:$0xff] }
 0x1a3   : > { %4480 = vmatpush1.bf16.msra.mxu0 %v8850_v21  ;;  %4553 = vmatpush1.bf16.msra.mxu1 %v8853_v54  ;;  %v10912_v21 = vld [vmem:[%s9312_s10 + $0x68] sm:$0xff]  ;;  %v4660_v54 = vshrl.u32 %v10745_v26, 16 }
 0x1a4   : > { %4481 = vmatprep.subr.bf16.mxu0 %v8858_v22  ;;  %4554 = vmatprep.subr.bf16.mxu1 %v8861_v23  ;;  %v4663_v22 = vshll.u32 %v10745_v26, 16  ;;  %v4669_v23 = vshll.u32 %v10748_v27, 16  ;;  %v8938_v26 = vld [vmem:[%s11953_s1 + $0xe64] ss:$16 sps:$4 sm:$0xff]  }
 0x1a6   : > { %3920 = vmatmul.mubr.bf16.gmra.mrb[12].mxu0 %v7423_v25  ;;  %3993 = vmatmul.mubr.bf16.gmra.mrb[12].mxu1 %v7423_v25  ;;  %v4673_v25 = vshrl.u32 %v10748_v27, 16 }
 0x1a7   : > { %4482 = vmatpush1.bf16.msra.mxu0 %v8856_v28  ;;  %4555 = vmatpush1.bf16.msra.mxu1 %v8859_v30  ;;  %v8930_v28 = vld [vmem:[%s11953_s1 + $0xe40] ss:$16 sps:$4 sm:$0xff]   ;;  %v8933_v30 = vld [vmem:[%s11953_s1 + $0xe48] ss:$16 sps:$4 sm:$0xff]  }
 0x1a8   : > { %4483 = vmatprep.subr.bf16.mxu0 %v8864_v36  ;;  %4556 = vmatprep.subr.bf16.mxu1 %v8867_v37  ;;  %v8941_v36 = vld [vmem:[%s11953_s1 + $0xe6c] ss:$16 sps:$4 sm:$0xff]   ;;  %v7566_v37 = vcombine.high %v10909_v42, %v10912_v21 }
 0x1a9   : > { %4501 = vmatprep.mubr.bf16.mxu0 %v7562_v6  ;;  %4574 = vmatprep.mubr.bf16.mxu1 %v7562_v6  ;;  %v4662_v6 = vrot.slane %v4660_v54, 4  ;;  %v8972_v54 = vld [vmem:[%s11953_s1 + $0xf20] ss:$16 sps:$4 sm:$0xff]  }
 0x1ab   : > { %4484 = vmatpush1.bf16.msra.mxu0 %v8862_v58  ;;  %4557 = vmatpush1.bf16.msra.mxu1 %v8865_v4  ;;  %v4665_v58 = vrot.slane %v4663_v22, 5  ;;  %v4671_v4 = vrot.slane %v4669_v23, 5  ;;  %v8975_v22 = vld [vmem:[%s11953_s1 + $0xf28] ss:$16 sps:$4 sm:$0xff]   ;;  %v8981_v23 = vld [vmem:[%s11953_s1 + $0xf44] ss:$16 sps:$4 sm:$0xff]  }
 0x1ac   : > { %4485 = vmatprep.subr.bf16.mxu0 %v8870_v49  ;;  %4558 = vmatprep.subr.bf16.mxu1 %v8873_v29  ;;  %v4675_v49 = vrot.slane %v4673_v25, 4  ;;  %v8936_v29 = vld [vmem:[%s11953_s1 + $0xe60] ss:$16 sps:$4 sm:$0xff]   ;;  %v8984_v25 = vld [vmem:[%s11953_s1 + $0xf4c] ss:$16 sps:$4 sm:$0xff]  }
 0x1af   : > { %4486 = vmatpush1.bf16.msra.mxu0 %v8868_v48  ;;  %4559 = vmatpush1.bf16.msra.mxu1 %v8871_v7  ;;  %v8939_v48 = vld [vmem:[%s11953_s1 + $0xe68] ss:$16 sps:$4 sm:$0xff]   ;;  %v10939_v7 = vld [vmem:[%s9312_s10 + $0x40] sm:$0x11] }
 0x1b0   : > { %4487 = vmatprep.subr.bf16.mxu0 %v8876_v51  ;;  %4560 = vmatprep.subr.bf16.mxu1 %v8879_v34  ;;  %v8944_v51 = vld [vmem:[%s11953_s1 + $0xe84] ss:$16 sps:$4 sm:$0xff]   ;;  %v8947_v34 = vld [vmem:[%s11953_s1 + $0xe8c] ss:$16 sps:$4 sm:$0xff]  }
 0x1b3   : > { %4488 = vmatpush1.bf16.msra.mxu0 %v8874_v35  ;;  %4561 = vmatpush1.bf16.msra.mxu1 %v8877_v38  ;;  %v7565_v35 = vcombine.low %v10909_v42, %v10912_v21  ;;  %v10950_v38 = vld [vmem:[%s9312_s10 + $0x78] sm:$0xff] }
 0x1b4   : > { %4489 = vmatprep.subr.bf16.mxu0 %v8882_v5  ;;  %4562 = vmatprep.subr.bf16.mxu1 %v8885_v44  ;;  %v10953_v5 = vld [vmem:[%s9312_s10 + $0x80] sm:$0xff]  ;;  %v4666_v44 = vor.u32 %v4665_v58, %v4662_v6  ;;  %v8991_v6 = vld [vmem:[%s11953_s1 + $0xf6c] ss:$16 sps:$4 sm:$0xff]   ;;  %v6080_v58 = vld [vmem:[%s11955_s3 + $0x30] sm:$0xff] }
 0x1b7   : > { %4490 = vmatpush1.bf16.msra.mxu0 %v8880_v32  ;;  %4563 = vmatpush1.bf16.msra.mxu1 %v8883_v31  ;;  %v4676_v32 = vor.u32 %v4675_v49, %v4671_v4  ;;  %v4679_v31 = vshll.u32 %v10939_v7, 16  ;;  %v8986_v49 = vld [vmem:[%s11953_s1 + $0xf60] ss:$16 sps:$4 sm:$0xff]  }
 0x1b8   : > { %4491 = vmatprep.subr.bf16.mxu0 %v8888_v50  ;;  %4564 = vmatprep.subr.bf16.mxu1 %v8891_v18  ;;  %v8942_v50 = vld [vmem:[%s11953_s1 + $0xe80] ss:$16 sps:$4 sm:$0xff]   ;;  %v8945_v18 = vld [vmem:[%s11953_s1 + $0xe88] ss:$16 sps:$4 sm:$0xff]  }
 0x1bb   : > { %4492 = vmatpush1.bf16.msra.mxu0 %v8886_v53  ;;  %4565 = vmatpush1.bf16.msra.mxu1 %v8889_v8  ;;  %v8950_v53 = vld [vmem:[%s11953_s1 + $0xea4] ss:$16 sps:$4 sm:$0xff]   ;;  %v8953_v8 = vld [vmem:[%s11953_s1 + $0xeac] ss:$16 sps:$4 sm:$0xff]  }
 0x1bc   : > { %4493 = vmatprep.subr.bf16.mxu0 %v8894_v55  ;;  %4566 = vmatprep.subr.bf16.mxu1 %v8897_v52  ;;  %v7568_v55 = vcombine.high %v10950_v38, %v10953_v5  ;;  %v4667_v52 = vrot.slane %v4666_v44, 4  ;;  %v4693_v44 = vshll.u32 %v10878_v40, 16 }
 0x1bf   : > { %4494 = vmatpush1.bf16.msra.mxu0 %v8892_v41  ;;  %4567 = vmatpush1.bf16.msra.mxu1 %v8895_v56  ;;  %v4677_v41 = vrot.slane %v4676_v32, 4  ;;  %v4681_v56 = vrot.slane %v4679_v31, 5  ;;  %v4697_v32 = vshrl.u32 %v10878_v40, 16  ;;  %v8993_v31 = vld [vmem:[%s11953_s1 + $0xf80] ss:$16 sps:$4 sm:$0xff]  }
 0x1c0   : > { %4495 = vmatprep.subr.bf16.mxu0 %v8900_v57  ;;  %4568 = vmatprep.subr.bf16.mxu1 %v8903_v43  ;;  %v8948_v57 = vld [vmem:[%s11953_s1 + $0xea0] ss:$16 sps:$4 sm:$0xff]   ;;  %v8951_v43 = vld [vmem:[%s11953_s1 + $0xea8] ss:$16 sps:$4 sm:$0xff]  }
 0x1c3   : > { %4496 = vmatpush1.bf16.msra.mxu0 %v8898_v59  ;;  %4569 = vmatpush1.bf16.msra.mxu1 %v8901_v63  ;;  %v8956_v59 = vld [vmem:[%s11953_s1 + $0xec4] ss:$16 sps:$4 sm:$0xff]   ;;  %v8959_v63 = vld [vmem:[%s11953_s1 + $0xecc] ss:$16 sps:$4 sm:$0xff]  }
 0x1c4   : > { %4497 = vmatprep.subr.bf16.mxu0 %v8906_v39  ;;  %4570 = vmatprep.subr.bf16.mxu1 %v8909_v20  ;;  %v7567_v39 = vcombine.low %v10950_v38, %v10953_v5  ;;  %v10986_v20 = vsel %vm9358_vm2, %v4667_v52, %v4671_v4  ;;  %v6081_v4 = vld [vmem:[%s11955_s3 + $0x38] sm:$0xff]  ;;  %v4699_v52 = vrot.slane %v4697_v32, 4 }
 0x1c7   : > { %4498 = vmatpush1.bf16.msra.mxu0 %v8904_v61  ;;  %4571 = vmatpush1.bf16.msra.mxu1 %v8907_v62  ;;  %v10990_v61 = vsel %vm9358_vm2, %v4677_v41, %v4681_v56  ;;  %v8954_v62 = vld [vmem:[%s11953_s1 + $0xec0] ss:$16 sps:$4 sm:$0xff]   ;;  %v11107_v41 = vld [vmem:[%s9312_s10 + $0x58] sm:$0x11] }
 0x1c8   : > { %4499 = vmatprep.subr.bf16.mxu0 %v8912_v0  ;;  %4572 = vmatprep.subr.bf16.mxu1 %v8915_v1  ;;  %v8957_v0 = vld [vmem:[%s11953_s1 + $0xec8] ss:$16 sps:$4 sm:$0xff]   ;;  %v8962_v1 = vld [vmem:[%s11953_s1 + $0xee4] ss:$16 sps:$4 sm:$0xff]   ;;  %v9000_v56 = vld [vmem:[%s11953_s1 + $0xfa0] ss:$16 sps:$4 sm:$0xff]  }
 0x1cb   : > { %4500 = vmatpush1.bf16.msra.mxu0 %v8910_v3  ;;  %4573 = vmatpush1.bf16.msra.mxu1 %v8913_v9  ;;  %v8965_v3 = vld [vmem:[%s11953_s1 + $0xeec] ss:$16 sps:$4 sm:$0xff]   ;;  %v7710_v9 = vcombine.high %v10986_v20, %v10990_v61 }
 0x1cc   : > { %5172 = vmatprep.subr.bf16.mxu0 %v8920_v12  ;;  %5245 = vmatprep.subr.bf16.mxu1 %v8923_v10  ;;  %v8960_v12 = vld [vmem:[%s11953_s1 + $0xee0] ss:$16 sps:$4 sm:$0xff]   ;;  %v8963_v10 = vld [vmem:[%s11953_s1 + $0xee8] ss:$16 sps:$4 sm:$0xff]  }
 0x1ce   : > { %4502 = vmatmul.mubr.bf16.vlgmr.msra.gmra.mrb[0].mxu0 %v7561_v13  ;;  %4575 = vmatmul.mubr.bf16.vlgmr.msra.gmra.mrb[0].mxu1 %v7561_v13  ;;  %v8968_v13 = vld [vmem:[%s11953_s1 + $0xf04] ss:$16 sps:$4 sm:$0xff]  }
 0x1cf   : > { %5173 = vmatpush1.bf16.msra.mxu0 %v8918_v24  ;;  %5246 = vmatpush1.bf16.msra.mxu1 %v8921_v45  ;;  %v8971_v24 = vld [vmem:[%s11953_s1 + $0xf0c] ss:$16 sps:$4 sm:$0xff]   ;;  %v9136_v45 = vmov 0  }
 0x1d0   : > { %5174 = vmatprep.subr.bf16.mxu0 %v8926_v14  ;;  %5247 = vmatprep.subr.bf16.mxu1 %v8929_v47  ;;  %v6074_v14 = vld [vmem:[%s11955_s3] sm:$0xff]  ;;  %v6076_v47 = vld [vmem:[%s11955_s3 + $0x10] sm:$0xff] }
 0x1d1   : > { %4511 = vmatprep.mubr.bf16.mxu0 %v7564_v33  ;;  %4584 = vmatprep.mubr.bf16.mxu1 %v7564_v33  ;;  %v8966_v33 = vld [vmem:[%s11953_s1 + $0xf00] ss:$16 sps:$4 sm:$0xff]  }
 0x1d2   : > { %8226 = vset.pattern.permute.xlu0 %v9136_v45  ;;  %8227 = vset.pattern.permute.xlu1 %v9136_v45 }
 0x1d3   : > { %5175 = vmatpush1.bf16.msra.mxu0 %v8924_v15  ;;  %5248 = vmatpush1.bf16.msra.mxu1 %v8927_v16  ;;  %v8969_v15 = vld [vmem:[%s11953_s1 + $0xf08] ss:$16 sps:$4 sm:$0xff]   ;;  %v8974_v16 = vld [vmem:[%s11953_s1 + $0xf24] ss:$16 sps:$4 sm:$0xff]  }
 0x1d4   : > { %5176 = vmatprep.subr.bf16.mxu0 %v8932_v17  ;;  %5249 = vmatprep.subr.bf16.mxu1 %v8935_v19  ;;  %v8977_v17 = vld [vmem:[%s11953_s1 + $0xf2c] ss:$16 sps:$4 sm:$0xff]  }
 0x1d5   : > { %6116 = vperm.xlu0 %8226, %v6074_v14   ;;  %6126 = vperm.xlu1 %8227, %v6076_v47   ;;  %v6075_v19 = vld [vmem:[%s11955_s3 + $0x8] sm:$0xff] }
 0x1d6   : > { %4512 = vmatmul.mubr.bf16.gmra.mrb[4].mxu0 %v7563_v60  ;;  %4585 = vmatmul.mubr.bf16.gmra.mrb[4].mxu1 %v7563_v60  ;;  %v6077_v60 = vld [vmem:[%s11955_s3 + $0x18] sm:$0xff] }
 0x1d7   : > { %5177 = vmatpush1.bf16.msra.mxu0 %v8930_v28  ;;  %5250 = vmatpush1.bf16.msra.mxu1 %v8933_v30  ;;  %v6078_v28 = vld [vmem:[%s11955_s3 + $0x20] sm:$0xff]  ;;  %v6079_v30 = vld [vmem:[%s11955_s3 + $0x28] sm:$0xff] }
 0x1d8   : > { %5178 = vmatprep.subr.bf16.mxu0 %v8938_v26  ;;  %5251 = vmatprep.subr.bf16.mxu1 %v8941_v36  ;;  %v8979_v26 = vld [vmem:[%s11953_s1 + $0xf40] ss:$16 sps:$4 sm:$0xff]   ;;  %v8982_v36 = vld [vmem:[%s11953_s1 + $0xf48] ss:$16 sps:$4 sm:$0xff]  }
 0x1d9   : > { %4521 = vmatprep.mubr.bf16.mxu0 %v7566_v37  ;;  %4594 = vmatprep.mubr.bf16.mxu1 %v7566_v37  ;;  %v8988_v37 = vld [vmem:[%s11953_s1 + $0xf64] ss:$16 sps:$4 sm:$0xff]  }
 0x1da   : > { %6121 = vperm.xlu0 %8226, %v6075_v19   ;;  %6131 = vperm.xlu1 %8227, %v6077_v60   ;;  %v9014_v19 = vld [vmem:[%s11953_s1 + $0xfe0] ss:$16 sps:$4 sm:$0xff]   ;;  %v9017_v60 = vld [vmem:[%s11953_s1 + $0xfe8] ss:$16 sps:$4 sm:$0xff]  }
 0x1db   : > { %5179 = vmatpush1.bf16.msra.mxu0 %v8936_v29  ;;  %5252 = vmatpush1.bf16.msra.mxu1 %v8939_v48  ;;  %v8989_v29 = vld [vmem:[%s11953_s1 + $0xf68] ss:$16 sps:$4 sm:$0xff]   ;;  %v8995_v48 = vld [vmem:[%s11953_s1 + $0xf84] ss:$16 sps:$4 sm:$0xff]  }
 0x1dc   : > { %5180 = vmatprep.subr.bf16.mxu0 %v8944_v51  ;;  %5253 = vmatprep.subr.bf16.mxu1 %v8947_v34  ;;  %v8998_v51 = vld [vmem:[%s11953_s1 + $0xf8c] ss:$16 sps:$4 sm:$0xff]   ;;  %v4684_v34 = vshrl.u32 %v10875_v11, 16 }
 0x1de   : > { %4522 = vmatmul.mubr.bf16.gmra.mrb[8].mxu0 %v7565_v35  ;;  %4595 = vmatmul.mubr.bf16.gmra.mrb[8].mxu1 %v7565_v35  ;;  %v4687_v35 = vshll.u32 %v10875_v11, 16  ;;  %v9002_v11 = vld [vmem:[%s11953_s1 + $0xfa4] ss:$16 sps:$4 sm:$0xff]  }
 0x1df   : > { %5181 = vmatpush1.bf16.msra.mxu0 %v8942_v50  ;;  %5254 = vmatpush1.bf16.msra.mxu1 %v8945_v18  ;;  %v8996_v50 = vld [vmem:[%s11953_s1 + $0xf88] ss:$16 sps:$4 sm:$0xff]   ;;  %v9005_v18 = vld [vmem:[%s11953_s1 + $0xfac] ss:$16 sps:$4 sm:$0xff]  }
 0x1e0   : > { %5182 = vmatprep.subr.bf16.mxu0 %v8950_v53  ;;  %5255 = vmatprep.subr.bf16.mxu1 %v8953_v8  ;;  %v4686_v53 = vrot.slane %v4684_v34, 4  ;;  %v4689_v8 = vrot.slane %v4687_v35, 5 }
 0x1e1   : > { %4531 = vmatprep.mubr.bf16.mxu0 %v7568_v55  ;;  %4604 = vmatprep.mubr.bf16.mxu1 %v7568_v55  ;;  %v4695_v55 = vrot.slane %v4693_v44, 5 }
 0x1e2   : > { %6136 = vperm.xlu0 %8226, %v6078_v28   ;;  %6141 = vperm.xlu1 %8227, %v6079_v30  }
 0x1e3   : > { %5183 = vmatpush1.bf16.msra.mxu0 %v8948_v57  ;;  %5256 = vmatpush1.bf16.msra.mxu1 %v8951_v43  ;;  %v9003_v57 = vld [vmem:[%s11953_s1 + $0xfa8] ss:$16 sps:$4 sm:$0xff]   ;;  %v9009_v43 = vld [vmem:[%s11953_s1 + $0xfc4] ss:$16 sps:$4 sm:$0xff]  }
 0x1e4   : > { %5184 = vmatprep.subr.bf16.mxu0 %v8956_v59  ;;  %5257 = vmatprep.subr.bf16.mxu1 %v8959_v63  ;;  %v9012_v59 = vld [vmem:[%s11953_s1 + $0xfcc] ss:$16 sps:$4 sm:$0xff]   ;;  %v4690_v63 = vor.u32 %v4689_v8, %v4686_v53  ;;  %v9034_v53 = vld [vmem:[%s11953_s1 + $0x1044] ss:$16 sps:$4 sm:$0xff]  }
 0x1e5   : > { %v9037_v8 = vld [vmem:[%s11953_s1 + $0x104c] ss:$16 sps:$4 sm:$0xff]  }
 0x1e6   : > { %4532 = vmatmul.mubr.bf16.gmra.mrb[12].mxu0 %v7567_v39  ;;  %4605 = vmatmul.mubr.bf16.gmra.mrb[12].mxu1 %v7567_v39  ;;  %v4700_v39 = vor.u32 %v4699_v52, %v4695_v55 }
 0x1e7   : > { %5185 = vmatpush1.bf16.msra.mxu0 %v8954_v62  ;;  %5258 = vmatpush1.bf16.msra.mxu1 %v8957_v0  ;;  %v4703_v62 = vshll.u32 %v11107_v41, 16  ;;  %v4708_v0 = vshrl.u32 %v10909_v42, 16 }
 0x1e8   : > { %5186 = vmatprep.subr.bf16.mxu0 %v8962_v1  ;;  %5259 = vmatprep.subr.bf16.mxu1 %v8965_v3  ;;  %v4711_v1 = vshll.u32 %v10909_v42, 16  ;;  %v4717_v3 = vshll.u32 %v10912_v21, 16  ;;  %v9019_v42 = vld [vmem:[%s11953_s1 + $0xfec] ss:$16 sps:$4 sm:$0xff]   ;;  %v4701_v45 = vrot.slane %v4700_v39, 4 }
 0x1e9   : > { %5204 = vmatprep.mubr.bf16.mxu0 %v7710_v9  ;;  %5277 = vmatprep.mubr.bf16.mxu1 %v7710_v9  ;;  %v4721_v9 = vshrl.u32 %v10912_v21, 16  ;;  %v4705_v14 = vrot.slane %v4703_v62, 5  ;;  %v4710_v47 = vrot.slane %v4708_v0, 4  ;;  %v9035_v39 = vld [vmem:[%s11953_s1 + $0x1048] ss:$16 sps:$4 sm:$0xff]  }
 0x1ea   : > { %6146 = vperm.xlu0 %8226, %v6080_v58   ;;  %6151 = vperm.xlu1 %8227, %v6081_v4   ;;  %v9020_v58 = vld [vmem:[%s11953_s1 + $0x1000] ss:$16 sps:$4 sm:$0xff]   ;;  %v9023_v4 = vld [vmem:[%s11953_s1 + $0x1008] ss:$16 sps:$4 sm:$0xff]   ;;  %v9040_v62 = vld [vmem:[%s11953_s1 + $0x1064] ss:$16 sps:$4 sm:$0xff]  }
 0x1eb   : > { %5187 = vmatpush1.bf16.msra.mxu0 %v8960_v12  ;;  %5260 = vmatpush1.bf16.msra.mxu1 %v8963_v10  ;;  %v9007_v12 = vld [vmem:[%s11953_s1 + $0xfc0] ss:$16 sps:$4 sm:$0xff]   ;;  %v9010_v10 = vld [vmem:[%s11953_s1 + $0xfc8] ss:$16 sps:$4 sm:$0xff]   ;;  %v4706_v28 = vsel %vm9358_vm2, %v4701_v45, %v4705_v14  ;;  %v9043_v0 = vld [vmem:[%s11953_s1 + $0x106c] ss:$16 sps:$4 sm:$0xff]  }
 0x1ec   : > { %5188 = vmatprep.subr.bf16.mxu0 %v8968_v13  ;;  %5261 = vmatprep.subr.bf16.mxu1 %v8971_v24  ;;  %v9016_v13 = vld [vmem:[%s11953_s1 + $0xfe4] ss:$16 sps:$4 sm:$0xff]   ;;  %v4691_v24 = vrot.slane %v4690_v63, 4  ;;  %v9032_v63 = vld [vmem:[%s11953_s1 + $0x1040] ss:$16 sps:$4 sm:$0xff]  }
 0x1ef   : > { %5189 = vmatpush1.bf16.msra.mxu0 %v8966_v33  ;;  %5262 = vmatpush1.bf16.msra.mxu1 %v8969_v15  ;;  %v4713_v33 = vrot.slane %v4711_v1, 5  ;;  %v4719_v15 = vrot.slane %v4717_v3, 5 }
 0x1f0   : > { %5190 = vmatprep.subr.bf16.mxu0 %v8974_v16  ;;  %5263 = vmatprep.subr.bf16.mxu1 %v8977_v17  ;;  %v4723_v16 = vrot.slane %v4721_v9, 4  ;;  %v11139_v17 = vld [vmem:[%s9312_s10 + $0x70] sm:$0x11] }
 0x1f1   : > { %v4714_v30 = vor.u32 %v4713_v33, %v4710_v47  ;;  %v5368_v33 = vrot.slane %v10748_v27, 5  ;;  %v9055_v27 = vld [vmem:[%s11953_s1 + $0x10ac] ss:$16 sps:$4 sm:$0xff]  }
 0x1f3   : > { %5191 = vmatpush1.bf16.msra.mxu0 %v8972_v54  ;;  %5264 = vmatpush1.bf16.msra.mxu1 %v8975_v22  ;;  %v7709_v54 = vcombine.low %v10986_v20, %v10990_v61  ;;  %v9022_v22 = vld [vmem:[%s11953_s1 + $0x1004] ss:$16 sps:$4 sm:$0xff]   ;;  %v4732_v20 = vshrl.u32 %v10950_v38, 16  ;;  %v4735_v61 = vshll.u32 %v10950_v38, 16 }
 0x1f4   : > { %5192 = vmatprep.subr.bf16.mxu0 %v8981_v23  ;;  %5265 = vmatprep.subr.bf16.mxu1 %v8984_v25  ;;  %v9025_v23 = vld [vmem:[%s11953_s1 + $0x100c] ss:$16 sps:$4 sm:$0xff]   ;;  %v4696_v25 = vsel %vm9358_vm2, %v4691_v24, %v4695_v55  ;;  %v9028_v38 = vld [vmem:[%s11953_s1 + $0x1024] ss:$16 sps:$4 sm:$0xff]  }
 0x1f5   : > { %v4734_v35 = vrot.slane %v4732_v20, 4  ;;  %v4737_v44 = vrot.slane %v4735_v61, 5  ;;  %v7711_v55 = vcombine.low %v4696_v25, %v4706_v28  ;;  %v9049_v24 = vld [vmem:[%s11953_s1 + $0x108c] ss:$16 sps:$4 sm:$0xff]   ;;  %v9056_v61 = vld [vmem:[%s11953_s1 + $0x10c0] ss:$16 sps:$4 sm:$0xff]  }
 0x1f7   : > { %5193 = vmatpush1.bf16.msra.mxu0 %v8979_v26  ;;  %5266 = vmatpush1.bf16.msra.mxu1 %v8982_v36  ;;  %v4724_v26 = vor.u32 %v4723_v16, %v4719_v15  ;;  %v4727_v36 = vshll.u32 %v11139_v17, 16  ;;  %v9047_v16 = vld [vmem:[%s11953_s1 + $0x1088] ss:$16 sps:$4 sm:$0xff]  }
 0x1f8   : > { %5194 = vmatprep.subr.bf16.mxu0 %v8988_v37  ;;  %5267 = vmatprep.subr.bf16.mxu1 %v8991_v6  ;;  %v4741_v37 = vshll.u32 %v10953_v5, 16  ;;  %v4745_v6 = vshrl.u32 %v10953_v5, 16 }
 0x1f9   : > { %v4729_v34 = vrot.slane %v4727_v36, 5 }
 0x1fa   : > { %v4743_v32 = vrot.slane %v4741_v37, 5  ;;  %v9059_v37 = vld [vmem:[%s11953_s1 + $0x10c8] ss:$16 sps:$4 sm:$0xff]  }
 0x1fb   : > { %5195 = vmatpush1.bf16.msra.mxu0 %v8986_v49  ;;  %5268 = vmatpush1.bf16.msra.mxu1 %v8989_v29  ;;  %v9031_v49 = vld [vmem:[%s11953_s1 + $0x102c] ss:$16 sps:$4 sm:$0xff]   ;;  %v7712_v29 = vcombine.high %v4696_v25, %v4706_v28  ;;  %v9050_v25 = vld [vmem:[%s11953_s1 + $0x10a0] ss:$16 sps:$4 sm:$0xff]   ;;  %v9053_v28 = vld [vmem:[%s11953_s1 + $0x10a8] ss:$16 sps:$4 sm:$0xff]  }
 0x1fc   : > { %5196 = vmatprep.subr.bf16.mxu0 %v8995_v48  ;;  %5269 = vmatprep.subr.bf16.mxu1 %v8998_v51  ;;  %v4715_v48 = vrot.slane %v4714_v30, 4  ;;  %v4725_v51 = vrot.slane %v4724_v26, 4  ;;  %v9058_v30 = vld [vmem:[%s11953_s1 + $0x10c4] ss:$16 sps:$4 sm:$0xff]  }
 0x1fe   : > { %v4720_v52 = vsel %vm9358_vm2, %v4715_v48, %v4719_v15  ;;  %v9044_v15 = vld [vmem:[%s11953_s1 + $0x1080] ss:$16 sps:$4 sm:$0xff]   ;;  %v9073_v48 = vld [vmem:[%s11953_s1 + $0x110c] ss:$16 sps:$4 sm:$0xff]  }
 0x1ff   : > { %5197 = vmatpush1.bf16.msra.mxu0 %v8993_v31  ;;  %5270 = vmatpush1.bf16.msra.mxu1 %v8996_v50  ;;  %v4747_v31 = vrot.slane %v4745_v6, 4  ;;  %v9026_v50 = vld [vmem:[%s11953_s1 + $0x1020] ss:$16 sps:$4 sm:$0xff]   ;;  %v9064_v6 = vld [vmem:[%s11953_s1 + $0x10e4] ss:$16 sps:$4 sm:$0xff]  }
 0x200   : > { %5198 = vmatprep.subr.bf16.mxu0 %v9002_v11  ;;  %5271 = vmatprep.subr.bf16.mxu1 %v9005_v18  ;;  %v9029_v11 = vld [vmem:[%s11953_s1 + $0x1028] ss:$16 sps:$4 sm:$0xff]  }
 0x201   : > { %v11183_v18 = vld [vmem:[%s9312_s10 + $0x88] sm:$0x11] }
 0x203   : > { %5199 = vmatpush1.bf16.msra.mxu0 %v9000_v56  ;;  %5272 = vmatpush1.bf16.msra.mxu1 %v9003_v57  ;;  %v4730_v56 = vsel %vm9358_vm2, %v4725_v51, %v4729_v34  ;;  %v4738_v57 = vor.u32 %v4737_v44, %v4734_v35  ;;  %v9068_v51 = vld [vmem:[%s11953_s1 + $0x1100] ss:$16 sps:$4 sm:$0xff]   ;;  %v9071_v34 = vld [vmem:[%s11953_s1 + $0x1108] ss:$16 sps:$4 sm:$0xff]   ;;  %v9076_v35 = vld [vmem:[%s11953_s1 + $0x1124] ss:$16 sps:$4 sm:$0xff]  }
 0x204   : > { %5200 = vmatprep.subr.bf16.mxu0 %v9009_v43  ;;  %5273 = vmatprep.subr.bf16.mxu1 %v9012_v59  ;;  %v4748_v43 = vor.u32 %v4747_v31, %v4743_v32  ;;  %v4751_v59 = vshll.u32 %v11183_v18, 16  ;;  %v7714_v1 = vcombine.high %v4720_v52, %v4730_v56  ;;  %v7713_v45 = vcombine.low %v4720_v52, %v4730_v56  ;;  %v9079_v44 = vld [vmem:[%s11953_s1 + $0x112c] ss:$16 sps:$4 sm:$0xff]   ;;  %v9077_v31 = vld [vmem:[%s11953_s1 + $0x1128] ss:$16 sps:$4 sm:$0xff]  }
 0x205   : > { %v4739_v3 = vrot.slane %v4738_v57, 4  ;;  %v9091_v52 = vld [vmem:[%s11953_s1 + $0x116c] ss:$16 sps:$4 sm:$0xff]   ;;  %v9086_v56 = vld [vmem:[%s11953_s1 + $0x1160] ss:$16 sps:$4 sm:$0xff]  }
 0x206   : > { %v4749_v9 = vrot.slane %v4748_v43, 4  ;;  %v9089_v57 = vld [vmem:[%s11953_s1 + $0x1168] ss:$16 sps:$4 sm:$0xff]   ;;  %v9094_v43 = vld [vmem:[%s11953_s1 + $0x1184] ss:$16 sps:$4 sm:$0xff]  }
 0x207   : > { %5201 = vmatpush1.bf16.msra.mxu0 %v9007_v12  ;;  %5274 = vmatpush1.bf16.msra.mxu1 %v9010_v10  ;;  %v4753_v12 = vrot.slane %v4751_v59, 5  ;;  %v9038_v10 = vld [vmem:[%s11953_s1 + $0x1060] ss:$16 sps:$4 sm:$0xff]   ;;  %v4744_v14 = vsel %vm9358_vm2, %v4739_v3, %v4743_v32  ;;  %v9097_v59 = vld [vmem:[%s11953_s1 + $0x118c] ss:$16 sps:$4 sm:$0xff]  }
 0x208   : > { %5202 = vmatprep.subr.bf16.mxu0 %v9016_v13  ;;  %5275 = vmatprep.subr.bf16.mxu1 %v9019_v42  ;;  %v9041_v13 = vld [vmem:[%s11953_s1 + $0x1068] ss:$16 sps:$4 sm:$0xff]   ;;  %v9046_v42 = vld [vmem:[%s11953_s1 + $0x1084] ss:$16 sps:$4 sm:$0xff]   ;;  %v9074_v32 = vld [vmem:[%s11953_s1 + $0x1120] ss:$16 sps:$4 sm:$0xff]  }
 0x209   : > { %v4754_v47 = vsel %vm9358_vm2, %v4749_v9, %v4753_v12  ;;  %v9101_v3 = vld [vmem:[%s11953_s1 + $0x11a8] ss:$16 sps:$4 sm:$0xff]   ;;  %v9106_v9 = vld [vmem:[%s11953_s1 + $0x11c4] ss:$16 sps:$4 sm:$0xff]   ;;  %v9109_v12 = vld [vmem:[%s11953_s1 + $0x11cc] ss:$16 sps:$4 sm:$0xff]  }
 0x20a   : > { %v7715_v26 = vcombine.low %v4744_v14, %v4754_v47 }
 0x20b   : > { %5203 = vmatpush1.bf16.msra.mxu0 %v9014_v19  ;;  %5276 = vmatpush1.bf16.msra.mxu1 %v9017_v60  ;;  %v7781_v19 = vld [vmem:[%s9312_s10 + $0x30] sm:$0xee]  ;;  %v7716_v60 = vcombine.high %v4744_v14, %v4754_v47 }
 0x20c   : > { %5811 = vmatprep.subr.bf16.mxu0 %v9022_v22  ;;  %5884 = vmatprep.subr.bf16.mxu1 %v9025_v23  ;;  %v5370_v22 = vrot.slane %v5368_v33, 4  ;;  %v5371_v23 = vrot.slane %v10939_v7, 5  ;;  %v9061_v7 = vld [vmem:[%s11953_s1 + $0x10cc] ss:$16 sps:$4 sm:$0xff]  }
 0x20e   : > { %5205 = vmatmul.mubr.bf16.vlgmr.msra.gmra.mrb[0].mxu0 %v7709_v54  ;;  %5278 = vmatmul.mubr.bf16.vlgmr.msra.gmra.mrb[0].mxu1 %v7709_v54  ;;  %v7785_v54 = vrot.slane %v7781_v19, 9  ;;  %v11257_v20 = vsel %vm9460_vm5, %v5370_v22, %v5371_v23 }
 0x20f   : > { %5812 = vmatpush1.bf16.msra.mxu0 %v9020_v58  ;;  %5885 = vmatpush1.bf16.msra.mxu1 %v9023_v4  ;;  %v9067_v58 = vld [vmem:[%s11953_s1 + $0x10ec] ss:$16 sps:$4 sm:$0xff]  }
 0x210   : > { %5813 = vmatprep.subr.bf16.mxu0 %v9028_v38  ;;  %5886 = vmatprep.subr.bf16.mxu1 %v9031_v49  ;;  %v11253_v36 = vsel %vm9460_vm5, %v7785_v54, %v5368_v33  ;;  %v9062_v38 = vld [vmem:[%s11953_s1 + $0x10e0] ss:$16 sps:$4 sm:$0xff]   ;;  %v9065_v49 = vld [vmem:[%s11953_s1 + $0x10e8] ss:$16 sps:$4 sm:$0xff]   ;;  %v5378_v33 = vrot.slane %v11107_v41, 5  ;;  %v5382_v41 = vrot.slane %v10912_v21, 5 }
 0x211   : > { %5214 = vmatprep.mubr.bf16.mxu0 %v7712_v29  ;;  %5287 = vmatprep.mubr.bf16.mxu1 %v7712_v29  ;;  %v7854_v4 = vcombine.high %v11253_v36, %v11257_v20  ;;  %v9070_v29 = vld [vmem:[%s11953_s1 + $0x1104] ss:$16 sps:$4 sm:$0xff]  }
 0x212   : > { %v5384_v23 = vrot.slane %v5382_v41, 4 }
 0x213   : > { %5814 = vmatpush1.bf16.msra.mxu0 %v9026_v50  ;;  %5887 = vmatpush1.bf16.msra.mxu1 %v9029_v11  ;;  %v9082_v50 = vld [vmem:[%s11953_s1 + $0x1144] ss:$16 sps:$4 sm:$0xff]   ;;  %v9085_v11 = vld [vmem:[%s11953_s1 + $0x114c] ss:$16 sps:$4 sm:$0xff]  }
 0x214   : > { %5815 = vmatprep.subr.bf16.mxu0 %v9034_v53  ;;  %5888 = vmatprep.subr.bf16.mxu1 %v9037_v8  ;;  %v9080_v53 = vld [vmem:[%s11953_s1 + $0x1140] ss:$16 sps:$4 sm:$0xff]   ;;  %v9083_v8 = vld [vmem:[%s11953_s1 + $0x1148] ss:$16 sps:$4 sm:$0xff]  }
 0x216   : > { %5215 = vmatmul.mubr.bf16.gmra.mrb[4].mxu0 %v7711_v55  ;;  %5288 = vmatmul.mubr.bf16.gmra.mrb[4].mxu1 %v7711_v55  ;;  %v9088_v55 = vld [vmem:[%s11953_s1 + $0x1164] ss:$16 sps:$4 sm:$0xff]  }
 0x217   : > { %5816 = vmatpush1.bf16.msra.mxu0 %v9032_v63  ;;  %5889 = vmatpush1.bf16.msra.mxu1 %v9035_v39  ;;  %v9092_v63 = vld [vmem:[%s11953_s1 + $0x1180] ss:$16 sps:$4 sm:$0xff]   ;;  %v9095_v39 = vld [vmem:[%s11953_s1 + $0x1188] ss:$16 sps:$4 sm:$0xff]  }
 0x218   : > { %5817 = vmatprep.subr.bf16.mxu0 %v9040_v62  ;;  %5890 = vmatprep.subr.bf16.mxu1 %v9043_v0  ;;  %v9100_v62 = vld [vmem:[%s11953_s1 + $0x11a4] ss:$16 sps:$4 sm:$0xff]   ;;  %v9103_v0 = vld [vmem:[%s11953_s1 + $0x11ac] ss:$16 sps:$4 sm:$0xff]  }
 0x219   : > { %5224 = vmatprep.mubr.bf16.mxu0 %v7714_v1  ;;  %5297 = vmatprep.mubr.bf16.mxu1 %v7714_v1  ;;  %v9098_v1 = vld [vmem:[%s11953_s1 + $0x11a0] ss:$16 sps:$4 sm:$0xff]  }
 0x21b   : > { %5818 = vmatpush1.bf16.msra.mxu0 %v9038_v10  ;;  %5891 = vmatpush1.bf16.msra.mxu1 %v9041_v13  ;;  %v5375_v10 = vrot.slane %v10878_v40, 5  ;;  %v7782_v13 = vld [vmem:[%s9312_s10 + $0x48] sm:$0xee] }
 0x21c   : > { %5819 = vmatprep.subr.bf16.mxu0 %v9046_v42  ;;  %5892 = vmatprep.subr.bf16.mxu1 %v9049_v24  ;;  %v9104_v42 = vld [vmem:[%s11953_s1 + $0x11c0] ss:$16 sps:$4 sm:$0xff]   ;;  %v9107_v24 = vld [vmem:[%s11953_s1 + $0x11c8] ss:$16 sps:$4 sm:$0xff]   ;;  %v9115_v40 = vld [vmem:[%s11953_s1 + $0x11ec] ss:$16 sps:$4 sm:$0xff]  }
 0x21d   : > { %v7786_v14 = vrot.slane %v7782_v13, 9  ;;  %v5377_v47 = vrot.slane %v5375_v10, 4 }
 0x21e   : > { %5225 = vmatmul.mubr.bf16.gmra.mrb[8].mxu0 %v7713_v45  ;;  %5298 = vmatmul.mubr.bf16.gmra.mrb[8].mxu1 %v7713_v45  ;;  %v9112_v45 = vld [vmem:[%s11953_s1 + $0x11e4] ss:$16 sps:$4 sm:$0xff]  }
 0x21f   : > { %5820 = vmatpush1.bf16.msra.mxu0 %v9044_v15  ;;  %5893 = vmatpush1.bf16.msra.mxu1 %v9047_v16  ;;  %v9110_v15 = vld [vmem:[%s11953_s1 + $0x11e0] ss:$16 sps:$4 sm:$0xff]   ;;  %v9113_v16 = vld [vmem:[%s11953_s1 + $0x11e8] ss:$16 sps:$4 sm:$0xff]   ;;  %v5376_v19 = vsel %vm9460_vm5, %v7786_v14, %v5375_v10 }
 0x220   : > { %5821 = vmatprep.subr.bf16.mxu0 %v9052_v2  ;;  %5894 = vmatprep.subr.bf16.mxu1 %v9055_v27  ;;  %v5379_v2 = vsel %vm9460_vm5, %v5377_v47, %v5378_v33  ;;  %v7783_v27 = vld [vmem:[%s9312_s10 + $0x60] sm:$0xee] }
 0x221   : > { %5234 = vmatprep.mubr.bf16.mxu0 %v7716_v60  ;;  %5307 = vmatprep.mubr.bf16.mxu1 %v7716_v60  ;;  %v7853_v60 = vcombine.low %v11253_v36, %v11257_v20  ;;  %v7856_v54 = vcombine.high %v5376_v19, %v5379_v2  ;;  %v7787_v22 = vrot.slane %v7783_v27, 9 }
 0x223   : > { %5822 = vmatpush1.bf16.msra.mxu0 %v9050_v25  ;;  %5895 = vmatpush1.bf16.msra.mxu1 %v9053_v28  ;;  %v5385_v25 = vrot.slane %v11139_v17, 5  ;;  %v5383_v28 = vsel %vm9460_vm5, %v7787_v22, %v5382_v41 }
 0x224   : > { %5823 = vmatprep.subr.bf16.mxu0 %v9058_v30  ;;  %5896 = vmatprep.subr.bf16.mxu1 %v9061_v7  ;;  %v5389_v30 = vrot.slane %v10953_v5, 5  ;;  %v7784_v7 = vld [vmem:[%s9312_s10 + $0x78] sm:$0xee] }
 0x225   : > { %v5386_v21 = vsel %vm9460_vm5, %v5384_v23, %v5385_v25  ;;  %v7788_v20 = vrot.slane %v7784_v7, 9 }
 0x226   : > { %5235 = vmatmul.mubr.bf16.gmra.mrb[12].mxu0 %v7715_v26  ;;  %5308 = vmatmul.mubr.bf16.gmra.mrb[12].mxu1 %v7715_v26  ;;  %v7855_v26 = vcombine.low %v5376_v19, %v5379_v2  ;;  %v7858_v36 = vcombine.high %v5383_v28, %v5386_v21 }
 0x227   : > { %5824 = vmatpush1.bf16.msra.mxu0 %v9056_v61  ;;  %5897 = vmatpush1.bf16.msra.mxu1 %v9059_v37  ;;  %v5391_v61 = vrot.slane %v5389_v30, 4  ;;  %v5392_v37 = vrot.slane %v11183_v18, 5  ;;  %v5390_v17 = vsel %vm9460_vm5, %v7788_v20, %v5389_v30  ;;  %v5990_v18 = vlaneseq }
 0x228   : > { %5825 = vmatprep.subr.bf16.mxu0 %v9064_v6  ;;  %5898 = vmatprep.subr.bf16.mxu1 %v9067_v58  ;;  %v7857_v58 = vcombine.low %v5383_v28, %v5386_v21 }
 0x229   : > { %5843 = vmatprep.mubr.bf16.mxu0 %v7854_v4  ;;  %5916 = vmatprep.mubr.bf16.mxu1 %v7854_v4  ;;  %v5393_v6 = vsel %vm9460_vm5, %v5391_v61, %v5392_v37 }
 0x22a   : > { %v7860_v4 = vcombine.high %v5390_v17, %v5393_v6  ;;  %v7859_v5 = vcombine.low %v5390_v17, %v5393_v6 }
 0x22b   : > { %5826 = vmatpush1.bf16.msra.mxu0 %v9062_v38  ;;  %5899 = vmatpush1.bf16.msra.mxu1 %v9065_v49  ;;  %v5991_v38 = vshrl.u32 %v5990_v18, 7 }
 0x22c   : > { %5827 = vmatprep.subr.bf16.mxu0 %v9070_v29  ;;  %5900 = vmatprep.subr.bf16.mxu1 %v9073_v48 }
 0x22d   : > { %v5992_v29 = vsub.s32 0, %v5991_v38  ;;  %v6000_v48 = vsub.s32 2, %v5991_v38 }
 0x22f   : > { %5828 = vmatpush1.bf16.msra.mxu0 %v9068_v51  ;;  %5901 = vmatpush1.bf16.msra.mxu1 %v9071_v34  ;;  %v5996_v51 = vsub.s32 1, %v5991_v38  ;;  %v6004_v34 = vsub.s32 3, %v5991_v38 }
 0x230   : > { %5829 = vmatprep.subr.bf16.mxu0 %v9076_v35  ;;  %5902 = vmatprep.subr.bf16.mxu1 %v9079_v44  ;;  %v11403_v35 = vrot.slane %v198_v46, %v5992_v29  ;;  %v11405_v44 = vrot.slane %v198_v46, %v6000_v48 }
 0x233   : > { %5830 = vmatpush1.bf16.msra.mxu0 %v9074_v32  ;;  %5903 = vmatpush1.bf16.msra.mxu1 %v9077_v31  ;;  %v11407_v32 = vrot.slane %v198_v46, %v5996_v51  ;;  %v11409_v31 = vrot.slane %v198_v46, %v6004_v34 }
 0x234   : > { %5831 = vmatprep.subr.bf16.mxu0 %v9082_v50  ;;  %5904 = vmatprep.subr.bf16.mxu1 %v9085_v11 }
 0x237   : > { %5832 = vmatpush1.bf16.msra.mxu0 %v9080_v53  ;;  %5905 = vmatpush1.bf16.msra.mxu1 %v9083_v8 }
 0x238   : > { %5833 = vmatprep.subr.bf16.mxu0 %v9088_v55  ;;  %5906 = vmatprep.subr.bf16.mxu1 %v9091_v52 }
 0x23b   : > { %5834 = vmatpush1.bf16.msra.mxu0 %v9086_v56  ;;  %5907 = vmatpush1.bf16.msra.mxu1 %v9089_v57 }
 0x23c   : > { %5835 = vmatprep.subr.bf16.mxu0 %v9094_v43  ;;  %5908 = vmatprep.subr.bf16.mxu1 %v9097_v59 }
 0x23f   : > { %5836 = vmatpush1.bf16.msra.mxu0 %v9092_v63  ;;  %5909 = vmatpush1.bf16.msra.mxu1 %v9095_v39 }
 0x240   : > { %5837 = vmatprep.subr.bf16.mxu0 %v9100_v62  ;;  %5910 = vmatprep.subr.bf16.mxu1 %v9103_v0 }
 0x243   : > { %5838 = vmatpush1.bf16.msra.mxu0 %v9098_v1  ;;  %5911 = vmatpush1.bf16.msra.mxu1 %v9101_v3 }
 0x244   : > { %5839 = vmatprep.subr.bf16.mxu0 %v9106_v9  ;;  %5912 = vmatprep.subr.bf16.mxu1 %v9109_v12 }
 0x247   : > { %5840 = vmatpush1.bf16.msra.mxu0 %v9104_v42  ;;  %5913 = vmatpush1.bf16.msra.mxu1 %v9107_v24 }
 0x248   : > { %5841 = vmatprep.subr.bf16.mxu0 %v9112_v45  ;;  %5914 = vmatprep.subr.bf16.mxu1 %v9115_v40 }
 0x24b   : > { %5842 = vmatpush1.bf16.msra.mxu0 %v9110_v15  ;;  %5915 = vmatpush1.bf16.msra.mxu1 %v9113_v16 }
 0x24e   : > { %5844 = vmatmul.mubr.bf16.vlgmr.msra.gmra.mrb[0].mxu0 %v7853_v60  ;;  %5917 = vmatmul.mubr.bf16.vlgmr.msra.gmra.mrb[0].mxu1 %v7853_v60 }
 0x24f   : > { %5853 = vmatprep.mubr.bf16.mxu0 %v7856_v54  ;;  %5926 = vmatprep.mubr.bf16.mxu1 %v7856_v54 }
 0x254   : > { %v11398_v49 = vpop.permute.xlu0 %6116  ;;  %v11449_v40 = vpop.permute.xlu1 %6126 }
 0x256   : > { %5854 = vmatmul.mubr.bf16.gmra.mrb[4].mxu0 %v7855_v26  ;;  %5927 = vmatmul.mubr.bf16.gmra.mrb[4].mxu1 %v7855_v26 }
 0x257   : > { %5863 = vmatprep.mubr.bf16.mxu0 %v7858_v36  ;;  %5936 = vmatprep.mubr.bf16.mxu1 %v7858_v36 }
 0x259   : > { %v11411_v50 = vpop.permute.xlu0 %6121  ;;  %v11477_v37 = vpop.permute.xlu1 %6131 }
 0x25e   : > { %5864 = vmatmul.mubr.bf16.gmra.mrb[8].mxu0 %v7857_v58  ;;  %5937 = vmatmul.mubr.bf16.gmra.mrb[8].mxu1 %v7857_v58 }
 0x25f   : > { %5873 = vmatprep.mubr.bf16.mxu0 %v7860_v4  ;;  %5946 = vmatprep.mubr.bf16.mxu1 %v7860_v4 }
 0x266   : > { %5874 = vmatmul.mubr.bf16.gmra.mrb[12].mxu0 %v7859_v5  ;;  %5947 = vmatmul.mubr.bf16.gmra.mrb[12].mxu1 %v7859_v5 }
 0x321   : > { %v5845_v11 = vpop.f32.mrb[0].mxu0  ;;  %v5918_v53 = vpop.f32.mrb[0].mxu1 }
 0x322   : > { %v11414_v8 = vadd.f32 %v11403_v35, %v5845_v11  ;;  %v11417_v55 = vadd.f32 %v11405_v44, %v5918_v53  ;;  %v5847_v52 = vpop.f32.mrb[1].mxu0  ;;  %v5920_v56 = vpop.f32.mrb[1].mxu1 }
 0x323   : > { %v11420_v57 = vadd.f32 %v11407_v32, %v5847_v52  ;;  %v11423_v43 = vadd.f32 %v11409_v31, %v5920_v56  ;;  %v5849_v59 = vpop.f32.mrb[2].mxu0  ;;  %v5922_v63 = vpop.f32.mrb[2].mxu1 }
 0x324   : > { %v11426_v39 = vadd.f32 %v11403_v35, %v5849_v59  ;;  %v11429_v62 = vadd.f32 %v11405_v44, %v5922_v63  ;;  %v5851_v0 = vpop.f32.mrb[3].mxu0  ;;  %v5924_v1 = vpop.f32.mrb[3].mxu1  ;;  %v6154_v12 = vmul.f32 %v11398_v49, %v11414_v8  ;;  %v6156_v10 = vmul.f32 %v11398_v49, %v11417_v55 }
 0x325   : > { %v11432_v3 = vadd.f32 %v11407_v32, %v5851_v0  ;;  %v11435_v9 = vadd.f32 %v11409_v31, %v5924_v1  ;;  %v6155_v24 = vmul.f32 %v11398_v49, %v11420_v57  ;;  %v6157_v45 = vmul.f32 %v11398_v49, %v11423_v43  ;;  %v11497_v11 = vpop.permute.xlu0 %6136 }
 0x326   : > { %v6158_v13 = vmul.f32 %v11411_v50, %v11426_v39  ;;  %v6160_v42 = vmul.f32 %v11411_v50, %v11429_v62 }
 0x327   : > { %v6159_v14 = vmul.f32 %v11411_v50, %v11432_v3  ;;  %v6161_v47 = vmul.f32 %v11411_v50, %v11435_v9 }
 0x328   : > { %v6186_v33 = vadd.f32 %v6158_v13, %v6154_v12  ;;  %v6212_v15 = vadd.f32 %v6160_v42, %v6156_v10 }
 0x329   : > { %v5855_v16 = vpop.f32.mrb[4].mxu0  ;;  %v5928_v19 = vpop.f32.mrb[4].mxu1  ;;  %v6199_v2 = vadd.f32 %v6159_v14, %v6155_v24  ;;  %v6225_v41 = vadd.f32 %v6161_v47, %v6157_v45 }
 0x32a   : > { %v11456_v27 = vadd.f32 %v11403_v35, %v5855_v16  ;;  %v11459_v60 = vadd.f32 %v11405_v44, %v5928_v19  ;;  %v5857_v54 = vpop.f32.mrb[5].mxu0  ;;  %v5930_v22 = vpop.f32.mrb[5].mxu1 }
 0x32b   : > { %v11462_v23 = vadd.f32 %v11407_v32, %v5857_v54  ;;  %v11465_v25 = vadd.f32 %v11409_v31, %v5930_v22  ;;  %v5859_v28 = vpop.f32.mrb[6].mxu0  ;;  %v5932_v21 = vpop.f32.mrb[6].mxu1 }
 0x32c   : > { %v6162_v30 = vmul.f32 %v11449_v40, %v11456_v27  ;;  %v6164_v7 = vmul.f32 %v11449_v40, %v11459_v60  ;;  %v11472_v26 = vadd.f32 %v11403_v35, %v5859_v28  ;;  %v11475_v36 = vadd.f32 %v11405_v44, %v5932_v21  ;;  %v5861_v20 = vpop.f32.mrb[7].mxu0  ;;  %v5934_v61 = vpop.f32.mrb[7].mxu1 }
 0x32d   : > { %v6163_v17 = vmul.f32 %v11449_v40, %v11462_v23  ;;  %v6165_v6 = vmul.f32 %v11449_v40, %v11465_v25  ;;  %v11484_v58 = vadd.f32 %v11407_v32, %v5861_v20  ;;  %v11487_v4 = vadd.f32 %v11409_v31, %v5934_v61 }
 0x32e   : > { %v6187_v5 = vadd.f32 %v6186_v33, %v6162_v30  ;;  %v6213_v18 = vadd.f32 %v6212_v15, %v6164_v7  ;;  %v6166_v38 = vmul.f32 %v11477_v37, %v11472_v26  ;;  %v6168_v29 = vmul.f32 %v11477_v37, %v11475_v36 }
 0x32f   : > { %v6200_v48 = vadd.f32 %v6199_v2, %v6163_v17  ;;  %v6226_v46 = vadd.f32 %v6225_v41, %v6165_v6  ;;  %v6167_v51 = vmul.f32 %v11477_v37, %v11484_v58  ;;  %v6169_v34 = vmul.f32 %v11477_v37, %v11487_v4  ;;  %v11521_v41 = vpop.permute.xlu1 %6141 }
 0x330   : > { %v6188_v53 = vadd.f32 %v6187_v5, %v6166_v38  ;;  %v6214_v52 = vadd.f32 %v6213_v18, %v6168_v29  ;;  %v11541_v38 = vpop.permute.xlu0 %6146 }
 0x331   : > { %v6201_v56 = vadd.f32 %v6200_v48, %v6167_v51  ;;  %v6227_v59 = vadd.f32 %v6226_v46, %v6169_v34  ;;  %v5865_v63 = vpop.f32.mrb[8].mxu0  ;;  %v5938_v0 = vpop.f32.mrb[8].mxu1 }
 0x332   : > { %v11500_v1 = vadd.f32 %v11403_v35, %v5865_v63  ;;  %v11503_v12 = vadd.f32 %v11405_v44, %v5938_v0  ;;  %v5867_v10 = vpop.f32.mrb[9].mxu0  ;;  %v5940_v13 = vpop.f32.mrb[9].mxu1 }
 0x333   : > { %v11506_v42 = vadd.f32 %v11407_v32, %v5867_v10  ;;  %v11509_v24 = vadd.f32 %v11409_v31, %v5940_v13  ;;  %v5869_v45 = vpop.f32.mrb[10].mxu0  ;;  %v5942_v14 = vpop.f32.mrb[10].mxu1 }
 0x334   : > { %v6170_v47 = vmul.f32 %v11497_v11, %v11500_v1  ;;  %v6172_v33 = vmul.f32 %v11497_v11, %v11503_v12  ;;  %v11516_v15 = vadd.f32 %v11403_v35, %v5869_v45  ;;  %v11519_v16 = vadd.f32 %v11405_v44, %v5942_v14  ;;  %v5871_v19 = vpop.f32.mrb[11].mxu0  ;;  %v5944_v2 = vpop.f32.mrb[11].mxu1 }
 0x335   : > { %11965 = vst [vmem:[#allocation3_spill] sm:$0xff] %v11509_v24  ;;  %v6171_v54 = vmul.f32 %v11497_v11, %v11506_v42  ;;  %v6173_v22 = vmul.f32 %v11497_v11, %v11509_v24  ;;  %v11528_v28 = vadd.f32 %v11407_v32, %v5871_v19  ;;  %v11531_v21 = vadd.f32 %v11409_v31, %v5944_v2 }
 0x336   : > { %v6189_v30 = vadd.f32 %v6188_v53, %v6170_v47  ;;  %v6215_v7 = vadd.f32 %v6214_v52, %v6172_v33  ;;  %v6174_v20 = vmul.f32 %v11521_v41, %v11516_v15  ;;  %v6176_v61 = vmul.f32 %v11521_v41, %v11519_v16 }
 0x337   : > { %11966 = vst [vmem:[#allocation4_spill] sm:$0xff] %v11531_v21  ;;  %v6202_v17 = vadd.f32 %v6201_v56, %v6171_v54  ;;  %v6228_v6 = vadd.f32 %v6227_v59, %v6173_v22  ;;  %v6175_v5 = vmul.f32 %v11521_v41, %v11528_v28  ;;  %v6177_v18 = vmul.f32 %v11521_v41, %v11531_v21  ;;  %v11565_v22 = vpop.permute.xlu1 %6151 }
 0x338   : > { %v6190_v29 = vadd.f32 %v6189_v30, %v6174_v20  ;;  %v6216_v48 = vadd.f32 %v6215_v7, %v6176_v61 }
 0x339   : > { %v6203_v46 = vadd.f32 %v6202_v17, %v6175_v5  ;;  %v6229_v51 = vadd.f32 %v6228_v6, %v6177_v18  ;;  %v5875_v34 = vpop.f32.mrb[12].mxu0  ;;  %v5948_v53 = vpop.f32.mrb[12].mxu1 }
 0x33a   : > { %v11544_v52 = vadd.f32 %v11403_v35, %v5875_v34  ;;  %v11547_v56 = vadd.f32 %v11405_v44, %v5948_v53  ;;  %v5877_v59 = vpop.f32.mrb[13].mxu0  ;;  %v5950_v63 = vpop.f32.mrb[13].mxu1 }
 0x33b   : > { %v11550_v0 = vadd.f32 %v11407_v32, %v5877_v59  ;;  %v11553_v10 = vadd.f32 %v11409_v31, %v5950_v63  ;;  %v5879_v13 = vpop.f32.mrb[14].mxu0  ;;  %v5952_v45 = vpop.f32.mrb[14].mxu1 }
 0x33c   : > { %v6178_v14 = vmul.f32 %v11541_v38, %v11544_v52  ;;  %v6180_v47 = vmul.f32 %v11541_v38, %v11547_v56  ;;  %v11560_v33 = vadd.f32 %v11403_v35, %v5879_v13  ;;  %v11563_v19 = vadd.f32 %v11405_v44, %v5952_v45  ;;  %v5881_v2 = vpop.f32.mrb[15].mxu0  ;;  %v5954_v54 = vpop.f32.mrb[15].mxu1 }
 0x33d   : > { %11967 = vst [vmem:[#allocation5_spill] sm:$0xff] %v11553_v10  ;;  %v6179_v30 = vmul.f32 %v11541_v38, %v11550_v0  ;;  %v6181_v7 = vmul.f32 %v11541_v38, %v11553_v10  ;;  %v11572_v20 = vadd.f32 %v11407_v32, %v5881_v2  ;;  %v11575_v61 = vadd.f32 %v11409_v31, %v5954_v54 }
 0x33e   : > { %v6191_v35 = vadd.f32 %v6190_v29, %v6178_v14  ;;  %v6217_v17 = vadd.f32 %v6216_v48, %v6180_v47  ;;  %v6182_v44 = vmul.f32 %v11565_v22, %v11560_v33  ;;  %v6184_v6 = vmul.f32 %v11565_v22, %v11563_v19 }
 0x33f   : > { %11968 = vst [vmem:[#allocation6_spill] sm:$0xff] %v11575_v61  ;;  %v6204_v5 = vadd.f32 %v6203_v46, %v6179_v30  ;;  %v6230_v18 = vadd.f32 %v6229_v51, %v6181_v7  ;;  %v6183_v34 = vmul.f32 %v11565_v22, %v11572_v20  ;;  %v6185_v32 = vmul.f32 %v11565_v22, %v11575_v61 }
 0x340   : > { %v6192_v53 = vadd.f32 %v6191_v35, %v6182_v44  ;;  %v6218_v59 = vadd.f32 %v6217_v17, %v6184_v6 }
 0x341   : > { %v6205_v31 = vadd.f32 %v6204_v5, %v6183_v34  ;;  %v6231_v63 = vadd.f32 %v6230_v18, %v6185_v32 }
 0x342   : > { %v6193_v29 = vrot.slane %v6192_v53, 4  ;;  %v6219_v48 = vrot.slane %v6218_v59, 4 }
 0x343   : > { %v6206_v13 = vrot.slane %v6205_v31, 4  ;;  %v6232_v45 = vrot.slane %v6231_v63, 4 }
 0x344   : > { %v6194_v14 = vadd.f32 %v6193_v29, %v6192_v53  ;;  %v6220_v47 = vadd.f32 %v6219_v48, %v6218_v59 }
 0x345   : > { %v6207_v2 = vadd.f32 %v6206_v13, %v6205_v31  ;;  %v6233_v54 = vadd.f32 %v6232_v45, %v6231_v63 }
 0x346   : > { %v6195_v46 = vrot.slane %v6194_v14, 2  ;;  %v6221_v51 = vrot.slane %v6220_v47, 2 }
 0x347   : > { %v6208_v30 = vrot.slane %v6207_v2, 2  ;;  %v6234_v7 = vrot.slane %v6233_v54, 2 }
 0x348   : > { %v6196_v10 = vadd.f32 %v6195_v46, %v6194_v14  ;;  %v6222_v21 = vadd.f32 %v6221_v51, %v6220_v47 }
 0x349   : > { %v6209_v24 = vadd.f32 %v6208_v30, %v6207_v2  ;;  %v6235_v44 = vadd.f32 %v6234_v7, %v6233_v54 }
 0x34a   : > { %v6197_v61 = vrot.slane %v6196_v10, 1  ;;  %v6223_v35 = vrot.slane %v6222_v21, 1 }
 0x34b   : > { %v6210_v17 = vrot.slane %v6209_v24, 1  ;;  %v6236_v53 = vrot.slane %v6235_v44, 1 }
 0x34c   : > { %v6198_v6 = vadd.f32 %v6197_v61, %v6196_v10  ;;  %v6224_v5 = vadd.f32 %v6223_v35, %v6222_v21 }
 0x34d   : > { %v6211_v32 = vadd.f32 %v6210_v17, %v6209_v24 }
 0x34e   : > { %v6238_v18 = vmul.f32 0.0625, %v6198_v6  ;;  %v6240_v34 = vmul.f32 0.0625, %v6224_v5 }
 0x350   : > { %v6242_v59 = vsub.f32 %v11414_v8, %v6238_v18  ;;  %v6246_v31 = vsub.f32 %v11426_v39, %v6238_v18  ;;  %v6250_v63 = vsub.f32 %v11456_v27, %v6238_v18  ;;  %v6254_v29 = vsub.f32 %v11472_v26, %v6238_v18 }
 0x351   : > { %v6258_v48 = vsub.f32 %v11500_v1, %v6238_v18  ;;  %v6262_v13 = vsub.f32 %v11516_v15, %v6238_v18  ;;  %v6266_v45 = vsub.f32 %v11544_v52, %v6238_v18  ;;  %v6270_v21 = vsub.f32 %v11560_v33, %v6238_v18 }
 0x352   : > { %v11594_v10 = vmul.f32 %v6242_v59, %v11398_v49  ;;  %v11597_v24 = vmul.f32 %v6246_v31, %v11411_v50  ;;  %v11600_v8 = vmul.f32 %v6250_v63, %v11449_v40  ;;  %v11603_v39 = vmul.f32 %v6254_v29, %v11477_v37 }
 0x353   : > { %v11605_v27 = vmul.f32 0.0625, %v6211_v32  ;;  %v6237_v26 = vadd.f32 %v6236_v53, %v6235_v44  ;;  %v11608_v1 = vmul.f32 %v6258_v48, %v11497_v11  ;;  %v11611_v15 = vmul.f32 %v6262_v13, %v11521_v41 }
 0x354   : > { %v6306_v52 = vmul.f32 %v11594_v10, %v11594_v10  ;;  %v6310_v33 = vmul.f32 %v11597_v24, %v11597_v24  ;;  %v11618_v61 = vmul.f32 %v6266_v45, %v11541_v38  ;;  %v11621_v14 = vmul.f32 %v6270_v21, %v11565_v22 }
 0x355   : > { %v6314_v47 = vmul.f32 %v11600_v8, %v11600_v8  ;;  %v6318_v2 = vmul.f32 %v11603_v39, %v11603_v39  ;;  %v6244_v46 = vsub.f32 %v11417_v55, %v6240_v34  ;;  %v6248_v51 = vsub.f32 %v11429_v62, %v6240_v34 }
 0x356   : > { %v6338_v54 = vadd.f32 %v6310_v33, %v6306_v52  ;;  %v6252_v30 = vsub.f32 %v11459_v60, %v6240_v34  ;;  %v6256_v7 = vsub.f32 %v11475_v36, %v6240_v34  ;;  %v6260_v35 = vsub.f32 %v11503_v12, %v6240_v34 }
 0x357   : > { %v6264_v17 = vsub.f32 %v11519_v16, %v6240_v34  ;;  %v6268_v44 = vsub.f32 %v11547_v56, %v6240_v34  ;;  %v6272_v5 = vsub.f32 %v11563_v19, %v6240_v34  ;;  %v11636_v18 = vmul.f32 %v6244_v46, %v11398_v49 }
 0x358   : > { %v6339_v6 = vadd.f32 %v6338_v54, %v6314_v47  ;;  %v11639_v55 = vmul.f32 %v6248_v51, %v11411_v50  ;;  %v6322_v62 = vmul.f32 %v11608_v1, %v11608_v1  ;;  %v6326_v60 = vmul.f32 %v11611_v15, %v11611_v15 }
 0x359   : > { %v11646_v36 = vmul.f32 %v6252_v30, %v11449_v40  ;;  %v11649_v12 = vmul.f32 %v6256_v7, %v11477_v37  ;;  %v6330_v16 = vmul.f32 %v11618_v61, %v11618_v61  ;;  %v6334_v56 = vmul.f32 %v11621_v14, %v11621_v14 }
 0x35a   : > { %v6340_v19 = vadd.f32 %v6339_v6, %v6318_v2  ;;  %v6308_v34 = vmul.f32 %v11636_v18, %v11636_v18  ;;  %v11658_v32 = vmul.f32 %v6260_v35, %v11497_v11  ;;  %v11661_v53 = vmul.f32 %v6264_v17, %v11521_v41 }
 0x35b   : > { %v11664_v59 = vmul.f32 %v6268_v44, %v11541_v38  ;;  %v6312_v31 = vmul.f32 %v11639_v55, %v11639_v55  ;;  %v11669_v29 = vmul.f32 %v6272_v5, %v11565_v22  ;;  %v6316_v48 = vmul.f32 %v11646_v36, %v11646_v36 }
 0x35c   : > { %v6341_v63 = vadd.f32 %v6340_v19, %v6322_v62  ;;  %v6320_v13 = vmul.f32 %v11649_v12, %v11649_v12  ;;  %v6243_v21 = vsub.f32 %v11420_v57, %v11605_v27  ;;  %v6247_v52 = vsub.f32 %v11432_v3, %v11605_v27 }
 0x35d   : > { %v6364_v45 = vadd.f32 %v6312_v31, %v6308_v34  ;;  %v6251_v33 = vsub.f32 %v11462_v23, %v11605_v27  ;;  %v6255_v2 = vsub.f32 %v11484_v58, %v11605_v27  ;;  %v6259_v54 = vsub.f32 %v11506_v42, %v11605_v27 }
 0x35e   : > { %v6342_v47 = vadd.f32 %v6341_v63, %v6326_v60  ;;  %v6263_v46 = vsub.f32 %v11528_v28, %v11605_v27  ;;  %v6267_v57 = vsub.f32 %v11550_v0, %v11605_v27  ;;  %v6271_v3 = vsub.f32 %v11572_v20, %v11605_v27 }
 0x35f   : > { %v6365_v51 = vadd.f32 %v6364_v45, %v6316_v48  ;;  %v11692_v30 = vmul.f32 %v6243_v21, %v11398_v49  ;;  %v11695_v7 = vmul.f32 %v6247_v52, %v11411_v50  ;;  %v11698_v58 = vmul.f32 %v6251_v33, %v11449_v40  ;;  %v11969_v52 = vld [vmem:[#allocation3_spill] sm:$0xff] }
 0x360   : > { %v6343_v23 = vadd.f32 %v6342_v47, %v6330_v16  ;;  %v11701_v42 = vmul.f32 %v6255_v2, %v11477_v37  ;;  %v6324_v28 = vmul.f32 %v11658_v32, %v11658_v32  ;;  %v11705_v35 = vmul.f32 0.0625, %v6237_v26 }
 0x361   : > { %v6366_v0 = vadd.f32 %v6365_v51, %v6320_v13  ;;  %v6328_v27 = vmul.f32 %v11661_v53, %v11661_v53  ;;  %v6307_v17 = vmul.f32 %v11692_v30, %v11692_v30  ;;  %v6311_v44 = vmul.f32 %v11695_v7, %v11695_v7 }
 0x362   : > { %v6344_v20 = vadd.f32 %v6343_v23, %v6334_v56  ;;  %v6332_v6 = vmul.f32 %v11664_v59, %v11664_v59  ;;  %v6336_v5 = vmul.f32 %v11669_v29, %v11669_v29  ;;  %v11718_v26 = vmul.f32 %v6259_v54, %v11497_v11  ;;  %v11970_v54 = vld [vmem:[#allocation4_spill] sm:$0xff] }
 0x363   : > { %v6367_v62 = vadd.f32 %v6366_v0, %v6324_v28  ;;  %v11721_v16 = vmul.f32 %v6263_v46, %v11521_v41  ;;  %v6315_v56 = vmul.f32 %v11698_v58, %v11698_v58  ;;  %v6319_v19 = vmul.f32 %v11701_v42, %v11701_v42 }
 0x364   : > { %v6345_v60 = vrot.slane %v6344_v20, 4  ;;  %v6351_v31 = vadd.f32 %v6311_v44, %v6307_v17  ;;  %v6245_v63 = vsub.f32 %v11423_v43, %v11705_v35  ;;  %v6249_v48 = vsub.f32 %v11435_v9, %v11705_v35  ;;  %v11971_v43 = vld [vmem:[#allocation5_spill] sm:$0xff]  ;;  %v11972_v9 = vld [vmem:[#allocation6_spill] sm:$0xff] }
 0x365   : > { %v6368_v34 = vadd.f32 %v6367_v62, %v6328_v27  ;;  %v6253_v45 = vsub.f32 %v11465_v25, %v11705_v35  ;;  %v6257_v21 = vsub.f32 %v11487_v4, %v11705_v35  ;;  %v6261_v33 = vsub.f32 %v11969_v52, %v11705_v35 }
 0x366   : > { %v6346_v13 = vadd.f32 %v6345_v60, %v6344_v20  ;;  %v6352_v2 = vadd.f32 %v6351_v31, %v6315_v56  ;;  %v6265_v46 = vsub.f32 %v11970_v54, %v11705_v35  ;;  %v6269_v51 = vsub.f32 %v11971_v43, %v11705_v35 }
 0x367   : > { %v6369_v47 = vadd.f32 %v6368_v34, %v6332_v6  ;;  %v6273_v28 = vsub.f32 %v11972_v9, %v11705_v35  ;;  %v11744_v25 = vmul.f32 %v6245_v63, %v11398_v49  ;;  %v11747_v4 = vmul.f32 %v6249_v48, %v11411_v50 }
 0x368   : > { %v6347_v23 = vrot.slane %v6346_v13, 2  ;;  %v11750_v20 = vmul.f32 %v6267_v57, %v11541_v38  ;;  %v6323_v27 = vmul.f32 %v11718_v26, %v11718_v26  ;;  %v6353_v17 = vadd.f32 %v6352_v2, %v6319_v19 }
 0x369   : > { %v6370_v0 = vadd.f32 %v6369_v47, %v6336_v5  ;;  %v11755_v6 = vmul.f32 %v6271_v3, %v11565_v22  ;;  %v11758_v35 = vmul.f32 %v6253_v45, %v11449_v40  ;;  %v6327_v50 = vmul.f32 %v11721_v16, %v11721_v16 }
 0x36a   : > { %v6348_v44 = vadd.f32 %v6347_v23, %v6346_v13  ;;  %v6354_v62 = vadd.f32 %v6353_v17, %v6323_v27  ;;  %v6309_v57 = vmul.f32 %v11744_v25, %v11744_v25  ;;  %v11765_v60 = vmul.f32 %v6257_v21, %v11477_v37 }
 0x36b   : > { %v6371_v49 = vrot.slane %v6370_v0, 4  ;;  %v6313_v56 = vmul.f32 %v11747_v4, %v11747_v4  ;;  %v6331_v40 = vmul.f32 %v11750_v20, %v11750_v20  ;;  %v11772_v31 = vmul.f32 %v6261_v33, %v11497_v11 }
 0x36c   : > { %v6349_v5 = vrot.slane %v6348_v44, 1  ;;  %v6355_v19 = vadd.f32 %v6354_v62, %v6327_v50  ;;  %v6317_v63 = vmul.f32 %v11758_v35, %v11758_v35  ;;  %v6335_v37 = vmul.f32 %v11755_v6, %v11755_v6 }
 0x36d   : > { %v6372_v3 = vadd.f32 %v6371_v49, %v6370_v0  ;;  %v6377_v48 = vadd.f32 %v6313_v56, %v6309_v57  ;;  %v11779_v52 = vmul.f32 %v6265_v46, %v11521_v41  ;;  %v6321_v47 = vmul.f32 %v11765_v60, %v11765_v60 }
 0x36e   : > { %v6350_v34 = vadd.f32 %v6349_v5, %v6348_v44  ;;  %v6356_v45 = vadd.f32 %v6355_v19, %v6331_v40  ;;  %v11784_v43 = vmul.f32 %v6269_v51, %v11541_v38  ;;  %v6325_v23 = vmul.f32 %v11772_v31, %v11772_v31 }
 0x36f   : > { %v6373_v13 = vrot.slane %v6372_v3, 2  ;;  %v6378_v2 = vadd.f32 %v6377_v48, %v6317_v63  ;;  %v11789_v27 = vmul.f32 %v6273_v28, %v11565_v22  ;;  %v6329_v41 = vmul.f32 %v11779_v52, %v11779_v52 }
 0x370   : > { %v6390_v21 = vmul.f32 0.0625, %v6350_v34  ;;  %v6357_v11 = vadd.f32 %v6356_v45, %v6335_v37  ;;  %v6333_v49 = vmul.f32 %v11784_v43, %v11784_v43 }
 0x371   : > { %v6374_v54 = vadd.f32 %v6373_v13, %v6372_v3  ;;  %v6379_v9 = vadd.f32 %v6378_v2, %v6321_v47  ;;  %v6337_v50 = vmul.f32 %v11789_v27, %v11789_v27 }
 0x372   : > { %v6394_v33 = vadd.f32 1e-05, %v6390_v21  ;;  %v6358_v44 = vrot.slane %v6357_v11, 4 }
 0x373   : > { %v6375_v0 = vrot.slane %v6374_v54, 1  ;;  %v6380_v46 = vadd.f32 %v6379_v9, %v6325_v23 }
 0x374   : > { %9116 = vrsqrt.f32 %v6394_v33  ;;  %v6359_v5 = vadd.f32 %v6358_v44, %v6357_v11 }
 0x375   : > { %v6376_v17 = vadd.f32 %v6375_v0, %v6374_v54  ;;  %v6381_v38 = vadd.f32 %v6380_v46, %v6329_v41 }
 0x376   : > { %v6360_v28 = vrot.slane %v6359_v5, 2 }
 0x377   : > { %v6392_v51 = vmul.f32 0.0625, %v6376_v17  ;;  %v6382_v62 = vadd.f32 %v6381_v38, %v6333_v49 }
 0x378   : > { %v6361_v45 = vadd.f32 %v6360_v28, %v6359_v5 }
 0x379   : > { %v6396_v57 = vadd.f32 1e-05, %v6392_v51  ;;  %v6383_v56 = vadd.f32 %v6382_v62, %v6337_v50 }
 0x37b   : > { %9118 = vrsqrt.f32 %v6396_v57  ;;  %v6384_v2 = vrot.slane %v6383_v56, 4 }
 0x37e   : > { %v9117_v22 = vpop.eup %9116 }
 0x37f   : > { %v6402_v3 = vmul.f32 %v9117_v22, %v11594_v10  ;;  %v6406_v40 = vmul.f32 %v9117_v22, %v11597_v24  ;;  %v6410_v19 = vmul.f32 %v9117_v22, %v11600_v8  ;;  %v6414_v34 = vmul.f32 %v9117_v22, %v11603_v39 }
 0x380   : > { %v6418_v63 = vmul.f32 %v9117_v22, %v11608_v1  ;;  %v6422_v48 = vmul.f32 %v9117_v22, %v11611_v15  ;;  %v6426_v13 = vmul.f32 %v9117_v22, %v11618_v61  ;;  %v6430_v37 = vmul.f32 %v9117_v22, %v11621_v14 }
 0x381   : > { %v6362_v24 = vrot.slane %v6361_v45, 1  ;;  %vm6434_vm6 = vcmp.gt.f32.partialorder %v6402_v3, 0.0  ;;  %vm6438_vm7 = vcmp.gt.f32.partialorder %v6406_v40, 0.0  ;;  %vm6442_vm8 = vcmp.gt.f32.partialorder %v6410_v19, 0.0 }
 0x382   : > { %v6470_v33 = vmul.f32 0.2, %v6406_v40  ;;  %v6482_v9 = vmul.f32 0.2, %v6418_v63  ;;  %v6486_v0 = vmul.f32 0.2, %v6422_v48 }
 0x383   : > { %vm6446_vm9 = vcmp.gt.f32.partialorder %v6414_v34, 0.0  ;;  %vm6450_vm10 = vcmp.gt.f32.partialorder %v6418_v63, 0.0  ;;  %vm6454_vm11 = vcmp.gt.f32.partialorder %v6422_v48, 0.0  ;;  %vm6458_vm12 = vcmp.gt.f32.partialorder %v6426_v13, 0.0 }
 0x384   : > { %vm6462_vm13 = vcmp.gt.f32.partialorder %v6430_v37, 0.0  ;;  %v6494_v41 = vmul.f32 0.2, %v6430_v37  ;;  %v11825_v17 = vsel %vm6438_vm7, %v6406_v40, %v6470_v33  ;;  %v11832_v51 = vsel %vm6450_vm10, %v6418_v63, %v6482_v9 }
 0x385   : > { %v9119_v21 = vpop.eup %9118  ;;  %v11834_v50 = vsel %vm6454_vm11, %v6422_v48, %v6486_v0 }
 0x386   : > { %v6404_v47 = vmul.f32 %v9119_v21, %v11636_v18  ;;  %v11807_v10 = vmul.f32 %v9119_v21, %v11639_v55  ;;  %v6412_v8 = vmul.f32 %v9119_v21, %v11646_v36  ;;  %v6416_v39 = vmul.f32 %v9119_v21, %v11649_v12 }
 0x387   : > { %v6420_v1 = vmul.f32 %v9119_v21, %v11658_v32  ;;  %v11813_v15 = vmul.f32 %v9119_v21, %v11661_v53  ;;  %v11816_v61 = vmul.f32 %v9119_v21, %v11664_v59  ;;  %v11819_v14 = vmul.f32 %v9119_v21, %v11669_v29 }
 0x388   : > { %v6363_v18 = vadd.f32 %v6362_v24, %v6361_v45  ;;  %v6385_v55 = vadd.f32 %v6384_v2, %v6383_v56  ;;  %v6466_v12 = vmul.f32 0.2, %v6402_v3  ;;  %v6474_v32 = vmul.f32 0.2, %v6410_v19 }
 0x389   : > { %v6478_v53 = vmul.f32 0.2, %v6414_v34  ;;  %v6490_v29 = vmul.f32 0.2, %v6426_v13  ;;  %vm6436_vm14 = vcmp.gt.f32.partialorder %v6404_v47, 0.0  ;;  %vm6440_vm15 = vcmp.gt.f32.partialorder %v11807_v10, 0.0 }
 0x38a   : > { %v6391_v54 = vmul.f32 0.0625, %v6363_v18  ;;  %v6386_v11 = vrot.slane %v6385_v55, 2  ;;  %v11822_v46 = vsel %vm6434_vm6, %v6402_v3, %v6466_v12  ;;  %v11828_v44 = vsel %vm6442_vm8, %v6410_v19, %v6474_v32 }
 0x38b   : > { %v11830_v38 = vsel %vm6446_vm9, %v6414_v34, %v6478_v53  ;;  %v6468_v62 = vmul.f32 0.2, %v6404_v47  ;;  %v6472_v57 = vmul.f32 0.2, %v11807_v10  ;;  %v11839_v56 = vsel %vm6458_vm12, %v6426_v13, %v6490_v29 }
 0x38c   : > { %v6395_v36 = vadd.f32 1e-05, %v6391_v54  ;;  %v6387_v23 = vadd.f32 %v6386_v11, %v6385_v55  ;;  %v6476_v22 = vmul.f32 0.2, %v6412_v8  ;;  %v6480_v28 = vmul.f32 0.2, %v6416_v39 }
 0x38d   : > { %v6484_v3 = vmul.f32 0.2, %v6420_v1  ;;  %vm6444_vm0 = vcmp.gt.f32.partialorder %v6412_v8, 0.0  ;;  %vm6448_vm1 = vcmp.gt.f32.partialorder %v6416_v39, 0.0  ;;  %vm6452_vm2 = vcmp.gt.f32.partialorder %v6420_v1, 0.0 }
 0x38e   : > { %9120 = vrsqrt.f32 %v6395_v36  ;;  %v6388_v59 = vrot.slane %v6387_v23, 1  ;;  %v11842_v19 = vsel %vm6462_vm13, %v6430_v37, %v6494_v41  ;;  %vm6456_vm3 = vcmp.gt.f32.partialorder %v11813_v15, 0.0 }
 0x38f   : > { %vm6460_vm4 = vcmp.gt.f32.partialorder %v11816_v61, 0.0  ;;  %v6488_v34 = vmul.f32 0.2, %v11813_v15  ;;  %v6492_v63 = vmul.f32 0.2, %v11816_v61  ;;  %v11852_v13 = vsel %vm6436_vm14, %v6404_v47, %v6468_v62 }
 0x390   : > { %v6389_v49 = vadd.f32 %v6388_v59, %v6387_v23  ;;  %v11849_v48 = vmul.f32 0.2, %v11819_v14  ;;  %v11857_v37 = vsel %vm6440_vm15, %v11807_v10, %v6472_v57  ;;  %v11859_v21 = vsel %vm6444_vm0, %v6412_v8, %v6476_v22 }
 0x391   : > { %v11861_v24 = vsel %vm6448_vm1, %v6416_v39, %v6480_v28  ;;  %v11863_v2 = vsel %vm6452_vm2, %v6420_v1, %v6484_v3  ;;  %vm6464_vm13 = vcmp.gt.f32.partialorder %v11819_v14, 0.0 }
 0x392   : > { %v6393_v5 = vmul.f32 0.0625, %v6389_v49 }
 0x394   : > { %v6397_v40 = vadd.f32 1e-05, %v6393_v5 }
 0x396   : > { %9122 = vrsqrt.f32 %v6397_v40 }
 0x398   : > { %v9121_v45 = vpop.eup %9120 }
 0x399   : > { %v6403_v18 = vmul.f32 %v9121_v45, %v11692_v30  ;;  %v6407_v55 = vmul.f32 %v9121_v45, %v11695_v7  ;;  %v6411_v47 = vmul.f32 %v9121_v45, %v11698_v58  ;;  %v6415_v54 = vmul.f32 %v9121_v45, %v11701_v42 }
 0x39a   : > { %v6419_v11 = vmul.f32 %v9121_v45, %v11718_v26  ;;  %v6423_v10 = vmul.f32 %v9121_v45, %v11721_v16  ;;  %v6427_v36 = vmul.f32 %v9121_v45, %v11750_v20  ;;  %v6431_v8 = vmul.f32 %v9121_v45, %v11755_v6 }
 0x39b   : > { %vm6435_vm5 = vcmp.gt.f32.partialorder %v6403_v18, 0.0  ;;  %vm6439_vm6 = vcmp.gt.f32.partialorder %v6407_v55, 0.0  ;;  %vm6443_vm7 = vcmp.gt.f32.partialorder %v6411_v47, 0.0  ;;  %vm6447_vm8 = vcmp.gt.f32.partialorder %v6415_v54, 0.0 }
 0x39c   : > { %vm6451_vm9 = vcmp.gt.f32.partialorder %v6419_v11, 0.0  ;;  %vm6455_vm10 = vcmp.gt.f32.partialorder %v6423_v10, 0.0  ;;  %vm6459_vm11 = vcmp.gt.f32.partialorder %v6427_v36, 0.0  ;;  %vm6463_vm12 = vcmp.gt.f32.partialorder %v6431_v8, 0.0 }
 0x39d   : > { %v11878_v30 = vsel %vm6456_vm3, %v11813_v15, %v6488_v34  ;;  %v6467_v7 = vmul.f32 0.2, %v6403_v18  ;;  %v6471_v58 = vmul.f32 0.2, %v6407_v55  ;;  %v6475_v42 = vmul.f32 0.2, %v6411_v47 }
 0x39e   : > { %v11883_v26 = vsel %vm6460_vm4, %v11816_v61, %v6492_v63  ;;  %v6479_v16 = vmul.f32 0.2, %v6415_v54  ;;  %v6483_v20 = vmul.f32 0.2, %v6419_v11  ;;  %v6487_v6 = vmul.f32 0.2, %v6423_v10 }
 0x39f   : > { %v6491_v39 = vmul.f32 0.2, %v6427_v36  ;;  %v6495_v1 = vmul.f32 0.2, %v6431_v8  ;;  %v6499_v12 = vsel %vm6435_vm5, %v6403_v18, %v6467_v7  ;;  %v6503_v33 = vsel %vm6439_vm6, %v6407_v55, %v6471_v58 }
 0x3a0   : > { %v6507_v15 = vsel %vm6443_vm7, %v6411_v47, %v6475_v42  ;;  %v6511_v61 = vsel %vm6447_vm8, %v6415_v54, %v6479_v16  ;;  %v6515_v32 = vsel %vm6451_vm9, %v6419_v11, %v6483_v20  ;;  %v6519_v23 = vsel %vm6455_vm10, %v6423_v10, %v6487_v6  ;;  %v9123_v53 = vpop.eup %9122 }
 0x3a1   : > { %v6523_v9 = vsel %vm6459_vm11, %v6427_v36, %v6491_v39  ;;  %v6527_v0 = vsel %vm6463_vm12, %v6431_v8, %v6495_v1  ;;  %v7944_v59 = vpack.c.bf16 %v6499_v12, %v11822_v46  ;;  %v7946_v29 = vpack.c.bf16 %v6503_v33, %v11825_v17 }
 0x3a2   : > { %v7948_v41 = vpack.c.bf16 %v6507_v15, %v11828_v44  ;;  %v7950_v49 = vpack.c.bf16 %v6511_v61, %v11830_v38  ;;  %v7952_v62 = vpack.c.bf16 %v6515_v32, %v11832_v51  ;;  %v7954_v57 = vpack.c.bf16 %v6519_v23, %v11834_v50 }
 0x3a3   : > { %v7956_v5 = vpack.c.bf16 %v6523_v9, %v11839_v56  ;;  %v7958_v22 = vpack.c.bf16 %v6527_v0, %v11842_v19  ;;  %6626 = vst [vmem:[%s11890_s13] sm:$0xff] %v7944_v59  ;;  %6628 = vst [vmem:[%s11890_s13 + $0x10] sm:$0xff] %v7946_v29  ;;  %v6405_v46 = vmul.f32 %v9123_v53, %v11744_v25 }
 0x3a4   : > { %v6409_v17 = vmul.f32 %v9123_v53, %v11747_v4  ;;  %6630 = vst [vmem:[%s11890_s13 + $0x20] sm:$0xff] %v7948_v41  ;;  %6632 = vst [vmem:[%s11890_s13 + $0x30] sm:$0xff] %v7950_v49  ;;  %v6413_v44 = vmul.f32 %v9123_v53, %v11758_v35  ;;  %v6417_v38 = vmul.f32 %v9123_v53, %v11765_v60 }
 0x3a5   : > { %6634 = vst [vmem:[%s11890_s13 + $0x40] sm:$0xff] %v7952_v62  ;;  %6636 = vst [vmem:[%s11890_s13 + $0x50] sm:$0xff] %v7954_v57  ;;  %v6421_v51 = vmul.f32 %v9123_v53, %v11772_v31  ;;  %v6425_v50 = vmul.f32 %v9123_v53, %v11779_v52  ;;  %v6429_v56 = vmul.f32 %v9123_v53, %v11784_v43  ;;  %vm6437_vm14 = vcmp.gt.f32.partialorder %v6405_v46, 0.0 }
 0x3a6   : > { %6638 = vst [vmem:[%s11890_s13 + $0x60] sm:$0xff] %v7956_v5  ;;  %6640 = vst [vmem:[%s11890_s13 + $0x70] sm:$0xff] %v7958_v22  ;;  %v6433_v25 = vmul.f32 %v9123_v53, %v11789_v27  ;;  %vm6441_vm15 = vcmp.gt.f32.partialorder %v6409_v17, 0.0  ;;  %vm6445_vm0 = vcmp.gt.f32.partialorder %v6413_v44, 0.0  ;;  %vm6449_vm1 = vcmp.gt.f32.partialorder %v6417_v38, 0.0 }
 0x3a7   : > { %vm6453_vm2 = vcmp.gt.f32.partialorder %v6421_v51, 0.0  ;;  %vm6457_vm3 = vcmp.gt.f32.partialorder %v6425_v50, 0.0  ;;  %vm6461_vm4 = vcmp.gt.f32.partialorder %v6429_v56, 0.0  ;;  %v6469_v4 = vmul.f32 0.2, %v6405_v46 }
 0x3a8   : > { %vm6465_vm5 = vcmp.gt.f32.partialorder %v6433_v25, 0.0  ;;  %v6473_v35 = vmul.f32 0.2, %v6409_v17  ;;  %v6528_v60 = vsel %vm6464_vm13, %v11819_v14, %v11849_v48  ;;  %v6477_v31 = vmul.f32 0.2, %v6413_v44 }
 0x3a9   : > { %v6481_v52 = vmul.f32 0.2, %v6417_v38  ;;  %v6485_v43 = vmul.f32 0.2, %v6421_v51  ;;  %v6489_v28 = vmul.f32 0.2, %v6425_v50  ;;  %v6501_v40 = vsel %vm6437_vm14, %v6405_v46, %v6469_v4 }
 0x3aa   : > { %v6493_v27 = vmul.f32 0.2, %v6429_v56  ;;  %v6497_v3 = vmul.f32 0.2, %v6433_v25  ;;  %v6505_v19 = vsel %vm6441_vm15, %v6409_v17, %v6473_v35  ;;  %v6509_v34 = vsel %vm6445_vm0, %v6413_v44, %v6477_v31 }
 0x3ab   : > { %v6513_v63 = vsel %vm6449_vm1, %v6417_v38, %v6481_v52  ;;  %v6517_v14 = vsel %vm6453_vm2, %v6421_v51, %v6485_v43  ;;  %v6521_v48 = vsel %vm6457_vm3, %v6425_v50, %v6489_v28  ;;  %v7945_v55 = vpack.c.bf16 %v6501_v40, %v11852_v13 }
 0x3ac   : > { %v6525_v45 = vsel %vm6461_vm4, %v6429_v56, %v6493_v27  ;;  %v6529_v18 = vsel %vm6465_vm5, %v6433_v25, %v6497_v3  ;;  %v7947_v47 = vpack.c.bf16 %v6505_v19, %v11857_v37  ;;  %v7949_v54 = vpack.c.bf16 %v6509_v34, %v11859_v21 }
 0x3ad   : > { %v7951_v11 = vpack.c.bf16 %v6513_v63, %v11861_v24  ;;  %v7953_v10 = vpack.c.bf16 %v6517_v14, %v11863_v2  ;;  %v7955_v36 = vpack.c.bf16 %v6521_v48, %v11878_v30  ;;  %v7957_v8 = vpack.c.bf16 %v6525_v45, %v11883_v26  ;;  %6627 = vst [vmem:[%s11890_s13 + $0x8] sm:$0xff] %v7945_v55 }
 0x3ae   : > { %v7959_v7 = vpack.c.bf16 %v6529_v18, %v6528_v60  ;;  %6629 = vst [vmem:[%s11890_s13 + $0x18] sm:$0xff] %v7947_v47  ;;  %6631 = vst [vmem:[%s11890_s13 + $0x28] sm:$0xff] %v7949_v54 }
 0x3af   : > { %6633 = vst [vmem:[%s11890_s13 + $0x38] sm:$0xff] %v7951_v11  ;;  %6635 = vst [vmem:[%s11890_s13 + $0x48] sm:$0xff] %v7953_v10 }
 0x3b0   : > { %6637 = vst [vmem:[%s11890_s13 + $0x58] sm:$0xff] %v7955_v36  ;;  %6639 = vst [vmem:[%s11890_s13 + $0x68] sm:$0xff] %v7957_v8 }
 0x3b1   : > { %6641 = vst [vmem:[%s11890_s13 + $0x78] sm:$0xff] %v7959_v7 }
 0x3b2 PF: > { %s14_s15 = sadd.s32 1, %s9134_s15  }
 0x3b3   : > { %p11_p4 = scmp.ge.s32.totalorder %s14_s15, 4  }
 0x3b5   :  { %13 = sbr.rel (!%p11_p4) target bundleno = 1 (0x1), region = 76 }

// kernel: discriminator_forward.9
= control target key start
LH: loop header
LB: loop body
LE: loop exit
PB: predicated region body
PF: predicated region fallthrough
CT: control target
= control target key end

     0   :  { %s7623_s15 = smov 0   ;;  %s9583_s0 = inlined_call_operand.vmem [shape: bf16[2,1,6,18,512], index: 0, kind: input, shape index: {}]   ;;  %s9584_s1 = inlined_call_operand.vmem [shape: bf16[9,512,128], index: 1, kind: input, shape index: {}]   ;;  %s9585_s2 = inlined_call_operand.vmem [shape: f32[1,128], index: 2, kind: input, shape index: {}]   ;;  %s9586_s3 = inlined_call_operand.vmem [shape: f32[64,1], index: 3, kind: input, shape index: {}]   ;;  %s9587_s4 = inlined_call_operand.vmem [shape: f32[2,4,16,128], index: 4, kind: output, shape index: {}]  }
   0x1 LB: > { %s5439_s16 = sadd.s32 4294967295, %s7595_s15   ;;  %p5443_p0 = scmp.ge.s32.totalorder %s7595_s15, 1  ;;  %s7595_s15 = sphi %s7623_s15, %s14_s15  }
   0x2   : > { %p162_p1 = scmp.lt.s32.totalorder %s7595_s15, 3 }
   0x4   : > { %p163_p2 = pnand %p5443_p0, %p162_p1 }
   0x5   : > { %v7247_v0 = vld [vmem:[%s9584_s1 + $0x140] sm:$0xff] (!%p163_p2)   ;;  %v7251_v4 = vld [vmem:[%s9584_s1 + $0x148] sm:$0xff] (!%p163_p2)   ;;  %v7255_v8 = vld [vmem:[%s9584_s1 + $0x150] sm:$0xff] (!%p163_p2)   ;;  %p188_p3 = scmp.lt.s32.totalorder (!%p163_p2), %s5439_s16, 1  ;;  %vm288_vm0 = vsmask.f32 (!%p163_p2), 3328 }
   0x6   : > { %166 = sbr.rel (%p163_p2) target bundleno = 573 (0x23d), region = 36  ;;  %v7248_v1 = vld [vmem:[%s9584_s1 + $0x1c0] sm:$0xff] (!%p163_p2)   ;;  %6515 = vmatprep.subr.bf16.mxu0 (!%p163_p2), %v7247_v0  ;;  %v7252_v5 = vld [vmem:[%s9584_s1 + $0x1c8] sm:$0xff] (!%p163_p2)   ;;  %v7256_v9 = vld [vmem:[%s9584_s1 + $0x1d0] sm:$0xff] (!%p163_p2)   ;;  %vm289_vm1 = vsmask.f32 (!%p163_p2), 7440 }
   0x7   : > { %v7249_v2 = vld [vmem:[%s9584_s1 + $0x100] sm:$0xff] (!%p163_p2)   ;;  %6555 = vmatprep.subr.bf16.mxu1 (!%p163_p2), %v7248_v1  ;;  %v7253_v6 = vld [vmem:[%s9584_s1 + $0x108] sm:$0xff] (!%p163_p2)   ;;  %v7257_v10 = vld [vmem:[%s9584_s1 + $0x110] sm:$0xff] (!%p163_p2)   ;;  %vm1360_vm3 = vcmask (!%p163_p2), 1042432   ;;  %vm1361_vm4 = vcmask (!%p163_p2), 1046532  }
   0x8   : > { %v7250_v3 = vld [vmem:[%s9584_s1 + $0x180] sm:$0xff] (!%p163_p2)   ;;  %6516 = vmatpush3.bf16.msra.mxu0 (!%p163_p2), %v7249_v2  ;;  %v7254_v7 = vld [vmem:[%s9584_s1 + $0x188] sm:$0xff] (!%p163_p2)   ;;  %v7258_v11 = vld [vmem:[%s9584_s1 + $0x190] sm:$0xff] (!%p163_p2)  }
   0x9   : > { %6556 = vmatpush3.bf16.msra.mxu1 (!%p163_p2), %v7250_v3  ;;  %6517 = vmatprep.subr.bf16.mxu0 (!%p163_p2), %v7251_v4  ;;  %v7259_v12 = vld [vmem:[%s9584_s1 + $0x158] sm:$0xff] (!%p163_p2)   ;;  %v7263_v16 = vld [vmem:[%s9584_s1 + $0x160] sm:$0xff] (!%p163_p2)   ;;  %v7267_v20 = vld [vmem:[%s9584_s1 + $0x168] sm:$0xff] (!%p163_p2)  }
   0xa   : > { %6557 = vmatprep.subr.bf16.mxu1 (!%p163_p2), %v7252_v5  ;;  %v7260_v13 = vld [vmem:[%s9584_s1 + $0x1d8] sm:$0xff] (!%p163_p2)   ;;  %v7264_v17 = vld [vmem:[%s9584_s1 + $0x1e0] sm:$0xff] (!%p163_p2)   ;;  %v7268_v21 = vld [vmem:[%s9584_s1 + $0x1e8] sm:$0xff] (!%p163_p2)  }
   0xb   : > { %v7261_v14 = vld [vmem:[%s9584_s1 + $0x118] sm:$0xff] (!%p163_p2)   ;;  %v7265_v18 = vld [vmem:[%s9584_s1 + $0x120] sm:$0xff] (!%p163_p2)   ;;  %v7269_v22 = vld [vmem:[%s9584_s1 + $0x128] sm:$0xff] (!%p163_p2)  }
   0xc   : > { %6518 = vmatpush3.bf16.msra.mxu0 (!%p163_p2), %v7253_v6  ;;  %v7262_v15 = vld [vmem:[%s9584_s1 + $0x198] sm:$0xff] (!%p163_p2)   ;;  %v7266_v19 = vld [vmem:[%s9584_s1 + $0x1a0] sm:$0xff] (!%p163_p2)   ;;  %v7270_v23 = vld [vmem:[%s9584_s1 + $0x1a8] sm:$0xff] (!%p163_p2)  }
   0xd   : > { %6558 = vmatpush3.bf16.msra.mxu1 %v7254_v7  ;;  %6519 = vmatprep.subr.bf16.mxu0 %v7255_v8  ;;  %s9593_s16 = smov (!%p188_p3, %s5439_s16), 1  ;;  %v7271_v24 = vld [vmem:[%s9584_s1 + $0x170] sm:$0xff]   ;;  %v7275_v28 = vld [vmem:[%s9584_s1 + $0x178] sm:$0xff]   ;;  %v7279_v54 = vld [vmem:[%s9584_s1 + $0x40] sm:$0xff]  }
   0xe   : > { %6559 = vmatprep.subr.bf16.mxu1 %v7256_v9  ;;  %v7272_v25 = vld [vmem:[%s9584_s1 + $0x1f0] sm:$0xff]   ;;  %s7235_s21 = smul.u32 288, %s9593_s16  ;;  %v7276_v29 = vld [vmem:[%s9584_s1 + $0x1f8] sm:$0xff]   ;;  %vm7772_vm2 = vmor %vm288_vm0, %vm289_vm1  ;;  %s6514_s11 = sshll.u32 %s9593_s16, 6 }
   0xf   : > { %v7273_v26 = vld [vmem:[%s9584_s1 + $0x130] sm:$0xff]   ;;  %v7277_v30 = vld [vmem:[%s9584_s1 + $0x138] sm:$0xff]   ;;  %v7280_v60 = vld [vmem:[%s9584_s1 + $0xc0] sm:$0xff]   ;;  %s9557_s14 = scalar_lea.vmem %s9587_s4, %s6514_s11 }
  0x10   : > { %6520 = vmatpush3.bf16.msra.mxu0 %v7257_v10  ;;  %v7274_v27 = vld [vmem:[%s9584_s1 + $0x1b0] sm:$0xff]   ;;  %s7731_s6 = scalar_lea.vmem %s9583_s0, %s7235_s21  ;;  %v7278_v31 = vld [vmem:[%s9584_s1 + $0x1b8] sm:$0xff]   ;;  %v7281_v9 = vld [vmem:[%s9584_s1] sm:$0xff]  }
  0x11   : > { %6560 = vmatpush3.bf16.msra.mxu1 %v7258_v11  ;;  %6521 = vmatprep.subr.bf16.mxu0 %v7259_v12  ;;  %v7740_v32 = vld [vmem:[%s7731_s6] sm:$0xff]  ;;  %v7743_v33 = vld [vmem:[%s7731_s6 + $0x10] sm:$0xff]  ;;  %v7752_v38 = vld [vmem:[%s7731_s6 + $0x8] sm:$0xff] }
  0x12   : > { %6561 = vmatprep.subr.bf16.mxu1 %v7260_v13  ;;  %v7746_v34 = vld [vmem:[%s7731_s6 + $0x20] sm:$0x11]  ;;  %v292_v35 = vshrl.u32 %v7740_v32, 16  ;;  %v295_v36 = vshll.u32 %v7740_v32, 16  ;;  %v301_v37 = vshll.u32 %v7743_v33, 16  ;;  %v319_v39 = vshrl.u32 %v7743_v33, 16  ;;  %vm7851_vm5 = vmor %vm1360_vm3, %vm1361_vm4 }
  0x13   : > { %v325_v40 = vshll.u32 %v7746_v34, 16  ;;  %v7757_v41 = vld [vmem:[%s7731_s6 + $0x18] sm:$0xff]  ;;  %v7760_v42 = vld [vmem:[%s7731_s6 + $0x28] sm:$0x11]  ;;  %v306_v46 = vshrl.u32 %v7752_v38, 16  ;;  %v309_v48 = vshll.u32 %v7752_v38, 16 }
  0x14   : > { %6522 = vmatpush3.bf16.msra.mxu0 %v7261_v14  ;;  %v294_v43 = vrot.slane %v292_v35, 4  ;;  %v297_v44 = vrot.slane %v295_v36, 5  ;;  %v303_v45 = vrot.slane %v301_v37, 5  ;;  %v321_v47 = vrot.slane %v319_v39, 4  ;;  %v7282_v12 = vld [vmem:[%s9584_s1 + $0x80] sm:$0xff]   ;;  %v7283_v13 = vld [vmem:[%s9584_s1 + $0x48] sm:$0xff]  }
  0x15   : > { %6562 = vmatpush3.bf16.msra.mxu1 %v7262_v15  ;;  %6523 = vmatprep.subr.bf16.mxu0 %v7263_v16  ;;  %v315_v49 = vshll.u32 %v7757_v41, 16  ;;  %v308_v51 = vrot.slane %v306_v46, 4  ;;  %v329_v52 = vshrl.u32 %v7757_v41, 16  ;;  %v335_v53 = vshll.u32 %v7760_v42, 16  ;;  %v7284_v16 = vld [vmem:[%s9584_s1 + $0xc8] sm:$0xff]  }
  0x16   : > { %6563 = vmatprep.subr.bf16.mxu1 %v7264_v17  ;;  %v298_v50 = vor.u32 %v297_v44, %v294_v43  ;;  %v322_v56 = vor.u32 %v321_v47, %v303_v45  ;;  %v327_v57 = vrot.slane %v325_v40, 5  ;;  %v311_v58 = vrot.slane %v309_v48, 5  ;;  %v7285_v17 = vld [vmem:[%s9584_s1 + $0x8] sm:$0xff]   ;;  %v7827_v35 = vld [vmem:[%s7731_s6 + $0x58] sm:$0x11] }
  0x17   : > { %v317_v59 = vrot.slane %v315_v49, 5  ;;  %v331_v62 = vrot.slane %v329_v52, 4  ;;  %v337_v1 = vrot.slane %v335_v53, 5  ;;  %v1372_v10 = vrot.slane %v7746_v34, 5  ;;  %v7286_v37 = vld [vmem:[%s9584_s1 + $0x88] sm:$0xff]   ;;  %v7287_v53 = vld [vmem:[%s9584_s1 + $0x50] sm:$0xff]  }
  0x18   : > { %6524 = vmatpush3.bf16.msra.mxu0 %v7265_v18  ;;  %v299_v61 = vrot.slane %v298_v50, 4  ;;  %v323_v63 = vrot.slane %v322_v56, 4  ;;  %v312_v0 = vor.u32 %v311_v58, %v308_v51  ;;  %v1375_v15 = vrot.slane %v7760_v42, 5  ;;  %v7805_v18 = vld [vmem:[%s7731_s6 + $0x30] sm:$0xff]  ;;  %v7892_v34 = vld [vmem:[%s7731_s6 + $0x80] sm:$0x11] }
  0x19   : > { %6564 = vmatpush3.bf16.msra.mxu1 %v7266_v19  ;;  %6525 = vmatprep.subr.bf16.mxu0 %v7267_v20  ;;  %v332_v3 = vor.u32 %v331_v62, %v317_v59  ;;  %v7808_v19 = vld [vmem:[%s7731_s6 + $0x40] sm:$0xff]  ;;  %v1365_v20 = vrot.slane %v7743_v33, 5  ;;  %v383_v56 = vshll.u32 %v7827_v35, 16  ;;  %v7290_v62 = vld [vmem:[%s9584_s1 + $0x90] sm:$0xff]   ;;  %v7300_v42 = vld [vmem:[%s9584_s1 + $0xe8] sm:$0xff]  }
  0x1a   : > { %6565 = vmatprep.subr.bf16.mxu1 %v7268_v21  ;;  %v304_v2 = vsel %vm7772_vm2, %v299_v61, %v303_v45  ;;  %v328_v4 = vsel %vm7772_vm2, %v323_v63, %v327_v57  ;;  %v313_v5 = vrot.slane %v312_v0, 4  ;;  %v1369_v21 = vrot.slane %v7757_v41, 5  ;;  %v7288_v57 = vld [vmem:[%s9584_s1 + $0xd0] sm:$0xff]  }
  0x1b   : > { %v5511_v6 = vcombine.low %v304_v2, %v328_v4  ;;  %v5512_v7 = vcombine.high %v304_v2, %v328_v4  ;;  %v333_v8 = vrot.slane %v332_v3, 4  ;;  %v7289_v61 = vld [vmem:[%s9584_s1 + $0x10] sm:$0xff]   ;;  %v385_v0 = vrot.slane %v383_v56, 5 }
  0x1c   : > { %6526 = vmatpush3.bf16.msra.mxu0 %v7269_v22  ;;  %v318_v11 = vsel %vm7772_vm2, %v313_v5, %v317_v59  ;;  %v7291_v5 = vld [vmem:[%s9584_s1 + $0x58] sm:$0xff]  }
  0x1d   : > { %6566 = vmatpush3.bf16.msra.mxu1 %v7270_v23  ;;  %6527 = vmatprep.subr.bf16.mxu0 %v7271_v24  ;;  %v338_v14 = vsel %vm7772_vm2, %v333_v8, %v337_v1  ;;  %v7813_v24 = vld [vmem:[%s7731_s6 + $0x50] sm:$0x11]  ;;  %v1371_v8 = vrot.slane %v1365_v20, 4 }
  0x1e   : > { %6567 = vmatprep.subr.bf16.mxu1 %v7272_v25  ;;  %836 = vmatprep.mubr.bf16.mxu0 %v5512_v7  ;;  %v5513_v22 = vcombine.low %v318_v11, %v338_v14  ;;  %v5514_v23 = vcombine.high %v318_v11, %v338_v14  ;;  %v340_v25 = vshrl.u32 %v7805_v18, 16  ;;  %v7292_v7 = vld [vmem:[%s9584_s1 + $0xd8] sm:$0xff]  }
  0x1f   : > { %v7293_v14 = vld [vmem:[%s9584_s1 + $0x18] sm:$0xff]  }
  0x20   : > { %6528 = vmatpush3.bf16.msra.mxu0 %v7273_v26  ;;  %v343_v26 = vshll.u32 %v7805_v18, 16  ;;  %901 = vmatprep.mubr.bf16.mxu1 %v5514_v23  ;;  %v342_v39 = vrot.slane %v340_v25, 4  ;;  %v7886_v25 = vld [vmem:[%s7731_s6 + $0x60] sm:$0xff] }
  0x21   : > { %6568 = vmatpush3.bf16.msra.mxu1 %v7274_v27  ;;  %6529 = vmatprep.subr.bf16.mxu0 %v7275_v28  ;;  %v7818_v27 = vld [vmem:[%s7731_s6 + $0x38] sm:$0xff]  ;;  %v7821_v28 = vld [vmem:[%s7731_s6 + $0x48] sm:$0xff] }
  0x22   : > { %6569 = vmatprep.subr.bf16.mxu1 %v7276_v29  ;;  %v349_v29 = vshll.u32 %v7808_v19, 16  ;;  %v354_v36 = vshrl.u32 %v7818_v27, 16  ;;  %v345_v40 = vrot.slane %v343_v26, 5  ;;  %v357_v43 = vshll.u32 %v7818_v27, 16  ;;  %v7889_v26 = vld [vmem:[%s7731_s6 + $0x70] sm:$0xff] }
  0x23   : > { %v363_v44 = vshll.u32 %v7821_v28, 16  ;;  %v377_v52 = vshrl.u32 %v7821_v28, 16 }
  0x24   : > { %6530 = vmatpush3.bf16.msra.mxu0 %v7277_v30  ;;  %v367_v30 = vshrl.u32 %v7808_v19, 16  ;;  %v351_v45 = vrot.slane %v349_v29, 5  ;;  %v356_v48 = vrot.slane %v354_v36, 4  ;;  %v346_v49 = vor.u32 %v345_v40, %v342_v39  ;;  %v7899_v39 = vld [vmem:[%s7731_s6 + $0x68] sm:$0xff]  ;;  %v7902_v40 = vld [vmem:[%s7731_s6 + $0x78] sm:$0xff] }
  0x25   : > { %6570 = vmatpush3.bf16.msra.mxu1 %v7278_v31  ;;  %6595 = vmatprep.subr.bf16.mxu0 %v7279_v54  ;;  %v373_v31 = vshll.u32 %v7813_v24, 16  ;;  %v359_v50 = vrot.slane %v357_v43, 5  ;;  %v365_v51 = vrot.slane %v363_v44, 5  ;;  %v1386_v29 = vrot.slane %v7813_v24, 5  ;;  %v7905_v43 = vld [vmem:[%s7731_s6 + $0x88] sm:$0x11] }
  0x26   : > { %6635 = vmatprep.subr.bf16.mxu1 %v7280_v60  ;;  %v369_v46 = vrot.slane %v367_v30, 4  ;;  %v347_v58 = vrot.slane %v346_v49, 4  ;;  %v379_v60 = vrot.slane %v377_v52, 4  ;;  %v388_v36 = vshrl.u32 %v7886_v25, 16 }
  0x27   : > { %837 = vmatmul.mubr.bf16.vlgmr.msra.gmra.mrb[0].mxu0 %v5511_v6  ;;  %v375_v47 = vrot.slane %v373_v31, 5  ;;  %v360_v59 = vor.u32 %v359_v50, %v356_v48  ;;  %v397_v44 = vshll.u32 %v7889_v26, 16  ;;  %v405_v50 = vshll.u32 %v7899_v39, 16 }
  0x28   : > { %6596 = vmatpush3.bf16.msra.mxu0 %v7281_v9  ;;  %902 = vmatmul.mubr.bf16.vlgmr.msra.gmra.mrb[0].mxu1 %v5513_v22  ;;  %v370_v54 = vor.u32 %v369_v46, %v351_v45  ;;  %v352_v2 = vsel %vm7772_vm2, %v347_v58, %v351_v45  ;;  %v380_v4 = vor.u32 %v379_v60, %v365_v51  ;;  %v1374_v22 = vrot.slane %v1369_v21, 4  ;;  %v7296_v58 = vld [vmem:[%s9584_s1 + $0xe0] sm:$0xff]  }
  0x29   : > { %6597 = vmatprep.subr.bf16.mxu0 %v7283_v13  ;;  %6636 = vmatpush3.bf16.msra.mxu1 %v7282_v12  ;;  %v361_v3 = vrot.slane %v360_v59, 4  ;;  %v415_v45 = vshrl.u32 %v7889_v26, 16  ;;  %v421_v46 = vshll.u32 %v7892_v34, 16  ;;  %v390_v48 = vrot.slane %v388_v36, 4  ;;  %v7301_v36 = vld [vmem:[%s9584_s1 + $0x28] sm:$0xff]  }
  0x2a   : > { %6637 = vmatprep.subr.bf16.mxu1 %v7284_v16  ;;  %v371_v63 = vrot.slane %v370_v54, 4  ;;  %v381_v12 = vrot.slane %v380_v4, 4  ;;  %v7294_v16 = vld [vmem:[%s9584_s1 + $0x98] sm:$0xff]   ;;  %v399_v52 = vrot.slane %v397_v44, 5  ;;  %v407_v60 = vrot.slane %v405_v50, 5  ;;  %v7954_v44 = vld [vmem:[%s7731_s6 + $0x90] sm:$0xff] }
  0x2b   : > { %v366_v11 = vsel %vm7772_vm2, %v361_v3, %v365_v51  ;;  %v411_v51 = vshll.u32 %v7902_v40, 16  ;;  %v423_v54 = vrot.slane %v421_v46, 5  ;;  %v7298_v3 = vld [vmem:[%s9584_s1 + $0xa0] sm:$0xff]   ;;  %v1383_v46 = vrot.slane %v7821_v28, 5  ;;  %v7970_v50 = vld [vmem:[%s7731_s6 + $0xb0] sm:$0x11] }
  0x2c   : > { %6598 = vmatpush3.bf16.msra.mxu0 %v7285_v17  ;;  %v376_v6 = vsel %vm7772_vm2, %v371_v63, %v375_v47  ;;  %v7879_v17 = vsel %vm7851_vm5, %v1371_v8, %v1372_v10  ;;  %v386_v23 = vsel %vm7772_vm2, %v381_v12, %v385_v0  ;;  %v1379_v10 = vrot.slane %v7808_v19, 5  ;;  %v7297_v63 = vld [vmem:[%s9584_s1 + $0x20] sm:$0xff]  }
  0x2d   : > { %6599 = vmatprep.subr.bf16.mxu0 %v7287_v53  ;;  %6638 = vmatpush3.bf16.msra.mxu1 %v7286_v37  ;;  %v5516_v9 = vcombine.high %v352_v2, %v376_v6  ;;  %v5515_v13 = vcombine.low %v352_v2, %v376_v6  ;;  %v5518_v30 = vcombine.high %v366_v11, %v386_v23  ;;  %v391_v37 = vshll.u32 %v7886_v25, 16 }
  0x2e   : > { %6639 = vmatprep.subr.bf16.mxu1 %v7288_v57  ;;  %v5517_v31 = vcombine.low %v366_v11, %v386_v23  ;;  %v402_v47 = vshrl.u32 %v7899_v39, 16  ;;  %v417_v53 = vrot.slane %v415_v45, 4  ;;  %v7295_v57 = vld [vmem:[%s9584_s1 + $0x60] sm:$0xff]   ;;  %v431_v2 = vshll.u32 %v7905_v43, 16 }
  0x2f   : > { %844 = vmatprep.mubr.bf16.mxu0 %v5516_v9  ;;  %909 = vmatprep.mubr.bf16.mxu1 %v5518_v30  ;;  %v393_v49 = vrot.slane %v391_v37, 5  ;;  %v7931_v9 = vsel %vm7851_vm5, %v1374_v22, %v1375_v15  ;;  %v1385_v15 = vrot.slane %v1379_v10, 4  ;;  %v7302_v37 = vld [vmem:[%s9584_s1 + $0xa8] sm:$0xff]   ;;  %v436_v24 = vshrl.u32 %v7954_v44, 16 }
  0x30   : > { %6600 = vmatpush3.bf16.msra.mxu0 %v7289_v61  ;;  %910 = vmatmul.mubr.bf16.gmra.mrb[4].mxu1 %v5517_v31  ;;  %v404_v56 = vrot.slane %v402_v47, 4  ;;  %v413_v61 = vrot.slane %v411_v51, 5  ;;  %v418_v0 = vor.u32 %v417_v53, %v399_v52  ;;  %v433_v8 = vrot.slane %v431_v2, 5  ;;  %v7975_v51 = vld [vmem:[%s7731_s6 + $0x98] sm:$0xff] }
  0x31   : > { %6601 = vmatprep.subr.bf16.mxu0 %v7291_v5  ;;  %6640 = vmatpush3.bf16.msra.mxu1 %v7290_v62  ;;  %v394_v59 = vor.u32 %v393_v49, %v390_v48  ;;  %v425_v62 = vshrl.u32 %v7902_v40, 16  ;;  %v7960_v45 = vsel %vm7851_vm5, %v1385_v15, %v1386_v29  ;;  %v1389_v47 = vrot.slane %v7827_v35, 5  ;;  %v7967_v49 = vld [vmem:[%s7731_s6 + $0xa0] sm:$0xff] }
  0x32   : > { %845 = vmatmul.mubr.bf16.gmra.mrb[4].mxu0 %v5515_v13  ;;  %6641 = vmatprep.subr.bf16.mxu1 %v7292_v7  ;;  %v408_v5 = vor.u32 %v407_v60, %v404_v56  ;;  %v419_v7 = vrot.slane %v418_v0, 4  ;;  %v439_v29 = vshll.u32 %v7954_v44, 16  ;;  %v445_v35 = vshll.u32 %v7967_v49, 16  ;;  %v7980_v56 = vld [vmem:[%s7731_s6 + $0xa8] sm:$0xff] }
  0x33   : > { %v395_v4 = vrot.slane %v394_v59, 4  ;;  %v427_v6 = vrot.slane %v425_v62, 4  ;;  %v438_v59 = vrot.slane %v436_v24, 4  ;;  %v450_v62 = vshrl.u32 %v7975_v51, 16 }
  0x34   : > { %6602 = vmatpush3.bf16.msra.mxu0 %v7293_v14  ;;  %v409_v12 = vrot.slane %v408_v5, 4  ;;  %v7299_v14 = vld [vmem:[%s9584_s1 + $0x68] sm:$0xff]   ;;  %v441_v60 = vrot.slane %v439_v29, 5  ;;  %v453_v2 = vshll.u32 %v7975_v51, 16 }
  0x35   : > { %6642 = vmatpush3.bf16.msra.mxu1 %v7294_v16  ;;  %6603 = vmatprep.subr.bf16.mxu0 %v7295_v57  ;;  %v400_v11 = vsel %vm7772_vm2, %v395_v4, %v399_v52  ;;  %v428_v13 = vor.u32 %v427_v6, %v413_v61  ;;  %v424_v16 = vsel %vm7772_vm2, %v419_v7, %v423_v54  ;;  %v463_v54 = vshrl.u32 %v7967_v49, 16  ;;  %v7983_v57 = vld [vmem:[%s7731_s6 + $0xb8] sm:$0x11] }
  0x36   : > { %6643 = vmatprep.subr.bf16.mxu1 %v7296_v58  ;;  %v5520_v22 = vcombine.high %v400_v11, %v424_v16  ;;  %v414_v23 = vsel %vm7772_vm2, %v409_v12, %v413_v61  ;;  %v5519_v31 = vcombine.low %v400_v11, %v424_v16  ;;  %v7303_v58 = vld [vmem:[%s9584_s1 + $0x70] sm:$0xff]   ;;  %v469_v61 = vshll.u32 %v7970_v50, 16 }
  0x37   : > { %v429_v30 = vrot.slane %v428_v13, 4  ;;  %v465_v0 = vrot.slane %v463_v54, 4  ;;  %v442_v4 = vor.u32 %v441_v60, %v438_v59  ;;  %v452_v6 = vrot.slane %v450_v62, 4  ;;  %v7305_v16 = vld [vmem:[%s9584_s1 + $0x30] sm:$0xff]  }
  0x38   : > { %6604 = vmatpush3.bf16.msra.mxu0 %v7297_v63  ;;  %852 = vmatprep.mubr.bf16.mxu0 %v5520_v22  ;;  %v447_v63 = vrot.slane %v445_v35, 5  ;;  %v471_v5 = vrot.slane %v469_v61, 5  ;;  %v473_v7 = vshrl.u32 %v7980_v56, 16  ;;  %v455_v12 = vrot.slane %v453_v2, 5  ;;  %v7309_v61 = vld [vmem:[%s9584_s1 + $0x38] sm:$0xff]  }
  0x39   : > { %6644 = vmatpush3.bf16.msra.mxu1 %v7298_v3  ;;  %6605 = vmatprep.subr.bf16.mxu0 %v7299_v14  ;;  %v434_v48 = vsel %vm7772_vm2, %v429_v30, %v433_v8  ;;  %v459_v3 = vshll.u32 %v7980_v56, 16  ;;  %v7304_v8 = vld [vmem:[%s9584_s1 + $0xf0] sm:$0xff]   ;;  %v479_v14 = vshll.u32 %v7983_v57, 16  ;;  %v5560_v62 = vcombine.high %v7740_v32, %v7743_v33 }
  0x3a   : > { %6645 = vmatprep.subr.bf16.mxu1 %v7300_v42  ;;  %v5522_v52 = vcombine.high %v414_v23, %v434_v48  ;;  %853 = vmatmul.mubr.bf16.gmra.mrb[8].mxu0 %v5519_v31  ;;  %v5521_v53 = vcombine.low %v414_v23, %v434_v48  ;;  %v466_v11 = vor.u32 %v465_v0, %v447_v63  ;;  %v443_v42 = vrot.slane %v442_v4, 4 }
  0x3b   : > { %v461_v13 = vrot.slane %v459_v3, 5  ;;  %v475_v15 = vrot.slane %v473_v7, 4  ;;  %v456_v23 = vor.u32 %v455_v12, %v452_v6  ;;  %v481_v30 = vrot.slane %v479_v14, 5  ;;  %v7315_v6 = vld [vmem:[%s9584_s1 + $0x240] sm:$0xff]  }
  0x3c   : > { %6606 = vmatpush3.bf16.msra.mxu0 %v7301_v36  ;;  %917 = vmatprep.mubr.bf16.mxu1 %v5522_v52  ;;  %v467_v22 = vrot.slane %v466_v11, 4  ;;  %v448_v31 = vsel %vm7772_vm2, %v443_v42, %v447_v63  ;;  %v1388_v48 = vrot.slane %v1383_v46, 4  ;;  %v7307_v52 = vld [vmem:[%s9584_s1 + $0x78] sm:$0xff]   ;;  %v1393_v63 = vrot.slane %v7889_v26, 5  ;;  %v7317_v42 = vld [vmem:[%s9584_s1 + $0x200] sm:$0xff]  }
  0x3d   : > { %6646 = vmatpush3.bf16.msra.mxu1 %v7302_v37  ;;  %6607 = vmatprep.subr.bf16.mxu0 %v7303_v58  ;;  %v476_v36 = vor.u32 %v475_v15, %v461_v13  ;;  %v7306_v37 = vld [vmem:[%s9584_s1 + $0xb0] sm:$0xff]   ;;  %v457_v29 = vrot.slane %v456_v23, 4  ;;  %v7308_v58 = vld [vmem:[%s9584_s1 + $0xf8] sm:$0xff]   ;;  %v1400_v2 = vrot.slane %v7892_v34, 5  ;;  %v1397_v34 = vrot.slane %v7902_v40, 5 }
  0x3e   : > { %918 = vmatmul.mubr.bf16.gmra.mrb[8].mxu1 %v5521_v53  ;;  %6647 = vmatprep.subr.bf16.mxu1 %v7304_v8  ;;  %v472_v24 = vsel %vm7772_vm2, %v467_v22, %v471_v5  ;;  %v8017_v59 = vsel %vm7851_vm5, %v1388_v48, %v1389_v47  ;;  %v7310_v47 = vld [vmem:[%s9584_s1 + $0xb8] sm:$0xff]   ;;  %v5562_v5 = vcombine.high %v7752_v38, %v7757_v41  ;;  %v1399_v7 = vrot.slane %v1393_v63, 4  ;;  %v7316_v8 = vld [vmem:[%s9584_s1 + $0x2c0] sm:$0xff]  }
  0x3f   : > { %v5524_v53 = vcombine.high %v448_v31, %v472_v24  ;;  %v477_v35 = vrot.slane %v476_v36, 4  ;;  %v5523_v54 = vcombine.low %v448_v31, %v472_v24  ;;  %v462_v60 = vsel %vm7772_vm2, %v457_v29, %v461_v13  ;;  %v7318_v31 = vld [vmem:[%s9584_s1 + $0x280] sm:$0xff]   ;;  %v7321_v24 = vld [vmem:[%s9584_s1 + $0x208] sm:$0xff]  }
  0x40   : > { %6608 = vmatpush3.bf16.msra.mxu0 %v7305_v16  ;;  %v8046_v11 = vsel %vm7851_vm5, %v1399_v7, %v1400_v2  ;;  %v1403_v12 = vrot.slane %v7905_v43, 5  ;;  %v1402_v13 = vrot.slane %v1397_v34, 4  ;;  %v5559_v14 = vcombine.low %v7740_v32, %v7743_v33  ;;  %v7319_v32 = vld [vmem:[%s9584_s1 + $0x248] sm:$0xff]   ;;  %v7333_v2 = vld [vmem:[%s9584_s1 + $0x218] sm:$0xff]   ;;  %v7359_v33 = vld [vmem:[%s9584_s1 + $0x340] sm:$0xff]  }
  0x41   : > { %6648 = vmatpush3.bf16.msra.mxu1 %v7306_v37  ;;  %6609 = vmatprep.subr.bf16.mxu0 %v7307_v52  ;;  %v482_v0 = vsel %vm7772_vm2, %v477_v35, %v481_v30  ;;  %v1407_v16 = vrot.slane %v7967_v49, 5  ;;  %v5564_v15 = vcombine.high %v7805_v18, %v7808_v19  ;;  %v1414_v22 = vrot.slane %v7970_v50, 5  ;;  %v7320_v50 = vld [vmem:[%s9584_s1 + $0x2c8] sm:$0xff]   ;;  %v7327_v52 = vld [vmem:[%s9584_s1 + $0x250] sm:$0xff]  }
  0x42   : > { %860 = vmatprep.mubr.bf16.mxu0 %v5524_v53  ;;  %6649 = vmatprep.subr.bf16.mxu1 %v7308_v58  ;;  %v5526_v3 = vcombine.high %v462_v60, %v482_v0  ;;  %v5525_v4 = vcombine.low %v462_v60, %v482_v0  ;;  %v8061_v43 = vsel %vm7851_vm5, %v1402_v13, %v1403_v12  ;;  %v1411_v36 = vrot.slane %v7980_v56, 5  ;;  %v7322_v53 = vld [vmem:[%s9584_s1 + $0x288] sm:$0xff]   ;;  %v7329_v58 = vld [vmem:[%s9584_s1 + $0x210] sm:$0xff]   ;;  %v7331_v60 = vld [vmem:[%s9584_s1 + $0x258] sm:$0xff]  }
  0x43   : > { %861 = vmatmul.mubr.bf16.gmra.mrb[12].mxu0 %v5523_v54  ;;  %v1413_v23 = vrot.slane %v1407_v16, 4  ;;  %v5561_v30 = vcombine.low %v7752_v38, %v7757_v41  ;;  %v5566_v37 = vcombine.high %v7818_v27, %v7821_v28  ;;  %v1417_v38 = vrot.slane %v7983_v57, 5  ;;  %v7328_v54 = vld [vmem:[%s9584_s1 + $0x2d0] sm:$0xff]   ;;  %v7332_v0 = vld [vmem:[%s9584_s1 + $0x2d8] sm:$0xff]   ;;  %v7343_v7 = vld [vmem:[%s9584_s1 + $0x268] sm:$0xff]  }
  0x44   : > { %6610 = vmatpush3.bf16.msra.mxu0 %v7309_v61  ;;  %925 = vmatprep.mubr.bf16.mxu1 %v5526_v3  ;;  %v1416_v29 = vrot.slane %v1411_v36, 4  ;;  %v5563_v35 = vcombine.low %v7805_v18, %v7808_v19  ;;  %v5568_v61 = vcombine.high %v7886_v25, %v7889_v26  ;;  %v5565_v18 = vcombine.low %v7818_v27, %v7821_v28  ;;  %v7339_v27 = vld [vmem:[%s9584_s1 + $0x260] sm:$0xff]   ;;  %v7334_v3 = vld [vmem:[%s9584_s1 + $0x298] sm:$0xff]   ;;  %v7344_v13 = vld [vmem:[%s9584_s1 + $0x2e8] sm:$0xff]  }
  0x45   : > { %6650 = vmatpush3.bf16.msra.mxu1 %v7310_v47  ;;  %1238 = vmatprep.mubr.bf16.mxu0 %v5560_v62  ;;  %v8082_v48 = vsel %vm7851_vm5, %v1413_v23, %v1414_v22  ;;  %v7330_v62 = vld [vmem:[%s9584_s1 + $0x290] sm:$0xff]   ;;  %v5570_v47 = vcombine.high %v7899_v39, %v7902_v40  ;;  %v7342_v12 = vld [vmem:[%s9584_s1 + $0x2a0] sm:$0xff]   ;;  %v5571_v22 = vcombine.low %v7954_v44, %v7967_v49 }
  0x46   : > { %926 = vmatmul.mubr.bf16.gmra.mrb[12].mxu1 %v5525_v4  ;;  %6675 = vmatprep.subr.bf16.mxu0 %v7315_v6  ;;  %v8098_v57 = vsel %vm7851_vm5, %v1416_v29, %v1417_v38  ;;  %v5567_v4 = vcombine.low %v7886_v25, %v7889_v26  ;;  %v7341_v6 = vld [vmem:[%s9584_s1 + $0x220] sm:$0xff]   ;;  %v5569_v25 = vcombine.low %v7899_v39, %v7902_v40  ;;  %v7351_v39 = vld [vmem:[%s9584_s1 + $0x270] sm:$0xff]   ;;  %v1337_v38 = vld [vmem:[%s7731_s6 + $0x8] sm:$0xee] }
  0x47   : > { %1303 = vmatprep.mubr.bf16.mxu1 %v5562_v5  ;;  %6715 = vmatprep.subr.bf16.mxu1 %v7316_v8  ;;  %v7340_v5 = vld [vmem:[%s9584_s1 + $0x2e0] sm:$0xff]   ;;  %v5572_v8 = vcombine.high %v7954_v44, %v7967_v49  ;;  %v7353_v23 = vld [vmem:[%s9584_s1 + $0x230] sm:$0xff]   ;;  %v5573_v44 = vcombine.low %v7975_v51, %v7980_v56  ;;  %v5608_v29 = vrot.slane %v1337_v38, 9  ;;  %v1343_v38 = vld [vmem:[%s7731_s6 + $0x98] sm:$0xee] }
  0x48   : > { %v7360_v41 = vld [vmem:[%s9584_s1 + $0x3c0] sm:$0xff]   ;;  %v7368_v28 = vld [vmem:[%s9584_s1 + $0x3d0] sm:$0xff]  }
  0x49   : > { %v7377_v40 = vld [vmem:[%s9584_s1 + $0x320] sm:$0xff]  }
  0x4b   : > { %1239 = vmatmul.mubr.bf16.vlgmr.msra.gmra.mrb[16].mxu0 %v5559_v14  ;;  %v5574_v14 = vcombine.high %v7975_v51, %v7980_v56  ;;  %v7358_v51 = vld [vmem:[%s9584_s1 + $0x2b8] sm:$0xff]   ;;  %v7385_v56 = vld [vmem:[%s9584_s1 + $0x330] sm:$0xff]  }
  0x4c   : > { %6676 = vmatpush3.bf16.msra.mxu0 %v7317_v42  ;;  %1246 = vmatprep.mubr.bf16.mxu0 %v5564_v15  ;;  %v7345_v42 = vld [vmem:[%s9584_s1 + $0x228] sm:$0xff]  }
  0x4d   : > { %6677 = vmatprep.subr.bf16.mxu0 %v7319_v32  ;;  %v7346_v15 = vld [vmem:[%s9584_s1 + $0x2a8] sm:$0xff]   ;;  %v7352_v32 = vld [vmem:[%s9584_s1 + $0x2f0] sm:$0xff]  }
  0x4e   : > { %1304 = vmatmul.mubr.bf16.vlgmr.msra.gmra.mrb[16].mxu1 %v5561_v30  ;;  %v7354_v30 = vld [vmem:[%s9584_s1 + $0x2b0] sm:$0xff]  }
  0x4f   : > { %6716 = vmatpush3.bf16.msra.mxu1 %v7318_v31  ;;  %1311 = vmatprep.mubr.bf16.mxu1 %v5566_v37  ;;  %v7355_v31 = vld [vmem:[%s9584_s1 + $0x278] sm:$0xff]   ;;  %v1336_v37 = vld [vmem:[%s7731_s6] sm:$0xee] }
  0x50   : > { %6717 = vmatprep.subr.bf16.mxu1 %v7320_v50  ;;  %6678 = vmatpush3.bf16.msra.mxu0 %v7321_v24  ;;  %v7356_v50 = vld [vmem:[%s9584_s1 + $0x2f8] sm:$0xff]   ;;  %v5607_v24 = vrot.slane %v1336_v37, 9  ;;  %v1342_v37 = vld [vmem:[%s7731_s6 + $0x90] sm:$0xee] }
  0x51   : > { %6679 = vmatprep.subr.bf16.mxu0 %v7327_v52  ;;  %v7357_v52 = vld [vmem:[%s9584_s1 + $0x238] sm:$0xff]  }
  0x53   : > { %6718 = vmatpush3.bf16.msra.mxu1 %v7322_v53  ;;  %1247 = vmatmul.mubr.bf16.gmra.mrb[20].mxu0 %v5563_v35  ;;  %v1366_v53 = vsel %vm7851_vm5, %v5607_v24, %v1365_v20  ;;  %v1370_v35 = vsel %vm7851_vm5, %v5608_v29, %v1369_v21  ;;  %v7361_v20 = vld [vmem:[%s9584_s1 + $0x300] sm:$0xff]   ;;  %v5613_v24 = vrot.slane %v1342_v37, 9  ;;  %v5614_v29 = vrot.slane %v1343_v38, 9  ;;  %v7411_v37 = vld [vmem:[%s9584_s1 + $0x458] sm:$0xff]  }
  0x54   : > { %6719 = vmatprep.subr.bf16.mxu1 %v7328_v54  ;;  %6680 = vmatpush3.bf16.msra.mxu0 %v7329_v58  ;;  %v5679_v54 = vcombine.low %v1366_v53, %v7879_v17  ;;  %v5680_v58 = vcombine.high %v1366_v53, %v7879_v17  ;;  %v7362_v21 = vld [vmem:[%s9584_s1 + $0x380] sm:$0xff]   ;;  %v7363_v17 = vld [vmem:[%s9584_s1 + $0x348] sm:$0xff]  }
  0x55   : > { %6681 = vmatprep.subr.bf16.mxu0 %v7331_v60  ;;  %1254 = vmatprep.mubr.bf16.mxu0 %v5568_v61  ;;  %v5681_v60 = vcombine.low %v1370_v35, %v7931_v9  ;;  %v5682_v61 = vcombine.high %v1370_v35, %v7931_v9  ;;  %v7364_v9 = vld [vmem:[%s9584_s1 + $0x3c8] sm:$0xff]   ;;  %v1412_v53 = vsel %vm7851_vm5, %v5614_v29, %v1411_v36  ;;  %v7384_v35 = vld [vmem:[%s9584_s1 + $0x3f0] sm:$0xff]   ;;  %v7387_v36 = vld [vmem:[%s9584_s1 + $0x378] sm:$0xff]  }
  0x56   : > { %1312 = vmatmul.mubr.bf16.gmra.mrb[20].mxu1 %v5565_v18  ;;  %v7365_v18 = vld [vmem:[%s9584_s1 + $0x308] sm:$0xff]   ;;  %v5693_v49 = vcombine.low %v1412_v53, %v8098_v57  ;;  %v7412_v29 = vld [vmem:[%s9584_s1 + $0x4d8] sm:$0xff]  }
  0x57   : > { %6720 = vmatpush3.bf16.msra.mxu1 %v7330_v62  ;;  %1319 = vmatprep.mubr.bf16.mxu1 %v5570_v47  ;;  %v1338_v62 = vld [vmem:[%s7731_s6 + $0x30] sm:$0xee] }
  0x58   : > { %6721 = vmatprep.subr.bf16.mxu1 %v7332_v0  ;;  %6682 = vmatpush3.bf16.msra.mxu0 %v7333_v2  ;;  %v1339_v0 = vld [vmem:[%s7731_s6 + $0x38] sm:$0xee]  ;;  %v5609_v47 = vrot.slane %v1338_v62, 9 }
  0x59   : > { %6683 = vmatprep.subr.bf16.mxu0 %v7339_v27  ;;  %v5610_v2 = vrot.slane %v1339_v0, 9  ;;  %v7366_v27 = vld [vmem:[%s9584_s1 + $0x388] sm:$0xff]  }
  0x5b   : > { %6722 = vmatpush3.bf16.msra.mxu1 %v7334_v3  ;;  %1255 = vmatmul.mubr.bf16.gmra.mrb[24].mxu0 %v5567_v4  ;;  %v1380_v3 = vsel %vm7851_vm5, %v5609_v47, %v1379_v10  ;;  %v1384_v4 = vsel %vm7851_vm5, %v5610_v2, %v1383_v46  ;;  %v7369_v10 = vld [vmem:[%s9584_s1 + $0x310] sm:$0xff]   ;;  %v7395_v47 = vld [vmem:[%s9584_s1 + $0x440] sm:$0xff]  }
  0x5c   : > { %6723 = vmatprep.subr.bf16.mxu1 %v7340_v5  ;;  %6684 = vmatpush3.bf16.msra.mxu0 %v7341_v6  ;;  %v7367_v5 = vld [vmem:[%s9584_s1 + $0x350] sm:$0xff]   ;;  %v5684_v6 = vcombine.high %v1380_v3, %v7960_v45  ;;  %v5685_v19 = vcombine.low %v1384_v4, %v8017_v59  ;;  %v7396_v2 = vld [vmem:[%s9584_s1 + $0x4c0] sm:$0xff]  }
  0x5d   : > { %6685 = vmatprep.subr.bf16.mxu0 %v7343_v7  ;;  %1262 = vmatprep.mubr.bf16.mxu0 %v5572_v8  ;;  %v5686_v7 = vcombine.high %v1384_v4, %v8017_v59  ;;  %v5683_v8 = vcombine.low %v1380_v3, %v7960_v45  ;;  %v7371_v45 = vld [vmem:[%s9584_s1 + $0x358] sm:$0xff]   ;;  %v7370_v46 = vld [vmem:[%s9584_s1 + $0x390] sm:$0xff]   ;;  %v7397_v4 = vld [vmem:[%s9584_s1 + $0x400] sm:$0xff]  }
  0x5e   : > { %1320 = vmatmul.mubr.bf16.gmra.mrb[24].mxu1 %v5569_v25  ;;  %v7372_v59 = vld [vmem:[%s9584_s1 + $0x3d8] sm:$0xff]  }
  0x5f   : > { %6724 = vmatpush3.bf16.msra.mxu1 %v7342_v12  ;;  %1327 = vmatprep.mubr.bf16.mxu1 %v5574_v14  ;;  %v7373_v25 = vld [vmem:[%s9584_s1 + $0x318] sm:$0xff]   ;;  %v1340_v12 = vld [vmem:[%s7731_s6 + $0x60] sm:$0xee] }
  0x60   : > { %6725 = vmatprep.subr.bf16.mxu1 %v7344_v13  ;;  %6686 = vmatpush3.bf16.msra.mxu0 %v7345_v42  ;;  %v1341_v13 = vld [vmem:[%s7731_s6 + $0x68] sm:$0xee]  ;;  %v7374_v14 = vld [vmem:[%s9584_s1 + $0x398] sm:$0xff]   ;;  %v5611_v42 = vrot.slane %v1340_v12, 9  ;;  %v8383_v12 = vld [vmem:[%s7731_s6 + $0x70] sm:$0xff] }
  0x61   : > { %6687 = vmatprep.subr.bf16.mxu0 %v7351_v39  ;;  %v5612_v39 = vrot.slane %v1341_v13, 9  ;;  %v8386_v13 = vld [vmem:[%s7731_s6 + $0x68] sm:$0xff] }
  0x63   : > { %6726 = vmatpush3.bf16.msra.mxu1 %v7346_v15  ;;  %1263 = vmatmul.mubr.bf16.gmra.mrb[28].mxu0 %v5571_v22  ;;  %v7375_v15 = vld [vmem:[%s9584_s1 + $0x360] sm:$0xff]   ;;  %v1394_v22 = vsel %vm7851_vm5, %v5611_v42, %v1393_v63 }
  0x64   : > { %6727 = vmatprep.subr.bf16.mxu1 %v7352_v32  ;;  %6688 = vmatpush3.bf16.msra.mxu0 %v7353_v23  ;;  %v1398_v32 = vsel %vm7851_vm5, %v5612_v39, %v1397_v34  ;;  %v7376_v23 = vld [vmem:[%s9584_s1 + $0x3e0] sm:$0xff]   ;;  %v5687_v26 = vcombine.low %v1394_v22, %v8046_v11 }
  0x65   : > { %6689 = vmatprep.subr.bf16.mxu0 %v7355_v31  ;;  %1772 = vmatprep.mubr.bf16.mxu0 %v5680_v58  ;;  %v5690_v31 = vcombine.high %v1398_v32, %v8061_v43  ;;  %v5689_v63 = vcombine.low %v1398_v32, %v8061_v43  ;;  %v7378_v34 = vld [vmem:[%s9584_s1 + $0x3a0] sm:$0xff]   ;;  %v7381_v43 = vld [vmem:[%s9584_s1 + $0x328] sm:$0xff]   ;;  %v5694_v58 = vcombine.high %v1412_v53, %v8098_v57  ;;  %v7389_v57 = vld [vmem:[%s9584_s1 + $0x338] sm:$0xff]  }
  0x66   : > { %1328 = vmatmul.mubr.bf16.gmra.mrb[28].mxu1 %v5573_v44  ;;  %v7379_v44 = vld [vmem:[%s9584_s1 + $0x368] sm:$0xff]  }
  0x67   : > { %6728 = vmatpush3.bf16.msra.mxu1 %v7354_v30  ;;  %1837 = vmatprep.mubr.bf16.mxu1 %v5682_v61  ;;  %v5688_v30 = vcombine.high %v1394_v22, %v8046_v11  ;;  %v7380_v11 = vld [vmem:[%s9584_s1 + $0x3e8] sm:$0xff]   ;;  %v7390_v61 = vld [vmem:[%s9584_s1 + $0x3b8] sm:$0xff]  }
  0x68   : > { %6729 = vmatprep.subr.bf16.mxu1 %v7356_v50  ;;  %6690 = vmatpush3.bf16.msra.mxu0 %v7357_v52  ;;  %v7382_v50 = vld [vmem:[%s9584_s1 + $0x3a8] sm:$0xff]   ;;  %v7383_v52 = vld [vmem:[%s9584_s1 + $0x370] sm:$0xff]  }
  0x69   : > { %6755 = vmatprep.subr.bf16.mxu0 %v7359_v33  ;;  %v5727_v33 = vld [vmem:[%s7731_s6 + $0x30] sm:$0xff] }
  0x6b   : > { %6730 = vmatpush3.bf16.msra.mxu1 %v7358_v51  ;;  %1773 = vmatmul.mubr.bf16.vlgmr.msra.gmra.mrb[32].mxu0 %v5679_v54  ;;  %v1408_v51 = vsel %vm7851_vm5, %v5613_v24, %v1407_v16  ;;  %v7386_v16 = vld [vmem:[%s9584_s1 + $0x3b0] sm:$0xff]  }
  0x6c   : > { %6795 = vmatprep.subr.bf16.mxu1 %v7360_v41  ;;  %6756 = vmatpush3.bf16.msra.mxu0 %v7361_v20  ;;  %v5692_v54 = vcombine.high %v1408_v51, %v8082_v48  ;;  %v8343_v41 = vld [vmem:[%s7731_s6 + $0x40] sm:$0xff] }
  0x6d   : > { %6757 = vmatprep.subr.bf16.mxu0 %v7363_v17  ;;  %1780 = vmatprep.mubr.bf16.mxu0 %v5684_v6  ;;  %v5808_v20 = vcombine.high %v5727_v33, %v8343_v41  ;;  %v8348_v17 = vld [vmem:[%s7731_s6 + $0x48] sm:$0xff]  ;;  %v5807_v62 = vcombine.low %v5727_v33, %v8343_v41  ;;  %v7398_v6 = vld [vmem:[%s9584_s1 + $0x480] sm:$0xff]  }
  0x6e   : > { %1838 = vmatmul.mubr.bf16.vlgmr.msra.gmra.mrb[32].mxu1 %v5681_v60  ;;  %v5691_v60 = vcombine.low %v1408_v51, %v8082_v48  ;;  %v7388_v48 = vld [vmem:[%s9584_s1 + $0x3f8] sm:$0xff]  }
  0x6f   : > { %6796 = vmatpush3.bf16.msra.mxu1 %v7362_v21  ;;  %1845 = vmatprep.mubr.bf16.mxu1 %v5686_v7  ;;  %v5728_v21 = vld [vmem:[%s7731_s6 + $0x38] sm:$0xff] }
  0x70   : > { %6797 = vmatprep.subr.bf16.mxu1 %v7364_v9  ;;  %6758 = vmatpush3.bf16.msra.mxu0 %v7365_v18  ;;  %v2395_v9 = vshrl.u32 %v5727_v33, 16  ;;  %v2398_v18 = vshll.u32 %v5727_v33, 16  ;;  %v5810_v0 = vcombine.high %v5728_v21, %v8348_v17  ;;  %v5809_v3 = vcombine.low %v5728_v21, %v8348_v17  ;;  %v7413_v51 = vld [vmem:[%s9584_s1 + $0x418] sm:$0xff]  }
  0x71   : > { %6759 = vmatprep.subr.bf16.mxu0 %v7367_v5  ;;  %v2412_v22 = vshll.u32 %v5728_v21, 16 }
  0x72   : > { %v2397_v5 = vrot.slane %v2395_v9, 4  ;;  %v2400_v7 = vrot.slane %v2398_v18, 5  ;;  %v7419_v18 = vld [vmem:[%s9584_s1 + $0x460] sm:$0xff]  }
  0x73   : > { %6798 = vmatpush3.bf16.msra.mxu1 %v7366_v27  ;;  %1781 = vmatmul.mubr.bf16.gmra.mrb[36].mxu0 %v5683_v8  ;;  %v2404_v27 = vshll.u32 %v8343_v41, 16  ;;  %v7399_v8 = vld [vmem:[%s9584_s1 + $0x448] sm:$0xff]  }
  0x74   : > { %6799 = vmatprep.subr.bf16.mxu1 %v7368_v28  ;;  %6760 = vmatpush3.bf16.msra.mxu0 %v7369_v10  ;;  %v7400_v28 = vld [vmem:[%s9584_s1 + $0x4c8] sm:$0xff]   ;;  %v2409_v10 = vshrl.u32 %v5728_v21, 16  ;;  %v2401_v42 = vor.u32 %v2400_v7, %v2397_v5 }
  0x75   : > { %6761 = vmatprep.subr.bf16.mxu0 %v7371_v45  ;;  %1788 = vmatprep.mubr.bf16.mxu0 %v5688_v30  ;;  %v7401_v45 = vld [vmem:[%s9584_s1 + $0x408] sm:$0xff]  }
  0x76   : > { %1846 = vmatmul.mubr.bf16.gmra.mrb[36].mxu1 %v5685_v19  ;;  %v2422_v19 = vshrl.u32 %v8343_v41, 16  ;;  %v7423_v7 = vld [vmem:[%s9584_s1 + $0x468] sm:$0xff]  }
  0x77   : > { %6800 = vmatpush3.bf16.msra.mxu1 %v7370_v46  ;;  %1853 = vmatprep.mubr.bf16.mxu1 %v5690_v31  ;;  %v7402_v46 = vld [vmem:[%s9584_s1 + $0x488] sm:$0xff]   ;;  %v7407_v31 = vld [vmem:[%s9584_s1 + $0x450] sm:$0xff]  }
  0x78   : > { %6801 = vmatprep.subr.bf16.mxu1 %v7372_v59  ;;  %6762 = vmatpush3.bf16.msra.mxu0 %v7373_v25  ;;  %v5731_v59 = vld [vmem:[%s7731_s6 + $0x60] sm:$0xff]  ;;  %v8380_v25 = vrot.slane %v2404_v27, 5  ;;  %v2424_v39 = vrot.slane %v2422_v19, 4  ;;  %v7424_v19 = vld [vmem:[%s9584_s1 + $0x4e8] sm:$0xff]  }
  0x79   : > { %6763 = vmatprep.subr.bf16.mxu0 %v7375_v15  ;;  %v2411_v15 = vrot.slane %v2409_v10, 4  ;;  %v5812_v32 = vcombine.high %v5731_v59, %v8383_v12  ;;  %v5811_v30 = vcombine.low %v5731_v59, %v8383_v12  ;;  %v7421_v27 = vld [vmem:[%s9584_s1 + $0x420] sm:$0xff]   ;;  %v7425_v10 = vld [vmem:[%s9584_s1 + $0x428] sm:$0xff]  }
  0x7a   : > { %v2425_v38 = vor.u32 %v2424_v39, %v8380_v25  ;;  %v8490_v39 = vld [vmem:[%s7731_s6 + $0xd0] sm:$0xff] }
  0x7b   : > { %6802 = vmatpush3.bf16.msra.mxu1 %v7374_v14  ;;  %1789 = vmatmul.mubr.bf16.gmra.mrb[40].mxu0 %v5687_v26  ;;  %v8389_v14 = vld [vmem:[%s7731_s6 + $0x78] sm:$0xff]  ;;  %v2418_v26 = vshll.u32 %v8348_v17, 16 }
  0x7c   : > { %6803 = vmatprep.subr.bf16.mxu1 %v7376_v23  ;;  %6764 = vmatpush3.bf16.msra.mxu0 %v7377_v40  ;;  %v5814_v23 = vcombine.high %v8386_v13, %v8389_v14  ;;  %v5813_v40 = vcombine.low %v8386_v13, %v8389_v14 }
  0x7d   : > { %6765 = vmatprep.subr.bf16.mxu0 %v7379_v44  ;;  %1796 = vmatprep.mubr.bf16.mxu0 %v5692_v54  ;;  %v7409_v44 = vld [vmem:[%s9584_s1 + $0x410] sm:$0xff]   ;;  %v8417_v24 = vrot.slane %v2418_v26, 5  ;;  %v7414_v54 = vld [vmem:[%s9584_s1 + $0x498] sm:$0xff]  }
  0x7e   : > { %1854 = vmatmul.mubr.bf16.gmra.mrb[40].mxu1 %v5689_v63  ;;  %v7408_v63 = vld [vmem:[%s9584_s1 + $0x4d0] sm:$0xff]  }
  0x7f   : > { %6804 = vmatpush3.bf16.msra.mxu1 %v7378_v34  ;;  %1861 = vmatprep.mubr.bf16.mxu1 %v5694_v58  ;;  %v2432_v34 = vshrl.u32 %v8348_v17, 16  ;;  %v2446_v58 = vshll.u32 %v5731_v59, 16 }
  0x80   : > { %6805 = vmatprep.subr.bf16.mxu1 %v7380_v11  ;;  %6766 = vmatpush3.bf16.msra.mxu0 %v7381_v43  ;;  %v2414_v11 = vrot.slane %v2412_v22, 5  ;;  %v7410_v43 = vld [vmem:[%s9584_s1 + $0x490] sm:$0xff]  }
  0x81   : > { %6767 = vmatprep.subr.bf16.mxu0 %v7383_v52  ;;  %v2434_v52 = vrot.slane %v2432_v34, 4 }
  0x82   : > { %v2415_v53 = vor.u32 %v2414_v11, %v2411_v15 }
  0x83   : > { %6806 = vmatpush3.bf16.msra.mxu1 %v7382_v50  ;;  %1797 = vmatmul.mubr.bf16.gmra.mrb[44].mxu0 %v5691_v60  ;;  %v8411_v50 = vrot.slane %v2401_v42, 4  ;;  %v8429_v60 = vld [vmem:[%s7731_s6 + $0x90] sm:$0xff]  ;;  %v8487_v42 = vld [vmem:[%s7731_s6 + $0xc0] sm:$0xff] }
  0x84   : > { %6807 = vmatprep.subr.bf16.mxu1 %v7384_v35  ;;  %6768 = vmatpush3.bf16.msra.mxu0 %v7385_v56  ;;  %v2443_v35 = vshrl.u32 %v5731_v59, 16  ;;  %v8435_v56 = vld [vmem:[%s7731_s6 + $0x98] sm:$0xff]  ;;  %v7426_v59 = vld [vmem:[%s9584_s1 + $0x4a8] sm:$0xff]   ;;  %v2491_v11 = vshrl.u32 %v8429_v60, 16 }
  0x85   : > { %6769 = vmatprep.subr.bf16.mxu0 %v7387_v36  ;;  %2264 = vmatprep.mubr.bf16.mxu0 %v5808_v20  ;;  %v2448_v20 = vrot.slane %v2446_v58, 5  ;;  %v7436_v58 = vld [vmem:[%s9584_s1 + $0x4f8] sm:$0xff]  }
  0x86   : > { %1862 = vmatmul.mubr.bf16.gmra.mrb[44].mxu1 %v5693_v49  ;;  %v8432_v49 = vld [vmem:[%s7731_s6 + $0xa0] sm:$0xff]  ;;  %v2445_v36 = vrot.slane %v2443_v35, 4  ;;  %v7435_v35 = vld [vmem:[%s9584_s1 + $0x478] sm:$0xff]  }
  0x87   : > { %6808 = vmatpush3.bf16.msra.mxu1 %v7386_v16  ;;  %2329 = vmatprep.mubr.bf16.mxu1 %v5810_v0  ;;  %v8437_v16 = vrot.slane %v2425_v38, 4  ;;  %v5815_v33 = vcombine.low %v8429_v60, %v8432_v49  ;;  %v7420_v0 = vld [vmem:[%s9584_s1 + $0x4e0] sm:$0xff]   ;;  %v7433_v38 = vld [vmem:[%s9584_s1 + $0x430] sm:$0xff]  }
  0x88   : > { %6809 = vmatprep.subr.bf16.mxu1 %v7388_v48  ;;  %6770 = vmatpush3.bf16.msra.mxu0 %v7389_v57  ;;  %v2452_v48 = vshll.u32 %v8383_v12, 16  ;;  %v5816_v57 = vcombine.high %v8429_v60, %v8432_v49  ;;  %v2449_v5 = vor.u32 %v2448_v20, %v2445_v36  ;;  %v2493_v36 = vrot.slane %v2491_v11, 4  ;;  %v8541_v20 = vld [vmem:[%s7731_s6 + $0x50] sm:$0x11]  ;;  %v7446_v11 = vld [vmem:[%s9584_s1 + $0x588] sm:$0xff]  }
  0x89   : > { %6835 = vmatprep.subr.bf16.mxu0 %v7395_v47  ;;  %v2435_v47 = vor.u32 %v2434_v52, %v8417_v24  ;;  %v7434_v52 = vld [vmem:[%s9584_s1 + $0x4b0] sm:$0xff]  }
  0x8a   : > { %v8492_v15 = vrot.slane %v2449_v5, 4 }
  0x8b   : > { %6810 = vmatpush3.bf16.msra.mxu1 %v7390_v61  ;;  %2265 = vmatmul.mubr.bf16.vlgmr.msra.gmra.mrb[48].mxu0 %v5807_v62  ;;  %v8443_v61 = vld [vmem:[%s7731_s6 + $0xa8] sm:$0xff]  ;;  %v8454_v62 = vrot.slane %v2415_v53, 4 }
  0x8c   : > { %6875 = vmatprep.subr.bf16.mxu1 %v7396_v2  ;;  %6836 = vmatpush3.bf16.msra.mxu0 %v7397_v4  ;;  %v5818_v21 = vcombine.high %v8435_v56, %v8443_v61  ;;  %v5817_v9 = vcombine.low %v8435_v56, %v8443_v61  ;;  %v2470_v2 = vshrl.u32 %v8383_v12, 16  ;;  %v7422_v4 = vld [vmem:[%s9584_s1 + $0x4a0] sm:$0xff]  }
  0x8d   : > { %6837 = vmatprep.subr.bf16.mxu0 %v7399_v8  ;;  %2272 = vmatprep.mubr.bf16.mxu0 %v5812_v32  ;;  %v2466_v32 = vshll.u32 %v8389_v14, 16 }
  0x8e   : > { %2330 = vmatmul.mubr.bf16.vlgmr.msra.gmra.mrb[48].mxu1 %v5809_v3  ;;  %v8464_v3 = vrot.slane %v2452_v48, 5  ;;  %v2472_v8 = vrot.slane %v2470_v2, 4  ;;  %v7437_v48 = vld [vmem:[%s9584_s1 + $0x438] sm:$0xff]  }
  0x8f   : > { %6876 = vmatpush3.bf16.msra.mxu1 %v7398_v6  ;;  %2337 = vmatprep.mubr.bf16.mxu1 %v5814_v23  ;;  %v2457_v6 = vshrl.u32 %v8386_v13, 16  ;;  %v5820_v23 = vcombine.high %v8487_v42, %v8490_v39 }
  0x90   : > { %6877 = vmatprep.subr.bf16.mxu1 %v7400_v28  ;;  %6838 = vmatpush3.bf16.msra.mxu0 %v7401_v45  ;;  %v8476_v28 = vrot.slane %v2435_v47, 4  ;;  %v2473_v45 = vor.u32 %v2472_v8, %v8464_v3  ;;  %v7440_v47 = vld [vmem:[%s9584_s1 + $0x5c0] sm:$0xff]  }
  0x91   : > { %6839 = vmatprep.subr.bf16.mxu0 %v7407_v31  ;;  %v2459_v22 = vrot.slane %v2457_v6, 4  ;;  %v5819_v31 = vcombine.low %v8487_v42, %v8490_v39  ;;  %v2500_v6 = vshll.u32 %v8432_v49, 16 }
  0x93   : > { %6878 = vmatpush3.bf16.msra.mxu1 %v7402_v46  ;;  %2273 = vmatmul.mubr.bf16.gmra.mrb[52].mxu0 %v5811_v30  ;;  %v2460_v46 = vshll.u32 %v8386_v13, 16  ;;  %v8498_v30 = vld [vmem:[%s7731_s6 + $0xc8] sm:$0xff]  ;;  %v8501_v13 = vld [vmem:[%s7731_s6 + $0xd8] sm:$0xff] }
  0x94   : > { %6879 = vmatprep.subr.bf16.mxu1 %v7408_v63  ;;  %6840 = vmatpush3.bf16.msra.mxu0 %v7409_v44  ;;  %v5822_v63 = vcombine.high %v8498_v30, %v8501_v13  ;;  %v5821_v34 = vcombine.low %v8498_v30, %v8501_v13  ;;  %v7431_v44 = vld [vmem:[%s9584_s1 + $0x470] sm:$0xff]  }
  0x95   : > { %6841 = vmatprep.subr.bf16.mxu0 %v7411_v37  ;;  %2280 = vmatprep.mubr.bf16.mxu0 %v5816_v57  ;;  %v2462_v26 = vrot.slane %v2460_v46, 5  ;;  %v8517_v37 = vrot.slane %v2473_v45, 4 }
  0x96   : > { %2338 = vmatmul.mubr.bf16.gmra.mrb[52].mxu1 %v5813_v40  ;;  %v2480_v40 = vshrl.u32 %v8389_v14, 16 }
  0x97   : > { %6880 = vmatpush3.bf16.msra.mxu1 %v7410_v43  ;;  %2345 = vmatprep.mubr.bf16.mxu1 %v5818_v21  ;;  %v7432_v43 = vld [vmem:[%s9584_s1 + $0x4f0] sm:$0xff]   ;;  %v2428_v21 = vshll.u32 %v8541_v20, 16 }
  0x98   : > { %6881 = vmatprep.subr.bf16.mxu1 %v7412_v29  ;;  %6842 = vmatpush3.bf16.msra.mxu0 %v7413_v51  ;;  %v8522_v29 = vrot.slane %v2466_v32, 5  ;;  %v2463_v51 = vor.u32 %v2462_v26, %v2459_v22  ;;  %v2482_v53 = vrot.slane %v2480_v40, 4  ;;  %v8587_v26 = vld [vmem:[%s7731_s6 + $0x80] sm:$0x11]  ;;  %v8590_v40 = vld [vmem:[%s7731_s6 + $0x88] sm:$0x11] }
  0x99   : > { %6843 = vmatprep.subr.bf16.mxu0 %v7419_v18  ;;  %v7439_v18 = vld [vmem:[%s9584_s1 + $0x540] sm:$0xff]  }
  0x9a   : > { %v2483_v2 = vor.u32 %v2482_v53, %v8522_v29 }
  0x9b   : > { %6882 = vmatpush3.bf16.msra.mxu1 %v7414_v54  ;;  %2281 = vmatmul.mubr.bf16.gmra.mrb[56].mxu0 %v5815_v33  ;;  %v2494_v54 = vshll.u32 %v8429_v60, 16  ;;  %v7438_v33 = vld [vmem:[%s9584_s1 + $0x4b8] sm:$0xff]   ;;  %v2464_v60 = vrot.slane %v2463_v51, 4 }
  0x9c   : > { %6883 = vmatprep.subr.bf16.mxu1 %v7420_v0  ;;  %6844 = vmatpush3.bf16.msra.mxu0 %v7421_v27  ;;  %v2407_v27 = vsel %vm7772_vm2, %v8411_v50, %v8380_v25  ;;  %v7442_v50 = vld [vmem:[%s9584_s1 + $0x580] sm:$0xff]   ;;  %v2484_v46 = vrot.slane %v2483_v2, 4  ;;  %v2508_v2 = vshll.u32 %v8435_v56, 16 }
  0x9d   : > { %6845 = vmatprep.subr.bf16.mxu0 %v7423_v7  ;;  %2288 = vmatprep.mubr.bf16.mxu0 %v5820_v23  ;;  %v2496_v57 = vrot.slane %v2494_v54, 5  ;;  %v2421_v7 = vsel %vm7772_vm2, %v8454_v62, %v8417_v24  ;;  %v7443_v62 = vld [vmem:[%s9584_s1 + $0x548] sm:$0xff]   ;;  %v2502_v23 = vrot.slane %v2500_v6, 5  ;;  %v2469_v51 = vsel %vm7772_vm2, %v2464_v60, %v8522_v29  ;;  %v7448_v54 = vld [vmem:[%s9584_s1 + $0x5d0] sm:$0xff]  }
  0x9e   : > { %2346 = vmatmul.mubr.bf16.gmra.mrb[56].mxu1 %v5817_v9  ;;  %v8545_v9 = vld [vmem:[%s7731_s6 + $0x58] sm:$0x11]  ;;  %v7450_v29 = vld [vmem:[%s9584_s1 + $0x590] sm:$0xff]   ;;  %v2514_v6 = vshll.u32 %v8443_v61, 16 }
  0x9f   : > { %6884 = vmatpush3.bf16.msra.mxu1 %v7422_v4  ;;  %2353 = vmatprep.mubr.bf16.mxu1 %v5822_v63  ;;  %v2438_v0 = vshll.u32 %v8545_v9, 16  ;;  %v2430_v4 = vrot.slane %v2428_v21, 5  ;;  %v2497_v5 = vor.u32 %v2496_v57, %v2493_v36  ;;  %v2505_v63 = vshrl.u32 %v8435_v56, 16 }
  0xa0   : > { %6885 = vmatprep.subr.bf16.mxu1 %v7424_v19  ;;  %6846 = vmatpush3.bf16.msra.mxu0 %v7425_v10  ;;  %v7441_v19 = vld [vmem:[%s9584_s1 + $0x500] sm:$0xff]  }
  0xa1   : > { %6847 = vmatprep.subr.bf16.mxu0 %v7431_v44  ;;  %v2440_v8 = vrot.slane %v2438_v0, 5  ;;  %v2431_v25 = vsel %vm7772_vm2, %v8437_v16, %v2430_v4  ;;  %v7444_v16 = vld [vmem:[%s9584_s1 + $0x5c8] sm:$0xff]   ;;  %v2498_v32 = vrot.slane %v2497_v5, 4  ;;  %v2486_v44 = vshll.u32 %v8590_v40, 16  ;;  %v8636_v4 = vld [vmem:[%s7731_s6 + $0xb0] sm:$0x11] }
  0xa2   : > { %v5943_v10 = vcombine.low %v2407_v27, %v2431_v25  ;;  %v5944_v45 = vcombine.high %v2407_v27, %v2431_v25  ;;  %v7454_v27 = vld [vmem:[%s9584_s1 + $0x598] sm:$0xff]  }
  0xa3   : > { %6886 = vmatpush3.bf16.msra.mxu1 %v7426_v59  ;;  %2289 = vmatmul.mubr.bf16.gmra.mrb[60].mxu0 %v5819_v31  ;;  %v2441_v24 = vsel %vm7772_vm2, %v8476_v28, %v2440_v8  ;;  %v2518_v31 = vshrl.u32 %v8432_v49, 16  ;;  %v7445_v28 = vld [vmem:[%s9584_s1 + $0x508] sm:$0xff]   ;;  %v2488_v53 = vrot.slane %v2486_v44, 5  ;;  %v8639_v5 = vld [vmem:[%s7731_s6 + $0xb8] sm:$0x11]  ;;  %v2510_v8 = vrot.slane %v2508_v2, 5 }
  0xa4   : > { %6887 = vmatprep.subr.bf16.mxu1 %v7432_v43  ;;  %6848 = vmatpush3.bf16.msra.mxu0 %v7433_v38  ;;  %v5945_v59 = vcombine.low %v2421_v7, %v2441_v24  ;;  %v5946_v22 = vcombine.high %v2421_v7, %v2441_v24  ;;  %v2455_v38 = vsel %vm7772_vm2, %v8492_v15, %v8464_v3  ;;  %v2524_v7 = vshll.u32 %v8636_v4, 16  ;;  %v7459_v44 = vld [vmem:[%s9584_s1 + $0x568] sm:$0xff]   ;;  %v7463_v2 = vld [vmem:[%s9584_s1 + $0x570] sm:$0xff]  }
  0xa5   : > { %6849 = vmatprep.subr.bf16.mxu0 %v7435_v35  ;;  %2939 = vmatprep.mubr.bf16.mxu0 %v5944_v45  ;;  %v2520_v43 = vrot.slane %v2518_v31, 4  ;;  %v7447_v35 = vld [vmem:[%s9584_s1 + $0x550] sm:$0xff]   ;;  %v2489_v15 = vsel %vm7772_vm2, %v2484_v46, %v2488_v53  ;;  %v2534_v56 = vshll.u32 %v8639_v5, 16  ;;  %v2503_v25 = vsel %vm7772_vm2, %v2498_v32, %v2502_v23 }
  0xa6   : > { %2354 = vmatmul.mubr.bf16.gmra.mrb[60].mxu1 %v5821_v34  ;;  %v2476_v34 = vshll.u32 %v8587_v26, 16  ;;  %v5949_v21 = vcombine.low %v2469_v51, %v2489_v15  ;;  %v2526_v45 = vrot.slane %v2524_v7, 5  ;;  %v2542_v53 = vshll.u32 %v8487_v42, 16 }
  0xa7   : > { %6888 = vmatpush3.bf16.msra.mxu1 %v7434_v52  ;;  %3004 = vmatprep.mubr.bf16.mxu1 %v5946_v22  ;;  %v2521_v36 = vor.u32 %v2520_v43, %v2502_v23  ;;  %v2536_v46 = vrot.slane %v2534_v56, 5  ;;  %v7457_v22 = vld [vmem:[%s9584_s1 + $0x520] sm:$0xff]  }
  0xa8   : > { %6889 = vmatprep.subr.bf16.mxu1 %v7436_v58  ;;  %6850 = vmatpush3.bf16.msra.mxu0 %v7437_v48  ;;  %v2478_v52 = vrot.slane %v2476_v34, 5  ;;  %v7449_v58 = vld [vmem:[%s9584_s1 + $0x510] sm:$0xff]   ;;  %v2507_v48 = vrot.slane %v2505_v63, 4 }
  0xa9   : > { %6915 = vmatprep.subr.bf16.mxu0 %v7439_v18  ;;  %v7451_v18 = vld [vmem:[%s9584_s1 + $0x558] sm:$0xff]   ;;  %v2522_v0 = vrot.slane %v2521_v36, 4 }
  0xaa   : > { %v2479_v3 = vsel %vm7772_vm2, %v8517_v37, %v2478_v52  ;;  %v7452_v37 = vld [vmem:[%s9584_s1 + $0x5d8] sm:$0xff]   ;;  %v2511_v24 = vor.u32 %v2510_v8, %v2507_v48  ;;  %v7460_v52 = vld [vmem:[%s9584_s1 + $0x5e8] sm:$0xff]  }
  0xab   : > { %6890 = vmatpush3.bf16.msra.mxu1 %v7438_v33  ;;  %2940 = vmatmul.mubr.bf16.vlgmr.msra.gmra.mrb[64].mxu0 %v5943_v10  ;;  %v5948_v57 = vcombine.high %v2455_v38, %v2479_v3  ;;  %v5950_v33 = vcombine.high %v2469_v51, %v2489_v15  ;;  %v5947_v60 = vcombine.low %v2455_v38, %v2479_v3  ;;  %v7455_v10 = vld [vmem:[%s9584_s1 + $0x560] sm:$0xff]   ;;  %v7461_v51 = vld [vmem:[%s9584_s1 + $0x528] sm:$0xff]  }
  0xac   : > { %6955 = vmatprep.subr.bf16.mxu1 %v7440_v47  ;;  %6916 = vmatpush3.bf16.msra.mxu0 %v7441_v19  ;;  %v7453_v47 = vld [vmem:[%s9584_s1 + $0x518] sm:$0xff]   ;;  %v2528_v19 = vshrl.u32 %v8443_v61, 16  ;;  %v2527_v32 = vsel %vm7772_vm2, %v2522_v0, %v2526_v45  ;;  %v2512_v23 = vrot.slane %v2511_v24, 4  ;;  %v8681_v15 = vld [vmem:[%s7731_s6 + $0xe0] sm:$0x11]  ;;  %v2562_v0 = vshll.u32 %v8501_v13, 16 }
  0xad   : > { %6917 = vmatprep.subr.bf16.mxu0 %v7443_v62  ;;  %2947 = vmatprep.mubr.bf16.mxu0 %v5948_v57  ;;  %v5952_v63 = vcombine.high %v2503_v25, %v2527_v32  ;;  %v5951_v34 = vcombine.low %v2503_v25, %v2527_v32  ;;  %v8685_v48 = vld [vmem:[%s7731_s6 + $0xe8] sm:$0x11]  ;;  %v7465_v24 = vld [vmem:[%s9584_s1 + $0x530] sm:$0xff]   ;;  %v7467_v32 = vld [vmem:[%s9584_s1 + $0x578] sm:$0xff]  }
  0xae   : > { %3005 = vmatmul.mubr.bf16.vlgmr.msra.gmra.mrb[64].mxu1 %v5945_v59  ;;  %v2530_v62 = vrot.slane %v2528_v19, 4  ;;  %v7456_v59 = vld [vmem:[%s9584_s1 + $0x5e0] sm:$0xff]   ;;  %v2582_v8 = vshll.u32 %v8685_v48, 16  ;;  %v2564_v56 = vrot.slane %v2562_v0, 5 }
  0xaf   : > { %6956 = vmatpush3.bf16.msra.mxu1 %v7442_v50  ;;  %3012 = vmatprep.mubr.bf16.mxu1 %v5950_v33  ;;  %v2516_v50 = vrot.slane %v2514_v6, 5  ;;  %v2572_v33 = vshll.u32 %v8681_v15, 16 }
  0xb0   : > { %6957 = vmatprep.subr.bf16.mxu1 %v7444_v16  ;;  %6918 = vmatpush3.bf16.msra.mxu0 %v7445_v28  ;;  %v2539_v16 = vshrl.u32 %v8487_v42, 16  ;;  %v7458_v28 = vld [vmem:[%s9584_s1 + $0x5a0] sm:$0xff]   ;;  %v2566_v42 = vshrl.u32 %v8490_v39, 16  ;;  %v2584_v45 = vrot.slane %v2582_v8, 5 }
  0xb1   : > { %6919 = vmatprep.subr.bf16.mxu0 %v7447_v35  ;;  %v2531_v31 = vor.u32 %v2530_v62, %v2516_v50  ;;  %v2517_v43 = vsel %vm7772_vm2, %v2512_v23, %v2516_v50  ;;  %v7464_v50 = vld [vmem:[%s9584_s1 + $0x5f0] sm:$0xff]  }
  0xb3   : > { %6958 = vmatpush3.bf16.msra.mxu1 %v7446_v11  ;;  %2948 = vmatmul.mubr.bf16.gmra.mrb[68].mxu0 %v5947_v60  ;;  %v2541_v11 = vrot.slane %v2539_v16, 4  ;;  %v2532_v38 = vrot.slane %v2531_v31, 4  ;;  %v2553_v60 = vshrl.u32 %v8498_v30, 16 }
  0xb4   : > { %6959 = vmatprep.subr.bf16.mxu1 %v7448_v54  ;;  %6920 = vmatpush3.bf16.msra.mxu0 %v7449_v58  ;;  %v7462_v54 = vld [vmem:[%s9584_s1 + $0x5a8] sm:$0xff]   ;;  %v2548_v58 = vshll.u32 %v8490_v39, 16 }
  0xb5   : > { %6921 = vmatprep.subr.bf16.mxu0 %v7451_v18  ;;  %2955 = vmatprep.mubr.bf16.mxu0 %v5952_v63  ;;  %v2537_v35 = vsel %vm7772_vm2, %v2532_v38, %v2536_v46  ;;  %v2555_v6 = vrot.slane %v2553_v60, 4 }
  0xb6   : > { %3013 = vmatmul.mubr.bf16.gmra.mrb[68].mxu1 %v5949_v21  ;;  %v5954_v36 = vcombine.high %v2517_v43, %v2537_v35  ;;  %v5953_v3 = vcombine.low %v2517_v43, %v2537_v35  ;;  %v2550_v57 = vrot.slane %v2548_v58, 5  ;;  %v2556_v21 = vshll.u32 %v8498_v30, 16 }
  0xb7   : > { %6960 = vmatpush3.bf16.msra.mxu1 %v7450_v29  ;;  %v2544_v29 = vrot.slane %v2542_v53, 5  ;;  %v3079_v43 = vrot.slane %v8343_v41, 5 }
  0xb8   : > { %6961 = vmatprep.subr.bf16.mxu1 %v7452_v37  ;;  %6922 = vmatpush3.bf16.msra.mxu0 %v7453_v47  ;;  %v2568_v37 = vrot.slane %v2566_v42, 4  ;;  %v2576_v47 = vshrl.u32 %v8501_v13, 16  ;;  %v2558_v7 = vrot.slane %v2556_v21, 5  ;;  %v3089_v42 = vrot.slane %v8545_v9, 5 }
  0xb9   : > { %6923 = vmatprep.subr.bf16.mxu0 %v7455_v10  ;;  %3020 = vmatprep.mubr.bf16.mxu1 %v5954_v36  ;;  %v2545_v18 = vor.u32 %v2544_v29, %v2541_v11  ;;  %v7469_v11 = vld [vmem:[%s9584_s1 + $0x538] sm:$0xff]   ;;  %v3085_v58 = vrot.slane %v3079_v43, 4 }
  0xba   : > { %v2569_v19 = vor.u32 %v2568_v37, %v2550_v57  ;;  %v2578_v25 = vrot.slane %v2576_v47, 4  ;;  %v2559_v10 = vor.u32 %v2558_v7, %v2555_v6  ;;  %v5992_v36 = vld [vmem:[%s7731_s6 + $0x38] sm:$0xee]  ;;  %v3093_v37 = vrot.slane %v8383_v12, 5  ;;  %v7475_v12 = vld [vmem:[%s9584_s1 + $0x648] sm:$0xff]  }
  0xbb   : > { %6962 = vmatpush3.bf16.msra.mxu1 %v7454_v27  ;;  %2956 = vmatmul.mubr.bf16.gmra.mrb[72].mxu0 %v5951_v34  ;;  %v2574_v27 = vrot.slane %v2572_v33, 5  ;;  %v2546_v30 = vrot.slane %v2545_v18, 4  ;;  %v6000_v29 = vrot.slane %v5992_v36, 9  ;;  %v3100_v7 = vrot.slane %v8587_v26, 5  ;;  %v5993_v26 = vld [vmem:[%s7731_s6 + $0x60] sm:$0xee] }
  0xbc   : > { %6963 = vmatprep.subr.bf16.mxu1 %v7456_v59  ;;  %6924 = vmatpush3.bf16.msra.mxu0 %v7457_v22  ;;  %v2570_v46 = vrot.slane %v2569_v19, 4  ;;  %v2579_v59 = vor.u32 %v2578_v25, %v2564_v56  ;;  %v7466_v22 = vld [vmem:[%s9584_s1 + $0x5b0] sm:$0xff]   ;;  %v2560_v16 = vrot.slane %v2559_v10, 4  ;;  %v3099_v6 = vrot.slane %v3093_v37, 4  ;;  %v7476_v19 = vld [vmem:[%s9584_s1 + $0x6c8] sm:$0xff]  }
  0xbd   : > { %6925 = vmatprep.subr.bf16.mxu0 %v7459_v44  ;;  %v2551_v62 = vsel %vm7772_vm2, %v2546_v30, %v2550_v57  ;;  %v7471_v57 = vld [vmem:[%s9584_s1 + $0x640] sm:$0xff]   ;;  %v3097_v30 = vrot.slane %v8389_v14, 5  ;;  %v7477_v25 = vld [vmem:[%s9584_s1 + $0x608] sm:$0xff]   ;;  %v6001_v14 = vrot.slane %v5993_v26, 9 }
  0xbe   : > { %3021 = vmatmul.mubr.bf16.gmra.mrb[72].mxu1 %v5953_v3  ;;  %v2575_v23 = vsel %vm7772_vm2, %v2570_v46, %v2574_v27  ;;  %v2580_v31 = vrot.slane %v2579_v59, 4  ;;  %v2565_v34 = vsel %vm7772_vm2, %v2560_v16, %v2564_v56  ;;  %v3083_v3 = vrot.slane %v8348_v17, 5  ;;  %v7472_v17 = vld [vmem:[%s9584_s1 + $0x6c0] sm:$0xff]   ;;  %v7479_v46 = vld [vmem:[%s9584_s1 + $0x650] sm:$0xff]  }
  0xbf   : > { %6964 = vmatpush3.bf16.msra.mxu1 %v7458_v28  ;;  %v7468_v28 = vld [vmem:[%s9584_s1 + $0x5f8] sm:$0xff]   ;;  %v5956_v63 = vcombine.high %v2551_v62, %v2575_v23  ;;  %v5955_v44 = vcombine.low %v2551_v62, %v2575_v23  ;;  %v7474_v27 = vld [vmem:[%s9584_s1 + $0x680] sm:$0xff]   ;;  %v3103_v56 = vrot.slane %v8590_v40, 5  ;;  %v3102_v10 = vrot.slane %v3097_v30, 4 }
  0xc0   : > { %6965 = vmatprep.subr.bf16.mxu1 %v7460_v52  ;;  %6926 = vmatpush3.bf16.msra.mxu0 %v7461_v51  ;;  %v2585_v38 = vsel %vm7772_vm2, %v2580_v31, %v2584_v45  ;;  %v7470_v52 = vld [vmem:[%s9584_s1 + $0x5b8] sm:$0xff]   ;;  %v3086_v51 = vrot.slane %v8541_v20, 5  ;;  %v3088_v33 = vrot.slane %v3083_v3, 4  ;;  %v3084_v9 = vsel %vm7851_vm5, %v6000_v29, %v3083_v3  ;;  %v7478_v45 = vld [vmem:[%s9584_s1 + $0x688] sm:$0xff]   ;;  %v7487_v29 = vld [vmem:[%s9584_s1 + $0x660] sm:$0xff]  }
  0xc1   : > { %6927 = vmatprep.subr.bf16.mxu0 %v7463_v2  ;;  %2963 = vmatprep.mubr.bf16.mxu0 %v5956_v63  ;;  %v5958_v53 = vcombine.high %v2565_v34, %v2585_v38  ;;  %v5957_v35 = vcombine.low %v2565_v34, %v2585_v38  ;;  %v7473_v2 = vld [vmem:[%s9584_s1 + $0x600] sm:$0xff]   ;;  %v3104_v40 = vsel %vm7851_vm5, %v3102_v10, %v3103_v56  ;;  %v3107_v59 = vrot.slane %v8432_v49, 5  ;;  %v7481_v63 = vld [vmem:[%s9584_s1 + $0x610] sm:$0xff]  }
  0xc2   : > { %v3087_v20 = vsel %vm7851_vm5, %v3085_v58, %v3086_v51  ;;  %v3090_v18 = vsel %vm7851_vm5, %v3088_v33, %v3089_v42  ;;  %v3114_v49 = vrot.slane %v8636_v4, 5  ;;  %v7482_v34 = vld [vmem:[%s9584_s1 + $0x690] sm:$0xff]   ;;  %v3111_v38 = vrot.slane %v8443_v61, 5  ;;  %v7484_v4 = vld [vmem:[%s9584_s1 + $0x6d8] sm:$0xff]  }
  0xc3   : > { %6966 = vmatpush3.bf16.msra.mxu1 %v7462_v54  ;;  %v5991_v54 = vld [vmem:[%s7731_s6 + $0x30] sm:$0xee]  ;;  %2964 = vmatmul.mubr.bf16.gmra.mrb[76].mxu0 %v5955_v44  ;;  %v6074_v47 = vcombine.high %v3084_v9, %v3090_v18  ;;  %v6073_v8 = vcombine.low %v3084_v9, %v3090_v18  ;;  %v3113_v44 = vrot.slane %v3107_v59, 4  ;;  %v7485_v51 = vld [vmem:[%s9584_s1 + $0x618] sm:$0xff]   ;;  %v3121_v58 = vrot.slane %v8490_v39, 5  ;;  %v7489_v9 = vld [vmem:[%s9584_s1 + $0x620] sm:$0xff]  }
  0xc4   : > { %6967 = vmatprep.subr.bf16.mxu1 %v7464_v50  ;;  %6928 = vmatpush3.bf16.msra.mxu0 %v7465_v24  ;;  %v5999_v41 = vrot.slane %v5991_v54, 9  ;;  %v5994_v50 = vld [vmem:[%s7731_s6 + $0x68] sm:$0xee]  ;;  %v3101_v24 = vsel %vm7851_vm5, %v3099_v6, %v3100_v7  ;;  %v7486_v61 = vld [vmem:[%s9584_s1 + $0x698] sm:$0xff]   ;;  %v7495_v56 = vld [vmem:[%s9584_s1 + $0x670] sm:$0xff]  }
  0xc5   : > { %6929 = vmatprep.subr.bf16.mxu0 %v7467_v32  ;;  %3028 = vmatprep.mubr.bf16.mxu1 %v5958_v53  ;;  %v6002_v62 = vrot.slane %v5994_v50, 9  ;;  %v7480_v32 = vld [vmem:[%s9584_s1 + $0x6d0] sm:$0xff]   ;;  %v3116_v53 = vrot.slane %v3111_v38, 4  ;;  %v5996_v54 = vld [vmem:[%s7731_s6 + $0x98] sm:$0xee]  ;;  %v7494_v6 = vld [vmem:[%s9584_s1 + $0x6a8] sm:$0xff]  }
  0xc6   : > { %3029 = vmatmul.mubr.bf16.gmra.mrb[76].mxu1 %v5957_v35  ;;  %v3080_v60 = vsel %vm7851_vm5, %v5999_v41, %v3079_v43  ;;  %v7483_v43 = vld [vmem:[%s9584_s1 + $0x658] sm:$0xff]   ;;  %v5995_v35 = vld [vmem:[%s7731_s6 + $0x90] sm:$0xee]  ;;  %v6004_v3 = vrot.slane %v5996_v54, 9  ;;  %v5998_v7 = vld [vmem:[%s7731_s6 + $0xc8] sm:$0xee] }
  0xc7   : > { %6968 = vmatpush3.bf16.msra.mxu1 %v7466_v22  ;;  %v6072_v21 = vcombine.high %v3080_v60, %v3087_v20  ;;  %v6071_v0 = vcombine.low %v3080_v60, %v3087_v20  ;;  %3551 = vmatprep.mubr.bf16.mxu1 %v6074_v47  ;;  %v3094_v22 = vsel %vm7851_vm5, %v6001_v14, %v3093_v37  ;;  %v6003_v36 = vrot.slane %v5995_v35, 9  ;;  %v7490_v37 = vld [vmem:[%s9584_s1 + $0x6a0] sm:$0xff]   ;;  %v7491_v47 = vld [vmem:[%s9584_s1 + $0x668] sm:$0xff]   ;;  %v7496_v50 = vld [vmem:[%s9584_s1 + $0x6f0] sm:$0xff]  }
  0xc8   : > { %6969 = vmatprep.subr.bf16.mxu1 %v7468_v28  ;;  %6930 = vmatpush3.bf16.msra.mxu0 %v7469_v11  ;;  %v3098_v16 = vsel %vm7851_vm5, %v6002_v62, %v3097_v30  ;;  %v6076_v23 = vcombine.high %v3094_v22, %v3101_v24  ;;  %v6075_v28 = vcombine.low %v3094_v22, %v3101_v24  ;;  %v3127_v20 = vrot.slane %v3121_v58, 4 }
  0xc9   : > { %6995 = vmatprep.subr.bf16.mxu0 %v7471_v57  ;;  %3486 = vmatprep.mubr.bf16.mxu0 %v6072_v21  ;;  %v6078_v31 = vcombine.high %v3098_v16, %v3104_v40  ;;  %v6077_v11 = vcombine.low %v3098_v16, %v3104_v40  ;;  %v3108_v42 = vsel %vm7851_vm5, %v6003_v36, %v3107_v59  ;;  %v7488_v57 = vld [vmem:[%s9584_s1 + $0x6e0] sm:$0xff]   ;;  %v3128_v21 = vrot.slane %v8681_v15, 5  ;;  %v7492_v15 = vld [vmem:[%s9584_s1 + $0x6e8] sm:$0xff]   ;;  %v7497_v40 = vld [vmem:[%s9584_s1 + $0x630] sm:$0xff]  }
  0xca   : > { %v3112_v39 = vsel %vm7851_vm5, %v6004_v3, %v3111_v38  ;;  %v6006_v30 = vrot.slane %v5998_v7, 9  ;;  %v7498_v59 = vld [vmem:[%s9584_s1 + $0x6b0] sm:$0xff]   ;;  %v7507_v36 = vld [vmem:[%s9584_s1 + $0x740] sm:$0xff]   ;;  %v8932_v7 = vld [vmem:[%s7731_s6 + $0xa8] sm:$0xff] }
  0xcb   : > { %6970 = vmatpush3.bf16.msra.mxu1 %v7470_v52  ;;  %3487 = vmatmul.mubr.bf16.vlgmr.msra.gmra.mrb[80].mxu0 %v6071_v0  ;;  %v3117_v52 = vrot.slane %v8639_v5, 5  ;;  %v3115_v5 = vsel %vm7851_vm5, %v3113_v44, %v3114_v49  ;;  %v3125_v0 = vrot.slane %v8501_v13, 5  ;;  %v7493_v13 = vld [vmem:[%s9584_s1 + $0x628] sm:$0xff]   ;;  %v7502_v44 = vld [vmem:[%s9584_s1 + $0x6b8] sm:$0xff]  }
  0xcc   : > { %7035 = vmatprep.subr.bf16.mxu1 %v7472_v17  ;;  %6996 = vmatpush3.bf16.msra.mxu0 %v7473_v2  ;;  %v6080_v33 = vcombine.high %v3108_v42, %v3115_v5  ;;  %v6079_v60 = vcombine.low %v3108_v42, %v3115_v5  ;;  %v3131_v2 = vrot.slane %v8685_v48, 5  ;;  %v5997_v48 = vld [vmem:[%s7731_s6 + $0xc0] sm:$0xee] }
  0xcd   : > { %6997 = vmatprep.subr.bf16.mxu0 %v7475_v12  ;;  %3494 = vmatprep.mubr.bf16.mxu0 %v6076_v23  ;;  %v3118_v41 = vsel %vm7851_vm5, %v3116_v53, %v3117_v52  ;;  %v3129_v12 = vsel %vm7851_vm5, %v3127_v20, %v3128_v21  ;;  %v3126_v26 = vsel %vm7851_vm5, %v6006_v30, %v3125_v0  ;;  %v8886_v53 = vld [vmem:[%s7731_s6 + $0x78] sm:$0xff] }
  0xce   : > { %3552 = vmatmul.mubr.bf16.vlgmr.msra.gmra.mrb[80].mxu1 %v6073_v8  ;;  %v6082_v17 = vcombine.high %v3112_v39, %v3118_v41  ;;  %v6081_v18 = vcombine.low %v3112_v39, %v3118_v41  ;;  %v6005_v8 = vrot.slane %v5997_v48, 9  ;;  %v7509_v39 = vld [vmem:[%s9584_s1 + $0x700] sm:$0xff]   ;;  %v8929_v48 = vld [vmem:[%s7731_s6 + $0x98] sm:$0xff] }
  0xcf   : > { %7036 = vmatpush3.bf16.msra.mxu1 %v7474_v27  ;;  %3559 = vmatprep.mubr.bf16.mxu1 %v6078_v31  ;;  %v3130_v27 = vrot.slane %v3125_v0, 4  ;;  %v7500_v31 = vld [vmem:[%s9584_s1 + $0x6f8] sm:$0xff]  }
  0xd0   : > { %7037 = vmatprep.subr.bf16.mxu1 %v7476_v19  ;;  %6998 = vmatpush3.bf16.msra.mxu0 %v7477_v25  ;;  %v3122_v25 = vsel %vm7851_vm5, %v6005_v8, %v3121_v58 }
  0xd1   : > { %6999 = vmatprep.subr.bf16.mxu0 %v7479_v46  ;;  %v3132_v19 = vsel %vm7851_vm5, %v3130_v27, %v3131_v2  ;;  %v6083_v24 = vcombine.low %v3122_v25, %v3129_v12  ;;  %v8922_v2 = vld [vmem:[%s7731_s6 + $0x90] sm:$0xff] }
  0xd2   : > { %v6086_v14 = vcombine.high %v3126_v26, %v3132_v19  ;;  %v6085_v62 = vcombine.low %v3126_v26, %v3132_v19  ;;  %v6205_v26 = vcombine.low %v8929_v48, %v8932_v7 }
  0xd3   : > { %7038 = vmatpush3.bf16.msra.mxu1 %v7478_v45  ;;  %3495 = vmatmul.mubr.bf16.gmra.mrb[84].mxu0 %v6075_v28  ;;  %v6084_v45 = vcombine.high %v3122_v25, %v3129_v12 }
  0xd4   : > { %7039 = vmatprep.subr.bf16.mxu1 %v7480_v32  ;;  %7000 = vmatpush3.bf16.msra.mxu0 %v7481_v63  ;;  %v7499_v32 = vld [vmem:[%s9584_s1 + $0x678] sm:$0xff]  }
  0xd5   : > { %7001 = vmatprep.subr.bf16.mxu0 %v7483_v43  ;;  %3502 = vmatprep.mubr.bf16.mxu0 %v6080_v33  ;;  %v7501_v63 = vld [vmem:[%s9584_s1 + $0x638] sm:$0xff]   ;;  %v8879_v43 = vld [vmem:[%s7731_s6 + $0x70] sm:$0xff]  ;;  %v7510_v33 = vld [vmem:[%s9584_s1 + $0x780] sm:$0xff]  }
  0xd6   : > { %3560 = vmatmul.mubr.bf16.gmra.mrb[84].mxu1 %v6077_v11  ;;  %v6119_v11 = vld [vmem:[%s7731_s6 + $0x60] sm:$0xff] }
  0xd7   : > { %7040 = vmatpush3.bf16.msra.mxu1 %v7482_v34  ;;  %3567 = vmatprep.mubr.bf16.mxu1 %v6082_v17  ;;  %v6200_v52 = vcombine.high %v6119_v11, %v8879_v43  ;;  %v6199_v54 = vcombine.low %v6119_v11, %v8879_v43  ;;  %v4109_v3 = vshrl.u32 %v6119_v11, 16  ;;  %v4112_v42 = vshll.u32 %v6119_v11, 16  ;;  %v7526_v11 = vld [vmem:[%s9584_s1 + $0x798] sm:$0xff]  }
  0xd8   : > { %7041 = vmatprep.subr.bf16.mxu1 %v7484_v4  ;;  %7002 = vmatpush3.bf16.msra.mxu0 %v7485_v51  ;;  %v8883_v51 = vld [vmem:[%s7731_s6 + $0x68] sm:$0xff] }
  0xd9   : > { %7003 = vmatprep.subr.bf16.mxu0 %v7487_v29  ;;  %v6202_v58 = vcombine.high %v8883_v51, %v8886_v53  ;;  %v6201_v41 = vcombine.low %v8883_v51, %v8886_v53  ;;  %v7508_v29 = vld [vmem:[%s9584_s1 + $0x7c0] sm:$0xff]   ;;  %v4111_v20 = vrot.slane %v4109_v3, 4  ;;  %v4114_v17 = vrot.slane %v4112_v42, 5 }
  0xda   : > { %v4157_v3 = vshrl.u32 %v8922_v2, 16 }
  0xdb   : > { %7042 = vmatpush3.bf16.msra.mxu1 %v7486_v61  ;;  %3503 = vmatmul.mubr.bf16.gmra.mrb[88].mxu0 %v6079_v60  ;;  %v7511_v60 = vld [vmem:[%s9584_s1 + $0x748] sm:$0xff]  }
  0xdc   : > { %7043 = vmatprep.subr.bf16.mxu1 %v7488_v57  ;;  %7004 = vmatpush3.bf16.msra.mxu0 %v7489_v9  ;;  %v7512_v9 = vld [vmem:[%s9584_s1 + $0x7c8] sm:$0xff]  }
  0xdd   : > { %7005 = vmatprep.subr.bf16.mxu0 %v7491_v47  ;;  %3510 = vmatprep.mubr.bf16.mxu0 %v6084_v45  ;;  %v7514_v47 = vld [vmem:[%s9584_s1 + $0x788] sm:$0xff]   ;;  %v7520_v45 = vld [vmem:[%s9584_s1 + $0x7d0] sm:$0xff]  }
  0xde   : > { %3568 = vmatmul.mubr.bf16.gmra.mrb[88].mxu1 %v6081_v18  ;;  %v4115_v18 = vor.u32 %v4114_v17, %v4111_v20  ;;  %v7532_v20 = vld [vmem:[%s9584_s1 + $0x7e0] sm:$0xff]  }
  0xdf   : > { %7044 = vmatpush3.bf16.msra.mxu1 %v7490_v37  ;;  %3575 = vmatprep.mubr.bf16.mxu1 %v6086_v14  ;;  %v7513_v37 = vld [vmem:[%s9584_s1 + $0x708] sm:$0xff]   ;;  %v7533_v17 = vld [vmem:[%s9584_s1 + $0x720] sm:$0xff]  }
  0xe0   : > { %7045 = vmatprep.subr.bf16.mxu1 %v7492_v15  ;;  %7006 = vmatpush3.bf16.msra.mxu0 %v7493_v13  ;;  %v4118_v13 = vshll.u32 %v8879_v43, 16  ;;  %v8934_v30 = vrot.slane %v4115_v18, 4 }
  0xe1   : > { %7007 = vmatprep.subr.bf16.mxu0 %v7495_v56  ;;  %v6206_v56 = vcombine.high %v8929_v48, %v8932_v7 }
  0xe3   : > { %7046 = vmatpush3.bf16.msra.mxu1 %v7494_v6  ;;  %3511 = vmatmul.mubr.bf16.gmra.mrb[92].mxu0 %v6083_v24  ;;  %v8926_v6 = vld [vmem:[%s7731_s6 + $0xa0] sm:$0xff] }
  0xe4   : > { %7047 = vmatprep.subr.bf16.mxu1 %v7496_v50  ;;  %7008 = vmatpush3.bf16.msra.mxu0 %v7497_v40  ;;  %v6204_v19 = vcombine.high %v8922_v2, %v8926_v6  ;;  %v6203_v25 = vcombine.low %v8922_v2, %v8926_v6  ;;  %v7519_v50 = vld [vmem:[%s9584_s1 + $0x750] sm:$0xff]  }
  0xe5   : > { %7009 = vmatprep.subr.bf16.mxu0 %v7499_v32  ;;  %3978 = vmatprep.mubr.bf16.mxu0 %v6200_v52  ;;  %v7521_v40 = vld [vmem:[%s9584_s1 + $0x710] sm:$0xff]   ;;  %v4136_v32 = vshrl.u32 %v8879_v43, 16  ;;  %v4126_v43 = vshll.u32 %v8883_v51, 16  ;;  %v8984_v52 = vld [vmem:[%s7731_s6 + $0xc8] sm:$0xff] }
  0xe6   : > { %3576 = vmatmul.mubr.bf16.gmra.mrb[92].mxu1 %v6085_v62 }
  0xe7   : > { %7048 = vmatpush3.bf16.msra.mxu1 %v7498_v59  ;;  %4043 = vmatprep.mubr.bf16.mxu1 %v6202_v58  ;;  %v7522_v59 = vld [vmem:[%s9584_s1 + $0x790] sm:$0xff]   ;;  %v4146_v58 = vshrl.u32 %v8886_v53, 16 }
  0xe8   : > { %7049 = vmatprep.subr.bf16.mxu1 %v7500_v31  ;;  %7010 = vmatpush3.bf16.msra.mxu0 %v7501_v63  ;;  %v4123_v31 = vshrl.u32 %v8883_v51, 16 }
  0xe9   : > { %7075 = vmatprep.subr.bf16.mxu0 %v7507_v36 }
  0xeb   : > { %7050 = vmatpush3.bf16.msra.mxu1 %v7502_v44  ;;  %3979 = vmatmul.mubr.bf16.vlgmr.msra.gmra.mrb[96].mxu0 %v6199_v54  ;;  %v4138_v44 = vrot.slane %v4136_v32, 4  ;;  %v4132_v54 = vshll.u32 %v8886_v53, 16  ;;  %v7531_v53 = vld [vmem:[%s9584_s1 + $0x760] sm:$0xff]  }
  0xec   : > { %7115 = vmatprep.subr.bf16.mxu1 %v7508_v29  ;;  %7076 = vmatpush3.bf16.msra.mxu0 %v7509_v39  ;;  %v4128_v39 = vrot.slane %v4126_v43, 5  ;;  %v7545_v43 = vld [vmem:[%s9584_s1 + $0x730] sm:$0xff]  }
  0xed   : > { %7077 = vmatprep.subr.bf16.mxu0 %v7511_v60  ;;  %3986 = vmatprep.mubr.bf16.mxu0 %v6204_v19  ;;  %v9033_v19 = vld [vmem:[%s7731_s6 + $0xf0] sm:$0xff] }
  0xee   : > { %4044 = vmatmul.mubr.bf16.vlgmr.msra.gmra.mrb[96].mxu1 %v6201_v41 }
  0xef   : > { %7116 = vmatpush3.bf16.msra.mxu1 %v7510_v33  ;;  %4051 = vmatprep.mubr.bf16.mxu1 %v6206_v56  ;;  %v9007_v33 = vrot.slane %v4132_v54, 5  ;;  %v9036_v56 = vld [vmem:[%s7731_s6 + $0x100] sm:$0xff]  ;;  %v4160_v54 = vshll.u32 %v8922_v2, 16  ;;  %v4184_v2 = vshrl.u32 %v8926_v6, 16 }
  0xf0   : > { %7117 = vmatprep.subr.bf16.mxu1 %v7512_v9  ;;  %7078 = vmatpush3.bf16.msra.mxu0 %v7513_v37  ;;  %v4148_v9 = vrot.slane %v4146_v58, 4  ;;  %v7535_v37 = vld [vmem:[%s9584_s1 + $0x768] sm:$0xff]   ;;  %v7546_v58 = vld [vmem:[%s9584_s1 + $0x7b0] sm:$0xff]  }
  0xf1   : > { %7079 = vmatprep.subr.bf16.mxu0 %v7519_v50 }
  0xf3   : > { %7118 = vmatpush3.bf16.msra.mxu1 %v7514_v47  ;;  %3987 = vmatmul.mubr.bf16.gmra.mrb[100].mxu0 %v6203_v25  ;;  %v4149_v47 = vor.u32 %v4148_v9, %v9007_v33  ;;  %v9092_v9 = vld [vmem:[%s7731_s6 + $0x88] sm:$0x11] }
  0xf4   : > { %7119 = vmatprep.subr.bf16.mxu1 %v7520_v45  ;;  %7080 = vmatpush3.bf16.msra.mxu0 %v7521_v40  ;;  %v9043_v45 = vld [vmem:[%s7731_s6 + $0xf8] sm:$0xff] }
  0xf5   : > { %v9038_v25 = vrot.slane %v4149_v47, 4 }
  0xf6   : > { %4052 = vmatmul.mubr.bf16.gmra.mrb[100].mxu1 %v6205_v26 }
  0xf7   : > { %7120 = vmatpush3.bf16.msra.mxu1 %v7522_v59 }
  0xfa   : > { %v6531_v10 = vpop.f32.mrb[0].mxu0 }
  0xfb   : > { %v6532_v46 = vpop.f32.mrb[1].mxu0  ;;  %v6571_v23 = vpop.f32.mrb[0].mxu1 }
  0xfc   : > { %v6533_v22 = vadd.f32 %v6532_v46, %v6531_v10  ;;  %v6534_v16 = vpop.f32.mrb[2].mxu0  ;;  %v6572_v28 = vpop.f32.mrb[1].mxu1 }
  0xfd   : > { %v6573_v49 = vadd.f32 %v6572_v28, %v6571_v23  ;;  %v6574_v34 = vpop.f32.mrb[2].mxu1  ;;  %v6535_v38 = vpop.f32.mrb[3].mxu0  ;;  %v7523_v23 = vld [vmem:[%s9584_s1 + $0x758] sm:$0xff]  }
  0xfe   : > { %v6575_v4 = vpop.f32.mrb[3].mxu1  ;;  %v6536_v35 = vadd.f32 %v6535_v38, %v6534_v16  ;;  %v7524_v28 = vld [vmem:[%s9584_s1 + $0x7d8] sm:$0xff]   ;;  %7081 = vmatprep.subr.bf16.mxu0 %v7523_v23  ;;  %v8978_v38 = vld [vmem:[%s7731_s6 + $0xc0] sm:$0xff]  ;;  %v7543_v23 = vld [vmem:[%s9584_s1 + $0x770] sm:$0xff]  }
  0xff   : > { %v8888_v61 = vadd.f32 %v6573_v49, %v6533_v22  ;;  %v6576_v5 = vadd.f32 %v6575_v4, %v6574_v34  ;;  %v8968_v49 = vrot.slane %v4118_v13, 5  ;;  %v7525_v34 = vld [vmem:[%s9584_s1 + $0x718] sm:$0xff]   ;;  %7121 = vmatprep.subr.bf16.mxu1 %v7524_v28  ;;  %v8981_v4 = vld [vmem:[%s7731_s6 + $0xd0] sm:$0xff]  ;;  %v7537_v13 = vld [vmem:[%s9584_s1 + $0x728] sm:$0xff]  }
 0x100   : > { %7082 = vmatpush3.bf16.msra.mxu0 %v7525_v34  ;;  %7122 = vmatpush3.bf16.msra.mxu1 %v7526_v11  ;;  %v6208_v36 = vcombine.high %v8978_v38, %v8981_v4  ;;  %v6207_v51 = vcombine.low %v8978_v38, %v8981_v4  ;;  %v7544_v28 = vld [vmem:[%s9584_s1 + $0x7f0] sm:$0xff]  }
 0x101   : > { %v8904_v57 = vadd.f32 %v6576_v5, %v6536_v35  ;;  %v4125_v35 = vrot.slane %v4123_v31, 4  ;;  %v8991_v5 = vld [vmem:[%s7731_s6 + $0xd8] sm:$0xff]  ;;  %v4139_v42 = vor.u32 %v4138_v44, %v8968_v49  ;;  %7083 = vmatprep.subr.bf16.mxu0 %v7531_v53  ;;  %7123 = vmatprep.subr.bf16.mxu1 %v7532_v20 }
 0x102   : > { %v6210_v41 = vcombine.high %v8984_v52, %v8991_v5  ;;  %v6209_v29 = vcombine.low %v8984_v52, %v8991_v5  ;;  %3994 = vmatprep.mubr.bf16.mxu0 %v6208_v36  ;;  %v4166_v36 = vshll.u32 %v8926_v6, 16  ;;  %v7548_v53 = vld [vmem:[%s9584_s1 + $0x7f8] sm:$0xff]   ;;  %v4121_v6 = vsel %vm7772_vm2, %v8934_v30, %v8968_v49  ;;  %v7554_v30 = vld [vmem:[%s9584_s1 + $0x880] sm:$0xff]  }
 0x103   : > { %v6577_v8 = vpop.f32.mrb[4].mxu1  ;;  %3995 = vmatmul.mubr.bf16.gmra.mrb[104].mxu0 %v6207_v51  ;;  %v4129_v60 = vor.u32 %v4128_v39, %v4125_v35  ;;  %v7547_v51 = vld [vmem:[%s9584_s1 + $0x778] sm:$0xff]  }
 0x104   : > { %v6578_v10 = vpop.f32.mrb[5].mxu1  ;;  %4059 = vmatprep.mubr.bf16.mxu1 %v6210_v41  ;;  %7084 = vmatpush3.bf16.msra.mxu0 %v7533_v17  ;;  %v7549_v39 = vld [vmem:[%s9584_s1 + $0x738] sm:$0xff]   ;;  %v4168_v20 = vrot.slane %v4166_v36, 5 }
 0x105   : > { %v6537_v21 = vpop.f32.mrb[4].mxu0  ;;  %v6579_v14 = vadd.f32 %v6578_v10, %v6577_v8  ;;  %v6580_v24 = vpop.f32.mrb[6].mxu1  ;;  %4060 = vmatmul.mubr.bf16.gmra.mrb[104].mxu1 %v6209_v29  ;;  %7085 = vmatprep.subr.bf16.mxu0 %v7535_v37  ;;  %v9027_v8 = vrot.slane %v4129_v60, 4  ;;  %v6212_v10 = vcombine.high %v9033_v19, %v9036_v56  ;;  %v4159_v29 = vrot.slane %v4157_v3, 4  ;;  %v7550_v17 = vld [vmem:[%s9584_s1 + $0x7b8] sm:$0xff]   ;;  %v7552_v37 = vld [vmem:[%s9584_s1 + $0x8c0] sm:$0xff]  }
 0x106   : > { %v6538_v0 = vpop.f32.mrb[5].mxu0  ;;  %v6581_v46 = vpop.f32.mrb[7].mxu1  ;;  %v9087_v60 = vld [vmem:[%s7731_s6 + $0x80] sm:$0x11] }
 0x107   : > { %v6539_v15 = vadd.f32 %v6538_v0, %v6537_v21  ;;  %v6540_v27 = vpop.f32.mrb[6].mxu0  ;;  %v6582_v16 = vadd.f32 %v6581_v46, %v6580_v24  ;;  %v7534_v21 = vld [vmem:[%s9584_s1 + $0x7a0] sm:$0xff]   ;;  %v9018_v0 = vrot.slane %v4139_v42, 4  ;;  %v6211_v24 = vcombine.low %v9033_v19, %v9036_v56  ;;  %4002 = vmatprep.mubr.bf16.mxu0 %v6212_v10 }
 0x108   : > { %v6541_v12 = vpop.f32.mrb[7].mxu0  ;;  %7124 = vmatpush3.bf16.msra.mxu1 %v7534_v21  ;;  %7086 = vmatpush3.bf16.msra.mxu0 %v7537_v13  ;;  %v4162_v42 = vrot.slane %v4160_v54, 5  ;;  %v4142_v3 = vshll.u32 %v9087_v60, 16  ;;  %v7551_v21 = vld [vmem:[%s9584_s1 + $0x840] sm:$0xff]   ;;  %v4135_v13 = vsel %vm7772_vm2, %v9027_v8, %v9007_v33  ;;  %v7555_v8 = vld [vmem:[%s9584_s1 + $0x848] sm:$0xff]  }
 0x109   : > { %v6542_v62 = vadd.f32 %v6541_v12, %v6540_v27  ;;  %v8956_v22 = vadd.f32 %v6579_v14, %v6539_v15  ;;  %v7536_v15 = vld [vmem:[%s9584_s1 + $0x7e8] sm:$0xff]   ;;  %7087 = vmatprep.subr.bf16.mxu0 %v7543_v23 }
 0x10a   : > { %7125 = vmatprep.subr.bf16.mxu1 %v7536_v15  ;;  %v7538_v12 = vld [vmem:[%s9584_s1 + $0x7a8] sm:$0xff]   ;;  %v4163_v47 = vor.u32 %v4162_v42, %v4159_v29  ;;  %v4144_v15 = vrot.slane %v4142_v3, 5 }
 0x10b   : > { %v8966_v63 = vadd.f32 %v6582_v16, %v6542_v62  ;;  %v9046_v14 = vld [vmem:[%s7731_s6 + $0x108] sm:$0xff]  ;;  %4003 = vmatmul.mubr.bf16.gmra.mrb[108].mxu0 %v6211_v24 }
 0x10c   : > { %7126 = vmatpush3.bf16.msra.mxu1 %v7538_v12  ;;  %v6214_v16 = vcombine.high %v9043_v45, %v9046_v14  ;;  %v6213_v32 = vcombine.low %v9043_v45, %v9046_v14  ;;  %7088 = vmatpush3.bf16.msra.mxu0 %v7545_v43  ;;  %v4164_v24 = vrot.slane %v4163_v47, 4  ;;  %v4194_v43 = vshrl.u32 %v8932_v7, 16  ;;  %v7562_v47 = vld [vmem:[%s9584_s1 + $0x890] sm:$0xff]  }
 0x10d   : > { %v6543_v18 = vpop.f32.mrb[8].mxu0  ;;  %7127 = vmatprep.subr.bf16.mxu1 %v7544_v28  ;;  %7089 = vmatprep.subr.bf16.mxu0 %v7547_v51  ;;  %v4174_v28 = vshll.u32 %v8929_v48, 16  ;;  %v7560_v51 = vld [vmem:[%s9584_s1 + $0x8d0] sm:$0xff]  }
 0x10e   : > { %v6544_v26 = vpop.f32.mrb[9].mxu0  ;;  %4067 = vmatprep.mubr.bf16.mxu1 %v6214_v16  ;;  %v4169_v54 = vsel %vm7772_vm2, %v4164_v24, %v4168_v20  ;;  %v7565_v24 = vld [vmem:[%s9584_s1 + $0x818] sm:$0xff]  }
 0x10f   : > { %v6545_v62 = vadd.f32 %v6544_v26, %v6543_v18  ;;  %v6546_v46 = vpop.f32.mrb[10].mxu0  ;;  %4068 = vmatmul.mubr.bf16.gmra.mrb[108].mxu1 %v6213_v32  ;;  %v4152_v18 = vshll.u32 %v9092_v9, 16  ;;  %v7553_v26 = vld [vmem:[%s9584_s1 + $0x800] sm:$0xff]   ;;  %v9135_v32 = vld [vmem:[%s7731_s6 + $0xb0] sm:$0x11]  ;;  %v4176_v36 = vrot.slane %v4174_v28, 5 }
 0x110   : > { %v6547_v31 = vpop.f32.mrb[11].mxu0  ;;  %7128 = vmatpush3.bf16.msra.mxu1 %v7546_v58  ;;  %7090 = vmatpush3.bf16.msra.mxu0 %v7549_v39  ;;  %v9180_v28 = vld [vmem:[%s7731_s6 + $0xe0] sm:$0x11] }
 0x111   : > { %v6583_v27 = vpop.f32.mrb[8].mxu1  ;;  %v6548_v44 = vadd.f32 %v6547_v31, %v6546_v46  ;;  %7129 = vmatprep.subr.bf16.mxu1 %v7548_v53  ;;  %7155 = vmatprep.subr.bf16.mxu0 %v7551_v21  ;;  %v4154_v12 = vrot.slane %v4152_v18, 5  ;;  %v4186_v46 = vrot.slane %v4184_v2, 4  ;;  %v9138_v31 = vld [vmem:[%s7731_s6 + $0xb8] sm:$0x11]  ;;  %v4196_v53 = vrot.slane %v4194_v43, 4 }
 0x112   : > { %v6584_v50 = vpop.f32.mrb[9].mxu1  ;;  %v7561_v2 = vld [vmem:[%s9584_s1 + $0x810] sm:$0xff]   ;;  %v9185_v43 = vld [vmem:[%s7731_s6 + $0xe8] sm:$0x11] }
 0x113   : > { %v6585_v40 = vadd.f32 %v6584_v50, %v6583_v27  ;;  %v6586_v59 = vpop.f32.mrb[10].mxu1  ;;  %v4171_v27 = vshrl.u32 %v8929_v48, 16  ;;  %v4145_v50 = vsel %vm7772_vm2, %v9018_v0, %v4144_v15  ;;  %v4155_v33 = vsel %vm7772_vm2, %v9038_v25, %v4154_v12  ;;  %v7556_v0 = vld [vmem:[%s9584_s1 + $0x8c8] sm:$0xff]   ;;  %v7559_v48 = vld [vmem:[%s9584_s1 + $0x850] sm:$0xff]  }
 0x114   : > { %v6587_v11 = vpop.f32.mrb[11].mxu1  ;;  %7130 = vmatpush3.bf16.msra.mxu1 %v7550_v17  ;;  %v6335_v49 = vcombine.low %v4121_v6, %v4145_v50  ;;  %v6336_v10 = vcombine.high %v4121_v6, %v4145_v50  ;;  %v7558_v25 = vld [vmem:[%s9584_s1 + $0x888] sm:$0xff]   ;;  %v4187_v23 = vor.u32 %v4186_v46, %v4168_v20  ;;  %v7564_v50 = vld [vmem:[%s9584_s1 + $0x8d8] sm:$0xff]  }
 0x115   : > { %v9060_v34 = vadd.f32 %v6585_v40, %v6545_v62  ;;  %v6588_v35 = vadd.f32 %v6587_v11, %v6586_v59  ;;  %7195 = vmatprep.subr.bf16.mxu1 %v7552_v37  ;;  %v6337_v62 = vcombine.low %v4135_v13, %v4155_v33  ;;  %v6338_v40 = vcombine.high %v4135_v13, %v4155_v33  ;;  %v7557_v59 = vld [vmem:[%s9584_s1 + $0x808] sm:$0xff]  }
 0x116   : > { %4653 = vmatprep.mubr.bf16.mxu0 %v6336_v10  ;;  %v4173_v16 = vrot.slane %v4171_v27, 4  ;;  %v4180_v11 = vshll.u32 %v8932_v7, 16  ;;  %v4188_v58 = vrot.slane %v4187_v23, 4  ;;  %v6549_v3 = vpop.f32.mrb[12].mxu0 }
 0x117   : > { %v9073_v41 = vadd.f32 %v6588_v35, %v6548_v44  ;;  %4718 = vmatprep.mubr.bf16.mxu1 %v6338_v40  ;;  %4654 = vmatmul.mubr.bf16.vlgmr.msra.gmra.mrb[112].mxu0 %v6335_v49  ;;  %v4190_v44 = vshll.u32 %v9135_v32, 16  ;;  %v4200_v35 = vshll.u32 %v9138_v31, 16  ;;  %v6550_v15 = vpop.f32.mrb[13].mxu0 }
 0x118   : > { %4719 = vmatmul.mubr.bf16.vlgmr.msra.gmra.mrb[112].mxu1 %v6337_v62  ;;  %7156 = vmatpush3.bf16.msra.mxu0 %v7553_v26  ;;  %v4182_v7 = vrot.slane %v4180_v11, 5  ;;  %v4177_v39 = vor.u32 %v4176_v36, %v4173_v16  ;;  %v6551_v13 = vadd.f32 %v6550_v15, %v6549_v3  ;;  %v7563_v26 = vld [vmem:[%s9584_s1 + $0x858] sm:$0xff]   ;;  %v6552_v10 = vpop.f32.mrb[14].mxu0  ;;  %v4208_v11 = vshll.u32 %v8978_v38, 16 }
 0x119   : > { %7196 = vmatpush3.bf16.msra.mxu1 %v7554_v30  ;;  %7157 = vmatprep.subr.bf16.mxu0 %v7555_v8  ;;  %v4192_v29 = vrot.slane %v4190_v44, 5  ;;  %v4202_v42 = vrot.slane %v4200_v35, 5  ;;  %v6589_v6 = vpop.f32.mrb[12].mxu1  ;;  %v6553_v62 = vpop.f32.mrb[15].mxu0  ;;  %v4205_v44 = vshrl.u32 %v8978_v38, 16  ;;  %v4214_v35 = vshll.u32 %v8981_v4, 16 }
 0x11a   : > { %7197 = vmatprep.subr.bf16.mxu1 %v7556_v0  ;;  %v4197_v17 = vor.u32 %v4196_v53, %v4182_v7  ;;  %v4178_v18 = vrot.slane %v4177_v39, 4  ;;  %v6590_v12 = vpop.f32.mrb[13].mxu1  ;;  %v4219_v36 = vshrl.u32 %v8984_v52, 16  ;;  %v7567_v38 = vld [vmem:[%s9584_s1 + $0x860] sm:$0xff]   ;;  %v4242_v3 = vshrl.u32 %v8991_v5, 16 }
 0x11b   : > { %v4193_v20 = vsel %vm7772_vm2, %v4188_v58, %v4192_v29  ;;  %v6591_v49 = vadd.f32 %v6590_v12, %v6589_v6  ;;  %v6592_v33 = vpop.f32.mrb[14].mxu1  ;;  %v4238_v58 = vshll.u32 %v9180_v28, 16  ;;  %v4210_v29 = vrot.slane %v4208_v11, 5 }
 0x11c   : > { %7158 = vmatpush3.bf16.msra.mxu0 %v7557_v59  ;;  %v6340_v21 = vcombine.high %v4169_v54, %v4193_v20  ;;  %v6339_v37 = vcombine.low %v4169_v54, %v4193_v20  ;;  %v4198_v27 = vrot.slane %v4197_v17, 4  ;;  %v4183_v30 = vsel %vm7772_vm2, %v4178_v18, %v4182_v7  ;;  %v7566_v59 = vld [vmem:[%s9584_s1 + $0x898] sm:$0xff]   ;;  %v6593_v16 = vpop.f32.mrb[15].mxu1 }
 0x11d   : > { %7198 = vmatpush3.bf16.msra.mxu1 %v7558_v25  ;;  %7159 = vmatprep.subr.bf16.mxu0 %v7559_v48  ;;  %v9174_v46 = vadd.f32 %v6591_v49, %v6551_v13  ;;  %v6554_v25 = vadd.f32 %v6553_v62, %v6552_v10  ;;  %v6594_v23 = vadd.f32 %v6593_v16, %v6592_v33  ;;  %v4232_v54 = vshrl.u32 %v8981_v4, 16 }
 0x11e   : > { %7199 = vmatprep.subr.bf16.mxu1 %v7560_v51  ;;  %4661 = vmatprep.mubr.bf16.mxu0 %v6340_v21  ;;  %v4203_v8 = vsel %vm7772_vm2, %v4198_v27, %v4202_v42  ;;  %v4207_v51 = vrot.slane %v4205_v44, 4  ;;  %v4222_v7 = vshll.u32 %v8984_v52, 16  ;;  %v4216_v53 = vrot.slane %v4214_v35, 5  ;;  %v7568_v52 = vld [vmem:[%s9584_s1 + $0x8e0] sm:$0xff]   ;;  %v7572_v44 = vld [vmem:[%s9584_s1 + $0x8e8] sm:$0xff]  }
 0x11f   : > { %4662 = vmatmul.mubr.bf16.gmra.mrb[116].mxu0 %v6339_v37  ;;  %v6342_v40 = vcombine.high %v4183_v30, %v4203_v8  ;;  %v6341_v0 = vcombine.low %v4183_v30, %v4203_v8  ;;  %v9191_v48 = vadd.f32 %v6594_v23, %v6554_v25  ;;  %v4234_v42 = vrot.slane %v4232_v54, 4  ;;  %v7569_v37 = vld [vmem:[%s9584_s1 + $0x820] sm:$0xff]  }
 0x120   : > { %7160 = vmatpush3.bf16.msra.mxu0 %v7561_v2  ;;  %v4240_v4 = vrot.slane %v4238_v58, 5  ;;  %v4221_v39 = vrot.slane %v4219_v36, 4  ;;  %v4211_v20 = vor.u32 %v4210_v29, %v4207_v51  ;;  %v4224_v17 = vrot.slane %v4222_v7, 5  ;;  %v7573_v58 = vld [vmem:[%s9584_s1 + $0x828] sm:$0xff]  }
 0x121   : > { %7200 = vmatpush3.bf16.msra.mxu1 %v7562_v47  ;;  %7161 = vmatprep.subr.bf16.mxu0 %v7563_v26  ;;  %v4228_v2 = vshll.u32 %v8991_v5, 16  ;;  %v4235_v21 = vor.u32 %v4234_v42, %v4216_v53  ;;  %v4248_v18 = vshll.u32 %v9185_v43, 16  ;;  %v4244_v27 = vrot.slane %v4242_v3, 4  ;;  %v7570_v5 = vld [vmem:[%s9584_s1 + $0x8a0] sm:$0xff]   ;;  %v6611_v26 = vpop.f32.mrb[16].mxu0  ;;  %v7574_v29 = vld [vmem:[%s9584_s1 + $0x8a8] sm:$0xff]  }
 0x122   : > { %7201 = vmatprep.subr.bf16.mxu1 %v7564_v50  ;;  %4726 = vmatprep.mubr.bf16.mxu1 %v6342_v40  ;;  %v4212_v47 = vrot.slane %v4211_v20, 4  ;;  %v4225_v6 = vor.u32 %v4224_v17, %v4221_v39  ;;  %v6651_v50 = vpop.f32.mrb[16].mxu1  ;;  %v6612_v33 = vpop.f32.mrb[17].mxu0  ;;  %v9236_v20 = vld [vmem:[%s7731_s6 + $0x118] sm:$0x11]  ;;  %v4256_v3 = vshll.u32 %v9033_v19, 16 }
 0x123   : > { %4727 = vmatmul.mubr.bf16.gmra.mrb[116].mxu1 %v6341_v0  ;;  %v4230_v15 = vrot.slane %v4228_v2, 5  ;;  %v4236_v13 = vrot.slane %v4235_v21, 4  ;;  %v4250_v12 = vrot.slane %v4248_v18, 5  ;;  %v6652_v8 = vpop.f32.mrb[17].mxu1  ;;  %v6613_v40 = vadd.f32 %v6612_v33, %v6611_v26  ;;  %v6614_v11 = vpop.f32.mrb[18].mxu0  ;;  %v7575_v21 = vld [vmem:[%s9584_s1 + $0x870] sm:$0xff]  }
 0x124   : > { %7162 = vmatpush3.bf16.msra.mxu0 %v7565_v24  ;;  %v4217_v30 = vsel %vm7772_vm2, %v4212_v47, %v4216_v53  ;;  %v4226_v49 = vrot.slane %v4225_v6, 4  ;;  %v7571_v24 = vld [vmem:[%s9584_s1 + $0x868] sm:$0xff]   ;;  %v6653_v0 = vadd.f32 %v6652_v8, %v6651_v50  ;;  %v6654_v35 = vpop.f32.mrb[18].mxu1  ;;  %v6615_v36 = vpop.f32.mrb[19].mxu0  ;;  %v9231_v53 = vld [vmem:[%s7731_s6 + $0x110] sm:$0x11] }
 0x125   : > { %7202 = vmatpush3.bf16.msra.mxu1 %v7566_v59  ;;  %7163 = vmatprep.subr.bf16.mxu0 %v7567_v38  ;;  %v4245_v10 = vor.u32 %v4244_v27, %v4230_v15  ;;  %v4241_v62 = vsel %vm7772_vm2, %v4236_v13, %v4240_v4  ;;  %v1241_v54 = vadd.f32 %v6613_v40, %v8888_v61  ;;  %v6655_v38 = vpop.f32.mrb[19].mxu1  ;;  %v4253_v2 = vshrl.u32 %v9033_v19, 16  ;;  %v7577_v33 = vld [vmem:[%s9584_s1 + $0x830] sm:$0xff]  }
 0x126   : > { %7203 = vmatprep.subr.bf16.mxu1 %v7568_v52  ;;  %v6344_v59 = vcombine.high %v4217_v30, %v4241_v62  ;;  %v4231_v16 = vsel %vm7772_vm2, %v4226_v49, %v4230_v15  ;;  %v6343_v23 = vcombine.low %v4217_v30, %v4241_v62  ;;  %v6616_v7 = vadd.f32 %v6615_v36, %v6614_v11  ;;  %v7578_v62 = vld [vmem:[%s9584_s1 + $0x8b0] sm:$0xff]   ;;  %v6617_v40 = vpop.f32.mrb[20].mxu0 }
 0x127   : > { %v4246_v25 = vrot.slane %v4245_v10, 4  ;;  %v9233_v4 = vadd.f32 %v6653_v0, %v1241_v54  ;;  %v6656_v39 = vadd.f32 %v6655_v38, %v6654_v35  ;;  %v4262_v52 = vshll.u32 %v9036_v56, 16  ;;  %v6618_v11 = vpop.f32.mrb[21].mxu0  ;;  %v7580_v38 = vld [vmem:[%s9584_s1 + $0x8f8] sm:$0xff]  }
 0x128   : > { %7164 = vmatpush3.bf16.msra.mxu0 %v7569_v37  ;;  %4669 = vmatprep.mubr.bf16.mxu0 %v6344_v59  ;;  %v1244_v17 = vadd.f32 %v6616_v7, %v8904_v57  ;;  %v4280_v18 = vshrl.u32 %v9036_v56, 16  ;;  %v4286_v37 = vshll.u32 %v9231_v53, 16  ;;  %v4267_v47 = vshrl.u32 %v9043_v45, 16  ;;  %v7579_v59 = vld [vmem:[%s9584_s1 + $0x878] sm:$0xff]  }
 0x129   : > { %7204 = vmatpush3.bf16.msra.mxu1 %v7570_v5  ;;  %7165 = vmatprep.subr.bf16.mxu0 %v7571_v24  ;;  %v4251_v51 = vsel %vm7772_vm2, %v4246_v25, %v4250_v12  ;;  %v4270_v6 = vshll.u32 %v9043_v45, 16  ;;  %v4255_v15 = vrot.slane %v4253_v2, 4  ;;  %v4258_v19 = vrot.slane %v4256_v3, 5  ;;  %v7576_v5 = vld [vmem:[%s9584_s1 + $0x8f0] sm:$0xff]   ;;  %v6657_v0 = vpop.f32.mrb[20].mxu1  ;;  %v7581_v2 = vld [vmem:[%s9584_s1 + $0x838] sm:$0xff]  }
 0x12a   : > { %7205 = vmatprep.subr.bf16.mxu1 %v7572_v44  ;;  %v6346_v42 = vcombine.high %v4231_v16, %v4251_v51  ;;  %4670 = vmatmul.mubr.bf16.gmra.mrb[120].mxu0 %v6343_v23  ;;  %v6345_v61 = vcombine.low %v4231_v16, %v4251_v51  ;;  %v9249_v57 = vadd.f32 %v6656_v39, %v1244_v17  ;;  %v4264_v27 = vrot.slane %v4262_v52, 5  ;;  %v6658_v35 = vpop.f32.mrb[21].mxu1 }
 0x12b   : > { %v4282_v13 = vrot.slane %v4280_v18, 4  ;;  %v4288_v12 = vrot.slane %v4286_v37, 5  ;;  %v4269_v26 = vrot.slane %v4267_v47, 4  ;;  %v4272_v50 = vrot.slane %v4270_v6, 5  ;;  %v6660_v17 = vpop.f32.mrb[22].mxu1  ;;  %v7582_v37 = vld [vmem:[%s9584_s1 + $0x8b8] sm:$0xff]  }
 0x12c   : > { %7166 = vmatpush3.bf16.msra.mxu0 %v7573_v58  ;;  %4734 = vmatprep.mubr.bf16.mxu1 %v6346_v42  ;;  %v4259_v30 = vor.u32 %v4258_v19, %v4255_v15  ;;  %v4276_v49 = vshll.u32 %v9046_v14, 16  ;;  %v4290_v45 = vshrl.u32 %v9046_v14, 16  ;;  %v4296_v10 = vshll.u32 %v9236_v20, 16  ;;  %v6620_v42 = vpop.f32.mrb[22].mxu0  ;;  %v6661_v6 = vpop.f32.mrb[23].mxu1  ;;  %v7583_v19 = vld [vmem:[%s7731_s6 + $0x70] sm:$0xff] }
 0x12d   : > { %7206 = vmatpush3.bf16.msra.mxu1 %v7574_v29  ;;  %7167 = vmatprep.subr.bf16.mxu0 %v7575_v21  ;;  %v4283_v8 = vor.u32 %v4282_v13, %v4264_v27  ;;  %v4273_v24 = vor.u32 %v4272_v50, %v4269_v26  ;;  %v6619_v36 = vadd.f32 %v6618_v11, %v6617_v40  ;;  %v6383_v15 = vld [vmem:[%s7731_s6 + $0x60] sm:$0xee]  ;;  %v6385_v40 = vld [vmem:[%s7731_s6 + $0x90] sm:$0xee] }
 0x12e   : > { %4735 = vmatmul.mubr.bf16.gmra.mrb[120].mxu1 %v6345_v61  ;;  %7207 = vmatprep.subr.bf16.mxu1 %v7576_v5  ;;  %v4260_v16 = vrot.slane %v4259_v30, 4  ;;  %v4278_v25 = vrot.slane %v4276_v49, 5  ;;  %v4292_v23 = vrot.slane %v4290_v45, 4  ;;  %v4298_v44 = vrot.slane %v4296_v10, 5  ;;  %v6384_v30 = vld [vmem:[%s7731_s6 + $0x68] sm:$0xee] }
 0x12f   : > { %v4284_v54 = vrot.slane %v4283_v8, 4  ;;  %v4274_v58 = vrot.slane %v4273_v24, 4  ;;  %v6659_v51 = vadd.f32 %v6658_v35, %v6657_v0  ;;  %v1249_v39 = vadd.f32 %v6619_v36, %v8956_v22  ;;  %v6621_v22 = vpop.f32.mrb[23].mxu0 }
 0x130   : > { %7168 = vmatpush3.bf16.msra.mxu0 %v7577_v33  ;;  %v4265_v29 = vsel %vm7772_vm2, %v4260_v16, %v4264_v27  ;;  %v4293_v7 = vor.u32 %v4292_v23, %v4278_v25  ;;  %v4793_v27 = vrot.slane %v7583_v19, 5  ;;  %v4800_v5 = vrot.slane %v9087_v60, 5  ;;  %v6623_v49 = vpop.f32.mrb[24].mxu0 }
 0x131   : > { %7208 = vmatpush3.bf16.msra.mxu1 %v7578_v62  ;;  %7169 = vmatprep.subr.bf16.mxu0 %v7579_v59  ;;  %v4289_v61 = vsel %vm7772_vm2, %v4284_v54, %v4288_v12  ;;  %v4279_v52 = vsel %vm7772_vm2, %v4274_v58, %v4278_v25  ;;  %v9282_v47 = vadd.f32 %v6659_v51, %v1249_v39  ;;  %v6391_v50 = vrot.slane %v6383_v15, 9  ;;  %v6663_v45 = vpop.f32.mrb[24].mxu1  ;;  %v6624_v62 = vpop.f32.mrb[25].mxu0  ;;  %v7584_v59 = vld [vmem:[%s7731_s6 + $0x78] sm:$0xff]  ;;  %v7586_v15 = vld [vmem:[%s7731_s6 + $0xa8] sm:$0xff] }
 0x132   : > { %v6348_v3 = vcombine.high %v4265_v29, %v4289_v61  ;;  %v4294_v21 = vrot.slane %v4293_v7, 4  ;;  %v6347_v18 = vcombine.low %v4265_v29, %v4289_v61  ;;  %7209 = vmatprep.subr.bf16.mxu1 %v7580_v38  ;;  %v6622_v12 = vadd.f32 %v6621_v22, %v6620_v42  ;;  %v6664_v60 = vpop.f32.mrb[25].mxu1  ;;  %v6626_v23 = vpop.f32.mrb[26].mxu0 }
 0x133   : > { %v6662_v26 = vadd.f32 %v6661_v6, %v6660_v17  ;;  %v4799_v8 = vrot.slane %v4793_v27, 4  ;;  %v6392_v24 = vrot.slane %v6384_v30, 9  ;;  %v4794_v0 = vsel %vm7851_vm5, %v6391_v50, %v4793_v27  ;;  %v6627_v58 = vpop.f32.mrb[27].mxu0 }
 0x134   : > { %7170 = vmatpush3.bf16.msra.mxu0 %v7581_v2  ;;  %4677 = vmatprep.mubr.bf16.mxu0 %v6348_v3  ;;  %v4299_v13 = vsel %vm7772_vm2, %v4294_v21, %v4298_v44  ;;  %v1252_v55 = vadd.f32 %v6622_v12, %v8966_v63  ;;  %v4797_v16 = vrot.slane %v7584_v59, 5  ;;  %v4803_v25 = vrot.slane %v9092_v9, 5  ;;  %v6666_v44 = vpop.f32.mrb[26].mxu1  ;;  %v6386_v63 = vld [vmem:[%s7731_s6 + $0x98] sm:$0xee] }
 0x135   : > { %7210 = vmatpush3.bf16.msra.mxu1 %v7582_v37  ;;  %v6350_v10 = vcombine.high %v4279_v52, %v4299_v13  ;;  %4678 = vmatmul.mubr.bf16.gmra.mrb[124].mxu0 %v6347_v18  ;;  %v6349_v33 = vcombine.low %v4279_v52, %v4299_v13  ;;  %v4801_v11 = vsel %vm7851_vm5, %v4799_v8, %v4800_v5  ;;  %v6667_v36 = vpop.f32.mrb[27].mxu1  ;;  %v6393_v51 = vrot.slane %v6385_v40, 9  ;;  %v7585_v18 = vld [vmem:[%s7731_s6 + $0xa0] sm:$0xff] }
 0x136   : > { %v6625_v35 = vadd.f32 %v6624_v62, %v6623_v49  ;;  %v6665_v54 = vadd.f32 %v6664_v60, %v6663_v45  ;;  %v9299_v29 = vadd.f32 %v6662_v26, %v1252_v55  ;;  %v6463_v7 = vcombine.low %v4794_v0, %v4801_v11  ;;  %v6629_v42 = vpop.f32.mrb[28].mxu0  ;;  %v6387_v60 = vld [vmem:[%s7731_s6 + $0xc0] sm:$0xee] }
 0x137   : > { %4742 = vmatprep.mubr.bf16.mxu1 %v6350_v10  ;;  %v6464_v38 = vcombine.high %v4794_v0, %v4801_v11  ;;  %v4798_v9 = vsel %vm7851_vm5, %v6392_v24, %v4797_v16  ;;  %v4802_v39 = vrot.slane %v4797_v16, 4  ;;  %v6628_v2 = vadd.f32 %v6627_v58, %v6626_v23  ;;  %v6630_v52 = vpop.f32.mrb[29].mxu0  ;;  %v6388_v23 = vld [vmem:[%s7731_s6 + $0xc8] sm:$0xee] }
 0x138   : > { %4743 = vmatmul.mubr.bf16.gmra.mrb[124].mxu1 %v6349_v33  ;;  %v1257_v17 = vadd.f32 %v6625_v35, %v9060_v34  ;;  %v6668_v3 = vadd.f32 %v6667_v36, %v6666_v44  ;;  %v4807_v37 = vrot.slane %v7585_v18, 5  ;;  %v4814_v22 = vrot.slane %v9135_v32, 5  ;;  %v6632_v27 = vpop.f32.mrb[30].mxu0 }
 0x139   : > { %v6669_v61 = vpop.f32.mrb[28].mxu1  ;;  %5200 = vmatprep.mubr.bf16.mxu0 %v6464_v38  ;;  %v6394_v6 = vrot.slane %v6386_v63, 9  ;;  %v4811_v19 = vrot.slane %v7586_v15, 5  ;;  %v4804_v13 = vsel %vm7851_vm5, %v4802_v39, %v4803_v25  ;;  %v1260_v34 = vadd.f32 %v6628_v2, %v9073_v41  ;;  %v6633_v50 = vpop.f32.mrb[31].mxu0 }
 0x13a   : > { %v6670_v21 = vpop.f32.mrb[29].mxu1  ;;  %v9309_v12 = vadd.f32 %v6665_v54, %v1257_v17  ;;  %v4817_v26 = vrot.slane %v9138_v31, 5  ;;  %v6465_v49 = vcombine.low %v4798_v9, %v4804_v13  ;;  %v6466_v45 = vcombine.high %v4798_v9, %v4804_v13 }
 0x13b   : > { %v6672_v5 = vpop.f32.mrb[30].mxu1  ;;  %v4808_v32 = vsel %vm7851_vm5, %v6393_v51, %v4807_v37  ;;  %v4813_v10 = vrot.slane %v4807_v37, 4  ;;  %v9315_v24 = vadd.f32 %v6668_v3, %v1260_v34  ;;  %v9319_v62 = vsel %vm7851_vm5, %v6394_v6, %v4811_v19  ;;  %v7587_v3 = vld [vmem:[%s7731_s6 + $0xd0] sm:$0xff]  ;;  %v7588_v6 = vld [vmem:[%s7731_s6 + $0xd8] sm:$0xff] }
 0x13c   : > { %v6673_v30 = vpop.f32.mrb[31].mxu1  ;;  %v4816_v41 = vrot.slane %v4811_v19, 4  ;;  %v6631_v31 = vadd.f32 %v6630_v52, %v6629_v42  ;;  %5265 = vmatprep.mubr.bf16.mxu1 %v6466_v45  ;;  %v6671_v59 = vadd.f32 %v6670_v21, %v6669_v61  ;;  %v6634_v16 = vadd.f32 %v6633_v50, %v6632_v27  ;;  %v6389_v61 = vld [vmem:[%s7731_s6 + $0xf0] sm:$0xee] }
 0x13d   : > { %5201 = vmatmul.mubr.bf16.vlgmr.msra.gmra.mrb[128].mxu0 %v6463_v7  ;;  %v4815_v0 = vsel %vm7851_vm5, %v4813_v10, %v4814_v22  ;;  %v6674_v25 = vadd.f32 %v6673_v30, %v6672_v5  ;;  %v6395_v42 = vrot.slane %v6387_v60, 9  ;;  %v4821_v52 = vrot.slane %v7587_v3, 5 }
 0x13e   : > { %v6691_v33 = vpop.f32.mrb[32].mxu0  ;;  %v6468_v35 = vcombine.high %v4808_v32, %v4815_v0  ;;  %v4818_v54 = vsel %vm7851_vm5, %v4816_v41, %v4817_v26  ;;  %v6467_v58 = vcombine.low %v4808_v32, %v4815_v0  ;;  %v1265_v36 = vadd.f32 %v6631_v31, %v9174_v46 }
 0x13f   : > { %v6692_v40 = vpop.f32.mrb[33].mxu0  ;;  %v6470_v7 = vcombine.high %v9319_v62, %v4818_v54  ;;  %v6469_v38 = vcombine.low %v9319_v62, %v4818_v54  ;;  %v1268_v9 = vadd.f32 %v6634_v16, %v9191_v48  ;;  %v4828_v46 = vrot.slane %v9180_v28, 5 }
 0x140   : > { %v6694_v44 = vpop.f32.mrb[34].mxu0  ;;  %5266 = vmatmul.mubr.bf16.vlgmr.msra.gmra.mrb[128].mxu1 %v6465_v49  ;;  %5208 = vmatprep.mubr.bf16.mxu0 %v6468_v35  ;;  %v9332_v2 = vadd.f32 %v6671_v59, %v1265_v36  ;;  %v6396_v21 = vrot.slane %v6388_v23, 9  ;;  %v4825_v15 = vrot.slane %v7588_v6, 5  ;;  %v4831_v48 = vrot.slane %v9185_v43, 5 }
 0x141   : > { %v6731_v8 = vpop.f32.mrb[32].mxu1  ;;  %v6695_v51 = vpop.f32.mrb[35].mxu0  ;;  %5273 = vmatprep.mubr.bf16.mxu1 %v6470_v7  ;;  %v9336_v22 = vadd.f32 %v6674_v25, %v1268_v9  ;;  %v6693_v19 = vadd.f32 %v6692_v40, %v6691_v33  ;;  %v9342_v13 = vsel %vm7851_vm5, %v6395_v42, %v4821_v52  ;;  %v4827_v34 = vrot.slane %v4821_v52, 4 }
 0x142   : > { %v6732_v55 = vpop.f32.mrb[33].mxu1  ;;  %v6696_v26 = vadd.f32 %v6695_v51, %v6694_v44  ;;  %v9346_v49 = vsel %vm7851_vm5, %v6396_v21, %v4825_v15  ;;  %v4830_v45 = vrot.slane %v4825_v15, 4  ;;  %v6397_v43 = vrot.slane %v6389_v61, 9 }
 0x143   : > { %v6734_v11 = vpop.f32.mrb[34].mxu1  ;;  %v6733_v28 = vadd.f32 %v6732_v55, %v6731_v8  ;;  %v4829_v62 = vsel %vm7851_vm5, %v4827_v34, %v4828_v46  ;;  %v4835_v31 = vrot.slane %v9036_v56, 5  ;;  %v6390_v8 = vld [vmem:[%s7731_s6 + $0xf8] sm:$0xee]  ;;  %v4842_v16 = vrot.slane %v9231_v53, 5 }
 0x144   : > { %v6735_v63 = vpop.f32.mrb[35].mxu1  ;;  %v6472_v55 = vcombine.high %v9342_v13, %v4829_v62  ;;  %v9355_v0 = vsel %vm7851_vm5, %v4830_v45, %v4831_v48  ;;  %v6398_v51 = vrot.slane %v6390_v8, 9 }
 0x145   : > { %v6736_v32 = vadd.f32 %v6735_v63, %v6734_v11  ;;  %5209 = vmatmul.mubr.bf16.gmra.mrb[132].mxu0 %v6467_v58  ;;  %v1840_v41 = vadd.f32 %v6733_v28, %v6693_v19  ;;  %v6474_v44 = vcombine.high %v9346_v49, %v9355_v0  ;;  %v6471_v11 = vcombine.low %v9342_v13, %v4829_v62 }
 0x146   : > { %v6697_v39 = vpop.f32.mrb[36].mxu0  ;;  %v9366_v35 = vsel %vm7851_vm5, %v6397_v43, %v4835_v31  ;;  %5216 = vmatprep.mubr.bf16.mxu0 %v6472_v55  ;;  %v4841_v36 = vrot.slane %v4835_v31, 4  ;;  %v4839_v63 = vrot.slane %v9046_v14, 5 }
 0x147   : > { %v6698_v18 = vpop.f32.mrb[37].mxu0  ;;  %v1843_v59 = vadd.f32 %v6736_v32, %v6696_v26  ;;  %v9362_v56 = vadd.f32 %v1840_v41, %v9233_v4  ;;  %v4845_v4 = vrot.slane %v9236_v20, 5  ;;  %v6473_v20 = vcombine.low %v9346_v49, %v9355_v0 }
 0x148   : > { %v6700_v27 = vpop.f32.mrb[38].mxu0  ;;  %5274 = vmatmul.mubr.bf16.gmra.mrb[132].mxu1 %v6469_v38  ;;  %v6699_v42 = vadd.f32 %v6698_v18, %v6697_v39  ;;  %v9375_v38 = vsel %vm7851_vm5, %v4841_v36, %v4842_v16  ;;  %v4844_v21 = vrot.slane %v4839_v63, 4  ;;  %v7597_v36 = vmov 0  }
 0x149   : > { %v6737_v17 = vpop.f32.mrb[36].mxu1  ;;  %v6701_v50 = vpop.f32.mrb[39].mxu0  ;;  %v9369_v53 = vadd.f32 %v1843_v59, %v9249_v57  ;;  %5281 = vmatprep.mubr.bf16.mxu1 %v6474_v44  ;;  %v9379_v57 = vsel %vm7851_vm5, %v6398_v51, %v4839_v63  ;;  %v6476_v39 = vcombine.high %v9366_v35, %v9375_v38  ;;  %7245 = vset.pattern.permute.xlu0 %v7597_v36 }
 0x14a   : > { %v6738_v37 = vpop.f32.mrb[37].mxu1  ;;  %v6702_v3 = vadd.f32 %v6701_v50, %v6700_v27  ;;  %v9387_v19 = vsel %vm7851_vm5, %v4844_v21, %v4845_v4  ;;  %v6475_v50 = vcombine.low %v9366_v35, %v9375_v38  ;;  %7246 = vset.pattern.permute.xlu1 %v7597_v36 }
 0x14b   : > { %v6740_v5 = vpop.f32.mrb[38].mxu1  ;;  %v6739_v61 = vadd.f32 %v6738_v37, %v6737_v17  ;;  %v6478_v26 = vcombine.high %v9379_v57, %v9387_v19 }
 0x14c   : > { %v6741_v30 = vpop.f32.mrb[39].mxu1 }
 0x14d   : > { %v6742_v14 = vadd.f32 %v6741_v30, %v6740_v5  ;;  %v1848_v17 = vadd.f32 %v6739_v61, %v6699_v42  ;;  %5217 = vmatmul.mubr.bf16.gmra.mrb[136].mxu0 %v6471_v11  ;;  %v5321_v61 = vld [vmem:[%s9586_s3 + $0x8] sm:$0xff] }
 0x14e   : > { %v6703_v10 = vpop.f32.mrb[40].mxu0  ;;  %5224 = vmatprep.mubr.bf16.mxu0 %v6476_v39 }
 0x14f   : > { %v6704_v60 = vpop.f32.mrb[41].mxu0  ;;  %v1851_v27 = vadd.f32 %v6742_v14, %v6702_v3  ;;  %v1872_v30 = vadd.f32 %v1848_v17, %v9282_v47 }
 0x150   : > { %v6706_v25 = vpop.f32.mrb[42].mxu0  ;;  %v6705_v18 = vadd.f32 %v6704_v60, %v6703_v10  ;;  %5282 = vmatmul.mubr.bf16.gmra.mrb[136].mxu1 %v6473_v20 }
 0x151   : > { %v6743_v33 = vpop.f32.mrb[40].mxu1  ;;  %v6707_v54 = vpop.f32.mrb[43].mxu0  ;;  %v1873_v1 = vadd.f32 %v1851_v27, %v9299_v29  ;;  %v5320_v29 = vld [vmem:[%s9586_s3] sm:$0xff]  ;;  %5289 = vmatprep.mubr.bf16.mxu1 %v6478_v26  ;;  %v5326_v27 = vld [vmem:[%s9586_s3 + $0x30] sm:$0xff] }
 0x152   : > { %v6744_v40 = vpop.f32.mrb[41].mxu1  ;;  %v6708_v34 = vadd.f32 %v6707_v54, %v6706_v25  ;;  %5330 = vperm.xlu0 %7245, %v5320_v29  }
 0x153   : > { %v6746_v23 = vpop.f32.mrb[42].mxu1  ;;  %v6745_v13 = vadd.f32 %v6744_v40, %v6743_v33 }
 0x154   : > { %v6747_v58 = vpop.f32.mrb[43].mxu1 }
 0x155   : > { %v6748_v49 = vadd.f32 %v6747_v58, %v6746_v23  ;;  %v1856_v43 = vadd.f32 %v6745_v13, %v6705_v18  ;;  %v5322_v23 = vld [vmem:[%s9586_s3 + $0x10] sm:$0xff]  ;;  %5225 = vmatmul.mubr.bf16.gmra.mrb[140].mxu0 %v6475_v50 }
 0x156   : > { %v6709_v7 = vpop.f32.mrb[44].mxu0  ;;  %5340 = vperm.xlu1 %7246, %v5322_v23   ;;  %5335 = vperm.xlu0 %7245, %v5321_v61  }
 0x157   : > { %v6710_v52 = vpop.f32.mrb[45].mxu0  ;;  %v1859_v31 = vadd.f32 %v6748_v49, %v6708_v34  ;;  %v9396_v47 = vadd.f32 %v1856_v43, %v9309_v12 }
 0x158   : > { %v6712_v6 = vpop.f32.mrb[46].mxu0  ;;  %v6711_v10 = vadd.f32 %v6710_v52, %v6709_v7 }
 0x159   : > { %v6749_v9 = vpop.f32.mrb[44].mxu1  ;;  %v6713_v37 = vpop.f32.mrb[47].mxu0  ;;  %v1875_v44 = vadd.f32 %v1859_v31, %v9315_v24  ;;  %v6477_v24 = vcombine.low %v9379_v57, %v9387_v19  ;;  %v5327_v19 = vld [vmem:[%s9586_s3 + $0x38] sm:$0xff] }
 0x15a   : > { %v6750_v46 = vpop.f32.mrb[45].mxu1  ;;  %v6714_v8 = vadd.f32 %v6713_v37, %v6712_v6 }
 0x15b   : > { %v6752_v15 = vpop.f32.mrb[46].mxu1  ;;  %v6751_v33 = vadd.f32 %v6750_v46, %v6749_v9  ;;  %5290 = vmatmul.mubr.bf16.gmra.mrb[140].mxu1 %v6477_v24 }
 0x15c   : > { %v6753_v48 = vpop.f32.mrb[47].mxu1 }
 0x15d   : > { %v6754_v60 = vadd.f32 %v6753_v48, %v6752_v15  ;;  %v1864_v59 = vadd.f32 %v6751_v33, %v6711_v10  ;;  %v5325_v15 = vld [vmem:[%s9586_s3 + $0x28] sm:$0xff] }
 0x15e   : > { %v6771_v5 = vpop.f32.mrb[48].mxu0 }
 0x15f   : > { %v6772_v45 = vpop.f32.mrb[49].mxu0  ;;  %v1867_v11 = vadd.f32 %v6754_v60, %v6714_v8  ;;  %v9406_v54 = vadd.f32 %v1864_v59, %v9332_v2 }
 0x160   : > { %v6774_v62 = vpop.f32.mrb[50].mxu0  ;;  %v6773_v40 = vadd.f32 %v6772_v45, %v6771_v5 }
 0x161   : > { %v6811_v28 = vpop.f32.mrb[48].mxu1  ;;  %v6775_v55 = vpop.f32.mrb[51].mxu0  ;;  %v9409_v51 = vadd.f32 %v1867_v11, %v9336_v22  ;;  %v5323_v22 = vld [vmem:[%s9586_s3 + $0x18] sm:$0xff] }
 0x162   : > { %v6812_v32 = vpop.f32.mrb[49].mxu1  ;;  %v6776_v25 = vadd.f32 %v6775_v55, %v6774_v62  ;;  %5345 = vperm.xlu1 %7246, %v5323_v22  }
 0x163   : > { %v6814_v41 = vpop.f32.mrb[50].mxu1  ;;  %v6813_v16 = vadd.f32 %v6812_v32, %v6811_v28 }
 0x164   : > { %v6815_v0 = vpop.f32.mrb[51].mxu1 }
 0x165   : > { %v6816_v35 = vadd.f32 %v6815_v0, %v6814_v41  ;;  %v2332_v12 = vadd.f32 %v6813_v16, %v6773_v40 }
 0x166   : > { %v6777_v58 = vpop.f32.mrb[52].mxu0  ;;  %5355 = vperm.xlu1 %7246, %v5325_v15  }
 0x167   : > { %v2335_v63 = vadd.f32 %v6816_v35, %v6776_v25  ;;  %v6778_v7 = vpop.f32.mrb[53].mxu0  ;;  %v9414_v9 = vadd.f32 %v2332_v12, %v9362_v56 }
 0x168   : > { %v6779_v4 = vadd.f32 %v6778_v7, %v6777_v58  ;;  %v6780_v42 = vpop.f32.mrb[54].mxu0 }
 0x169   : > { %v6817_v2 = vpop.f32.mrb[52].mxu1  ;;  %v9423_v3 = vadd.f32 %v2335_v63, %v9369_v53  ;;  %v6781_v46 = vpop.f32.mrb[55].mxu0  ;;  %v5324_v53 = vld [vmem:[%s9586_s3 + $0x20] sm:$0xff] }
 0x16a   : > { %v6818_v52 = vpop.f32.mrb[53].mxu1  ;;  %v6782_v57 = vadd.f32 %v6781_v46, %v6780_v42  ;;  %5350 = vperm.xlu0 %7245, %v5324_v53   ;;  %5365 = vperm.xlu1 %7246, %v5327_v19  }
 0x16b   : > { %v6819_v38 = vadd.f32 %v6818_v52, %v6817_v2  ;;  %v6820_v56 = vpop.f32.mrb[54].mxu1 }
 0x16c   : > { %v6821_v21 = vpop.f32.mrb[55].mxu1 }
 0x16d   : > { %v2340_v14 = vadd.f32 %v6819_v38, %v6779_v4  ;;  %v6822_v6 = vadd.f32 %v6821_v21, %v6820_v56 }
 0x16e   : > { %v6783_v17 = vpop.f32.mrb[56].mxu0  ;;  %5360 = vperm.xlu0 %7245, %v5326_v27  }
 0x16f   : > { %v9431_v20 = vadd.f32 %v2340_v14, %v1872_v30  ;;  %v2343_v39 = vadd.f32 %v6822_v6, %v6782_v57  ;;  %v6784_v48 = vpop.f32.mrb[57].mxu0 }
 0x170   : > { %v6785_v13 = vadd.f32 %v6784_v48, %v6783_v17  ;;  %v6786_v5 = vpop.f32.mrb[58].mxu0 }
 0x171   : > { %v9433_v18 = vadd.f32 %v2343_v39, %v1873_v1  ;;  %v6823_v37 = vpop.f32.mrb[56].mxu1  ;;  %v6787_v50 = vpop.f32.mrb[59].mxu0 }
 0x172   : > { %v6824_v34 = vpop.f32.mrb[57].mxu1  ;;  %v6788_v30 = vadd.f32 %v6787_v50, %v6786_v5 }
 0x173   : > { %v6825_v28 = vadd.f32 %v6824_v34, %v6823_v37  ;;  %v6826_v26 = vpop.f32.mrb[58].mxu1 }
 0x174   : > { %v6827_v49 = vpop.f32.mrb[59].mxu1 }
 0x175   : > { %v2348_v45 = vadd.f32 %v6825_v28, %v6785_v13  ;;  %v6828_v32 = vadd.f32 %v6827_v49, %v6826_v26 }
 0x176   : > { %v6789_v33 = vpop.f32.mrb[60].mxu0 }
 0x177   : > { %v9442_v1 = vadd.f32 %v2348_v45, %v9396_v47  ;;  %v2351_v43 = vadd.f32 %v6828_v32, %v6788_v30  ;;  %v6790_v41 = vpop.f32.mrb[61].mxu0 }
 0x178   : > { %v6791_v31 = vadd.f32 %v6790_v41, %v6789_v33  ;;  %v6792_v60 = vpop.f32.mrb[62].mxu0 }
 0x179   : > { %v9444_v10 = vadd.f32 %v2351_v43, %v1875_v44  ;;  %v6829_v62 = vpop.f32.mrb[60].mxu1  ;;  %v6793_v0 = vpop.f32.mrb[63].mxu0 }
 0x17a   : > { %v6830_v8 = vpop.f32.mrb[61].mxu1  ;;  %v6794_v59 = vadd.f32 %v6793_v0, %v6792_v60 }
 0x17b   : > { %v6831_v40 = vadd.f32 %v6830_v8, %v6829_v62  ;;  %v6832_v55 = vpop.f32.mrb[62].mxu1 }
 0x17c   : > { %v6833_v16 = vpop.f32.mrb[63].mxu1 }
 0x17d   : > { %v2356_v25 = vadd.f32 %v6831_v40, %v6791_v31  ;;  %v6834_v29 = vadd.f32 %v6833_v16, %v6832_v55 }
 0x17e   : > { %v6851_v11 = vpop.f32.mrb[64].mxu0 }
 0x17f   : > { %v9447_v23 = vadd.f32 %v2356_v25, %v9406_v54  ;;  %v2359_v47 = vadd.f32 %v6834_v29, %v6794_v59  ;;  %v6852_v12 = vpop.f32.mrb[65].mxu0 }
 0x180   : > { %v6853_v58 = vadd.f32 %v6852_v12, %v6851_v11  ;;  %v6854_v63 = vpop.f32.mrb[66].mxu0 }
 0x181   : > { %v9450_v44 = vadd.f32 %v2359_v47, %v9409_v51  ;;  %v6891_v35 = vpop.f32.mrb[64].mxu1  ;;  %v6855_v2 = vpop.f32.mrb[67].mxu0 }
 0x182   : > { %v6892_v36 = vpop.f32.mrb[65].mxu1  ;;  %v6856_v4 = vadd.f32 %v6855_v2, %v6854_v63 }
 0x183   : > { %v6893_v7 = vadd.f32 %v6892_v36, %v6891_v35  ;;  %v6894_v24 = vpop.f32.mrb[66].mxu1 }
 0x184   : > { %v6895_v42 = vpop.f32.mrb[67].mxu1 }
 0x185   : > { %v3007_v61 = vadd.f32 %v6893_v7, %v6853_v58  ;;  %v6896_v22 = vadd.f32 %v6895_v42, %v6894_v24 }
 0x186   : > { %v6857_v46 = vpop.f32.mrb[68].mxu0 }
 0x187   : > { %v9453_v54 = vadd.f32 %v3007_v61, %v9414_v9  ;;  %v3010_v52 = vadd.f32 %v6896_v22, %v6856_v4  ;;  %v6858_v56 = vpop.f32.mrb[69].mxu0 }
 0x188   : > { %v6859_v21 = vadd.f32 %v6858_v56, %v6857_v46  ;;  %v6860_v6 = vpop.f32.mrb[70].mxu0 }
 0x189   : > { %v9456_v51 = vadd.f32 %v3010_v52, %v9423_v3  ;;  %v6897_v38 = vpop.f32.mrb[68].mxu1  ;;  %v6861_v53 = vpop.f32.mrb[71].mxu0 }
 0x18a   : > { %v6898_v57 = vpop.f32.mrb[69].mxu1  ;;  %v6862_v37 = vadd.f32 %v6861_v53, %v6860_v6 }
 0x18b   : > { %v6899_v14 = vadd.f32 %v6898_v57, %v6897_v38  ;;  %v6900_v15 = vpop.f32.mrb[70].mxu1 }
 0x18c   : > { %v6901_v39 = vpop.f32.mrb[71].mxu1 }
 0x18d   : > { %v3015_v17 = vadd.f32 %v6899_v14, %v6859_v21  ;;  %v6902_v48 = vadd.f32 %v6901_v39, %v6900_v15 }
 0x18e   : > { %v6863_v27 = vpop.f32.mrb[72].mxu0 }
 0x18f   : > { %v9459_v9 = vadd.f32 %v3015_v17, %v9431_v20  ;;  %v3018_v19 = vadd.f32 %v6902_v48, %v6862_v37  ;;  %v6864_v13 = vpop.f32.mrb[73].mxu0 }
 0x190   : > { %v6865_v34 = vadd.f32 %v6864_v13, %v6863_v27  ;;  %v6866_v5 = vpop.f32.mrb[74].mxu0 }
 0x191   : > { %v9462_v3 = vadd.f32 %v3018_v19, %v9433_v18  ;;  %v6867_v28 = vpop.f32.mrb[75].mxu0  ;;  %v6903_v26 = vpop.f32.mrb[72].mxu1 }
 0x192   : > { %v6868_v50 = vadd.f32 %v6867_v28, %v6866_v5  ;;  %v6904_v30 = vpop.f32.mrb[73].mxu1 }
 0x193   : > { %v6905_v49 = vadd.f32 %v6904_v30, %v6903_v26  ;;  %v6906_v45 = vpop.f32.mrb[74].mxu1 }
 0x194   : > { %v6907_v32 = vpop.f32.mrb[75].mxu1 }
 0x195   : > { %v3023_v43 = vadd.f32 %v6905_v49, %v6865_v34  ;;  %v6908_v33 = vadd.f32 %v6907_v32, %v6906_v45 }
 0x196   : > { %v6869_v41 = vpop.f32.mrb[76].mxu0 }
 0x197   : > { %v9465_v20 = vadd.f32 %v3023_v43, %v9442_v1  ;;  %v3026_v62 = vadd.f32 %v6908_v33, %v6868_v50  ;;  %v6870_v31 = vpop.f32.mrb[77].mxu0 }
 0x198   : > { %v6871_v60 = vadd.f32 %v6870_v31, %v6869_v41  ;;  %v6872_v40 = vpop.f32.mrb[78].mxu0 }
 0x199   : > { %v9468_v18 = vadd.f32 %v3026_v62, %v9444_v10  ;;  %v6909_v8 = vpop.f32.mrb[76].mxu1  ;;  %v6873_v0 = vpop.f32.mrb[79].mxu0 }
 0x19a   : > { %v6910_v55 = vpop.f32.mrb[77].mxu1  ;;  %v6874_v25 = vadd.f32 %v6873_v0, %v6872_v40 }
 0x19b   : > { %v6911_v59 = vadd.f32 %v6910_v55, %v6909_v8  ;;  %v6912_v16 = vpop.f32.mrb[78].mxu1 }
 0x19c   : > { %v6913_v29 = vpop.f32.mrb[79].mxu1 }
 0x19d   : > { %v3031_v47 = vadd.f32 %v6911_v59, %v6871_v60  ;;  %v6914_v11 = vadd.f32 %v6913_v29, %v6912_v16 }
 0x19e   : > { %v6931_v12 = vpop.f32.mrb[80].mxu0 }
 0x19f   : > { %v9471_v1 = vadd.f32 %v3031_v47, %v9447_v23  ;;  %v3034_v35 = vadd.f32 %v6914_v11, %v6874_v25  ;;  %v6932_v10 = vpop.f32.mrb[81].mxu0 }
 0x1a0   : > { %v6933_v63 = vadd.f32 %v6932_v10, %v6931_v12  ;;  %v6934_v7 = vpop.f32.mrb[82].mxu0 }
 0x1a1   : > { %v9474_v58 = vadd.f32 %v3034_v35, %v9450_v44  ;;  %v6971_v36 = vpop.f32.mrb[80].mxu1  ;;  %v6935_v2 = vpop.f32.mrb[83].mxu0 }
 0x1a2   : > { %v6972_v24 = vpop.f32.mrb[81].mxu1  ;;  %v6936_v61 = vadd.f32 %v6935_v2, %v6934_v7 }
 0x1a3   : > { %v6973_v4 = vadd.f32 %v6972_v24, %v6971_v36  ;;  %v6974_v42 = vpop.f32.mrb[82].mxu1 }
 0x1a4   : > { %v6975_v22 = vpop.f32.mrb[83].mxu1 }
 0x1a5   : > { %v3554_v52 = vadd.f32 %v6973_v4, %v6933_v63  ;;  %v6976_v46 = vadd.f32 %v6975_v22, %v6974_v42 }
 0x1a6   : > { %v6937_v56 = vpop.f32.mrb[84].mxu0 }
 0x1a7   : > { %v9477_v23 = vadd.f32 %v3554_v52, %v9453_v54  ;;  %v3557_v38 = vadd.f32 %v6976_v46, %v6936_v61  ;;  %v6938_v57 = vpop.f32.mrb[85].mxu0 }
 0x1a8   : > { %v6939_v14 = vadd.f32 %v6938_v57, %v6937_v56  ;;  %v6940_v6 = vpop.f32.mrb[86].mxu0 }
 0x1a9   : > { %v9480_v44 = vadd.f32 %v3557_v38, %v9456_v51  ;;  %v6977_v21 = vpop.f32.mrb[84].mxu1  ;;  %v6941_v53 = vpop.f32.mrb[87].mxu0 }
 0x1aa   : > { %v6978_v15 = vpop.f32.mrb[85].mxu1  ;;  %v6942_v37 = vadd.f32 %v6941_v53, %v6940_v6 }
 0x1ab   : > { %v6979_v39 = vadd.f32 %v6978_v15, %v6977_v21  ;;  %v6980_v17 = vpop.f32.mrb[86].mxu1 }
 0x1ac   : > { %v6981_v48 = vpop.f32.mrb[87].mxu1 }
 0x1ad   : > { %v3562_v19 = vadd.f32 %v6979_v39, %v6939_v14  ;;  %v6982_v27 = vadd.f32 %v6981_v48, %v6980_v17 }
 0x1ae   : > { %v6943_v34 = vpop.f32.mrb[88].mxu0 }
 0x1af   : > { %v9483_v54 = vadd.f32 %v3562_v19, %v9459_v9  ;;  %v3565_v13 = vadd.f32 %v6982_v27, %v6942_v37  ;;  %v6944_v5 = vpop.f32.mrb[89].mxu0 }
 0x1b0   : > { %v6945_v26 = vadd.f32 %v6944_v5, %v6943_v34  ;;  %v6946_v50 = vpop.f32.mrb[90].mxu0 }
 0x1b1   : > { %v3587_v51 = vadd.f32 %v3565_v13, %v9462_v3  ;;  %v6983_v28 = vpop.f32.mrb[88].mxu1  ;;  %v6947_v49 = vpop.f32.mrb[91].mxu0 }
 0x1b2   : > { %v6984_v30 = vpop.f32.mrb[89].mxu1  ;;  %v6948_v43 = vadd.f32 %v6947_v49, %v6946_v50 }
 0x1b3   : > { %v6985_v45 = vadd.f32 %v6984_v30, %v6983_v28  ;;  %v6986_v32 = vpop.f32.mrb[90].mxu1 }
 0x1b4   : > { %v6987_v33 = vpop.f32.mrb[91].mxu1 }
 0x1b5   : > { %v3570_v62 = vadd.f32 %v6985_v45, %v6945_v26  ;;  %v6988_v41 = vadd.f32 %v6987_v33, %v6986_v32 }
 0x1b6   : > { %v6949_v8 = vpop.f32.mrb[92].mxu0 }
 0x1b7   : > { %v9487_v31 = vadd.f32 %v3570_v62, %v9465_v20  ;;  %v3573_v9 = vadd.f32 %v6988_v41, %v6948_v43  ;;  %v6950_v40 = vpop.f32.mrb[93].mxu0 }
 0x1b8   : > { %v6951_v55 = vadd.f32 %v6950_v40, %v6949_v8  ;;  %v6952_v59 = vpop.f32.mrb[94].mxu0 }
 0x1b9   : > { %v9490_v60 = vadd.f32 %v3573_v9, %v9468_v18  ;;  %v6989_v3 = vpop.f32.mrb[92].mxu1  ;;  %v6953_v29 = vpop.f32.mrb[95].mxu0 }
 0x1ba   : > { %v6990_v0 = vpop.f32.mrb[93].mxu1  ;;  %v6954_v47 = vadd.f32 %v6953_v29, %v6952_v59 }
 0x1bb   : > { %v6991_v16 = vadd.f32 %v6990_v0, %v6989_v3  ;;  %v6992_v25 = vpop.f32.mrb[94].mxu1 }
 0x1bc   : > { %v6993_v11 = vpop.f32.mrb[95].mxu1 }
 0x1bd   : > { %v3578_v35 = vadd.f32 %v6991_v16, %v6951_v55  ;;  %v6994_v12 = vadd.f32 %v6993_v11, %v6992_v25 }
 0x1be   : > { %v7011_v36 = vpop.f32.mrb[96].mxu0 }
 0x1bf   : > { %v9493_v20 = vadd.f32 %v3578_v35, %v9471_v1  ;;  %v3581_v10 = vadd.f32 %v6994_v12, %v6954_v47  ;;  %v7012_v7 = vpop.f32.mrb[97].mxu0 }
 0x1c0   : > { %v7013_v24 = vadd.f32 %v7012_v7, %v7011_v36  ;;  %v7014_v4 = vpop.f32.mrb[98].mxu0 }
 0x1c1   : > { %v9496_v18 = vadd.f32 %v3581_v10, %v9474_v58  ;;  %v7051_v63 = vpop.f32.mrb[96].mxu1  ;;  %v7015_v22 = vpop.f32.mrb[99].mxu0 }
 0x1c2   : > { %v7052_v2 = vpop.f32.mrb[97].mxu1  ;;  %v7016_v52 = vadd.f32 %v7015_v22, %v7014_v4 }
 0x1c3   : > { %v7053_v42 = vadd.f32 %v7052_v2, %v7051_v63  ;;  %v7054_v61 = vpop.f32.mrb[98].mxu1 }
 0x1c4   : > { %v7055_v46 = vpop.f32.mrb[99].mxu1 }
 0x1c5   : > { %v4046_v38 = vadd.f32 %v7053_v42, %v7013_v24  ;;  %v7056_v56 = vadd.f32 %v7055_v46, %v7054_v61 }
 0x1c6   : > { %v7017_v21 = vpop.f32.mrb[100].mxu0 }
 0x1c7   : > { %v9499_v1 = vadd.f32 %v4046_v38, %v9477_v23  ;;  %v4049_v57 = vadd.f32 %v7056_v56, %v7016_v52  ;;  %v7018_v6 = vpop.f32.mrb[101].mxu0 }
 0x1c8   : > { %v7019_v15 = vadd.f32 %v7018_v6, %v7017_v21  ;;  %v7020_v39 = vpop.f32.mrb[102].mxu0 }
 0x1c9   : > { %v9502_v58 = vadd.f32 %v4049_v57, %v9480_v44  ;;  %v7057_v14 = vpop.f32.mrb[100].mxu1  ;;  %v7021_v48 = vpop.f32.mrb[103].mxu0 }
 0x1ca   : > { %v7058_v53 = vpop.f32.mrb[101].mxu1  ;;  %v7022_v19 = vadd.f32 %v7021_v48, %v7020_v39 }
 0x1cb   : > { %v7059_v17 = vadd.f32 %v7058_v53, %v7057_v14  ;;  %v7060_v37 = vpop.f32.mrb[102].mxu1 }
 0x1cc   : > { %v7061_v27 = vpop.f32.mrb[103].mxu1 }
 0x1cd   : > { %v4054_v13 = vadd.f32 %v7059_v17, %v7019_v15  ;;  %v7062_v34 = vadd.f32 %v7061_v27, %v7060_v37 }
 0x1cf   : > { %v9505_v23 = vadd.f32 %v4054_v13, %v9483_v54  ;;  %v4057_v5 = vadd.f32 %v7062_v34, %v7022_v19 }
 0x1d1   : > { %v9507_v28 = vadd.f32 %v4057_v5, %v3587_v51 }
 0x1d6   : > { %v7023_v44 = vpop.f32.mrb[104].mxu0 }
 0x1d7   : > { %v7024_v50 = vpop.f32.mrb[105].mxu0 }
 0x1d8   : > { %v7063_v26 = vpop.f32.mrb[104].mxu1  ;;  %v7025_v30 = vadd.f32 %v7024_v50, %v7023_v44  ;;  %v7026_v45 = vpop.f32.mrb[106].mxu0 }
 0x1d9   : > { %v7064_v49 = vpop.f32.mrb[105].mxu1  ;;  %v7027_v33 = vpop.f32.mrb[107].mxu0 }
 0x1da   : > { %v7065_v32 = vadd.f32 %v7064_v49, %v7063_v26  ;;  %v7066_v43 = vpop.f32.mrb[106].mxu1  ;;  %v7028_v62 = vadd.f32 %v7027_v33, %v7026_v45 }
 0x1db   : > { %v7067_v41 = vpop.f32.mrb[107].mxu1 }
 0x1dc   : > { %v4062_v9 = vadd.f32 %v7065_v32, %v7025_v30  ;;  %v7068_v8 = vadd.f32 %v7067_v41, %v7066_v43 }
 0x1de   : > { %v9510_v3 = vadd.f32 %v4062_v9, %v9487_v31  ;;  %v4065_v54 = vadd.f32 %v7068_v8, %v7028_v62  ;;  %v7029_v40 = vpop.f32.mrb[108].mxu0 }
 0x1df   : > { %v7030_v0 = vpop.f32.mrb[109].mxu0 }
 0x1e0   : > { %v9513_v51 = vadd.f32 %v4065_v54, %v9490_v60  ;;  %v7031_v59 = vadd.f32 %v7030_v0, %v7029_v40  ;;  %v7032_v25 = vpop.f32.mrb[110].mxu0 }
 0x1e1   : > { %v7033_v11 = vpop.f32.mrb[111].mxu0 }
 0x1e2   : > { %v7069_v55 = vpop.f32.mrb[108].mxu1  ;;  %v7034_v35 = vadd.f32 %v7033_v11, %v7032_v25 }
 0x1e3   : > { %v7070_v16 = vpop.f32.mrb[109].mxu1 }
 0x1e4   : > { %v7071_v29 = vadd.f32 %v7070_v16, %v7069_v55  ;;  %v7072_v47 = vpop.f32.mrb[110].mxu1 }
 0x1e5   : > { %v7073_v12 = vpop.f32.mrb[111].mxu1 }
 0x1e6   : > { %v4070_v10 = vadd.f32 %v7071_v29, %v7031_v59  ;;  %v7074_v36 = vadd.f32 %v7073_v12, %v7072_v47 }
 0x1e8   : > { %v9516_v31 = vadd.f32 %v4070_v10, %v9493_v20  ;;  %v4073_v63 = vadd.f32 %v7074_v36, %v7034_v35 }
 0x1ea   : > { %v9519_v60 = vadd.f32 %v4073_v63, %v9496_v18  ;;  %v7091_v7 = vpop.f32.mrb[112].mxu0 }
 0x1eb   : > { %v7131_v24 = vpop.f32.mrb[112].mxu1  ;;  %v7092_v2 = vpop.f32.mrb[113].mxu0 }
 0x1ec   : > { %v7093_v4 = vadd.f32 %v7092_v2, %v7091_v7  ;;  %v7132_v42 = vpop.f32.mrb[113].mxu1  ;;  %v7094_v61 = vpop.f32.mrb[114].mxu0 }
 0x1ed   : > { %v7133_v22 = vadd.f32 %v7132_v42, %v7131_v24  ;;  %v7134_v52 = vpop.f32.mrb[114].mxu1  ;;  %v7095_v46 = vpop.f32.mrb[115].mxu0 }
 0x1ee   : > { %v7096_v38 = vadd.f32 %v7095_v46, %v7094_v61  ;;  %v7135_v56 = vpop.f32.mrb[115].mxu1 }
 0x1ef   : > { %v4721_v57 = vadd.f32 %v7133_v22, %v7093_v4  ;;  %v7136_v21 = vadd.f32 %v7135_v56, %v7134_v52 }
 0x1f1   : > { %v9522_v20 = vadd.f32 %v4721_v57, %v9499_v1  ;;  %v4724_v14 = vadd.f32 %v7136_v21, %v7096_v38 }
 0x1f2   : > { %v7097_v6 = vpop.f32.mrb[116].mxu0 }
 0x1f3   : > { %v9525_v18 = vadd.f32 %v4724_v14, %v9502_v58  ;;  %v7098_v15 = vpop.f32.mrb[117].mxu0  ;;  %v5331_v14 = vpop.permute.xlu0 %5330 }
 0x1f4   : > { %v7099_v53 = vadd.f32 %v7098_v15, %v7097_v6  ;;  %v7100_v39 = vpop.f32.mrb[118].mxu0 }
 0x1f5   : > { %v7101_v17 = vpop.f32.mrb[119].mxu0 }
 0x1f6   : > { %v7137_v37 = vpop.f32.mrb[116].mxu1  ;;  %v7102_v48 = vadd.f32 %v7101_v17, %v7100_v39 }
 0x1f7   : > { %v7138_v19 = vpop.f32.mrb[117].mxu1 }
 0x1f8   : > { %v7139_v27 = vadd.f32 %v7138_v19, %v7137_v37  ;;  %v7140_v13 = vpop.f32.mrb[118].mxu1 }
 0x1f9   : > { %v7141_v34 = vpop.f32.mrb[119].mxu1 }
 0x1fa   : > { %v4729_v5 = vadd.f32 %v7139_v27, %v7099_v53  ;;  %v7142_v44 = vadd.f32 %v7141_v34, %v7140_v13 }
 0x1fc   : > { %v9528_v1 = vadd.f32 %v4729_v5, %v9505_v23  ;;  %v4732_v26 = vadd.f32 %v7142_v44, %v7102_v48  ;;  %v5336_v44 = vpop.permute.xlu0 %5335 }
 0x1fd   : > { %v7103_v50 = vpop.f32.mrb[120].mxu0 }
 0x1fe   : > { %v9531_v58 = vadd.f32 %v4732_v26, %v9507_v28  ;;  %v7104_v30 = vpop.f32.mrb[121].mxu0 }
 0x1ff   : > { %v7105_v49 = vadd.f32 %v7104_v30, %v7103_v50  ;;  %v7106_v45 = vpop.f32.mrb[122].mxu0 }
 0x200   : > { %v7107_v43 = vpop.f32.mrb[123].mxu0 }
 0x201   : > { %v7143_v32 = vpop.f32.mrb[120].mxu1  ;;  %v7108_v62 = vadd.f32 %v7107_v43, %v7106_v45 }
 0x202   : > { %v7144_v33 = vpop.f32.mrb[121].mxu1 }
 0x203   : > { %v7145_v41 = vadd.f32 %v7144_v33, %v7143_v32  ;;  %v7146_v9 = vpop.f32.mrb[122].mxu1  ;;  %v5341_v33 = vpop.permute.xlu1 %5340 }
 0x204   : > { %v7147_v8 = vpop.f32.mrb[123].mxu1 }
 0x205   : > { %v4737_v54 = vadd.f32 %v7145_v41, %v7105_v49  ;;  %v7148_v40 = vadd.f32 %v7147_v8, %v7146_v9 }
 0x207   : > { %v9534_v23 = vadd.f32 %v4737_v54, %v9510_v3  ;;  %v4740_v55 = vadd.f32 %v7148_v40, %v7108_v62 }
 0x208   : > { %v7109_v0 = vpop.f32.mrb[124].mxu0 }
 0x209   : > { %v9537_v28 = vadd.f32 %v4740_v55, %v9513_v51  ;;  %v7110_v59 = vpop.f32.mrb[125].mxu0 }
 0x20a   : > { %v7111_v16 = vadd.f32 %v7110_v59, %v7109_v0  ;;  %v7112_v25 = vpop.f32.mrb[126].mxu0 }
 0x20b   : > { %v7149_v29 = vpop.f32.mrb[124].mxu1  ;;  %v7113_v47 = vpop.f32.mrb[127].mxu0 }
 0x20c   : > { %v7150_v11 = vpop.f32.mrb[125].mxu1  ;;  %v7114_v35 = vadd.f32 %v7113_v47, %v7112_v25 }
 0x20d   : > { %v7151_v12 = vadd.f32 %v7150_v11, %v7149_v29  ;;  %v7152_v10 = vpop.f32.mrb[126].mxu1 }
 0x20e   : > { %v7153_v36 = vpop.f32.mrb[127].mxu1 }
 0x20f   : > { %v4745_v63 = vadd.f32 %v7151_v12, %v7111_v16  ;;  %v7154_v7 = vadd.f32 %v7153_v36, %v7152_v10  ;;  %v5346_v10 = vpop.permute.xlu1 %5345 }
 0x210   : > { %v7171_v24 = vpop.f32.mrb[128].mxu0 }
 0x211   : > { %v9540_v3 = vadd.f32 %v4745_v63, %v9516_v31  ;;  %v4748_v2 = vadd.f32 %v7154_v7, %v7114_v35  ;;  %v7172_v51 = vpop.f32.mrb[129].mxu0  ;;  %v9548_v31 = vld [vmem:[%s9585_s2] ss:$0 sm:$0xff] }
 0x212   : > { %v7173_v4 = vadd.f32 %v7172_v51, %v7171_v24  ;;  %v7174_v42 = vpop.f32.mrb[130].mxu0 }
 0x213   : > { %v9543_v61 = vadd.f32 %v4748_v2, %v9519_v60  ;;  %v7211_v22 = vpop.f32.mrb[128].mxu1  ;;  %v7175_v52 = vpop.f32.mrb[131].mxu0 }
 0x214   : > { %v7212_v46 = vpop.f32.mrb[129].mxu1  ;;  %v7176_v38 = vadd.f32 %v7175_v52, %v7174_v42 }
 0x215   : > { %v7213_v56 = vadd.f32 %v7212_v46, %v7211_v22  ;;  %v7214_v57 = vpop.f32.mrb[130].mxu1 }
 0x216   : > { %v7215_v21 = vpop.f32.mrb[131].mxu1 }
 0x217   : > { %v5268_v6 = vadd.f32 %v7213_v56, %v7173_v4  ;;  %v7216_v15 = vadd.f32 %v7215_v21, %v7214_v57  ;;  %v5351_v56 = vpop.permute.xlu0 %5350 }
 0x218   : > { %v7177_v53 = vpop.f32.mrb[132].mxu0 }
 0x219   : > { %v5271_v39 = vadd.f32 %v7216_v15, %v7176_v38  ;;  %v5298_v60 = vadd.f32 %v5268_v6, %v9522_v20  ;;  %v7178_v17 = vpop.f32.mrb[133].mxu0 }
 0x21a   : > { %v7179_v37 = vadd.f32 %v7178_v17, %v7177_v53  ;;  %v7180_v48 = vpop.f32.mrb[134].mxu0 }
 0x21b   : > { %v5312_v19 = vadd.f32 %v9548_v31, %v5298_v60  ;;  %v7217_v27 = vpop.f32.mrb[132].mxu1  ;;  %v5299_v13 = vadd.f32 %v5271_v39, %v9525_v18  ;;  %v7181_v34 = vpop.f32.mrb[135].mxu0 }
 0x21c   : > { %v7218_v5 = vpop.f32.mrb[133].mxu1  ;;  %v7182_v26 = vadd.f32 %v7181_v34, %v7180_v48 }
 0x21d   : > { %v5368_v20 = vmul.f32 %v5331_v14, %v5312_v19  ;;  %v7219_v50 = vadd.f32 %v7218_v5, %v7217_v27  ;;  %v7220_v30 = vpop.f32.mrb[134].mxu1  ;;  %v5313_v49 = vadd.f32 %v9548_v31, %v5299_v13  ;;  %v5361_v13 = vpop.permute.xlu0 %5360 }
 0x21e   : > { %v7221_v45 = vpop.f32.mrb[135].mxu1 }
 0x21f   : > { %5376 = vst [vmem:[%s9557_s14] sm:$0xff] %v5368_v20  ;;  %v5276_v32 = vadd.f32 %v7219_v50, %v7179_v37  ;;  %v5369_v18 = vmul.f32 %v5336_v44, %v5313_v49  ;;  %v7222_v43 = vadd.f32 %v7221_v45, %v7220_v30 }
 0x220   : > { %v7183_v62 = vpop.f32.mrb[136].mxu0 }
 0x221   : > { %5377 = vst [vmem:[%s9557_s14 + $0x8] sm:$0xff] %v5369_v18  ;;  %v5279_v41 = vadd.f32 %v7222_v43, %v7182_v26  ;;  %v5300_v9 = vadd.f32 %v5276_v32, %v9528_v1  ;;  %v7184_v8 = vpop.f32.mrb[137].mxu0 }
 0x222   : > { %v7185_v54 = vadd.f32 %v7184_v8, %v7183_v62  ;;  %v7186_v40 = vpop.f32.mrb[138].mxu0 }
 0x223   : > { %v5314_v55 = vadd.f32 %v9548_v31, %v5300_v9  ;;  %v5301_v0 = vadd.f32 %v5279_v41, %v9531_v58  ;;  %v7223_v59 = vpop.f32.mrb[136].mxu1  ;;  %v7187_v16 = vpop.f32.mrb[139].mxu0 }
 0x224   : > { %v7224_v25 = vpop.f32.mrb[137].mxu1  ;;  %v7188_v29 = vadd.f32 %v7187_v16, %v7186_v40 }
 0x225   : > { %v5370_v47 = vmul.f32 %v5341_v33, %v5314_v55  ;;  %v5315_v11 = vadd.f32 %v9548_v31, %v5301_v0  ;;  %v7225_v35 = vadd.f32 %v7224_v25, %v7223_v59  ;;  %v7226_v12 = vpop.f32.mrb[138].mxu1 }
 0x226   : > { %v7227_v1 = vpop.f32.mrb[139].mxu1 }
 0x227   : > { %5378 = vst [vmem:[%s9557_s14 + $0x10] sm:$0xff] %v5370_v47  ;;  %v5371_v36 = vmul.f32 %v5346_v10, %v5315_v11  ;;  %v5284_v63 = vadd.f32 %v7225_v35, %v7185_v54  ;;  %v7228_v7 = vadd.f32 %v7227_v1, %v7226_v12 }
 0x228   : > { %v7189_v24 = vpop.f32.mrb[140].mxu0 }
 0x229   : > { %5379 = vst [vmem:[%s9557_s14 + $0x18] sm:$0xff] %v5371_v36  ;;  %v5287_v2 = vadd.f32 %v7228_v7, %v7188_v29  ;;  %v5302_v58 = vadd.f32 %v5284_v63, %v9534_v23  ;;  %v7190_v51 = vpop.f32.mrb[141].mxu0  ;;  %v5356_v23 = vpop.permute.xlu1 %5355 }
 0x22a   : > { %v7191_v4 = vadd.f32 %v7190_v51, %v7189_v24  ;;  %v7192_v42 = vpop.f32.mrb[142].mxu0 }
 0x22b   : > { %v5303_v22 = vadd.f32 %v5287_v2, %v9537_v28  ;;  %v5316_v52 = vadd.f32 %v9548_v31, %v5302_v58  ;;  %v7193_v38 = vpop.f32.mrb[143].mxu0 }
 0x22c   : > { %v7194_v21 = vadd.f32 %v7193_v38, %v7192_v42 }
 0x22d   : > { %v5317_v14 = vadd.f32 %v9548_v31, %v5303_v22  ;;  %v5372_v6 = vmul.f32 %v5351_v56, %v5316_v52  ;;  %v5366_v44 = vpop.permute.xlu1 %5365 }
 0x22e   : > { %v7229_v46 = vpop.f32.mrb[140].mxu1 }
 0x22f   : > { %v7230_v57 = vpop.f32.mrb[141].mxu1  ;;  %v5373_v60 = vmul.f32 %v5356_v23, %v5317_v14  ;;  %5380 = vst [vmem:[%s9557_s14 + $0x20] sm:$0xff] %v5372_v6 }
 0x230   : > { %v7231_v15 = vadd.f32 %v7230_v57, %v7229_v46  ;;  %v7232_v53 = vpop.f32.mrb[142].mxu1 }
 0x231   : > { %v7233_v39 = vpop.f32.mrb[143].mxu1  ;;  %5381 = vst [vmem:[%s9557_s14 + $0x28] sm:$0xff] %v5373_v60 }
 0x232   : > { %v5292_v28 = vadd.f32 %v7231_v15, %v7191_v4  ;;  %v7234_v17 = vadd.f32 %v7233_v39, %v7232_v53 }
 0x234   : > { %v5304_v37 = vadd.f32 %v5292_v28, %v9540_v3  ;;  %v5295_v48 = vadd.f32 %v7234_v17, %v7194_v21 }
 0x236   : > { %v5318_v19 = vadd.f32 %v9548_v31, %v5304_v37  ;;  %v5305_v27 = vadd.f32 %v5295_v48, %v9543_v61 }
 0x238   : > { %v5374_v34 = vmul.f32 %v5361_v13, %v5318_v19  ;;  %v5319_v5 = vadd.f32 %v9548_v31, %v5305_v27 }
 0x23a   : > { %5382 = vst [vmem:[%s9557_s14 + $0x30] sm:$0xff] %v5374_v34  ;;  %v5375_v26 = vmul.f32 %v5366_v44, %v5319_v5 }
 0x23c   : > { %5383 = vst [vmem:[%s9557_s14 + $0x38] sm:$0xff] %v5375_v26 }
 0x23d PF: > { %s14_s15 = sadd.s32 1, %s7595_s15  }
 0x23e   : > { %p11_p4 = scmp.ge.s32.totalorder %s14_s15, 4  }
 0x240   :  { %13 = sbr.rel (!%p11_p4) target bundleno = 1 (0x1), region = 76 }

</bundles_post_ra>
